<compile_context>
chip_gen: v7x
topology: tpu7x:2x2x1
jax: 0.10.0
libtpu: 0.0.40
codegen_flags: <defaults>
</compile_context>

<pallas_src>
import math
import functools

import jax
import jax.numpy as jnp
from jax.experimental import pallas as pl
from jax.experimental.pallas import tpu as pltpu

LEAKY_ALPHA = 0.02   # the module's default leaky_alpha (note: nn.LeakyReLU default is 0.01)
BN_EPS = 1e-5


# --------------------------------------------------------------------------- #
# Fused kernel: (Conv3x3 + BN + LeakyReLU) x 2 for one batch image.
# --------------------------------------------------------------------------- #
def _double_conv_kernel(xw_ref, w1_ref, b1_ref, mask_ref, w2_ref, b2_ref,
                        o_ref, y1_ref, *, H, W, alpha):
    """
    xw_ref  : (5, (H+4)*W, Cin)   5 width-shifted copies of the pad-2 input,
                                  flattened row-major over (H+4, W).
    w1_ref  : (9, Cin, Cmid)      BN-folded conv1 weights, tap-major (ki*3+kj).
    b1_ref  : (1, Cmid)           folded conv1 bias.
    mask_ref: (3, (H+2)*W, 1)     interior masks (zero ring == conv2's zero pad).
    w2_ref  : (9, Cmid, Cout)     BN-folded conv2 weights.
    b2_ref  : (1, Cout)           folded conv2 bias.
    o_ref   : (H*W, Cout)         output block (real channels only).
    y1_ref  : (3, (H+2)*W, Cmid)  VMEM scratch: zero-padded conv1 output in
                                  3 width-shifted copies (conv2's tap source).
    """
    Hp = H + 2
    HpW = Hp * W
    HW = H * W
    cmid = w1_ref.shape[-1]
    cout = w2_ref.shape[-1]

    # ---- Stage 1: conv1 + BN + LeakyReLU, intermediate kept in VMEM ----
    # Y[kj2][i, j] == y1pad[i, j + kj2]  (y1pad = zero-padded conv1 output)
    for kj2 in range(3):
        acc = jnp.zeros((HpW, cmid), jnp.float32)
        for ki1 in range(3):
            for kj1 in range(3):
                tap = xw_ref[kj2 + kj1, pl.ds(ki1 * W, HpW), :]       # (HpW, Cin)
                acc += jnp.dot(tap, w1_ref[ki1 * 3 + kj1],
                               preferred_element_type=jnp.float32)
        y = acc + b1_ref[...]
        y = jnp.maximum(y, alpha * y)               # LeakyReLU
        y1_ref[kj2] = y * mask_ref[kj2]             # force the padding ring to 0

    # ---- Stage 2: conv2 + BN + LeakyReLU straight out of VMEM ----
    acc2 = jnp.zeros((HW, cout), jnp.float32)
    for ki2 in range(3):
        for kj2 in range(3):
            tap = y1_ref[kj2, pl.ds(ki2 * W, HW), :]                  # (HW, Cmid)
            acc2 += jnp.dot(tap, w2_ref[ki2 * 3 + kj2],
                            preferred_element_type=jnp.float32)
    y2 = acc2 + b2_ref[...]
    o_ref[...] = jnp.maximum(y2, alpha * y2).astype(o_ref.dtype)


# --------------------------------------------------------------------------- #
# Wrapper (NCHW in / NCHW out, matching the PyTorch module)
# --------------------------------------------------------------------------- #
def double_conv_forward(x_nchw, params, *, alpha=LEAKY_ALPHA):
    x = jnp.transpose(x_nchw, (0, 2, 3, 1)).astype(jnp.float32)       # NHWC
    N, H, W, cin = x.shape
    w1, b1 = params["l1"]["w"], params["l1"]["b"]
    w2, b2 = params["l2"]["w"], params["l2"]["b"]
    cmid, cout = w1.shape[-1], w2.shape[-1]
    Hp = H + 2
    HpW = Hp * W

    # Pad by 2 (conv1 pad=1 composed with conv2 pad=1) and pre-build the 5
    # width-shifted flattened views so every in-kernel tap is an aligned slice.
    xp2 = jnp.pad(x, ((0, 0), (2, 2), (2, 2), (0, 0)))                # (N,H+4,W+4,Cin)
    xw = jnp.stack([xp2[:, :, s:s + W, :] for s in range(5)], axis=1)
    xw = xw.reshape(N, 5, (H + 4) * W, cin)

    # Interior masks: mask[s][i, j] = 1 iff (i, j+s) is an interior cell of the
    # zero-padded (H+2, W+2) conv1 output grid.
    ii = jnp.arange(Hp)[:, None]
    jj = jnp.arange(W)[None, :]
    mask = jnp.stack(
        [((ii >= 1) & (ii <= H) & (jj + s >= 1) & (jj + s <= W)).astype(jnp.float32)
         for s in range(3)], axis=0).reshape(3, HpW, 1)

    kernel = functools.partial(_double_conv_kernel, H=H, W=W, alpha=alpha)
    out = pl.pallas_call(
        kernel,
        out_shape=jax.ShapeDtypeStruct((N, H * W, cout), jnp.float32),
        grid=(N,),
        in_specs=[
            pl.BlockSpec((None, 5, (H + 4) * W, cin), lambda n: (n, 0, 0, 0)),
            pl.BlockSpec((9, cin, cmid), lambda n: (0, 0, 0)),
            pl.BlockSpec((1, cmid), lambda n: (0, 0)),
            pl.BlockSpec((3, HpW, 1), lambda n: (0, 0, 0)),
            pl.BlockSpec((9, cmid, cout), lambda n: (0, 0, 0)),
            pl.BlockSpec((1, cout), lambda n: (0, 0)),
        ],
        out_specs=pl.BlockSpec((None, H * W, cout), lambda n: (n, 0, 0)),
        scratch_shapes=[pltpu.VMEM((3, HpW, cmid), jnp.float32)],
        compiler_params=pltpu.CompilerParams(
            dimension_semantics=("parallel",),      # 2 steps -> one per v7x TC
        ),
    )(xw, w1, b1, mask, w2, b2)

    out = out.reshape(N, H, W, cout)
    return jnp.transpose(out, (0, 3, 1, 2))                           # back to NCHW


# --------------------------------------------------------------------------- #
# Parameter prep: fold Conv bias + BN (inference) into weights/bias (f32, no pad)
# --------------------------------------------------------------------------- #
def prepare_conv_bn(conv_w, conv_b, bn, eps=BN_EPS):
    """conv_w: PyTorch layout (Cout, Cin, kh, kw) -> {'w': (kh*kw, Cin, Cout), 'b': (1, Cout)}."""
    cout, cin, kh, kw = conv_w.shape
    assert kh == 3 and kw == 3, "fused kernel implements the 3x3/s1/p1 default"
    scale = bn["gamma"] / jnp.sqrt(bn["var"] + eps)
    w = jnp.transpose(conv_w, (2, 3, 1, 0)).reshape(kh * kw, cin, cout)
    w = (w * scale[None, None, :]).astype(jnp.float32)
    b = (bn["beta"] + (conv_b - bn["mean"]) * scale).reshape(1, cout).astype(jnp.float32)
    return {"w": w, "b": b}


# --------------------------------------------------------------------------- #
# Deterministic init mirroring the PyTorch module defaults
# --------------------------------------------------------------------------- #
def init_double_conv(key, inp, outp, midp=None, kernel_size=3):
    if not midp:
        midp = outp
    keys = jax.random.split(key, 4)

    def conv_init(kw_, kb_, cout, cin):
        fan_in = cin * kernel_size * kernel_size
        bound = 1.0 / math.sqrt(fan_in)
        w = jax.random.uniform(kw_, (cout, cin, kernel_size, kernel_size),
                               jnp.float32, -bound, bound)
        b = jax.random.uniform(kb_, (cout,), jnp.float32, -bound, bound)
        return w, b

    def bn_init(c):
        return {"gamma": jnp.ones((c,), jnp.float32),
                "beta": jnp.zeros((c,), jnp.float32),
                "mean": jnp.zeros((c,), jnp.float32),
                "var": jnp.ones((c,), jnp.float32)}

    w1, b1 = conv_init(keys[0], keys[1], midp, inp)
    w2, b2 = conv_init(keys[2], keys[3], outp, midp)
    return {"conv1_w": w1, "conv1_b": b1, "bn1": bn_init(midp),
            "conv2_w": w2, "conv2_b": b2, "bn2": bn_init(outp)}


# --------------------------------------------------------------------------- #
# Pure-JAX reference (correctness check only)
# --------------------------------------------------------------------------- #
def reference_forward(x_nchw, raw, alpha=LEAKY_ALPHA, eps=BN_EPS):
    def block(x, w, b, bn):
        y = jax.lax.conv_general_dilated(
            x, w, window_strides=(1, 1), padding=((1, 1), (1, 1)),
            dimension_numbers=("NCHW", "OIHW", "NCHW"))
        y = y + b[None, :, None, None]
        scale = bn["gamma"] / jnp.sqrt(bn["var"] + eps)
        y = (y - bn["mean"][None, :, None, None]) * scale[None, :, None, None] \
            + bn["beta"][None, :, None, None]
        return jnp.maximum(y, alpha * y)

    x = block(x_nchw, raw["conv1_w"], raw["conv1_b"], raw["bn1"])
    x = block(x, raw["conv2_w"], raw["conv2_b"], raw["bn2"])
    return x


# --------------------------------------------------------------------------- #
if __name__ == "__main__":
    key = jax.random.PRNGKey(0)
    pkey, xkey = jax.random.split(key)

    INP, OUTP = 4, 8            # midp defaults to outp (as in the module)
    N, H, W = 2, 16, 16

    raw = init_double_conv(pkey, INP, OUTP)
    prepared = {
        "l1": prepare_conv_bn(raw["conv1_w"], raw["conv1_b"], raw["bn1"]),
        "l2": prepare_conv_bn(raw["conv2_w"], raw["conv2_b"], raw["bn2"]),
    }

    x = jax.random.normal(xkey, (N, INP, H, W), jnp.float32)

    fwd = jax.jit(double_conv_forward)
    out = jax.block_until_ready(fwd(x, prepared))

    assert out.shape == (N, OUTP, H, W)
    assert bool(jnp.all(jnp.isfinite(out)))

    ref = reference_forward(x, raw)
    assert bool(jnp.allclose(out, ref, atol=2e-2, rtol=2e-2)), \
        "Pallas DoubleConv deviates from reference"

    print("KERNEL_OK")
</pallas_src>

<mosaic_0001>
module attributes {stable_mosaic.version = 11 : i64} {
  func.func @_double_conv_kernel(%arg0: i32, %arg1: memref<1x5x320x4xf32, #tpu.memory_space<vmem>>, %arg2: memref<9x4x8xf32, #tpu.memory_space<vmem>>, %arg3: memref<1x8xf32, #tpu.memory_space<vmem>>, %arg4: memref<3x288x1xf32, #tpu.memory_space<vmem>>, %arg5: memref<9x8x8xf32, #tpu.memory_space<vmem>>, %arg6: memref<1x8xf32, #tpu.memory_space<vmem>>, %arg7: memref<1x256x8xf32, #tpu.memory_space<vmem>>, %arg8: memref<3x288x8xf32, #tpu.memory_space<vmem>>) attributes {dimension_semantics = [#tpu.dimension_semantics<parallel>], iteration_bounds = array<i64: 2>, scalar_prefetch = 0 : i64, scratch_operands = 1 : i64, tpu.core_type = #tpu.core_type<tc>, window_params = [{transform_indices = @transform_0, window_bounds = array<i64: 1, 5, 320, 4>}, {pipeline_mode = #tpu.pipeline_mode<synchronous>, transform_indices = @transform_1, window_bounds = array<i64: 9, 4, 8>}, {pipeline_mode = #tpu.pipeline_mode<synchronous>, transform_indices = @transform_2, window_bounds = array<i64: 1, 8>}, {pipeline_mode = #tpu.pipeline_mode<synchronous>, transform_indices = @transform_3, window_bounds = array<i64: 3, 288, 1>}, {pipeline_mode = #tpu.pipeline_mode<synchronous>, transform_indices = @transform_4, window_bounds = array<i64: 9, 8, 8>}, {pipeline_mode = #tpu.pipeline_mode<synchronous>, transform_indices = @transform_5, window_bounds = array<i64: 1, 8>}, {transform_indices = @transform_6, window_bounds = array<i64: 1, 256, 8>}]} {
    %cst = arith.constant 0.000000e+00 : f32
    %0 = vector.broadcast %cst : f32 to vector<288x8xf32>
    %c0 = arith.constant 0 : index
    %c0_0 = arith.constant 0 : index
    %c0_1 = arith.constant 0 : index
    %c0_2 = arith.constant 0 : index
    %1 = vector.load %arg1[%c0, %c0_0, %c0_1, %c0_2] : memref<1x5x320x4xf32, #tpu.memory_space<vmem>>, vector<1x1x288x4xf32>
    %2 = vector.shape_cast %1 : vector<1x1x288x4xf32> to vector<288x4xf32>
    %c0_3 = arith.constant 0 : index
    %c0_4 = arith.constant 0 : index
    %c0_5 = arith.constant 0 : index
    %3 = vector.load %arg2[%c0_3, %c0_4, %c0_5] : memref<9x4x8xf32, #tpu.memory_space<vmem>>, vector<1x4x8xf32>
    %4 = vector.shape_cast %3 : vector<1x4x8xf32> to vector<4x8xf32>
    %cst_6 = arith.constant dense<0.000000e+00> : vector<288x8xf32>
    %5 = tpu.matmul %2, %4, %cst_6 {dimension_numbers = #tpu.dot_dimension_numbers<[1], [0], [0], [1], [0, 0, 1, 1], [], []>} : vector<288x4xf32>, vector<4x8xf32>, vector<288x8xf32> -> vector<288x8xf32>
    %6 = arith.addf %0, %5 : vector<288x8xf32>
    %c0_7 = arith.constant 0 : index
    %c1 = arith.constant 1 : index
    %c0_8 = arith.constant 0 : index
    %c0_9 = arith.constant 0 : index
    %7 = vector.load %arg1[%c0_7, %c1, %c0_8, %c0_9] : memref<1x5x320x4xf32, #tpu.memory_space<vmem>>, vector<1x1x288x4xf32>
    %8 = vector.shape_cast %7 : vector<1x1x288x4xf32> to vector<288x4xf32>
    %c1_10 = arith.constant 1 : index
    %c0_11 = arith.constant 0 : index
    %c0_12 = arith.constant 0 : index
    %9 = vector.load %arg2[%c1_10, %c0_11, %c0_12] : memref<9x4x8xf32, #tpu.memory_space<vmem>>, vector<1x4x8xf32>
    %10 = vector.shape_cast %9 : vector<1x4x8xf32> to vector<4x8xf32>
    %cst_13 = arith.constant dense<0.000000e+00> : vector<288x8xf32>
    %11 = tpu.matmul %8, %10, %cst_13 {dimension_numbers = #tpu.dot_dimension_numbers<[1], [0], [0], [1], [0, 0, 1, 1], [], []>} : vector<288x4xf32>, vector<4x8xf32>, vector<288x8xf32> -> vector<288x8xf32>
    %12 = arith.addf %6, %11 : vector<288x8xf32>
    %c0_14 = arith.constant 0 : index
    %c2 = arith.constant 2 : index
    %c0_15 = arith.constant 0 : index
    %c0_16 = arith.constant 0 : index
    %13 = vector.load %arg1[%c0_14, %c2, %c0_15, %c0_16] : memref<1x5x320x4xf32, #tpu.memory_space<vmem>>, vector<1x1x288x4xf32>
    %14 = vector.shape_cast %13 : vector<1x1x288x4xf32> to vector<288x4xf32>
    %c2_17 = arith.constant 2 : index
    %c0_18 = arith.constant 0 : index
    %c0_19 = arith.constant 0 : index
    %15 = vector.load %arg2[%c2_17, %c0_18, %c0_19] : memref<9x4x8xf32, #tpu.memory_space<vmem>>, vector<1x4x8xf32>
    %16 = vector.shape_cast %15 : vector<1x4x8xf32> to vector<4x8xf32>
    %cst_20 = arith.constant dense<0.000000e+00> : vector<288x8xf32>
    %17 = tpu.matmul %14, %16, %cst_20 {dimension_numbers = #tpu.dot_dimension_numbers<[1], [0], [0], [1], [0, 0, 1, 1], [], []>} : vector<288x4xf32>, vector<4x8xf32>, vector<288x8xf32> -> vector<288x8xf32>
    %18 = arith.addf %12, %17 : vector<288x8xf32>
    %c0_21 = arith.constant 0 : index
    %c0_22 = arith.constant 0 : index
    %c16 = arith.constant 16 : index
    %c0_23 = arith.constant 0 : index
    %19 = vector.load %arg1[%c0_21, %c0_22, %c16, %c0_23] : memref<1x5x320x4xf32, #tpu.memory_space<vmem>>, vector<1x1x288x4xf32>
    %20 = vector.shape_cast %19 : vector<1x1x288x4xf32> to vector<288x4xf32>
    %c3 = arith.constant 3 : index
    %c0_24 = arith.constant 0 : index
    %c0_25 = arith.constant 0 : index
    %21 = vector.load %arg2[%c3, %c0_24, %c0_25] : memref<9x4x8xf32, #tpu.memory_space<vmem>>, vector<1x4x8xf32>
    %22 = vector.shape_cast %21 : vector<1x4x8xf32> to vector<4x8xf32>
    %cst_26 = arith.constant dense<0.000000e+00> : vector<288x8xf32>
    %23 = tpu.matmul %20, %22, %cst_26 {dimension_numbers = #tpu.dot_dimension_numbers<[1], [0], [0], [1], [0, 0, 1, 1], [], []>} : vector<288x4xf32>, vector<4x8xf32>, vector<288x8xf32> -> vector<288x8xf32>
    %24 = arith.addf %18, %23 : vector<288x8xf32>
    %c0_27 = arith.constant 0 : index
    %c1_28 = arith.constant 1 : index
    %c16_29 = arith.constant 16 : index
    %c0_30 = arith.constant 0 : index
    %25 = vector.load %arg1[%c0_27, %c1_28, %c16_29, %c0_30] : memref<1x5x320x4xf32, #tpu.memory_space<vmem>>, vector<1x1x288x4xf32>
    %26 = vector.shape_cast %25 : vector<1x1x288x4xf32> to vector<288x4xf32>
    %c4 = arith.constant 4 : index
    %c0_31 = arith.constant 0 : index
    %c0_32 = arith.constant 0 : index
    %27 = vector.load %arg2[%c4, %c0_31, %c0_32] : memref<9x4x8xf32, #tpu.memory_space<vmem>>, vector<1x4x8xf32>
    %28 = vector.shape_cast %27 : vector<1x4x8xf32> to vector<4x8xf32>
    %cst_33 = arith.constant dense<0.000000e+00> : vector<288x8xf32>
    %29 = tpu.matmul %26, %28, %cst_33 {dimension_numbers = #tpu.dot_dimension_numbers<[1], [0], [0], [1], [0, 0, 1, 1], [], []>} : vector<288x4xf32>, vector<4x8xf32>, vector<288x8xf32> -> vector<288x8xf32>
    %30 = arith.addf %24, %29 : vector<288x8xf32>
    %c0_34 = arith.constant 0 : index
    %c2_35 = arith.constant 2 : index
    %c16_36 = arith.constant 16 : index
    %c0_37 = arith.constant 0 : index
    %31 = vector.load %arg1[%c0_34, %c2_35, %c16_36, %c0_37] : memref<1x5x320x4xf32, #tpu.memory_space<vmem>>, vector<1x1x288x4xf32>
    %32 = vector.shape_cast %31 : vector<1x1x288x4xf32> to vector<288x4xf32>
    %c5 = arith.constant 5 : index
    %c0_38 = arith.constant 0 : index
    %c0_39 = arith.constant 0 : index
    %33 = vector.load %arg2[%c5, %c0_38, %c0_39] : memref<9x4x8xf32, #tpu.memory_space<vmem>>, vector<1x4x8xf32>
    %34 = vector.shape_cast %33 : vector<1x4x8xf32> to vector<4x8xf32>
    %cst_40 = arith.constant dense<0.000000e+00> : vector<288x8xf32>
    %35 = tpu.matmul %32, %34, %cst_40 {dimension_numbers = #tpu.dot_dimension_numbers<[1], [0], [0], [1], [0, 0, 1, 1], [], []>} : vector<288x4xf32>, vector<4x8xf32>, vector<288x8xf32> -> vector<288x8xf32>
    %36 = arith.addf %30, %35 : vector<288x8xf32>
    %c0_41 = arith.constant 0 : index
    %c0_42 = arith.constant 0 : index
    %c32 = arith.constant 32 : index
    %c0_43 = arith.constant 0 : index
    %37 = vector.load %arg1[%c0_41, %c0_42, %c32, %c0_43] : memref<1x5x320x4xf32, #tpu.memory_space<vmem>>, vector<1x1x288x4xf32>
    %38 = vector.shape_cast %37 : vector<1x1x288x4xf32> to vector<288x4xf32>
    %c6 = arith.constant 6 : index
    %c0_44 = arith.constant 0 : index
    %c0_45 = arith.constant 0 : index
    %39 = vector.load %arg2[%c6, %c0_44, %c0_45] : memref<9x4x8xf32, #tpu.memory_space<vmem>>, vector<1x4x8xf32>
    %40 = vector.shape_cast %39 : vector<1x4x8xf32> to vector<4x8xf32>
    %cst_46 = arith.constant dense<0.000000e+00> : vector<288x8xf32>
    %41 = tpu.matmul %38, %40, %cst_46 {dimension_numbers = #tpu.dot_dimension_numbers<[1], [0], [0], [1], [0, 0, 1, 1], [], []>} : vector<288x4xf32>, vector<4x8xf32>, vector<288x8xf32> -> vector<288x8xf32>
    %42 = arith.addf %36, %41 : vector<288x8xf32>
    %c0_47 = arith.constant 0 : index
    %c1_48 = arith.constant 1 : index
    %c32_49 = arith.constant 32 : index
    %c0_50 = arith.constant 0 : index
    %43 = vector.load %arg1[%c0_47, %c1_48, %c32_49, %c0_50] : memref<1x5x320x4xf32, #tpu.memory_space<vmem>>, vector<1x1x288x4xf32>
    %44 = vector.shape_cast %43 : vector<1x1x288x4xf32> to vector<288x4xf32>
    %c7 = arith.constant 7 : index
    %c0_51 = arith.constant 0 : index
    %c0_52 = arith.constant 0 : index
    %45 = vector.load %arg2[%c7, %c0_51, %c0_52] : memref<9x4x8xf32, #tpu.memory_space<vmem>>, vector<1x4x8xf32>
    %46 = vector.shape_cast %45 : vector<1x4x8xf32> to vector<4x8xf32>
    %cst_53 = arith.constant dense<0.000000e+00> : vector<288x8xf32>
    %47 = tpu.matmul %44, %46, %cst_53 {dimension_numbers = #tpu.dot_dimension_numbers<[1], [0], [0], [1], [0, 0, 1, 1], [], []>} : vector<288x4xf32>, vector<4x8xf32>, vector<288x8xf32> -> vector<288x8xf32>
    %48 = arith.addf %42, %47 : vector<288x8xf32>
    %c0_54 = arith.constant 0 : index
    %c2_55 = arith.constant 2 : index
    %c32_56 = arith.constant 32 : index
    %c0_57 = arith.constant 0 : index
    %49 = vector.load %arg1[%c0_54, %c2_55, %c32_56, %c0_57] : memref<1x5x320x4xf32, #tpu.memory_space<vmem>>, vector<1x1x288x4xf32>
    %50 = vector.shape_cast %49 : vector<1x1x288x4xf32> to vector<288x4xf32>
    %c8 = arith.constant 8 : index
    %c0_58 = arith.constant 0 : index
    %c0_59 = arith.constant 0 : index
    %51 = vector.load %arg2[%c8, %c0_58, %c0_59] : memref<9x4x8xf32, #tpu.memory_space<vmem>>, vector<1x4x8xf32>
    %52 = vector.shape_cast %51 : vector<1x4x8xf32> to vector<4x8xf32>
    %cst_60 = arith.constant dense<0.000000e+00> : vector<288x8xf32>
    %53 = tpu.matmul %50, %52, %cst_60 {dimension_numbers = #tpu.dot_dimension_numbers<[1], [0], [0], [1], [0, 0, 1, 1], [], []>} : vector<288x4xf32>, vector<4x8xf32>, vector<288x8xf32> -> vector<288x8xf32>
    %54 = arith.addf %48, %53 : vector<288x8xf32>
    %c0_61 = arith.constant 0 : index
    %c0_62 = arith.constant 0 : index
    %55 = vector.load %arg3[%c0_61, %c0_62] : memref<1x8xf32, #tpu.memory_space<vmem>>, vector<1x8xf32>
    %56 = vector.broadcast %55 : vector<1x8xf32> to vector<288x8xf32>
    %57 = arith.addf %54, %56 : vector<288x8xf32>
    %cst_63 = arith.constant 2.000000e-02 : f32
    %58 = vector.broadcast %cst_63 : f32 to vector<288x8xf32>
    %59 = arith.mulf %58, %57 : vector<288x8xf32>
    %60 = arith.maximumf %57, %59 : vector<288x8xf32>
    %c0_64 = arith.constant 0 : index
    %c0_65 = arith.constant 0 : index
    %c0_66 = arith.constant 0 : index
    %61 = vector.load %arg4[%c0_64, %c0_65, %c0_66] : memref<3x288x1xf32, #tpu.memory_space<vmem>>, vector<1x288x1xf32>
    %62 = vector.shape_cast %61 : vector<1x288x1xf32> to vector<288x1xf32>
    %63 = vector.broadcast %62 : vector<288x1xf32> to vector<288x8xf32>
    %64 = arith.mulf %60, %63 : vector<288x8xf32>
    %c0_67 = arith.constant 0 : index
    %c0_68 = arith.constant 0 : index
    %c0_69 = arith.constant 0 : index
    %65 = vector.load %arg8[%c0_67, %c0_68, %c0_69] : memref<3x288x8xf32, #tpu.memory_space<vmem>>, vector<1x288x8xf32>
    %66 = vector.shape_cast %65 : vector<1x288x8xf32> to vector<288x8xf32>
    %67 = vector.shape_cast %64 : vector<288x8xf32> to vector<1x288x8xf32>
    tpu.vector_store %arg8[%c0_67, %c0_68, %c0_69], %67 {strides = array<i32>} : memref<3x288x8xf32, #tpu.memory_space<vmem>>, vector<1x288x8xf32>,
    %cst_70 = arith.constant 0.000000e+00 : f32
    %68 = vector.broadcast %cst_70 : f32 to vector<288x8xf32>
    %c0_71 = arith.constant 0 : index
    %c1_72 = arith.constant 1 : index
    %c0_73 = arith.constant 0 : index
    %c0_74 = arith.constant 0 : index
    %69 = vector.load %arg1[%c0_71, %c1_72, %c0_73, %c0_74] : memref<1x5x320x4xf32, #tpu.memory_space<vmem>>, vector<1x1x288x4xf32>
    %70 = vector.shape_cast %69 : vector<1x1x288x4xf32> to vector<288x4xf32>
    %c0_75 = arith.constant 0 : index
    %c0_76 = arith.constant 0 : index
    %c0_77 = arith.constant 0 : index
    %71 = vector.load %arg2[%c0_75, %c0_76, %c0_77] : memref<9x4x8xf32, #tpu.memory_space<vmem>>, vector<1x4x8xf32>
    %72 = vector.shape_cast %71 : vector<1x4x8xf32> to vector<4x8xf32>
    %cst_78 = arith.constant dense<0.000000e+00> : vector<288x8xf32>
    %73 = tpu.matmul %70, %72, %cst_78 {dimension_numbers = #tpu.dot_dimension_numbers<[1], [0], [0], [1], [0, 0, 1, 1], [], []>} : vector<288x4xf32>, vector<4x8xf32>, vector<288x8xf32> -> vector<288x8xf32>
    %74 = arith.addf %68, %73 : vector<288x8xf32>
    %c0_79 = arith.constant 0 : index
    %c2_80 = arith.constant 2 : index
    %c0_81 = arith.constant 0 : index
    %c0_82 = arith.constant 0 : index
    %75 = vector.load %arg1[%c0_79, %c2_80, %c0_81, %c0_82] : memref<1x5x320x4xf32, #tpu.memory_space<vmem>>, vector<1x1x288x4xf32>
    %76 = vector.shape_cast %75 : vector<1x1x288x4xf32> to vector<288x4xf32>
    %c1_83 = arith.constant 1 : index
    %c0_84 = arith.constant 0 : index
    %c0_85 = arith.constant 0 : index
    %77 = vector.load %arg2[%c1_83, %c0_84, %c0_85] : memref<9x4x8xf32, #tpu.memory_space<vmem>>, vector<1x4x8xf32>
    %78 = vector.shape_cast %77 : vector<1x4x8xf32> to vector<4x8xf32>
    %cst_86 = arith.constant dense<0.000000e+00> : vector<288x8xf32>
    %79 = tpu.matmul %76, %78, %cst_86 {dimension_numbers = #tpu.dot_dimension_numbers<[1], [0], [0], [1], [0, 0, 1, 1], [], []>} : vector<288x4xf32>, vector<4x8xf32>, vector<288x8xf32> -> vector<288x8xf32>
    %80 = arith.addf %74, %79 : vector<288x8xf32>
    %c0_87 = arith.constant 0 : index
    %c3_88 = arith.constant 3 : index
    %c0_89 = arith.constant 0 : index
    %c0_90 = arith.constant 0 : index
    %81 = vector.load %arg1[%c0_87, %c3_88, %c0_89, %c0_90] : memref<1x5x320x4xf32, #tpu.memory_space<vmem>>, vector<1x1x288x4xf32>
    %82 = vector.shape_cast %81 : vector<1x1x288x4xf32> to vector<288x4xf32>
    %c2_91 = arith.constant 2 : index
    %c0_92 = arith.constant 0 : index
    %c0_93 = arith.constant 0 : index
    %83 = vector.load %arg2[%c2_91, %c0_92, %c0_93] : memref<9x4x8xf32, #tpu.memory_space<vmem>>, vector<1x4x8xf32>
    %84 = vector.shape_cast %83 : vector<1x4x8xf32> to vector<4x8xf32>
    %cst_94 = arith.constant dense<0.000000e+00> : vector<288x8xf32>
    %85 = tpu.matmul %82, %84, %cst_94 {dimension_numbers = #tpu.dot_dimension_numbers<[1], [0], [0], [1], [0, 0, 1, 1], [], []>} : vector<288x4xf32>, vector<4x8xf32>, vector<288x8xf32> -> vector<288x8xf32>
    %86 = arith.addf %80, %85 : vector<288x8xf32>
    %c0_95 = arith.constant 0 : index
    %c1_96 = arith.constant 1 : index
    %c16_97 = arith.constant 16 : index
    %c0_98 = arith.constant 0 : index
    %87 = vector.load %arg1[%c0_95, %c1_96, %c16_97, %c0_98] : memref<1x5x320x4xf32, #tpu.memory_space<vmem>>, vector<1x1x288x4xf32>
    %88 = vector.shape_cast %87 : vector<1x1x288x4xf32> to vector<288x4xf32>
    %c3_99 = arith.constant 3 : index
    %c0_100 = arith.constant 0 : index
    %c0_101 = arith.constant 0 : index
    %89 = vector.load %arg2[%c3_99, %c0_100, %c0_101] : memref<9x4x8xf32, #tpu.memory_space<vmem>>, vector<1x4x8xf32>
    %90 = vector.shape_cast %89 : vector<1x4x8xf32> to vector<4x8xf32>
    %cst_102 = arith.constant dense<0.000000e+00> : vector<288x8xf32>
    %91 = tpu.matmul %88, %90, %cst_102 {dimension_numbers = #tpu.dot_dimension_numbers<[1], [0], [0], [1], [0, 0, 1, 1], [], []>} : vector<288x4xf32>, vector<4x8xf32>, vector<288x8xf32> -> vector<288x8xf32>
    %92 = arith.addf %86, %91 : vector<288x8xf32>
    %c0_103 = arith.constant 0 : index
    %c2_104 = arith.constant 2 : index
    %c16_105 = arith.constant 16 : index
    %c0_106 = arith.constant 0 : index
    %93 = vector.load %arg1[%c0_103, %c2_104, %c16_105, %c0_106] : memref<1x5x320x4xf32, #tpu.memory_space<vmem>>, vector<1x1x288x4xf32>
    %94 = vector.shape_cast %93 : vector<1x1x288x4xf32> to vector<288x4xf32>
    %c4_107 = arith.constant 4 : index
    %c0_108 = arith.constant 0 : index
    %c0_109 = arith.constant 0 : index
    %95 = vector.load %arg2[%c4_107, %c0_108, %c0_109] : memref<9x4x8xf32, #tpu.memory_space<vmem>>, vector<1x4x8xf32>
    %96 = vector.shape_cast %95 : vector<1x4x8xf32> to vector<4x8xf32>
    %cst_110 = arith.constant dense<0.000000e+00> : vector<288x8xf32>
    %97 = tpu.matmul %94, %96, %cst_110 {dimension_numbers = #tpu.dot_dimension_numbers<[1], [0], [0], [1], [0, 0, 1, 1], [], []>} : vector<288x4xf32>, vector<4x8xf32>, vector<288x8xf32> -> vector<288x8xf32>
    %98 = arith.addf %92, %97 : vector<288x8xf32>
    %c0_111 = arith.constant 0 : index
    %c3_112 = arith.constant 3 : index
    %c16_113 = arith.constant 16 : index
    %c0_114 = arith.constant 0 : index
    %99 = vector.load %arg1[%c0_111, %c3_112, %c16_113, %c0_114] : memref<1x5x320x4xf32, #tpu.memory_space<vmem>>, vector<1x1x288x4xf32>
    %100 = vector.shape_cast %99 : vector<1x1x288x4xf32> to vector<288x4xf32>
    %c5_115 = arith.constant 5 : index
    %c0_116 = arith.constant 0 : index
    %c0_117 = arith.constant 0 : index
    %101 = vector.load %arg2[%c5_115, %c0_116, %c0_117] : memref<9x4x8xf32, #tpu.memory_space<vmem>>, vector<1x4x8xf32>
    %102 = vector.shape_cast %101 : vector<1x4x8xf32> to vector<4x8xf32>
    %cst_118 = arith.constant dense<0.000000e+00> : vector<288x8xf32>
    %103 = tpu.matmul %100, %102, %cst_118 {dimension_numbers = #tpu.dot_dimension_numbers<[1], [0], [0], [1], [0, 0, 1, 1], [], []>} : vector<288x4xf32>, vector<4x8xf32>, vector<288x8xf32> -> vector<288x8xf32>
    %104 = arith.addf %98, %103 : vector<288x8xf32>
    %c0_119 = arith.constant 0 : index
    %c1_120 = arith.constant 1 : index
    %c32_121 = arith.constant 32 : index
    %c0_122 = arith.constant 0 : index
    %105 = vector.load %arg1[%c0_119, %c1_120, %c32_121, %c0_122] : memref<1x5x320x4xf32, #tpu.memory_space<vmem>>, vector<1x1x288x4xf32>
    %106 = vector.shape_cast %105 : vector<1x1x288x4xf32> to vector<288x4xf32>
    %c6_123 = arith.constant 6 : index
    %c0_124 = arith.constant 0 : index
    %c0_125 = arith.constant 0 : index
    %107 = vector.load %arg2[%c6_123, %c0_124, %c0_125] : memref<9x4x8xf32, #tpu.memory_space<vmem>>, vector<1x4x8xf32>
    %108 = vector.shape_cast %107 : vector<1x4x8xf32> to vector<4x8xf32>
    %cst_126 = arith.constant dense<0.000000e+00> : vector<288x8xf32>
    %109 = tpu.matmul %106, %108, %cst_126 {dimension_numbers = #tpu.dot_dimension_numbers<[1], [0], [0], [1], [0, 0, 1, 1], [], []>} : vector<288x4xf32>, vector<4x8xf32>, vector<288x8xf32> -> vector<288x8xf32>
    %110 = arith.addf %104, %109 : vector<288x8xf32>
    %c0_127 = arith.constant 0 : index
    %c2_128 = arith.constant 2 : index
    %c32_129 = arith.constant 32 : index
    %c0_130 = arith.constant 0 : index
    %111 = vector.load %arg1[%c0_127, %c2_128, %c32_129, %c0_130] : memref<1x5x320x4xf32, #tpu.memory_space<vmem>>, vector<1x1x288x4xf32>
    %112 = vector.shape_cast %111 : vector<1x1x288x4xf32> to vector<288x4xf32>
    %c7_131 = arith.constant 7 : index
    %c0_132 = arith.constant 0 : index
    %c0_133 = arith.constant 0 : index
    %113 = vector.load %arg2[%c7_131, %c0_132, %c0_133] : memref<9x4x8xf32, #tpu.memory_space<vmem>>, vector<1x4x8xf32>
    %114 = vector.shape_cast %113 : vector<1x4x8xf32> to vector<4x8xf32>
    %cst_134 = arith.constant dense<0.000000e+00> : vector<288x8xf32>
    %115 = tpu.matmul %112, %114, %cst_134 {dimension_numbers = #tpu.dot_dimension_numbers<[1], [0], [0], [1], [0, 0, 1, 1], [], []>} : vector<288x4xf32>, vector<4x8xf32>, vector<288x8xf32> -> vector<288x8xf32>
    %116 = arith.addf %110, %115 : vector<288x8xf32>
    %c0_135 = arith.constant 0 : index
    %c3_136 = arith.constant 3 : index
    %c32_137 = arith.constant 32 : index
    %c0_138 = arith.constant 0 : index
    %117 = vector.load %arg1[%c0_135, %c3_136, %c32_137, %c0_138] : memref<1x5x320x4xf32, #tpu.memory_space<vmem>>, vector<1x1x288x4xf32>
    %118 = vector.shape_cast %117 : vector<1x1x288x4xf32> to vector<288x4xf32>
    %c8_139 = arith.constant 8 : index
    %c0_140 = arith.constant 0 : index
    %c0_141 = arith.constant 0 : index
    %119 = vector.load %arg2[%c8_139, %c0_140, %c0_141] : memref<9x4x8xf32, #tpu.memory_space<vmem>>, vector<1x4x8xf32>
    %120 = vector.shape_cast %119 : vector<1x4x8xf32> to vector<4x8xf32>
    %cst_142 = arith.constant dense<0.000000e+00> : vector<288x8xf32>
    %121 = tpu.matmul %118, %120, %cst_142 {dimension_numbers = #tpu.dot_dimension_numbers<[1], [0], [0], [1], [0, 0, 1, 1], [], []>} : vector<288x4xf32>, vector<4x8xf32>, vector<288x8xf32> -> vector<288x8xf32>
    %122 = arith.addf %116, %121 : vector<288x8xf32>
    %c0_143 = arith.constant 0 : index
    %c0_144 = arith.constant 0 : index
    %123 = vector.load %arg3[%c0_143, %c0_144] : memref<1x8xf32, #tpu.memory_space<vmem>>, vector<1x8xf32>
    %124 = vector.broadcast %123 : vector<1x8xf32> to vector<288x8xf32>
    %125 = arith.addf %122, %124 : vector<288x8xf32>
    %cst_145 = arith.constant 2.000000e-02 : f32
    %126 = vector.broadcast %cst_145 : f32 to vector<288x8xf32>
    %127 = arith.mulf %126, %125 : vector<288x8xf32>
    %128 = arith.maximumf %125, %127 : vector<288x8xf32>
    %c1_146 = arith.constant 1 : index
    %c0_147 = arith.constant 0 : index
    %c0_148 = arith.constant 0 : index
    %129 = vector.load %arg4[%c1_146, %c0_147, %c0_148] : memref<3x288x1xf32, #tpu.memory_space<vmem>>, vector<1x288x1xf32>
    %130 = vector.shape_cast %129 : vector<1x288x1xf32> to vector<288x1xf32>
    %131 = vector.broadcast %130 : vector<288x1xf32> to vector<288x8xf32>
    %132 = arith.mulf %128, %131 : vector<288x8xf32>
    %c1_149 = arith.constant 1 : index
    %c0_150 = arith.constant 0 : index
    %c0_151 = arith.constant 0 : index
    %133 = vector.load %arg8[%c1_149, %c0_150, %c0_151] : memref<3x288x8xf32, #tpu.memory_space<vmem>>, vector<1x288x8xf32>
    %134 = vector.shape_cast %133 : vector<1x288x8xf32> to vector<288x8xf32>
    %135 = vector.shape_cast %132 : vector<288x8xf32> to vector<1x288x8xf32>
    tpu.vector_store %arg8[%c1_149, %c0_150, %c0_151], %135 {strides = array<i32>} : memref<3x288x8xf32, #tpu.memory_space<vmem>>, vector<1x288x8xf32>,
    %cst_152 = arith.constant 0.000000e+00 : f32
    %136 = vector.broadcast %cst_152 : f32 to vector<288x8xf32>
    %c0_153 = arith.constant 0 : index
    %c2_154 = arith.constant 2 : index
    %c0_155 = arith.constant 0 : index
    %c0_156 = arith.constant 0 : index
    %137 = vector.load %arg1[%c0_153, %c2_154, %c0_155, %c0_156] : memref<1x5x320x4xf32, #tpu.memory_space<vmem>>, vector<1x1x288x4xf32>
    %138 = vector.shape_cast %137 : vector<1x1x288x4xf32> to vector<288x4xf32>
    %c0_157 = arith.constant 0 : index
    %c0_158 = arith.constant 0 : index
    %c0_159 = arith.constant 0 : index
    %139 = vector.load %arg2[%c0_157, %c0_158, %c0_159] : memref<9x4x8xf32, #tpu.memory_space<vmem>>, vector<1x4x8xf32>
    %140 = vector.shape_cast %139 : vector<1x4x8xf32> to vector<4x8xf32>
    %cst_160 = arith.constant dense<0.000000e+00> : vector<288x8xf32>
    %141 = tpu.matmul %138, %140, %cst_160 {dimension_numbers = #tpu.dot_dimension_numbers<[1], [0], [0], [1], [0, 0, 1, 1], [], []>} : vector<288x4xf32>, vector<4x8xf32>, vector<288x8xf32> -> vector<288x8xf32>
    %142 = arith.addf %136, %141 : vector<288x8xf32>
    %c0_161 = arith.constant 0 : index
    %c3_162 = arith.constant 3 : index
    %c0_163 = arith.constant 0 : index
    %c0_164 = arith.constant 0 : index
    %143 = vector.load %arg1[%c0_161, %c3_162, %c0_163, %c0_164] : memref<1x5x320x4xf32, #tpu.memory_space<vmem>>, vector<1x1x288x4xf32>
    %144 = vector.shape_cast %143 : vector<1x1x288x4xf32> to vector<288x4xf32>
    %c1_165 = arith.constant 1 : index
    %c0_166 = arith.constant 0 : index
    %c0_167 = arith.constant 0 : index
    %145 = vector.load %arg2[%c1_165, %c0_166, %c0_167] : memref<9x4x8xf32, #tpu.memory_space<vmem>>, vector<1x4x8xf32>
    %146 = vector.shape_cast %145 : vector<1x4x8xf32> to vector<4x8xf32>
    %cst_168 = arith.constant dense<0.000000e+00> : vector<288x8xf32>
    %147 = tpu.matmul %144, %146, %cst_168 {dimension_numbers = #tpu.dot_dimension_numbers<[1], [0], [0], [1], [0, 0, 1, 1], [], []>} : vector<288x4xf32>, vector<4x8xf32>, vector<288x8xf32> -> vector<288x8xf32>
    %148 = arith.addf %142, %147 : vector<288x8xf32>
    %c0_169 = arith.constant 0 : index
    %c4_170 = arith.constant 4 : index
    %c0_171 = arith.constant 0 : index
    %c0_172 = arith.constant 0 : index
    %149 = vector.load %arg1[%c0_169, %c4_170, %c0_171, %c0_172] : memref<1x5x320x4xf32, #tpu.memory_space<vmem>>, vector<1x1x288x4xf32>
    %150 = vector.shape_cast %149 : vector<1x1x288x4xf32> to vector<288x4xf32>
    %c2_173 = arith.constant 2 : index
    %c0_174 = arith.constant 0 : index
    %c0_175 = arith.constant 0 : index
    %151 = vector.load %arg2[%c2_173, %c0_174, %c0_175] : memref<9x4x8xf32, #tpu.memory_space<vmem>>, vector<1x4x8xf32>
    %152 = vector.shape_cast %151 : vector<1x4x8xf32> to vector<4x8xf32>
    %cst_176 = arith.constant dense<0.000000e+00> : vector<288x8xf32>
    %153 = tpu.matmul %150, %152, %cst_176 {dimension_numbers = #tpu.dot_dimension_numbers<[1], [0], [0], [1], [0, 0, 1, 1], [], []>} : vector<288x4xf32>, vector<4x8xf32>, vector<288x8xf32> -> vector<288x8xf32>
    %154 = arith.addf %148, %153 : vector<288x8xf32>
    %c0_177 = arith.constant 0 : index
    %c2_178 = arith.constant 2 : index
    %c16_179 = arith.constant 16 : index
    %c0_180 = arith.constant 0 : index
    %155 = vector.load %arg1[%c0_177, %c2_178, %c16_179, %c0_180] : memref<1x5x320x4xf32, #tpu.memory_space<vmem>>, vector<1x1x288x4xf32>
    %156 = vector.shape_cast %155 : vector<1x1x288x4xf32> to vector<288x4xf32>
    %c3_181 = arith.constant 3 : index
    %c0_182 = arith.constant 0 : index
    %c0_183 = arith.constant 0 : index
    %157 = vector.load %arg2[%c3_181, %c0_182, %c0_183] : memref<9x4x8xf32, #tpu.memory_space<vmem>>, vector<1x4x8xf32>
    %158 = vector.shape_cast %157 : vector<1x4x8xf32> to vector<4x8xf32>
    %cst_184 = arith.constant dense<0.000000e+00> : vector<288x8xf32>
    %159 = tpu.matmul %156, %158, %cst_184 {dimension_numbers = #tpu.dot_dimension_numbers<[1], [0], [0], [1], [0, 0, 1, 1], [], []>} : vector<288x4xf32>, vector<4x8xf32>, vector<288x8xf32> -> vector<288x8xf32>
    %160 = arith.addf %154, %159 : vector<288x8xf32>
    %c0_185 = arith.constant 0 : index
    %c3_186 = arith.constant 3 : index
    %c16_187 = arith.constant 16 : index
    %c0_188 = arith.constant 0 : index
    %161 = vector.load %arg1[%c0_185, %c3_186, %c16_187, %c0_188] : memref<1x5x320x4xf32, #tpu.memory_space<vmem>>, vector<1x1x288x4xf32>
    %162 = vector.shape_cast %161 : vector<1x1x288x4xf32> to vector<288x4xf32>
    %c4_189 = arith.constant 4 : index
    %c0_190 = arith.constant 0 : index
    %c0_191 = arith.constant 0 : index
    %163 = vector.load %arg2[%c4_189, %c0_190, %c0_191] : memref<9x4x8xf32, #tpu.memory_space<vmem>>, vector<1x4x8xf32>
    %164 = vector.shape_cast %163 : vector<1x4x8xf32> to vector<4x8xf32>
    %cst_192 = arith.constant dense<0.000000e+00> : vector<288x8xf32>
    %165 = tpu.matmul %162, %164, %cst_192 {dimension_numbers = #tpu.dot_dimension_numbers<[1], [0], [0], [1], [0, 0, 1, 1], [], []>} : vector<288x4xf32>, vector<4x8xf32>, vector<288x8xf32> -> vector<288x8xf32>
    %166 = arith.addf %160, %165 : vector<288x8xf32>
    %c0_193 = arith.constant 0 : index
    %c4_194 = arith.constant 4 : index
    %c16_195 = arith.constant 16 : index
    %c0_196 = arith.constant 0 : index
    %167 = vector.load %arg1[%c0_193, %c4_194, %c16_195, %c0_196] : memref<1x5x320x4xf32, #tpu.memory_space<vmem>>, vector<1x1x288x4xf32>
    %168 = vector.shape_cast %167 : vector<1x1x288x4xf32> to vector<288x4xf32>
    %c5_197 = arith.constant 5 : index
    %c0_198 = arith.constant 0 : index
    %c0_199 = arith.constant 0 : index
    %169 = vector.load %arg2[%c5_197, %c0_198, %c0_199] : memref<9x4x8xf32, #tpu.memory_space<vmem>>, vector<1x4x8xf32>
    %170 = vector.shape_cast %169 : vector<1x4x8xf32> to vector<4x8xf32>
    %cst_200 = arith.constant dense<0.000000e+00> : vector<288x8xf32>
    %171 = tpu.matmul %168, %170, %cst_200 {dimension_numbers = #tpu.dot_dimension_numbers<[1], [0], [0], [1], [0, 0, 1, 1], [], []>} : vector<288x4xf32>, vector<4x8xf32>, vector<288x8xf32> -> vector<288x8xf32>
    %172 = arith.addf %166, %171 : vector<288x8xf32>
    %c0_201 = arith.constant 0 : index
    %c2_202 = arith.constant 2 : index
    %c32_203 = arith.constant 32 : index
    %c0_204 = arith.constant 0 : index
    %173 = vector.load %arg1[%c0_201, %c2_202, %c32_203, %c0_204] : memref<1x5x320x4xf32, #tpu.memory_space<vmem>>, vector<1x1x288x4xf32>
    %174 = vector.shape_cast %173 : vector<1x1x288x4xf32> to vector<288x4xf32>
    %c6_205 = arith.constant 6 : index
    %c0_206 = arith.constant 0 : index
    %c0_207 = arith.constant 0 : index
    %175 = vector.load %arg2[%c6_205, %c0_206, %c0_207] : memref<9x4x8xf32, #tpu.memory_space<vmem>>, vector<1x4x8xf32>
    %176 = vector.shape_cast %175 : vector<1x4x8xf32> to vector<4x8xf32>
    %cst_208 = arith.constant dense<0.000000e+00> : vector<288x8xf32>
    %177 = tpu.matmul %174, %176, %cst_208 {dimension_numbers = #tpu.dot_dimension_numbers<[1], [0], [0], [1], [0, 0, 1, 1], [], []>} : vector<288x4xf32>, vector<4x8xf32>, vector<288x8xf32> -> vector<288x8xf32>
    %178 = arith.addf %172, %177 : vector<288x8xf32>
    %c0_209 = arith.constant 0 : index
    %c3_210 = arith.constant 3 : index
    %c32_211 = arith.constant 32 : index
    %c0_212 = arith.constant 0 : index
    %179 = vector.load %arg1[%c0_209, %c3_210, %c32_211, %c0_212] : memref<1x5x320x4xf32, #tpu.memory_space<vmem>>, vector<1x1x288x4xf32>
    %180 = vector.shape_cast %179 : vector<1x1x288x4xf32> to vector<288x4xf32>
    %c7_213 = arith.constant 7 : index
    %c0_214 = arith.constant 0 : index
    %c0_215 = arith.constant 0 : index
    %181 = vector.load %arg2[%c7_213, %c0_214, %c0_215] : memref<9x4x8xf32, #tpu.memory_space<vmem>>, vector<1x4x8xf32>
    %182 = vector.shape_cast %181 : vector<1x4x8xf32> to vector<4x8xf32>
    %cst_216 = arith.constant dense<0.000000e+00> : vector<288x8xf32>
    %183 = tpu.matmul %180, %182, %cst_216 {dimension_numbers = #tpu.dot_dimension_numbers<[1], [0], [0], [1], [0, 0, 1, 1], [], []>} : vector<288x4xf32>, vector<4x8xf32>, vector<288x8xf32> -> vector<288x8xf32>
    %184 = arith.addf %178, %183 : vector<288x8xf32>
    %c0_217 = arith.constant 0 : index
    %c4_218 = arith.constant 4 : index
    %c32_219 = arith.constant 32 : index
    %c0_220 = arith.constant 0 : index
    %185 = vector.load %arg1[%c0_217, %c4_218, %c32_219, %c0_220] : memref<1x5x320x4xf32, #tpu.memory_space<vmem>>, vector<1x1x288x4xf32>
    %186 = vector.shape_cast %185 : vector<1x1x288x4xf32> to vector<288x4xf32>
    %c8_221 = arith.constant 8 : index
    %c0_222 = arith.constant 0 : index
    %c0_223 = arith.constant 0 : index
    %187 = vector.load %arg2[%c8_221, %c0_222, %c0_223] : memref<9x4x8xf32, #tpu.memory_space<vmem>>, vector<1x4x8xf32>
    %188 = vector.shape_cast %187 : vector<1x4x8xf32> to vector<4x8xf32>
    %cst_224 = arith.constant dense<0.000000e+00> : vector<288x8xf32>
    %189 = tpu.matmul %186, %188, %cst_224 {dimension_numbers = #tpu.dot_dimension_numbers<[1], [0], [0], [1], [0, 0, 1, 1], [], []>} : vector<288x4xf32>, vector<4x8xf32>, vector<288x8xf32> -> vector<288x8xf32>
    %190 = arith.addf %184, %189 : vector<288x8xf32>
    %c0_225 = arith.constant 0 : index
    %c0_226 = arith.constant 0 : index
    %191 = vector.load %arg3[%c0_225, %c0_226] : memref<1x8xf32, #tpu.memory_space<vmem>>, vector<1x8xf32>
    %192 = vector.broadcast %191 : vector<1x8xf32> to vector<288x8xf32>
    %193 = arith.addf %190, %192 : vector<288x8xf32>
    %cst_227 = arith.constant 2.000000e-02 : f32
    %194 = vector.broadcast %cst_227 : f32 to vector<288x8xf32>
    %195 = arith.mulf %194, %193 : vector<288x8xf32>
    %196 = arith.maximumf %193, %195 : vector<288x8xf32>
    %c2_228 = arith.constant 2 : index
    %c0_229 = arith.constant 0 : index
    %c0_230 = arith.constant 0 : index
    %197 = vector.load %arg4[%c2_228, %c0_229, %c0_230] : memref<3x288x1xf32, #tpu.memory_space<vmem>>, vector<1x288x1xf32>
    %198 = vector.shape_cast %197 : vector<1x288x1xf32> to vector<288x1xf32>
    %199 = vector.broadcast %198 : vector<288x1xf32> to vector<288x8xf32>
    %200 = arith.mulf %196, %199 : vector<288x8xf32>
    %c2_231 = arith.constant 2 : index
    %c0_232 = arith.constant 0 : index
    %c0_233 = arith.constant 0 : index
    %201 = vector.load %arg8[%c2_231, %c0_232, %c0_233] : memref<3x288x8xf32, #tpu.memory_space<vmem>>, vector<1x288x8xf32>
    %202 = vector.shape_cast %201 : vector<1x288x8xf32> to vector<288x8xf32>
    %203 = vector.shape_cast %200 : vector<288x8xf32> to vector<1x288x8xf32>
    tpu.vector_store %arg8[%c2_231, %c0_232, %c0_233], %203 {strides = array<i32>} : memref<3x288x8xf32, #tpu.memory_space<vmem>>, vector<1x288x8xf32>,
    %cst_234 = arith.constant 0.000000e+00 : f32
    %204 = vector.broadcast %cst_234 : f32 to vector<256x8xf32>
    %c0_235 = arith.constant 0 : index
    %c0_236 = arith.constant 0 : index
    %c0_237 = arith.constant 0 : index
    %205 = vector.load %arg8[%c0_235, %c0_236, %c0_237] : memref<3x288x8xf32, #tpu.memory_space<vmem>>, vector<1x256x8xf32>
    %206 = vector.shape_cast %205 : vector<1x256x8xf32> to vector<256x8xf32>
    %c0_238 = arith.constant 0 : index
    %c0_239 = arith.constant 0 : index
    %c0_240 = arith.constant 0 : index
    %207 = vector.load %arg5[%c0_238, %c0_239, %c0_240] : memref<9x8x8xf32, #tpu.memory_space<vmem>>, vector<1x8x8xf32>
    %208 = vector.shape_cast %207 : vector<1x8x8xf32> to vector<8x8xf32>
    %cst_241 = arith.constant dense<0.000000e+00> : vector<256x8xf32>
    %209 = tpu.matmul %206, %208, %cst_241 {dimension_numbers = #tpu.dot_dimension_numbers<[1], [0], [0], [1], [0, 0, 1, 1], [], []>} : vector<256x8xf32>, vector<8x8xf32>, vector<256x8xf32> -> vector<256x8xf32>
    %210 = arith.addf %204, %209 : vector<256x8xf32>
    %c1_242 = arith.constant 1 : index
    %c0_243 = arith.constant 0 : index
    %c0_244 = arith.constant 0 : index
    %211 = vector.load %arg8[%c1_242, %c0_243, %c0_244] : memref<3x288x8xf32, #tpu.memory_space<vmem>>, vector<1x256x8xf32>
    %212 = vector.shape_cast %211 : vector<1x256x8xf32> to vector<256x8xf32>
    %c1_245 = arith.constant 1 : index
    %c0_246 = arith.constant 0 : index
    %c0_247 = arith.constant 0 : index
    %213 = vector.load %arg5[%c1_245, %c0_246, %c0_247] : memref<9x8x8xf32, #tpu.memory_space<vmem>>, vector<1x8x8xf32>
    %214 = vector.shape_cast %213 : vector<1x8x8xf32> to vector<8x8xf32>
    %cst_248 = arith.constant dense<0.000000e+00> : vector<256x8xf32>
    %215 = tpu.matmul %212, %214, %cst_248 {dimension_numbers = #tpu.dot_dimension_numbers<[1], [0], [0], [1], [0, 0, 1, 1], [], []>} : vector<256x8xf32>, vector<8x8xf32>, vector<256x8xf32> -> vector<256x8xf32>
    %216 = arith.addf %210, %215 : vector<256x8xf32>
    %c2_249 = arith.constant 2 : index
    %c0_250 = arith.constant 0 : index
    %c0_251 = arith.constant 0 : index
    %217 = vector.load %arg8[%c2_249, %c0_250, %c0_251] : memref<3x288x8xf32, #tpu.memory_space<vmem>>, vector<1x256x8xf32>
    %218 = vector.shape_cast %217 : vector<1x256x8xf32> to vector<256x8xf32>
    %c2_252 = arith.constant 2 : index
    %c0_253 = arith.constant 0 : index
    %c0_254 = arith.constant 0 : index
    %219 = vector.load %arg5[%c2_252, %c0_253, %c0_254] : memref<9x8x8xf32, #tpu.memory_space<vmem>>, vector<1x8x8xf32>
    %220 = vector.shape_cast %219 : vector<1x8x8xf32> to vector<8x8xf32>
    %cst_255 = arith.constant dense<0.000000e+00> : vector<256x8xf32>
    %221 = tpu.matmul %218, %220, %cst_255 {dimension_numbers = #tpu.dot_dimension_numbers<[1], [0], [0], [1], [0, 0, 1, 1], [], []>} : vector<256x8xf32>, vector<8x8xf32>, vector<256x8xf32> -> vector<256x8xf32>
    %222 = arith.addf %216, %221 : vector<256x8xf32>
    %c0_256 = arith.constant 0 : index
    %c16_257 = arith.constant 16 : index
    %c0_258 = arith.constant 0 : index
    %223 = vector.load %arg8[%c0_256, %c16_257, %c0_258] : memref<3x288x8xf32, #tpu.memory_space<vmem>>, vector<1x256x8xf32>
    %224 = vector.shape_cast %223 : vector<1x256x8xf32> to vector<256x8xf32>
    %c3_259 = arith.constant 3 : index
    %c0_260 = arith.constant 0 : index
    %c0_261 = arith.constant 0 : index
    %225 = vector.load %arg5[%c3_259, %c0_260, %c0_261] : memref<9x8x8xf32, #tpu.memory_space<vmem>>, vector<1x8x8xf32>
    %226 = vector.shape_cast %225 : vector<1x8x8xf32> to vector<8x8xf32>
    %cst_262 = arith.constant dense<0.000000e+00> : vector<256x8xf32>
    %227 = tpu.matmul %224, %226, %cst_262 {dimension_numbers = #tpu.dot_dimension_numbers<[1], [0], [0], [1], [0, 0, 1, 1], [], []>} : vector<256x8xf32>, vector<8x8xf32>, vector<256x8xf32> -> vector<256x8xf32>
    %228 = arith.addf %222, %227 : vector<256x8xf32>
    %c1_263 = arith.constant 1 : index
    %c16_264 = arith.constant 16 : index
    %c0_265 = arith.constant 0 : index
    %229 = vector.load %arg8[%c1_263, %c16_264, %c0_265] : memref<3x288x8xf32, #tpu.memory_space<vmem>>, vector<1x256x8xf32>
    %230 = vector.shape_cast %229 : vector<1x256x8xf32> to vector<256x8xf32>
    %c4_266 = arith.constant 4 : index
    %c0_267 = arith.constant 0 : index
    %c0_268 = arith.constant 0 : index
    %231 = vector.load %arg5[%c4_266, %c0_267, %c0_268] : memref<9x8x8xf32, #tpu.memory_space<vmem>>, vector<1x8x8xf32>
    %232 = vector.shape_cast %231 : vector<1x8x8xf32> to vector<8x8xf32>
    %cst_269 = arith.constant dense<0.000000e+00> : vector<256x8xf32>
    %233 = tpu.matmul %230, %232, %cst_269 {dimension_numbers = #tpu.dot_dimension_numbers<[1], [0], [0], [1], [0, 0, 1, 1], [], []>} : vector<256x8xf32>, vector<8x8xf32>, vector<256x8xf32> -> vector<256x8xf32>
    %234 = arith.addf %228, %233 : vector<256x8xf32>
    %c2_270 = arith.constant 2 : index
    %c16_271 = arith.constant 16 : index
    %c0_272 = arith.constant 0 : index
    %235 = vector.load %arg8[%c2_270, %c16_271, %c0_272] : memref<3x288x8xf32, #tpu.memory_space<vmem>>, vector<1x256x8xf32>
    %236 = vector.shape_cast %235 : vector<1x256x8xf32> to vector<256x8xf32>
    %c5_273 = arith.constant 5 : index
    %c0_274 = arith.constant 0 : index
    %c0_275 = arith.constant 0 : index
    %237 = vector.load %arg5[%c5_273, %c0_274, %c0_275] : memref<9x8x8xf32, #tpu.memory_space<vmem>>, vector<1x8x8xf32>
    %238 = vector.shape_cast %237 : vector<1x8x8xf32> to vector<8x8xf32>
    %cst_276 = arith.constant dense<0.000000e+00> : vector<256x8xf32>
    %239 = tpu.matmul %236, %238, %cst_276 {dimension_numbers = #tpu.dot_dimension_numbers<[1], [0], [0], [1], [0, 0, 1, 1], [], []>} : vector<256x8xf32>, vector<8x8xf32>, vector<256x8xf32> -> vector<256x8xf32>
    %240 = arith.addf %234, %239 : vector<256x8xf32>
    %c0_277 = arith.constant 0 : index
    %c32_278 = arith.constant 32 : index
    %c0_279 = arith.constant 0 : index
    %241 = vector.load %arg8[%c0_277, %c32_278, %c0_279] : memref<3x288x8xf32, #tpu.memory_space<vmem>>, vector<1x256x8xf32>
    %242 = vector.shape_cast %241 : vector<1x256x8xf32> to vector<256x8xf32>
    %c6_280 = arith.constant 6 : index
    %c0_281 = arith.constant 0 : index
    %c0_282 = arith.constant 0 : index
    %243 = vector.load %arg5[%c6_280, %c0_281, %c0_282] : memref<9x8x8xf32, #tpu.memory_space<vmem>>, vector<1x8x8xf32>
    %244 = vector.shape_cast %243 : vector<1x8x8xf32> to vector<8x8xf32>
    %cst_283 = arith.constant dense<0.000000e+00> : vector<256x8xf32>
    %245 = tpu.matmul %242, %244, %cst_283 {dimension_numbers = #tpu.dot_dimension_numbers<[1], [0], [0], [1], [0, 0, 1, 1], [], []>} : vector<256x8xf32>, vector<8x8xf32>, vector<256x8xf32> -> vector<256x8xf32>
    %246 = arith.addf %240, %245 : vector<256x8xf32>
    %c1_284 = arith.constant 1 : index
    %c32_285 = arith.constant 32 : index
    %c0_286 = arith.constant 0 : index
    %247 = vector.load %arg8[%c1_284, %c32_285, %c0_286] : memref<3x288x8xf32, #tpu.memory_space<vmem>>, vector<1x256x8xf32>
    %248 = vector.shape_cast %247 : vector<1x256x8xf32> to vector<256x8xf32>
    %c7_287 = arith.constant 7 : index
    %c0_288 = arith.constant 0 : index
    %c0_289 = arith.constant 0 : index
    %249 = vector.load %arg5[%c7_287, %c0_288, %c0_289] : memref<9x8x8xf32, #tpu.memory_space<vmem>>, vector<1x8x8xf32>
    %250 = vector.shape_cast %249 : vector<1x8x8xf32> to vector<8x8xf32>
    %cst_290 = arith.constant dense<0.000000e+00> : vector<256x8xf32>
    %251 = tpu.matmul %248, %250, %cst_290 {dimension_numbers = #tpu.dot_dimension_numbers<[1], [0], [0], [1], [0, 0, 1, 1], [], []>} : vector<256x8xf32>, vector<8x8xf32>, vector<256x8xf32> -> vector<256x8xf32>
    %252 = arith.addf %246, %251 : vector<256x8xf32>
    %c2_291 = arith.constant 2 : index
    %c32_292 = arith.constant 32 : index
    %c0_293 = arith.constant 0 : index
    %253 = vector.load %arg8[%c2_291, %c32_292, %c0_293] : memref<3x288x8xf32, #tpu.memory_space<vmem>>, vector<1x256x8xf32>
    %254 = vector.shape_cast %253 : vector<1x256x8xf32> to vector<256x8xf32>
    %c8_294 = arith.constant 8 : index
    %c0_295 = arith.constant 0 : index
    %c0_296 = arith.constant 0 : index
    %255 = vector.load %arg5[%c8_294, %c0_295, %c0_296] : memref<9x8x8xf32, #tpu.memory_space<vmem>>, vector<1x8x8xf32>
    %256 = vector.shape_cast %255 : vector<1x8x8xf32> to vector<8x8xf32>
    %cst_297 = arith.constant dense<0.000000e+00> : vector<256x8xf32>
    %257 = tpu.matmul %254, %256, %cst_297 {dimension_numbers = #tpu.dot_dimension_numbers<[1], [0], [0], [1], [0, 0, 1, 1], [], []>} : vector<256x8xf32>, vector<8x8xf32>, vector<256x8xf32> -> vector<256x8xf32>
    %258 = arith.addf %252, %257 : vector<256x8xf32>
    %c0_298 = arith.constant 0 : index
    %c0_299 = arith.constant 0 : index
    %259 = vector.load %arg6[%c0_298, %c0_299] : memref<1x8xf32, #tpu.memory_space<vmem>>, vector<1x8xf32>
    %260 = vector.broadcast %259 : vector<1x8xf32> to vector<256x8xf32>
    %261 = arith.addf %258, %260 : vector<256x8xf32>
    %cst_300 = arith.constant 2.000000e-02 : f32
    %262 = vector.broadcast %cst_300 : f32 to vector<256x8xf32>
    %263 = arith.mulf %262, %261 : vector<256x8xf32>
    %264 = arith.maximumf %261, %263 : vector<256x8xf32>
    %c0_301 = arith.constant 0 : index
    %c0_302 = arith.constant 0 : index
    %c0_303 = arith.constant 0 : index
    %265 = vector.load %arg7[%c0_301, %c0_302, %c0_303] : memref<1x256x8xf32, #tpu.memory_space<vmem>>, vector<1x256x8xf32>
    %266 = vector.shape_cast %265 : vector<1x256x8xf32> to vector<256x8xf32>
    %267 = vector.shape_cast %264 : vector<256x8xf32> to vector<1x256x8xf32>
    tpu.vector_store %arg7[%c0_301, %c0_302, %c0_303], %267 {strides = array<i32>} : memref<1x256x8xf32, #tpu.memory_space<vmem>>, vector<1x256x8xf32>,
    return
  }
  func.func @transform_0(%arg0: i32) -> (i32, i32, i32, i32) {
    %c0_i32 = arith.constant 0 : i32
    %c0_i32_0 = arith.constant 0 : i32
    %c0_i32_1 = arith.constant 0 : i32
    %c0_i32_2 = arith.constant 0 : i32
    return %arg0, %c0_i32, %c0_i32_0, %c0_i32_1 : i32, i32, i32, i32
  }
  func.func @transform_1(%arg0: i32) -> (i32, i32, i32) {
    %c0_i32 = arith.constant 0 : i32
    %c0_i32_0 = arith.constant 0 : i32
    %c0_i32_1 = arith.constant 0 : i32
    %c0_i32_2 = arith.constant 0 : i32
    return %c0_i32, %c0_i32_0, %c0_i32_1 : i32, i32, i32
  }
  func.func @transform_2(%arg0: i32) -> (i32, i32) {
    %c0_i32 = arith.constant 0 : i32
    %c0_i32_0 = arith.constant 0 : i32
    %c0_i32_1 = arith.constant 0 : i32
    return %c0_i32, %c0_i32_0 : i32, i32
  }
  func.func @transform_3(%arg0: i32) -> (i32, i32, i32) {
    %c0_i32 = arith.constant 0 : i32
    %c0_i32_0 = arith.constant 0 : i32
    %c0_i32_1 = arith.constant 0 : i32
    %c0_i32_2 = arith.constant 0 : i32
    return %c0_i32, %c0_i32_0, %c0_i32_1 : i32, i32, i32
  }
  func.func @transform_4(%arg0: i32) -> (i32, i32, i32) {
    %c0_i32 = arith.constant 0 : i32
    %c0_i32_0 = arith.constant 0 : i32
    %c0_i32_1 = arith.constant 0 : i32
    %c0_i32_2 = arith.constant 0 : i32
    return %c0_i32, %c0_i32_0, %c0_i32_1 : i32, i32, i32
  }
  func.func @transform_5(%arg0: i32) -> (i32, i32) {
    %c0_i32 = arith.constant 0 : i32
    %c0_i32_0 = arith.constant 0 : i32
    %c0_i32_1 = arith.constant 0 : i32
    return %c0_i32, %c0_i32_0 : i32, i32
  }
  func.func @transform_6(%arg0: i32) -> (i32, i32, i32) {
    %c0_i32 = arith.constant 0 : i32
    %c0_i32_0 = arith.constant 0 : i32
    %c0_i32_1 = arith.constant 0 : i32
    return %arg0, %c0_i32, %c0_i32_0 : i32, i32, i32
  }
}

</mosaic_0001>

<bundles_post_ra>
// kernel: double_conv_forward.1
= control target key start
LH: loop header
LB: loop body
LE: loop exit
PB: predicated region body
PF: predicated region fallthrough
CT: control target
= control target key end

     0   :  { %s23166_s21 = smov 0   ;;  %s27964_s0 = inlined_call_operand.vmem [shape: f32[2,5,320,4], index: 0, kind: input, shape index: {}]   ;;  %s27965_s1 = inlined_call_operand.vmem [shape: f32[9,4,8], index: 1, kind: input, shape index: {}]   ;;  %s27966_s2 = inlined_call_operand.vmem [shape: f32[1,8], index: 2, kind: input, shape index: {}]   ;;  %s27967_s3 = inlined_call_operand.vmem [shape: f32[3,288,1], index: 3, kind: input, shape index: {}]   ;;  %s27968_s4 = inlined_call_operand.vmem [shape: f32[9,8,8], index: 4, kind: input, shape index: {}]   ;;  %s27969_s5 = inlined_call_operand.vmem [shape: f32[1,8], index: 5, kind: input, shape index: {}]   ;;  %s27970_s6 = inlined_call_operand.vmem [shape: f32[2,256,8], index: 6, kind: output, shape index: {}]  }
   0x1 LB: > { %s16455_s22 = sadd.s32 4294967295, %s23128_s21   ;;  %p16459_p0 = scmp.ge.s32.totalorder %s23128_s21, 1  ;;  %s23128_s21 = sphi %s23166_s21, %s16_s21  }
   0x2   : > { %p212_p1 = scmp.lt.s32.totalorder %s23128_s21, 3 }
   0x4   : > { %p213_p2 = pnand %p16459_p0, %p212_p1 }
   0x6   : > { %216 = sbr.rel (%p213_p2) target bundleno = 2103 (0x837), region = 44 }
   0xd   : > { %v16499_v0 = vld [vmem:[%s27965_s1 + $0x4] sm:$0xf]  ;;  %vm437_vm0 = vcmask 1043456   ;;  %p242_p3 = scmp.lt.s32.totalorder %s16455_s22, 1  ;;  %v288_v1 = vld [vmem:[%s27965_s1] sm:$0xf] }
   0xe   : > { %20021 = vmatprep.subr.msk.mxu0 %vm437_vm0, %v16499_v0  ;;  %21983 = vmatprep.subr.msk.mxu1 %vm437_vm0, %v16499_v0  ;;  %v17093_v2 = vld [vmem:[%s27965_s1 + $0x4] sm:$0xf]  ;;  %vm328_vm1 = vcmask 31744   ;;  %v23200_v3 = vld [vmem:[%s27965_s1 + $0x8] sm:$0xf]  ;;  %vm4420_vm2 = vcmask 64512  }
   0xf   : > { %20022 = vmatpush3.msk.msra.mxu0 %vm437_vm0, %v16499_v0  ;;  %21984 = vmatpush3.msk.msra.mxu1 %vm437_vm0, %v16499_v0  ;;  %s28587_s22 = smov (!%p242_p3, %s16455_s22), 1  ;;  %v23251_v14 = vld [vmem:[%s27965_s1] sm:$0xf]  ;;  %v23413_v47 = vld [vmem:[%s27965_s1 + $0xc] sm:$0xf] }
  0x10   : > { %20077 = vmatprep.subr.msk.mxu0 %vm437_vm0, %v288_v1  ;;  %20525 = vmatprep.subr.msk.mxu1 %vm437_vm0, %v17093_v2  ;;  %s23105_s29 = smul.u32 1600, %s28587_s22  ;;  %v23487_v60 = vld [vmem:[%s27965_s1 + $0x8] sm:$0xf]  ;;  %s18724_s27 = sshll.u32 %s28587_s22, 8 }
  0x11   : > { %s27865_s30 = scalar_lea.vmem %s27970_s6, %s18724_s27 }
  0x12   : > { %s23195_s8 = scalar_lea.vmem %s27964_s0, %s23105_s29 }
  0x13   : > { %v23203_v4 = vld [vmem:[%s23195_s8 + $0x140] sm:$0xff]  ;;  %v23206_v5 = vld [vmem:[%s23195_s8 + $0x1d0] sm:$0xff]  ;;  %v23209_v6 = vld [vmem:[%s23195_s8 + $0x148] sm:$0xff] }
  0x14   : > { %20023 = vmatprep.mubr.msk.f32.mxu0 %vm328_vm1, %v23203_v4  ;;  %20050 = vmatprep.mubr.msk.f32.mxu1 %vm328_vm1, %v23206_v5  ;;  %v23216_v7 = vld [vmem:[%s23195_s8 + $0x1d8] sm:$0xff]  ;;  %v23219_v8 = vld [vmem:[%s23195_s8 + $0x150] sm:$0xff]  ;;  %v23222_v9 = vld [vmem:[%s23195_s8 + $0x1e0] sm:$0xff] }
  0x15   : > { %20024 = vmatmul.mubr.msk.f32.vlgmr.msra.gmra.mrb[0].mxu0 %vm328_vm1, %v23209_v6  ;;  %20051 = vmatmul.mubr.msk.f32.vlgmr.msra.gmra.mrb[0].mxu1 %vm328_vm1, %v23216_v7  ;;  %v23232_v10 = vld [vmem:[%s23195_s8 + $0x158] sm:$0xff]  ;;  %v23235_v11 = vld [vmem:[%s23195_s8 + $0x1e8] sm:$0xff]  ;;  %v23240_v12 = vld [vmem:[%s23195_s8 + $0x160] sm:$0xff] }
  0x16   : > { %20078 = vmatpush3.msk.msra.mxu0 %vm437_vm0, %v288_v1  ;;  %20026 = vmatprep.mubr.msk.f32.mxu0 %vm328_vm1, %v23219_v8  ;;  %v23243_v13 = vld [vmem:[%s23195_s8 + $0x1f0] sm:$0xff]  ;;  %v23262_v15 = vld [vmem:[%s23195_s8 + $0x168] sm:$0xff]  ;;  %v23265_v16 = vld [vmem:[%s23195_s8 + $0x1f8] sm:$0xff] }
  0x17   : > { %20053 = vmatprep.mubr.msk.f32.mxu1 %vm328_vm1, %v23222_v9  ;;  %20133 = vmatprep.subr.msk.mxu0 %vm437_vm0, %v23200_v3  ;;  %v23268_v17 = vld [vmem:[%s23195_s8 + $0x170] sm:$0xff]  ;;  %v23271_v18 = vld [vmem:[%s23195_s8 + $0x200] sm:$0xff]  ;;  %v23284_v19 = vld [vmem:[%s23195_s8 + $0x178] sm:$0xff] }
  0x18   : > { %20526 = vmatpush3.msk.msra.mxu1 %vm437_vm0, %v17093_v2  ;;  %v23287_v20 = vld [vmem:[%s23195_s8 + $0x208] sm:$0xff]  ;;  %v23290_v21 = vld [vmem:[%s23195_s8 + $0x180] sm:$0xff]  ;;  %v23293_v22 = vld [vmem:[%s23195_s8 + $0x210] sm:$0xff] }
  0x19   : > { %20027 = vmatmul.mubr.msk.f32.gmra.mrb[2].mxu0 %vm328_vm1, %v23232_v10  ;;  %20054 = vmatmul.mubr.msk.f32.gmra.mrb[2].mxu1 %vm328_vm1, %v23235_v11  ;;  %v23304_v23 = vld [vmem:[%s23195_s8 + $0x188] sm:$0xff]  ;;  %v23307_v24 = vld [vmem:[%s23195_s8 + $0x218] sm:$0xff]  ;;  %v23310_v25 = vld [vmem:[%s23195_s8 + $0x190] sm:$0xff] }
  0x1a   : > { %20029 = vmatprep.mubr.msk.f32.mxu0 %vm328_vm1, %v23240_v12  ;;  %20056 = vmatprep.mubr.msk.f32.mxu1 %vm328_vm1, %v23243_v13  ;;  %28140 = vst [vmem:[#allocation3_spill] sm:$0xff] %v23307_v24  ;;  %v23313_v26 = vld [vmem:[%s23195_s8 + $0x220] sm:$0xff]  ;;  %v23324_v27 = vld [vmem:[%s23195_s8 + $0x198] sm:$0xff]  ;;  %v23327_v28 = vld [vmem:[%s23195_s8 + $0x228] sm:$0xff] }
  0x1b   : > { %20581 = vmatprep.subr.msk.mxu1 %vm437_vm0, %v23251_v14  ;;  %28141 = vst [vmem:[#allocation4_spill] sm:$0xff] %v23313_v26  ;;  %28142 = vst [vmem:[#allocation5_spill] sm:$0xff] %v23327_v28  ;;  %v23330_v29 = vld [vmem:[%s23195_s8 + $0x1a0] sm:$0xff]  ;;  %v23333_v30 = vld [vmem:[%s23195_s8 + $0x230] sm:$0xff] }
  0x1c   : > { %28143 = vst [vmem:[#allocation6_spill] sm:$0xff] %v23333_v30  ;;  %v23344_v31 = vld [vmem:[%s23195_s8 + $0x1a8] sm:$0xff]  ;;  %v23347_v32 = vld [vmem:[%s23195_s8 + $0x238] sm:$0xff]  ;;  %v23350_v33 = vld [vmem:[%s23195_s8 + $0x1b0] sm:$0xff] }
  0x1d   : > { %20030 = vmatmul.mubr.msk.f32.gmra.mrb[4].mxu0 %vm328_vm1, %v23262_v15  ;;  %20057 = vmatmul.mubr.msk.f32.gmra.mrb[4].mxu1 %vm328_vm1, %v23265_v16  ;;  %28144 = vst [vmem:[#allocation7_spill] sm:$0xff] %v23347_v32  ;;  %v23353_v34 = vld [vmem:[%s23195_s8 + $0x240] sm:$0xff]  ;;  %v23364_v35 = vld [vmem:[%s23195_s8 + $0x1b8] sm:$0xff]  ;;  %v23367_v36 = vld [vmem:[%s23195_s8 + $0x248] sm:$0xff] }
  0x1e   : > { %20032 = vmatprep.mubr.msk.f32.mxu0 %vm328_vm1, %v23268_v17  ;;  %20059 = vmatprep.mubr.msk.f32.mxu1 %vm328_vm1, %v23271_v18  ;;  %28145 = vst [vmem:[#allocation8_spill] sm:$0xff] %v23353_v34  ;;  %28146 = vst [vmem:[#allocation9_spill] sm:$0xff] %v23367_v36  ;;  %v23370_v37 = vld [vmem:[%s23195_s8 + $0x1c0] sm:$0xff]  ;;  %v23373_v38 = vld [vmem:[%s23195_s8 + $0x250] sm:$0xff] }
  0x1f   : > { %28147 = vst [vmem:[#allocation10_spill] sm:$0xff] %v23373_v38  ;;  %v23384_v39 = vld [vmem:[%s23195_s8 + $0x1c8] sm:$0xff]  ;;  %v23387_v40 = vld [vmem:[%s23195_s8 + $0x258] sm:$0xff]  ;;  %v252_v41 = vld [vmem:[%s23195_s8] sm:$0xff] }
  0x20   : > { %28148 = vst [vmem:[#allocation11_spill] sm:$0xff] %v23387_v40  ;;  %v23391_v42 = vld [vmem:[%s23195_s8 + $0x280] sm:$0xff]  ;;  %v253_v43 = vld [vmem:[%s23195_s8 + $0x8] sm:$0xff]  ;;  %v23405_v45 = vld [vmem:[%s23195_s8 + $0x10] sm:$0xff] }
  0x21   : > { %20033 = vmatmul.mubr.msk.f32.gmra.mrb[6].mxu0 %vm328_vm1, %v23284_v19  ;;  %20060 = vmatmul.mubr.msk.f32.gmra.mrb[6].mxu1 %vm328_vm1, %v23287_v20  ;;  %v23402_v44 = vld [vmem:[%s23195_s8 + $0x288] sm:$0xff]  ;;  %28149 = vst [vmem:[#allocation12_spill] sm:$0xff] %v23405_v45  ;;  %v23408_v46 = vld [vmem:[%s23195_s8 + $0x290] sm:$0xff]  ;;  %v23423_v48 = vld [vmem:[%s23195_s8 + $0x18] sm:$0xff] }
  0x22   : > { %20035 = vmatprep.mubr.msk.f32.mxu0 %vm328_vm1, %v23290_v21  ;;  %20062 = vmatprep.mubr.msk.f32.mxu1 %vm328_vm1, %v23293_v22  ;;  %28150 = vst [vmem:[#allocation13_spill] sm:$0xff] %v23423_v48  ;;  %v23426_v49 = vld [vmem:[%s23195_s8 + $0x298] sm:$0xff]  ;;  %v23431_v50 = vld [vmem:[%s23195_s8 + $0x20] sm:$0xff]  ;;  %v23449_v52 = vld [vmem:[%s23195_s8 + $0x28] sm:$0xff] }
  0x23   : > { %28151 = vst [vmem:[#allocation14_spill] sm:$0xff] %v23431_v50  ;;  %v23434_v51 = vld [vmem:[%s23195_s8 + $0x2a0] sm:$0xff]  ;;  %28152 = vst [vmem:[#allocation15_spill] sm:$0xff] %v23449_v52  ;;  %v23452_v53 = vld [vmem:[%s23195_s8 + $0x2a8] sm:$0xff] }
  0x24   : > { %v23455_v54 = vld [vmem:[%s23195_s8 + $0x30] sm:$0xff]  ;;  %v23469_v56 = vld [vmem:[%s23195_s8 + $0x38] sm:$0xff]  ;;  %v23475_v58 = vld [vmem:[%s23195_s8 + $0x40] sm:$0xff] }
  0x25   : > { %20036 = vmatmul.mubr.msk.f32.gmra.mrb[8].mxu0 %vm328_vm1, %v23304_v23  ;;  %20063 = vmatmul.mubr.msk.f32.gmra.mrb[8].mxu1 %vm328_vm1, %v23307_v24  ;;  %28153 = vst [vmem:[#allocation16_spill] sm:$0xff] %v23455_v54  ;;  %v23458_v55 = vld [vmem:[%s23195_s8 + $0x2b0] sm:$0xff]  ;;  %28154 = vst [vmem:[#allocation17_spill] sm:$0xff] %v23469_v56  ;;  %v23472_v57 = vld [vmem:[%s23195_s8 + $0x2b8] sm:$0xff] }
  0x26   : > { %20038 = vmatprep.mubr.msk.f32.mxu0 %vm328_vm1, %v23310_v25  ;;  %20065 = vmatprep.mubr.msk.f32.mxu1 %vm328_vm1, %v23313_v26  ;;  %28155 = vst [vmem:[#allocation18_spill] sm:$0xff] %v23475_v58  ;;  %v23478_v59 = vld [vmem:[%s23195_s8 + $0x2c0] sm:$0xff]  ;;  %v23494_v61 = vld [vmem:[%s23195_s8 + $0x48] sm:$0xff]  ;;  %v23500_v63 = vld [vmem:[%s23195_s8 + $0x50] sm:$0xff] }
  0x27   : > { %28156 = vst [vmem:[#allocation19_spill] sm:$0xff] %v23494_v61  ;;  %v23497_v62 = vld [vmem:[%s23195_s8 + $0x2c8] sm:$0xff]  ;;  %28157 = vst [vmem:[#allocation20_spill] sm:$0xff] %v23500_v63  ;;  %v23503_v0 = vld [vmem:[%s23195_s8 + $0x2d0] sm:$0xff] }
  0x28   : > { %v23516_v1 = vld [vmem:[%s23195_s8 + $0x58] sm:$0xff]  ;;  %v23702_v26 = vld [vmem:[%s23195_s8 + $0xf0] sm:$0xff] }
  0x29   : > { %20039 = vmatmul.mubr.msk.f32.gmra.mrb[10].mxu0 %vm328_vm1, %v23324_v27  ;;  %20066 = vmatmul.mubr.msk.f32.gmra.mrb[10].mxu1 %vm328_vm1, %v23327_v28  ;;  %28158 = vst [vmem:[#allocation21_spill] sm:$0xff] %v23516_v1  ;;  %v23519_v2 = vld [vmem:[%s23195_s8 + $0x2d8] sm:$0xff]  ;;  %v23685_v28 = vld [vmem:[%s23195_s8 + $0x360] sm:$0xff]  ;;  %28180 = vst [vmem:[#allocation43_spill] sm:$0xff] %v23702_v26 }
  0x2a   : > { %20041 = vmatprep.mubr.msk.f32.mxu0 %vm328_vm1, %v23330_v29  ;;  %20068 = vmatprep.mubr.msk.f32.mxu1 %vm328_vm1, %v23333_v30  ;;  %v23682_v30 = vld [vmem:[%s23195_s8 + $0xe0] sm:$0xff]  ;;  %28177 = vst [vmem:[#allocation40_spill] sm:$0xff] %v23685_v28  ;;  %v23705_v24 = vld [vmem:[%s23195_s8 + $0x370] sm:$0xff] }
  0x2b   : > { %28176 = vst [vmem:[#allocation39_spill] sm:$0xff] %v23682_v30  ;;  %28181 = vst [vmem:[#allocation44_spill] sm:$0xff] %v23705_v24 }
  0x2d   : > { %20042 = vmatmul.mubr.msk.f32.gmra.mrb[12].mxu0 %vm328_vm1, %v23344_v31  ;;  %20069 = vmatmul.mubr.msk.f32.gmra.mrb[12].mxu1 %vm328_vm1, %v23347_v32  ;;  %v23665_v32 = vld [vmem:[%s23195_s8 + $0x350] sm:$0xff] }
  0x2e   : > { %20044 = vmatprep.mubr.msk.f32.mxu0 %vm328_vm1, %v23350_v33  ;;  %20071 = vmatprep.mubr.msk.f32.mxu1 %vm328_vm1, %v23353_v34  ;;  %v23662_v34 = vld [vmem:[%s23195_s8 + $0xd0] sm:$0xff] }
  0x2f   : > { %28173 = vst [vmem:[#allocation36_spill] sm:$0xff] %v23662_v34 }
  0x31   : > { %20045 = vmatmul.mubr.msk.f32.gmra.mrb[14].mxu0 %vm328_vm1, %v23364_v35  ;;  %20072 = vmatmul.mubr.msk.f32.gmra.mrb[14].mxu1 %vm328_vm1, %v23367_v36  ;;  %v23645_v36 = vld [vmem:[%s23195_s8 + $0x340] sm:$0xff] }
  0x32   : > { %20047 = vmatprep.mubr.msk.f32.mxu0 %vm328_vm1, %v23370_v37  ;;  %20074 = vmatprep.mubr.msk.f32.mxu1 %vm328_vm1, %v23373_v38  ;;  %v23642_v38 = vld [vmem:[%s23195_s8 + $0xc0] sm:$0xff] }
  0x33   : > { %28171 = vst [vmem:[#allocation34_spill] sm:$0xff] %v23642_v38 }
  0x35   : > { %20048 = vmatmul.mubr.msk.f32.gmra.mrb[16].mxu0 %vm328_vm1, %v23384_v39  ;;  %20075 = vmatmul.mubr.msk.f32.gmra.mrb[16].mxu1 %vm328_vm1, %v23387_v40  ;;  %v23625_v40 = vld [vmem:[%s23195_s8 + $0x330] sm:$0xff] }
  0x36   : > { %20079 = vmatprep.mubr.msk.f32.mxu0 %vm328_vm1, %v252_v41  ;;  %20527 = vmatprep.mubr.msk.f32.mxu1 %vm328_vm1, %v23391_v42  ;;  %v23536_v41 = vld [vmem:[%s23195_s8 + $0x68] sm:$0xff] }
  0x37   : > { %28160 = vst [vmem:[#allocation23_spill] sm:$0xff] %v23536_v41 }
  0x39   : > { %20080 = vmatmul.mubr.msk.f32.vlgmr.msra.gmra.mrb[0].mxu0 %vm328_vm1, %v253_v43  ;;  %20528 = vmatmul.mubr.msk.f32.vlgmr.msra.gmra.mrb[18].mxu1 %vm328_vm1, %v23402_v44  ;;  %v23539_v43 = vld [vmem:[%s23195_s8 + $0x2e8] sm:$0xff] }
  0x3a   : > { %20134 = vmatpush3.msk.msra.mxu0 %vm437_vm0, %v23200_v3  ;;  %20082 = vmatprep.mubr.msk.f32.mxu0 %vm328_vm1, %v23405_v45  ;;  %v23522_v3 = vld [vmem:[%s23195_s8 + $0x60] sm:$0xff]  ;;  %v23622_v45 = vld [vmem:[%s23195_s8 + $0xb0] sm:$0xff] }
  0x3b   : > { %20530 = vmatprep.mubr.msk.f32.mxu1 %vm328_vm1, %v23408_v46  ;;  %20189 = vmatprep.subr.msk.mxu0 %vm437_vm0, %v23413_v47  ;;  %28159 = vst [vmem:[#allocation22_spill] sm:$0xff] %v23522_v3  ;;  %28169 = vst [vmem:[#allocation32_spill] sm:$0xff] %v23622_v45 }
  0x3c   : > { %20582 = vmatpush3.msk.msra.mxu1 %vm437_vm0, %v23251_v14  ;;  %v23525_v14 = vld [vmem:[%s23195_s8 + $0x2e0] sm:$0xff] }
  0x3d   : > { %20083 = vmatmul.mubr.msk.f32.gmra.mrb[2].mxu0 %vm328_vm1, %v23423_v48  ;;  %20531 = vmatmul.mubr.msk.f32.gmra.mrb[20].mxu1 %vm328_vm1, %v23426_v49  ;;  %v23605_v48 = vld [vmem:[%s23195_s8 + $0x320] sm:$0xff] }
  0x3e   : > { %20085 = vmatprep.mubr.msk.f32.mxu0 %vm328_vm1, %v23431_v50  ;;  %20533 = vmatprep.mubr.msk.f32.mxu1 %vm328_vm1, %v23434_v51  ;;  %v23602_v50 = vld [vmem:[%s23195_s8 + $0xa0] sm:$0xff] }
  0x3f   : > { %20637 = vmatprep.subr.msk.mxu1 %vm437_vm0, %v23487_v60  ;;  %28167 = vst [vmem:[#allocation30_spill] sm:$0xff] %v23602_v50 }
  0x41   : > { %20086 = vmatmul.mubr.msk.f32.gmra.mrb[4].mxu0 %vm328_vm1, %v23449_v52  ;;  %20534 = vmatmul.mubr.msk.f32.gmra.mrb[22].mxu1 %vm328_vm1, %v23452_v53  ;;  %v23585_v52 = vld [vmem:[%s23195_s8 + $0x310] sm:$0xff] }
  0x42   : > { %20088 = vmatprep.mubr.msk.f32.mxu0 %vm328_vm1, %v23455_v54  ;;  %20536 = vmatprep.mubr.msk.f32.mxu1 %vm328_vm1, %v23458_v55  ;;  %v23582_v54 = vld [vmem:[%s23195_s8 + $0x90] sm:$0xff] }
  0x43   : > { %28165 = vst [vmem:[#allocation28_spill] sm:$0xff] %v23582_v54 }
  0x45   : > { %20089 = vmatmul.mubr.msk.f32.gmra.mrb[6].mxu0 %vm328_vm1, %v23469_v56  ;;  %20537 = vmatmul.mubr.msk.f32.gmra.mrb[24].mxu1 %vm328_vm1, %v23472_v57  ;;  %v23565_v56 = vld [vmem:[%s23195_s8 + $0x300] sm:$0xff] }
  0x46   : > { %20091 = vmatprep.mubr.msk.f32.mxu0 %vm328_vm1, %v23475_v58  ;;  %20539 = vmatprep.mubr.msk.f32.mxu1 %vm328_vm1, %v23478_v59  ;;  %v23562_v58 = vld [vmem:[%s23195_s8 + $0x80] sm:$0xff] }
  0x47   : > { %28163 = vst [vmem:[#allocation26_spill] sm:$0xff] %v23562_v58 }
  0x49   : > { %20092 = vmatmul.mubr.msk.f32.gmra.mrb[8].mxu0 %vm328_vm1, %v23494_v61  ;;  %20540 = vmatmul.mubr.msk.f32.gmra.mrb[26].mxu1 %vm328_vm1, %v23497_v62  ;;  %v23545_v61 = vld [vmem:[%s23195_s8 + $0x2f0] sm:$0xff] }
  0x4a   : > { %20094 = vmatprep.mubr.msk.f32.mxu0 %vm328_vm1, %v23500_v63  ;;  %20542 = vmatprep.mubr.msk.f32.mxu1 %vm328_vm1, %v23503_v0  ;;  %v23542_v63 = vld [vmem:[%s23195_s8 + $0x70] sm:$0xff] }
  0x4b   : > { %28161 = vst [vmem:[#allocation24_spill] sm:$0xff] %v23542_v63 }
  0x4d   : > { %20095 = vmatmul.mubr.msk.f32.gmra.mrb[10].mxu0 %vm328_vm1, %v23516_v1  ;;  %20543 = vmatmul.mubr.msk.f32.gmra.mrb[28].mxu1 %vm328_vm1, %v23519_v2  ;;  %v23559_v1 = vld [vmem:[%s23195_s8 + $0x2f8] sm:$0xff] }
  0x4e   : > { %20097 = vmatprep.mubr.msk.f32.mxu0 %vm328_vm1, %v23522_v3  ;;  %20545 = vmatprep.mubr.msk.f32.mxu1 %vm328_vm1, %v23525_v14  ;;  %v23556_v3 = vld [vmem:[%s23195_s8 + $0x78] sm:$0xff] }
  0x4f   : > { %28162 = vst [vmem:[#allocation25_spill] sm:$0xff] %v23556_v3 }
  0x51   : > { %20098 = vmatmul.mubr.msk.f32.gmra.mrb[12].mxu0 %vm328_vm1, %v23536_v41  ;;  %20546 = vmatmul.mubr.msk.f32.gmra.mrb[30].mxu1 %vm328_vm1, %v23539_v43  ;;  %v23579_v41 = vld [vmem:[%s23195_s8 + $0x308] sm:$0xff] }
  0x52   : > { %20100 = vmatprep.mubr.msk.f32.mxu0 %vm328_vm1, %v23542_v63  ;;  %20548 = vmatprep.mubr.msk.f32.mxu1 %vm328_vm1, %v23545_v61  ;;  %v23576_v63 = vld [vmem:[%s23195_s8 + $0x88] sm:$0xff] }
  0x53   : > { %28164 = vst [vmem:[#allocation27_spill] sm:$0xff] %v23576_v63 }
  0x55   : > { %20101 = vmatmul.mubr.msk.f32.gmra.mrb[14].mxu0 %vm328_vm1, %v23556_v3  ;;  %20549 = vmatmul.mubr.msk.f32.gmra.mrb[32].mxu1 %vm328_vm1, %v23559_v1  ;;  %v23599_v3 = vld [vmem:[%s23195_s8 + $0x318] sm:$0xff] }
  0x56   : > { %20103 = vmatprep.mubr.msk.f32.mxu0 %vm328_vm1, %v23562_v58  ;;  %20551 = vmatprep.mubr.msk.f32.mxu1 %vm328_vm1, %v23565_v56  ;;  %v23596_v58 = vld [vmem:[%s23195_s8 + $0x98] sm:$0xff] }
  0x57   : > { %28166 = vst [vmem:[#allocation29_spill] sm:$0xff] %v23596_v58 }
  0x59   : > { %20104 = vmatmul.mubr.msk.f32.gmra.mrb[16].mxu0 %vm328_vm1, %v23576_v63  ;;  %20552 = vmatmul.mubr.msk.f32.gmra.mrb[34].mxu1 %vm328_vm1, %v23579_v41  ;;  %v23619_v63 = vld [vmem:[%s23195_s8 + $0x328] sm:$0xff] }
  0x5a   : > { %20106 = vmatprep.mubr.msk.f32.mxu0 %vm328_vm1, %v23582_v54  ;;  %20554 = vmatprep.mubr.msk.f32.mxu1 %vm328_vm1, %v23585_v52  ;;  %v23616_v54 = vld [vmem:[%s23195_s8 + $0xa8] sm:$0xff] }
  0x5b   : > { %28168 = vst [vmem:[#allocation31_spill] sm:$0xff] %v23616_v54 }
  0x5d   : > { %20107 = vmatmul.mubr.msk.f32.gmra.mrb[18].mxu0 %vm328_vm1, %v23596_v58  ;;  %20555 = vmatmul.mubr.msk.f32.gmra.mrb[36].mxu1 %vm328_vm1, %v23599_v3  ;;  %v23639_v58 = vld [vmem:[%s23195_s8 + $0x338] sm:$0xff] }
  0x5e   : > { %20109 = vmatprep.mubr.msk.f32.mxu0 %vm328_vm1, %v23602_v50  ;;  %20557 = vmatprep.mubr.msk.f32.mxu1 %vm328_vm1, %v23605_v48  ;;  %v23636_v50 = vld [vmem:[%s23195_s8 + $0xb8] sm:$0xff] }
  0x5f   : > { %28170 = vst [vmem:[#allocation33_spill] sm:$0xff] %v23636_v50 }
  0x61   : > { %20110 = vmatmul.mubr.msk.f32.gmra.mrb[20].mxu0 %vm328_vm1, %v23616_v54  ;;  %20558 = vmatmul.mubr.msk.f32.gmra.mrb[38].mxu1 %vm328_vm1, %v23619_v63  ;;  %v23659_v54 = vld [vmem:[%s23195_s8 + $0x348] sm:$0xff] }
  0x62   : > { %20112 = vmatprep.mubr.msk.f32.mxu0 %vm328_vm1, %v23622_v45  ;;  %20560 = vmatprep.mubr.msk.f32.mxu1 %vm328_vm1, %v23625_v40  ;;  %v23656_v45 = vld [vmem:[%s23195_s8 + $0xc8] sm:$0xff] }
  0x63   : > { %28172 = vst [vmem:[#allocation35_spill] sm:$0xff] %v23656_v45 }
  0x65   : > { %20113 = vmatmul.mubr.msk.f32.gmra.mrb[22].mxu0 %vm328_vm1, %v23636_v50  ;;  %20561 = vmatmul.mubr.msk.f32.gmra.mrb[40].mxu1 %vm328_vm1, %v23639_v58  ;;  %v23679_v50 = vld [vmem:[%s23195_s8 + $0x358] sm:$0xff] }
  0x66   : > { %20115 = vmatprep.mubr.msk.f32.mxu0 %vm328_vm1, %v23642_v38  ;;  %20563 = vmatprep.mubr.msk.f32.mxu1 %vm328_vm1, %v23645_v36  ;;  %v23676_v38 = vld [vmem:[%s23195_s8 + $0xd8] sm:$0xff]  ;;  %28175 = vst [vmem:[#allocation38_spill] sm:$0xff] %v23679_v50 }
  0x67   : > { %28174 = vst [vmem:[#allocation37_spill] sm:$0xff] %v23676_v38 }
  0x69   : > { %20116 = vmatmul.mubr.msk.f32.gmra.mrb[24].mxu0 %vm328_vm1, %v23656_v45  ;;  %20564 = vmatmul.mubr.msk.f32.gmra.mrb[42].mxu1 %vm328_vm1, %v23659_v54  ;;  %v23699_v45 = vld [vmem:[%s23195_s8 + $0x368] sm:$0xff] }
  0x6a   : > { %20118 = vmatprep.mubr.msk.f32.mxu0 %vm328_vm1, %v23662_v34  ;;  %20566 = vmatprep.mubr.msk.f32.mxu1 %vm328_vm1, %v23665_v32  ;;  %v23696_v34 = vld [vmem:[%s23195_s8 + $0xe8] sm:$0xff]  ;;  %28179 = vst [vmem:[#allocation42_spill] sm:$0xff] %v23699_v45 }
  0x6b   : > { %28178 = vst [vmem:[#allocation41_spill] sm:$0xff] %v23696_v34 }
  0x6d   : > { %20119 = vmatmul.mubr.msk.f32.gmra.mrb[26].mxu0 %vm328_vm1, %v23676_v38  ;;  %20567 = vmatmul.mubr.msk.f32.gmra.mrb[44].mxu1 %vm328_vm1, %v23679_v50  ;;  %v23719_v38 = vld [vmem:[%s23195_s8 + $0x378] sm:$0xff]  ;;  %v23725_v50 = vld [vmem:[%s23195_s8 + $0x380] sm:$0xff] }
  0x6e   : > { %20121 = vmatprep.mubr.msk.f32.mxu0 %vm328_vm1, %v23682_v30  ;;  %20569 = vmatprep.mubr.msk.f32.mxu1 %vm328_vm1, %v23685_v28  ;;  %v23716_v30 = vld [vmem:[%s23195_s8 + $0xf8] sm:$0xff]  ;;  %v23722_v28 = vld [vmem:[%s23195_s8 + $0x100] sm:$0xff] }
  0x6f   : > { %28182 = vst [vmem:[#allocation45_spill] sm:$0xff] %v23716_v30  ;;  %28183 = vst [vmem:[#allocation46_spill] sm:$0xff] %v23722_v28 }
  0x71   : > { %20122 = vmatmul.mubr.msk.f32.gmra.mrb[28].mxu0 %vm328_vm1, %v23696_v34  ;;  %20570 = vmatmul.mubr.msk.f32.gmra.mrb[46].mxu1 %vm328_vm1, %v23699_v45  ;;  %v23739_v34 = vld [vmem:[%s23195_s8 + $0x388] sm:$0xff]  ;;  %v23745_v45 = vld [vmem:[%s23195_s8 + $0x390] sm:$0xff] }
  0x72   : > { %20124 = vmatprep.mubr.msk.f32.mxu0 %vm328_vm1, %v23702_v26  ;;  %20572 = vmatprep.mubr.msk.f32.mxu1 %vm328_vm1, %v23705_v24  ;;  %v23736_v26 = vld [vmem:[%s23195_s8 + $0x108] sm:$0xff]  ;;  %v23742_v24 = vld [vmem:[%s23195_s8 + $0x110] sm:$0xff] }
  0x73   : > { %28184 = vst [vmem:[#allocation47_spill] sm:$0xff] %v23742_v24 }
  0x75   : > { %20125 = vmatmul.mubr.msk.f32.gmra.mrb[30].mxu0 %vm328_vm1, %v23716_v30  ;;  %20573 = vmatmul.mubr.msk.f32.gmra.mrb[48].mxu1 %vm328_vm1, %v23719_v38  ;;  %v23759_v30 = vld [vmem:[%s23195_s8 + $0x398] sm:$0xff] }
  0x76   : > { %20127 = vmatprep.mubr.msk.f32.mxu0 %vm328_vm1, %v23722_v28  ;;  %20575 = vmatprep.mubr.msk.f32.mxu1 %vm328_vm1, %v23725_v50  ;;  %v23756_v28 = vld [vmem:[%s23195_s8 + $0x118] sm:$0xff] }
  0x79   : > { %20128 = vmatmul.mubr.msk.f32.gmra.mrb[32].mxu0 %vm328_vm1, %v23736_v26  ;;  %20576 = vmatmul.mubr.msk.f32.gmra.mrb[50].mxu1 %vm328_vm1, %v23739_v34 }
  0x7a   : > { %20130 = vmatprep.mubr.msk.f32.mxu0 %vm328_vm1, %v23742_v24  ;;  %20578 = vmatprep.mubr.msk.f32.mxu1 %vm328_vm1, %v23745_v45  ;;  %v23772_v24 = vld [vmem:[%s27965_s1 + $0x10] sm:$0xf] }
  0x7d   : > { %20131 = vmatmul.mubr.msk.f32.gmra.mrb[34].mxu0 %vm328_vm1, %v23756_v28  ;;  %20579 = vmatmul.mubr.msk.f32.gmra.mrb[52].mxu1 %vm328_vm1, %v23759_v30 }
  0x7e   : > { %20135 = vmatprep.mubr.msk.f32.mxu0 %vm328_vm1, %v23391_v42  ;;  %20583 = vmatprep.mubr.msk.f32.mxu1 %vm328_vm1, %v23203_v4  ;;  %v23811_v4 = vld [vmem:[%s27965_s1 + $0xc] sm:$0xf] }
  0x7f   : > { %v24001_v42 = vld [vmem:[%s23195_s8 + $0x408] sm:$0xff] }
  0x81   : > { %20136 = vmatmul.mubr.msk.f32.vlgmr.msra.gmra.mrb[0].mxu0 %vm328_vm1, %v23402_v44  ;;  %20584 = vmatmul.mubr.msk.f32.vlgmr.msra.gmra.mrb[18].mxu1 %vm328_vm1, %v23209_v6  ;;  %v28186_v6 = vld [vmem:[#allocation3_spill] sm:$0xff]  ;;  %v24004_v44 = vld [vmem:[%s23195_s8 + $0x410] sm:$0xff] }
  0x82   : > { %20190 = vmatpush3.msk.msra.mxu0 %vm437_vm0, %v23413_v47  ;;  %20138 = vmatprep.mubr.msk.f32.mxu0 %vm328_vm1, %v23408_v46  ;;  %v28208_v46 = vld [vmem:[#allocation22_spill] sm:$0xff] }
  0x83   : > { %20586 = vmatprep.mubr.msk.f32.mxu1 %vm328_vm1, %v23219_v8  ;;  %20245 = vmatprep.subr.msk.mxu0 %vm437_vm0, %v23772_v24  ;;  %v28188_v8 = vld [vmem:[#allocation4_spill] sm:$0xff]  ;;  %v24017_v47 = vld [vmem:[%s23195_s8 + $0x418] sm:$0xff] }
  0x84   : > { %20638 = vmatpush3.msk.msra.mxu1 %vm437_vm0, %v23487_v60  ;;  %v24062_v60 = vld [vmem:[%s23195_s8 + $0x450] sm:$0xff] }
  0x85   : > { %20139 = vmatmul.mubr.msk.f32.gmra.mrb[2].mxu0 %vm328_vm1, %v23426_v49  ;;  %20587 = vmatmul.mubr.msk.f32.gmra.mrb[20].mxu1 %vm328_vm1, %v23232_v10  ;;  %v28190_v10 = vld [vmem:[#allocation5_spill] sm:$0xff]  ;;  %v28209_v49 = vld [vmem:[#allocation23_spill] sm:$0xff] }
  0x86   : > { %20141 = vmatprep.mubr.msk.f32.mxu0 %vm328_vm1, %v23434_v51  ;;  %20589 = vmatprep.mubr.msk.f32.mxu1 %vm328_vm1, %v23240_v12  ;;  %v28192_v12 = vld [vmem:[#allocation6_spill] sm:$0xff]  ;;  %v24031_v51 = vld [vmem:[%s23195_s8 + $0x428] sm:$0xff] }
  0x87   : > { %20693 = vmatprep.subr.msk.mxu1 %vm437_vm0, %v23811_v4 }
  0x89   : > { %20142 = vmatmul.mubr.msk.f32.gmra.mrb[4].mxu0 %vm328_vm1, %v23452_v53  ;;  %20590 = vmatmul.mubr.msk.f32.gmra.mrb[22].mxu1 %vm328_vm1, %v23262_v15  ;;  %v28194_v15 = vld [vmem:[#allocation8_spill] sm:$0xff]  ;;  %v28211_v53 = vld [vmem:[#allocation25_spill] sm:$0xff] }
  0x8a   : > { %20144 = vmatprep.mubr.msk.f32.mxu0 %vm328_vm1, %v23458_v55  ;;  %20592 = vmatprep.mubr.msk.f32.mxu1 %vm328_vm1, %v23268_v17  ;;  %v28196_v17 = vld [vmem:[#allocation10_spill] sm:$0xff] }
  0x8b   : > { %v24045_v55 = vld [vmem:[%s23195_s8 + $0x438] sm:$0xff] }
  0x8d   : > { %20145 = vmatmul.mubr.msk.f32.gmra.mrb[6].mxu0 %vm328_vm1, %v23472_v57  ;;  %20593 = vmatmul.mubr.msk.f32.gmra.mrb[24].mxu1 %vm328_vm1, %v23284_v19  ;;  %v28197_v19 = vld [vmem:[#allocation11_spill] sm:$0xff] }
  0x8e   : > { %20147 = vmatprep.mubr.msk.f32.mxu0 %vm328_vm1, %v23478_v59  ;;  %20595 = vmatprep.mubr.msk.f32.mxu1 %vm328_vm1, %v23290_v21  ;;  %v17169_v21 = vld [vmem:[%s23195_s8 + $0x3c8] sm:$0xff]  ;;  %v28213_v57 = vld [vmem:[#allocation27_spill] sm:$0xff] }
  0x8f   : > { %v24059_v59 = vld [vmem:[%s23195_s8 + $0x448] sm:$0xff] }
  0x91   : > { %20148 = vmatmul.mubr.msk.f32.gmra.mrb[8].mxu0 %vm328_vm1, %v23497_v62  ;;  %20596 = vmatmul.mubr.msk.f32.gmra.mrb[26].mxu1 %vm328_vm1, %v23304_v23  ;;  %v23938_v23 = vld [vmem:[%s27965_s1 + $0x14] sm:$0xf]  ;;  %v28216_v62 = vld [vmem:[#allocation30_spill] sm:$0xff] }
  0x92   : > { %20150 = vmatprep.mubr.msk.f32.mxu0 %vm328_vm1, %v23503_v0  ;;  %20598 = vmatprep.mubr.msk.f32.mxu1 %vm328_vm1, %v23310_v25  ;;  %v28199_v25 = vld [vmem:[#allocation13_spill] sm:$0xff]  ;;  %v24076_v0 = vld [vmem:[%s23195_s8 + $0x460] sm:$0xff] }
  0x95   : > { %20151 = vmatmul.mubr.msk.f32.gmra.mrb[10].mxu0 %vm328_vm1, %v23519_v2  ;;  %20599 = vmatmul.mubr.msk.f32.gmra.mrb[28].mxu1 %vm328_vm1, %v23324_v27  ;;  %v28200_v27 = vld [vmem:[#allocation14_spill] sm:$0xff]  ;;  %v28218_v2 = vld [vmem:[#allocation32_spill] sm:$0xff] }
  0x96   : > { %20153 = vmatprep.mubr.msk.f32.mxu0 %vm328_vm1, %v23525_v14  ;;  %20601 = vmatprep.mubr.msk.f32.mxu1 %vm328_vm1, %v23330_v29  ;;  %v23948_v29 = vld [vmem:[%s23195_s8 + $0x3d8] sm:$0xff]  ;;  %v24090_v14 = vld [vmem:[%s23195_s8 + $0x470] sm:$0xff] }
  0x99   : > { %20154 = vmatmul.mubr.msk.f32.gmra.mrb[12].mxu0 %vm328_vm1, %v23539_v43  ;;  %20602 = vmatmul.mubr.msk.f32.gmra.mrb[30].mxu1 %vm328_vm1, %v23344_v31  ;;  %v28201_v31 = vld [vmem:[#allocation15_spill] sm:$0xff]  ;;  %v28220_v43 = vld [vmem:[#allocation34_spill] sm:$0xff] }
  0x9a   : > { %20156 = vmatprep.mubr.msk.f32.mxu0 %vm328_vm1, %v23545_v61  ;;  %20604 = vmatprep.mubr.msk.f32.mxu1 %vm328_vm1, %v23350_v33  ;;  %v23971_v33 = vld [vmem:[%s23195_s8 + $0x3f0] sm:$0xff] }
  0x9b   : > { %v28215_v61 = vld [vmem:[#allocation29_spill] sm:$0xff] }
  0x9d   : > { %20157 = vmatmul.mubr.msk.f32.gmra.mrb[14].mxu0 %vm328_vm1, %v23559_v1  ;;  %20605 = vmatmul.mubr.msk.f32.gmra.mrb[32].mxu1 %vm328_vm1, %v23364_v35  ;;  %v28204_v35 = vld [vmem:[#allocation18_spill] sm:$0xff]  ;;  %v28217_v1 = vld [vmem:[#allocation31_spill] sm:$0xff] }
  0x9e   : > { %20159 = vmatprep.mubr.msk.f32.mxu0 %vm328_vm1, %v23565_v56  ;;  %20607 = vmatprep.mubr.msk.f32.mxu1 %vm328_vm1, %v23370_v37  ;;  %v23985_v37 = vld [vmem:[%s23195_s8 + $0x400] sm:$0xff] }
  0x9f   : > { %v24048_v56 = vld [vmem:[%s23195_s8 + $0x440] sm:$0xff] }
  0xa1   : > { %20160 = vmatmul.mubr.msk.f32.gmra.mrb[16].mxu0 %vm328_vm1, %v23579_v41  ;;  %20608 = vmatmul.mubr.msk.f32.gmra.mrb[34].mxu1 %vm328_vm1, %v23384_v39  ;;  %v23994_v39 = vld [vmem:[%s27965_s1 + $0x10] sm:$0xf] }
  0xa2   : > { %20162 = vmatprep.mubr.msk.f32.mxu0 %vm328_vm1, %v23585_v52  ;;  %20610 = vmatprep.mubr.msk.f32.mxu1 %vm328_vm1, %v23206_v5  ;;  %v28185_v5 = vld [vmem:[#allocation38_spill] sm:$0xff]  ;;  %v24034_v52 = vld [vmem:[%s23195_s8 + $0x430] sm:$0xff] }
  0xa3   : > { %v28219_v41 = vld [vmem:[#allocation33_spill] sm:$0xff] }
  0xa5   : > { %20163 = vmatmul.mubr.msk.f32.gmra.mrb[18].mxu0 %vm328_vm1, %v23599_v3  ;;  %20611 = vmatmul.mubr.msk.f32.gmra.mrb[36].mxu1 %vm328_vm1, %v23216_v7  ;;  %v28187_v7 = vld [vmem:[#allocation40_spill] sm:$0xff] }
  0xa6   : > { %20165 = vmatprep.mubr.msk.f32.mxu0 %vm328_vm1, %v23605_v48  ;;  %20613 = vmatprep.mubr.msk.f32.mxu1 %vm328_vm1, %v23222_v9  ;;  %v28189_v9 = vld [vmem:[#allocation42_spill] sm:$0xff]  ;;  %v24020_v48 = vld [vmem:[%s23195_s8 + $0x420] sm:$0xff]  ;;  %v24087_v3 = vld [vmem:[%s23195_s8 + $0x468] sm:$0xff] }
  0xa9   : > { %20166 = vmatmul.mubr.msk.f32.gmra.mrb[20].mxu0 %vm328_vm1, %v23619_v63  ;;  %20614 = vmatmul.mubr.msk.f32.gmra.mrb[38].mxu1 %vm328_vm1, %v23235_v11  ;;  %v28191_v11 = vld [vmem:[#allocation44_spill] sm:$0xff]  ;;  %v24073_v63 = vld [vmem:[%s23195_s8 + $0x458] sm:$0xff] }
  0xaa   : > { %20168 = vmatprep.mubr.msk.f32.mxu0 %vm328_vm1, %v23625_v40  ;;  %20616 = vmatprep.mubr.msk.f32.mxu1 %vm328_vm1, %v23243_v13  ;;  %v28193_v13 = vld [vmem:[#allocation7_spill] sm:$0xff]  ;;  %v28206_v40 = vld [vmem:[#allocation20_spill] sm:$0xff] }
  0xad   : > { %20169 = vmatmul.mubr.msk.f32.gmra.mrb[22].mxu0 %vm328_vm1, %v23639_v58  ;;  %20617 = vmatmul.mubr.msk.f32.gmra.mrb[40].mxu1 %vm328_vm1, %v23265_v16  ;;  %v28195_v16 = vld [vmem:[#allocation9_spill] sm:$0xff]  ;;  %v28214_v58 = vld [vmem:[#allocation28_spill] sm:$0xff] }
  0xae   : > { %20171 = vmatprep.mubr.msk.f32.mxu0 %vm328_vm1, %v23645_v36  ;;  %20619 = vmatprep.mubr.msk.f32.mxu1 %vm328_vm1, %v23271_v18  ;;  %v17168_v18 = vld [vmem:[%s23195_s8 + $0x3c0] sm:$0xff]  ;;  %v23982_v36 = vld [vmem:[%s23195_s8 + $0x3f8] sm:$0xff] }
  0xb1   : > { %20172 = vmatmul.mubr.msk.f32.gmra.mrb[24].mxu0 %vm328_vm1, %v23659_v54  ;;  %20620 = vmatmul.mubr.msk.f32.gmra.mrb[42].mxu1 %vm328_vm1, %v23287_v20  ;;  %v28198_v20 = vld [vmem:[#allocation12_spill] sm:$0xff]  ;;  %v28212_v54 = vld [vmem:[#allocation26_spill] sm:$0xff] }
  0xb2   : > { %20174 = vmatprep.mubr.msk.f32.mxu0 %vm328_vm1, %v23665_v32  ;;  %20622 = vmatprep.mubr.msk.f32.mxu1 %vm328_vm1, %v23293_v22  ;;  %v23933_v22 = vld [vmem:[%s23195_s8 + $0x3d0] sm:$0xff]  ;;  %v23968_v32 = vld [vmem:[%s23195_s8 + $0x3e8] sm:$0xff] }
  0xb5   : > { %20175 = vmatmul.mubr.msk.f32.gmra.mrb[26].mxu0 %vm328_vm1, %v28185_v5  ;;  %20623 = vmatmul.mubr.msk.f32.gmra.mrb[44].mxu1 %vm328_vm1, %v28186_v6  ;;  %v24104_v5 = vld [vmem:[%s23195_s8 + $0x480] sm:$0xff] }
  0xb6   : > { %20177 = vmatprep.mubr.msk.f32.mxu0 %vm328_vm1, %v28187_v7  ;;  %20625 = vmatprep.mubr.msk.f32.mxu1 %vm328_vm1, %v28188_v8  ;;  %v28221_v6 = vld [vmem:[#allocation35_spill] sm:$0xff]  ;;  %v28222_v7 = vld [vmem:[#allocation36_spill] sm:$0xff] }
  0xb7   : > { %v24115_v8 = vld [vmem:[%s23195_s8 + $0x488] sm:$0xff] }
  0xb9   : > { %20178 = vmatmul.mubr.msk.f32.gmra.mrb[28].mxu0 %vm328_vm1, %v28189_v9  ;;  %20626 = vmatmul.mubr.msk.f32.gmra.mrb[46].mxu1 %vm328_vm1, %v28190_v10  ;;  %v24118_v9 = vld [vmem:[%s23195_s8 + $0x490] sm:$0xff] }
  0xba   : > { %20180 = vmatprep.mubr.msk.f32.mxu0 %vm328_vm1, %v28191_v11  ;;  %20628 = vmatprep.mubr.msk.f32.mxu1 %vm328_vm1, %v28192_v12  ;;  %v28223_v10 = vld [vmem:[#allocation37_spill] sm:$0xff]  ;;  %v28224_v11 = vld [vmem:[#allocation39_spill] sm:$0xff]  ;;  %v24129_v12 = vld [vmem:[%s23195_s8 + $0x498] sm:$0xff] }
  0xbd   : > { %20181 = vmatmul.mubr.msk.f32.gmra.mrb[30].mxu0 %vm328_vm1, %v23719_v38  ;;  %20629 = vmatmul.mubr.msk.f32.gmra.mrb[48].mxu1 %vm328_vm1, %v28193_v13  ;;  %v28205_v38 = vld [vmem:[#allocation19_spill] sm:$0xff] }
  0xbe   : > { %20183 = vmatprep.mubr.msk.f32.mxu0 %vm328_vm1, %v23725_v50  ;;  %20631 = vmatprep.mubr.msk.f32.mxu1 %vm328_vm1, %v28194_v15  ;;  %v28210_v50 = vld [vmem:[#allocation24_spill] sm:$0xff]  ;;  %v24132_v13 = vld [vmem:[%s23195_s8 + $0x4a0] sm:$0xff]  ;;  %v28225_v15 = vld [vmem:[#allocation41_spill] sm:$0xff] }
  0xc1   : > { %20184 = vmatmul.mubr.msk.f32.gmra.mrb[32].mxu0 %vm328_vm1, %v23739_v34  ;;  %20632 = vmatmul.mubr.msk.f32.gmra.mrb[50].mxu1 %vm328_vm1, %v28195_v16  ;;  %v28203_v34 = vld [vmem:[#allocation17_spill] sm:$0xff]  ;;  %v28226_v16 = vld [vmem:[#allocation43_spill] sm:$0xff] }
  0xc2   : > { %20186 = vmatprep.mubr.msk.f32.mxu0 %vm328_vm1, %v23745_v45  ;;  %20634 = vmatprep.mubr.msk.f32.mxu1 %vm328_vm1, %v28196_v17  ;;  %v28207_v45 = vld [vmem:[#allocation21_spill] sm:$0xff]  ;;  %v24143_v17 = vld [vmem:[%s23195_s8 + $0x4a8] sm:$0xff] }
  0xc5   : > { %20187 = vmatmul.mubr.msk.f32.gmra.mrb[34].mxu0 %vm328_vm1, %v23759_v30  ;;  %20635 = vmatmul.mubr.msk.f32.gmra.mrb[52].mxu1 %vm328_vm1, %v28197_v19  ;;  %v23953_v30 = vld [vmem:[%s23195_s8 + $0x3e0] sm:$0xff]  ;;  %v28227_v19 = vld [vmem:[#allocation45_spill] sm:$0xff] }
  0xc6   : > { %20191 = vmatprep.mubr.msk.f32.mxu0 %vm328_vm1, %v28198_v20  ;;  %20639 = vmatprep.mubr.msk.f32.mxu1 %vm328_vm1, %v17168_v18  ;;  %v24146_v18 = vld [vmem:[%s23195_s8 + $0x4b0] sm:$0xff]  ;;  %v28228_v20 = vld [vmem:[#allocation46_spill] sm:$0xff] }
  0xc9   : > { %20192 = vmatmul.mubr.msk.f32.vlgmr.msra.gmra.mrb[0].mxu0 %vm328_vm1, %v28199_v25  ;;  %20640 = vmatmul.mubr.msk.f32.vlgmr.msra.gmra.mrb[18].mxu1 %vm328_vm1, %v17169_v21  ;;  %v24157_v21 = vld [vmem:[%s23195_s8 + $0x4b8] sm:$0xff]  ;;  %v24160_v25 = vld [vmem:[%s23195_s8 + $0x4c0] sm:$0xff] }
  0xca   : > { %20246 = vmatpush3.msk.msra.mxu0 %vm437_vm0, %v23772_v24  ;;  %20194 = vmatprep.mubr.msk.f32.mxu0 %vm328_vm1, %v28200_v27  ;;  %v28202_v24 = vld [vmem:[#allocation16_spill] sm:$0xff]  ;;  %v28229_v27 = vld [vmem:[#allocation47_spill] sm:$0xff] }
  0xcb   : > { %20642 = vmatprep.mubr.msk.f32.mxu1 %vm328_vm1, %v23933_v22  ;;  %20301 = vmatprep.subr.msk.mxu0 %vm437_vm0, %v23938_v23 }
  0xcc   : > { %20694 = vmatpush3.msk.msra.mxu1 %vm437_vm0, %v23811_v4  ;;  %v24101_v4 = vld [vmem:[%s23195_s8 + $0x478] sm:$0xff] }
  0xcd   : > { %20195 = vmatmul.mubr.msk.f32.gmra.mrb[2].mxu0 %vm328_vm1, %v28201_v31  ;;  %20643 = vmatmul.mubr.msk.f32.gmra.mrb[20].mxu1 %vm328_vm1, %v23948_v29  ;;  %v24171_v31 = vld [vmem:[%s23195_s8 + $0x4c8] sm:$0xff] }
  0xce   : > { %20197 = vmatprep.mubr.msk.f32.mxu0 %vm328_vm1, %v28202_v24  ;;  %20645 = vmatprep.mubr.msk.f32.mxu1 %vm328_vm1, %v23953_v30  ;;  %v24174_v24 = vld [vmem:[%s23195_s8 + $0x120] sm:$0xff] }
  0xcf   : > { %20749 = vmatprep.subr.msk.mxu1 %vm437_vm0, %v23994_v39 }
  0xd1   : > { %20198 = vmatmul.mubr.msk.f32.gmra.mrb[4].mxu0 %vm328_vm1, %v28203_v34  ;;  %20646 = vmatmul.mubr.msk.f32.gmra.mrb[22].mxu1 %vm328_vm1, %v23968_v32  ;;  %v24177_v34 = vld [vmem:[%s23195_s8 + $0x4d0] sm:$0xff] }
  0xd2   : > { %20200 = vmatprep.mubr.msk.f32.mxu0 %vm328_vm1, %v28204_v35  ;;  %20648 = vmatprep.mubr.msk.f32.mxu1 %vm328_vm1, %v23971_v33  ;;  %v24191_v35 = vld [vmem:[%s23195_s8 + $0x4d8] sm:$0xff] }
  0xd5   : > { %20201 = vmatmul.mubr.msk.f32.gmra.mrb[6].mxu0 %vm328_vm1, %v28205_v38  ;;  %20649 = vmatmul.mubr.msk.f32.gmra.mrb[24].mxu1 %vm328_vm1, %v23982_v36  ;;  %v16686_v38 = vld [vmem:[%s23195_s8 + $0x150] sm:$0xff] }
  0xd6   : > { %20203 = vmatprep.mubr.msk.f32.mxu0 %vm328_vm1, %v28206_v40  ;;  %20651 = vmatprep.mubr.msk.f32.mxu1 %vm328_vm1, %v23985_v37  ;;  %v24202_v40 = vld [vmem:[%s23195_s8 + $0x160] sm:$0xff] }
  0xd9   : > { %20204 = vmatmul.mubr.msk.f32.gmra.mrb[8].mxu0 %vm328_vm1, %v28207_v45  ;;  %20652 = vmatmul.mubr.msk.f32.gmra.mrb[26].mxu1 %vm328_vm1, %v24001_v42  ;;  %v24207_v45 = vld [vmem:[%s27965_s1 + $0x18] sm:$0xf] }
  0xda   : > { %20206 = vmatprep.mubr.msk.f32.mxu0 %vm328_vm1, %v28208_v46  ;;  %20654 = vmatprep.mubr.msk.f32.mxu1 %vm328_vm1, %v24004_v44  ;;  %v24216_v46 = vld [vmem:[%s23195_s8 + $0x168] sm:$0xff] }
  0xdd   : > { %20207 = vmatmul.mubr.msk.f32.gmra.mrb[10].mxu0 %vm328_vm1, %v28209_v49  ;;  %20655 = vmatmul.mubr.msk.f32.gmra.mrb[28].mxu1 %vm328_vm1, %v24017_v47  ;;  %v24221_v49 = vld [vmem:[%s23195_s8 + $0x170] sm:$0xff] }
  0xde   : > { %20209 = vmatprep.mubr.msk.f32.mxu0 %vm328_vm1, %v28210_v50  ;;  %20657 = vmatprep.mubr.msk.f32.mxu1 %vm328_vm1, %v24020_v48  ;;  %v24239_v50 = vld [vmem:[%s23195_s8 + $0x180] sm:$0xff] }
  0xe1   : > { %20210 = vmatmul.mubr.msk.f32.gmra.mrb[12].mxu0 %vm328_vm1, %v28211_v53  ;;  %20658 = vmatmul.mubr.msk.f32.gmra.mrb[30].mxu1 %vm328_vm1, %v24031_v51  ;;  %v24253_v53 = vld [vmem:[%s23195_s8 + $0x190] sm:$0xff] }
  0xe2   : > { %20212 = vmatprep.mubr.msk.f32.mxu0 %vm328_vm1, %v28212_v54  ;;  %20660 = vmatprep.mubr.msk.f32.mxu1 %vm328_vm1, %v24034_v52  ;;  %v24262_v54 = vld [vmem:[%s27965_s1 + $0x14] sm:$0xf] }
  0xe5   : > { %20213 = vmatmul.mubr.msk.f32.gmra.mrb[14].mxu0 %vm328_vm1, %v28213_v57  ;;  %20661 = vmatmul.mubr.msk.f32.gmra.mrb[32].mxu1 %vm328_vm1, %v24045_v55  ;;  %v24269_v57 = vld [vmem:[%s23195_s8 + $0x198] sm:$0xff] }
  0xe6   : > { %20215 = vmatprep.mubr.msk.f32.mxu0 %vm328_vm1, %v28214_v58  ;;  %20663 = vmatprep.mubr.msk.f32.mxu1 %vm328_vm1, %v24048_v56  ;;  %v24272_v58 = vld [vmem:[%s23195_s8 + $0x1a0] sm:$0xff] }
  0xe9   : > { %20216 = vmatmul.mubr.msk.f32.gmra.mrb[16].mxu0 %vm328_vm1, %v28215_v61  ;;  %20664 = vmatmul.mubr.msk.f32.gmra.mrb[34].mxu1 %vm328_vm1, %v24059_v59  ;;  %v24285_v61 = vld [vmem:[%s23195_s8 + $0x1a8] sm:$0xff] }
  0xea   : > { %20218 = vmatprep.mubr.msk.f32.mxu0 %vm328_vm1, %v28216_v62  ;;  %20666 = vmatprep.mubr.msk.f32.mxu1 %vm328_vm1, %v24062_v60  ;;  %v24288_v62 = vld [vmem:[%s23195_s8 + $0x1b0] sm:$0xff] }
  0xed   : > { %20219 = vmatmul.mubr.msk.f32.gmra.mrb[18].mxu0 %vm328_vm1, %v28217_v1  ;;  %20667 = vmatmul.mubr.msk.f32.gmra.mrb[36].mxu1 %vm328_vm1, %v24073_v63  ;;  %v24299_v1 = vld [vmem:[%s23195_s8 + $0x1b8] sm:$0xff] }
  0xee   : > { %20221 = vmatprep.mubr.msk.f32.mxu0 %vm328_vm1, %v28218_v2  ;;  %20669 = vmatprep.mubr.msk.f32.mxu1 %vm328_vm1, %v24076_v0  ;;  %v24302_v2 = vld [vmem:[%s23195_s8 + $0x1c0] sm:$0xff] }
  0xf1   : > { %20222 = vmatmul.mubr.msk.f32.gmra.mrb[20].mxu0 %vm328_vm1, %v28219_v41  ;;  %20670 = vmatmul.mubr.msk.f32.gmra.mrb[38].mxu1 %vm328_vm1, %v24087_v3  ;;  %v24313_v41 = vld [vmem:[%s23195_s8 + $0x1c8] sm:$0xff] }
  0xf2   : > { %20224 = vmatprep.mubr.msk.f32.mxu0 %vm328_vm1, %v28220_v43  ;;  %20672 = vmatprep.mubr.msk.f32.mxu1 %vm328_vm1, %v24090_v14  ;;  %v24316_v43 = vld [vmem:[%s23195_s8 + $0x1d0] sm:$0xff] }
  0xf5   : > { %20225 = vmatmul.mubr.msk.f32.gmra.mrb[22].mxu0 %vm328_vm1, %v28221_v6  ;;  %20673 = vmatmul.mubr.msk.f32.gmra.mrb[40].mxu1 %vm328_vm1, %v24101_v4  ;;  %v24327_v6 = vld [vmem:[%s23195_s8 + $0x1d8] sm:$0xff] }
  0xf6   : > { %20227 = vmatprep.mubr.msk.f32.mxu0 %vm328_vm1, %v28222_v7  ;;  %20675 = vmatprep.mubr.msk.f32.mxu1 %vm328_vm1, %v24104_v5  ;;  %v24330_v7 = vld [vmem:[%s23195_s8 + $0x1e0] sm:$0xff] }
  0xf9   : > { %20228 = vmatmul.mubr.msk.f32.gmra.mrb[24].mxu0 %vm328_vm1, %v28223_v10  ;;  %20676 = vmatmul.mubr.msk.f32.gmra.mrb[42].mxu1 %vm328_vm1, %v24115_v8  ;;  %v24341_v10 = vld [vmem:[%s23195_s8 + $0x1e8] sm:$0xff] }
  0xfa   : > { %20230 = vmatprep.mubr.msk.f32.mxu0 %vm328_vm1, %v28224_v11  ;;  %20678 = vmatprep.mubr.msk.f32.mxu1 %vm328_vm1, %v24118_v9  ;;  %v24344_v11 = vld [vmem:[%s23195_s8 + $0x1f0] sm:$0xff] }
  0xfd   : > { %20231 = vmatmul.mubr.msk.f32.gmra.mrb[26].mxu0 %vm328_vm1, %v28225_v15  ;;  %20679 = vmatmul.mubr.msk.f32.gmra.mrb[44].mxu1 %vm328_vm1, %v24129_v12  ;;  %v24355_v15 = vld [vmem:[%s23195_s8 + $0x1f8] sm:$0xff] }
  0xfe   : > { %20233 = vmatprep.mubr.msk.f32.mxu0 %vm328_vm1, %v28226_v16  ;;  %20681 = vmatprep.mubr.msk.f32.mxu1 %vm328_vm1, %v24132_v13  ;;  %28230 = vst [vmem:[#allocation38_spill] sm:$0xff] %v24355_v15  ;;  %v24358_v16 = vld [vmem:[%s23195_s8 + $0x200] sm:$0xff] }
  0xff   : > { %28231 = vst [vmem:[#allocation3_spill] sm:$0xff] %v24358_v16 }
 0x101   : > { %20234 = vmatmul.mubr.msk.f32.gmra.mrb[28].mxu0 %vm328_vm1, %v28227_v19  ;;  %20682 = vmatmul.mubr.msk.f32.gmra.mrb[46].mxu1 %vm328_vm1, %v24143_v17  ;;  %v24369_v19 = vld [vmem:[%s23195_s8 + $0x208] sm:$0xff] }
 0x102   : > { %20236 = vmatprep.mubr.msk.f32.mxu0 %vm328_vm1, %v28228_v20  ;;  %20684 = vmatprep.mubr.msk.f32.mxu1 %vm328_vm1, %v24146_v18  ;;  %28232 = vst [vmem:[#allocation40_spill] sm:$0xff] %v24369_v19  ;;  %v24372_v20 = vld [vmem:[%s23195_s8 + $0x210] sm:$0xff] }
 0x103   : > { %28233 = vst [vmem:[#allocation4_spill] sm:$0xff] %v24372_v20 }
 0x105   : > { %20237 = vmatmul.mubr.msk.f32.gmra.mrb[30].mxu0 %vm328_vm1, %v23736_v26  ;;  %20685 = vmatmul.mubr.msk.f32.gmra.mrb[48].mxu1 %vm328_vm1, %v24157_v21  ;;  %v24188_v26 = vld [vmem:[%s23195_s8 + $0x128] sm:$0xff] }
 0x106   : > { %20239 = vmatprep.mubr.msk.f32.mxu0 %vm328_vm1, %v28229_v27  ;;  %20687 = vmatprep.mubr.msk.f32.mxu1 %vm328_vm1, %v24160_v25  ;;  %v24383_v27 = vld [vmem:[%s23195_s8 + $0x218] sm:$0xff] }
 0x107   : > { %28234 = vst [vmem:[#allocation42_spill] sm:$0xff] %v24383_v27 }
 0x109   : > { %20240 = vmatmul.mubr.msk.f32.gmra.mrb[32].mxu0 %vm328_vm1, %v23756_v28  ;;  %20688 = vmatmul.mubr.msk.f32.gmra.mrb[50].mxu1 %vm328_vm1, %v24171_v31  ;;  %v16687_v28 = vld [vmem:[%s23195_s8 + $0x158] sm:$0xff] }
 0x10a   : > { %20242 = vmatprep.mubr.msk.f32.mxu0 %vm328_vm1, %v24174_v24  ;;  %20690 = vmatprep.mubr.msk.f32.mxu1 %vm328_vm1, %v24177_v34 }
 0x10d   : > { %20243 = vmatmul.mubr.msk.f32.gmra.mrb[34].mxu0 %vm328_vm1, %v24188_v26  ;;  %20691 = vmatmul.mubr.msk.f32.gmra.mrb[52].mxu1 %vm328_vm1, %v24191_v35 }
 0x10e   : > { %20247 = vmatprep.mubr.msk.f32.mxu0 %vm328_vm1, %v16686_v38  ;;  %20695 = vmatprep.mubr.msk.f32.mxu1 %vm328_vm1, %v16686_v38  ;;  %v24386_v38 = vld [vmem:[%s23195_s8 + $0x220] sm:$0xff] }
 0x10f   : > { %28235 = vst [vmem:[#allocation5_spill] sm:$0xff] %v24386_v38 }
 0x111   : > { %20248 = vmatmul.mubr.msk.f32.vlgmr.msra.gmra.mrb[0].mxu0 %vm328_vm1, %v16687_v28  ;;  %20696 = vmatmul.mubr.msk.f32.vlgmr.msra.gmra.mrb[18].mxu1 %vm328_vm1, %v16687_v28  ;;  %v24397_v28 = vld [vmem:[%s23195_s8 + $0x228] sm:$0xff] }
 0x112   : > { %20302 = vmatpush3.msk.msra.mxu0 %vm437_vm0, %v23938_v23  ;;  %20250 = vmatprep.mubr.msk.f32.mxu0 %vm328_vm1, %v24202_v40  ;;  %v24236_v23 = vld [vmem:[%s23195_s8 + $0x178] sm:$0xff]  ;;  %28236 = vst [vmem:[#allocation44_spill] sm:$0xff] %v24397_v28 }
 0x113   : > { %20698 = vmatprep.mubr.msk.f32.mxu1 %vm328_vm1, %v24202_v40  ;;  %20357 = vmatprep.subr.msk.mxu0 %vm437_vm0, %v24207_v45 }
 0x114   : > { %20750 = vmatpush3.msk.msra.mxu1 %vm437_vm0, %v23994_v39  ;;  %v24250_v39 = vld [vmem:[%s23195_s8 + $0x188] sm:$0xff] }
 0x115   : > { %20251 = vmatmul.mubr.msk.f32.gmra.mrb[2].mxu0 %vm328_vm1, %v24216_v46  ;;  %20699 = vmatmul.mubr.msk.f32.gmra.mrb[20].mxu1 %vm328_vm1, %v24216_v46 }
 0x116   : > { %20253 = vmatprep.mubr.msk.f32.mxu0 %vm328_vm1, %v24221_v49  ;;  %20701 = vmatprep.mubr.msk.f32.mxu1 %vm328_vm1, %v24221_v49 }
 0x117   : > { %20805 = vmatprep.subr.msk.mxu1 %vm437_vm0, %v24262_v54 }
 0x119   : > { %20254 = vmatmul.mubr.msk.f32.gmra.mrb[4].mxu0 %vm328_vm1, %v24236_v23  ;;  %20702 = vmatmul.mubr.msk.f32.gmra.mrb[22].mxu1 %vm328_vm1, %v24236_v23 }
 0x11a   : > { %20256 = vmatprep.mubr.msk.f32.mxu0 %vm328_vm1, %v24239_v50  ;;  %20704 = vmatprep.mubr.msk.f32.mxu1 %vm328_vm1, %v24239_v50 }
 0x11d   : > { %20257 = vmatmul.mubr.msk.f32.gmra.mrb[6].mxu0 %vm328_vm1, %v24250_v39  ;;  %20705 = vmatmul.mubr.msk.f32.gmra.mrb[24].mxu1 %vm328_vm1, %v24250_v39 }
 0x11e   : > { %20259 = vmatprep.mubr.msk.f32.mxu0 %vm328_vm1, %v24253_v53  ;;  %20707 = vmatprep.mubr.msk.f32.mxu1 %vm328_vm1, %v24253_v53 }
 0x121   : > { %20260 = vmatmul.mubr.msk.f32.gmra.mrb[8].mxu0 %vm328_vm1, %v24269_v57  ;;  %20708 = vmatmul.mubr.msk.f32.gmra.mrb[26].mxu1 %vm328_vm1, %v24269_v57 }
 0x122   : > { %20262 = vmatprep.mubr.msk.f32.mxu0 %vm328_vm1, %v24272_v58  ;;  %20710 = vmatprep.mubr.msk.f32.mxu1 %vm328_vm1, %v24272_v58 }
 0x125   : > { %20263 = vmatmul.mubr.msk.f32.gmra.mrb[10].mxu0 %vm328_vm1, %v24285_v61  ;;  %20711 = vmatmul.mubr.msk.f32.gmra.mrb[28].mxu1 %vm328_vm1, %v24285_v61 }
 0x126   : > { %20265 = vmatprep.mubr.msk.f32.mxu0 %vm328_vm1, %v24288_v62  ;;  %20713 = vmatprep.mubr.msk.f32.mxu1 %vm328_vm1, %v24288_v62 }
 0x129   : > { %20266 = vmatmul.mubr.msk.f32.gmra.mrb[12].mxu0 %vm328_vm1, %v24299_v1  ;;  %20714 = vmatmul.mubr.msk.f32.gmra.mrb[30].mxu1 %vm328_vm1, %v24299_v1 }
 0x12a   : > { %20268 = vmatprep.mubr.msk.f32.mxu0 %vm328_vm1, %v24302_v2  ;;  %20716 = vmatprep.mubr.msk.f32.mxu1 %vm328_vm1, %v24302_v2 }
 0x12d   : > { %20269 = vmatmul.mubr.msk.f32.gmra.mrb[14].mxu0 %vm328_vm1, %v24313_v41  ;;  %20717 = vmatmul.mubr.msk.f32.gmra.mrb[32].mxu1 %vm328_vm1, %v24313_v41 }
 0x12e   : > { %20271 = vmatprep.mubr.msk.f32.mxu0 %vm328_vm1, %v24316_v43  ;;  %20719 = vmatprep.mubr.msk.f32.mxu1 %vm328_vm1, %v24316_v43 }
 0x131   : > { %20272 = vmatmul.mubr.msk.f32.gmra.mrb[16].mxu0 %vm328_vm1, %v24327_v6  ;;  %20720 = vmatmul.mubr.msk.f32.gmra.mrb[34].mxu1 %vm328_vm1, %v24327_v6 }
 0x132   : > { %20274 = vmatprep.mubr.msk.f32.mxu0 %vm328_vm1, %v24330_v7  ;;  %20722 = vmatprep.mubr.msk.f32.mxu1 %vm328_vm1, %v24330_v7 }
 0x135   : > { %20275 = vmatmul.mubr.msk.f32.gmra.mrb[18].mxu0 %vm328_vm1, %v24341_v10  ;;  %20723 = vmatmul.mubr.msk.f32.gmra.mrb[36].mxu1 %vm328_vm1, %v24341_v10 }
 0x136   : > { %20277 = vmatprep.mubr.msk.f32.mxu0 %vm328_vm1, %v24344_v11  ;;  %20725 = vmatprep.mubr.msk.f32.mxu1 %vm328_vm1, %v24344_v11 }
 0x139   : > { %20278 = vmatmul.mubr.msk.f32.gmra.mrb[20].mxu0 %vm328_vm1, %v24355_v15  ;;  %20726 = vmatmul.mubr.msk.f32.gmra.mrb[38].mxu1 %vm328_vm1, %v24355_v15  ;;  %v23130_v15 = vmov 0  }
 0x13a   : > { %20280 = vmatprep.mubr.msk.f32.mxu0 %vm328_vm1, %v24358_v16  ;;  %20728 = vmatprep.mubr.msk.f32.mxu1 %vm328_vm1, %v24358_v16  ;;  %v16778_v16 = vld [vmem:[%s23195_s8 + $0x320] sm:$0xff] }
 0x13b   : > { %23116 = vset.pattern.permute.xlu1 %v23130_v15  ;;  %23115 = vset.pattern.permute.xlu0 %v23130_v15  ;;  %v17690_v15 = vld [vmem:[%s27967_s3 + $0x138] sm:$0xff] }
 0x13d   : > { %20281 = vmatmul.mubr.msk.f32.gmra.mrb[22].mxu0 %vm328_vm1, %v24369_v19  ;;  %20729 = vmatmul.mubr.msk.f32.gmra.mrb[40].mxu1 %vm328_vm1, %v24369_v19  ;;  %v24464_v19 = vld [vmem:[%s23195_s8 + $0x2a0] sm:$0xff] }
 0x13e   : > { %20283 = vmatprep.mubr.msk.f32.mxu0 %vm328_vm1, %v24372_v20  ;;  %20731 = vmatprep.mubr.msk.f32.mxu1 %vm328_vm1, %v24372_v20  ;;  %v24400_v20 = vld [vmem:[%s23195_s8 + $0x230] sm:$0xff]  ;;  %28245 = vst [vmem:[#allocation14_spill] sm:$0xff] %v24464_v19 }
 0x13f   : > { %28237 = vst [vmem:[#allocation6_spill] sm:$0xff] %v24400_v20 }
 0x141   : > { %20284 = vmatmul.mubr.msk.f32.gmra.mrb[24].mxu0 %vm328_vm1, %v24383_v27  ;;  %20732 = vmatmul.mubr.msk.f32.gmra.mrb[42].mxu1 %vm328_vm1, %v24383_v27  ;;  %v24411_v27 = vld [vmem:[%s23195_s8 + $0x238] sm:$0xff] }
 0x142   : > { %20286 = vmatprep.mubr.msk.f32.mxu0 %vm328_vm1, %v24386_v38  ;;  %20734 = vmatprep.mubr.msk.f32.mxu1 %vm328_vm1, %v24386_v38  ;;  %28238 = vst [vmem:[#allocation7_spill] sm:$0xff] %v24411_v27  ;;  %v24414_v38 = vld [vmem:[%s23195_s8 + $0x240] sm:$0xff] }
 0x143   : > { %28239 = vst [vmem:[#allocation8_spill] sm:$0xff] %v24414_v38 }
 0x145   : > { %20287 = vmatmul.mubr.msk.f32.gmra.mrb[26].mxu0 %vm328_vm1, %v24397_v28  ;;  %20735 = vmatmul.mubr.msk.f32.gmra.mrb[44].mxu1 %vm328_vm1, %v24397_v28  ;;  %v24425_v28 = vld [vmem:[%s23195_s8 + $0x248] sm:$0xff] }
 0x146   : > { %20289 = vmatprep.mubr.msk.f32.mxu0 %vm328_vm1, %v24400_v20  ;;  %20737 = vmatprep.mubr.msk.f32.mxu1 %vm328_vm1, %v24400_v20  ;;  %28240 = vst [vmem:[#allocation9_spill] sm:$0xff] %v24425_v28  ;;  %v24428_v20 = vld [vmem:[%s23195_s8 + $0x250] sm:$0xff] }
 0x147   : > { %28241 = vst [vmem:[#allocation10_spill] sm:$0xff] %v24428_v20 }
 0x149   : > { %20290 = vmatmul.mubr.msk.f32.gmra.mrb[28].mxu0 %vm328_vm1, %v24411_v27  ;;  %20738 = vmatmul.mubr.msk.f32.gmra.mrb[46].mxu1 %vm328_vm1, %v24411_v27  ;;  %v24439_v27 = vld [vmem:[%s23195_s8 + $0x258] sm:$0xff] }
 0x14a   : > { %20292 = vmatprep.mubr.msk.f32.mxu0 %vm328_vm1, %v24414_v38  ;;  %20740 = vmatprep.mubr.msk.f32.mxu1 %vm328_vm1, %v24414_v38  ;;  %28242 = vst [vmem:[#allocation11_spill] sm:$0xff] %v24439_v27  ;;  %v24442_v38 = vld [vmem:[%s23195_s8 + $0x260] sm:$0xff] }
 0x14b   : > { %28243 = vst [vmem:[#allocation12_spill] sm:$0xff] %v24442_v38 }
 0x14d   : > { %20293 = vmatmul.mubr.msk.f32.gmra.mrb[30].mxu0 %vm328_vm1, %v24425_v28  ;;  %20741 = vmatmul.mubr.msk.f32.gmra.mrb[48].mxu1 %vm328_vm1, %v24425_v28  ;;  %v24453_v28 = vld [vmem:[%s23195_s8 + $0x268] sm:$0xff] }
 0x14e   : > { %20295 = vmatprep.mubr.msk.f32.mxu0 %vm328_vm1, %v24428_v20  ;;  %20743 = vmatprep.mubr.msk.f32.mxu1 %vm328_vm1, %v24428_v20  ;;  %28244 = vst [vmem:[#allocation13_spill] sm:$0xff] %v24453_v28  ;;  %v16760_v20 = vld [vmem:[%s23195_s8 + $0x290] sm:$0xff] }
 0x151   : > { %20296 = vmatmul.mubr.msk.f32.gmra.mrb[32].mxu0 %vm328_vm1, %v24439_v27  ;;  %20744 = vmatmul.mubr.msk.f32.gmra.mrb[50].mxu1 %vm328_vm1, %v24439_v27  ;;  %v16761_v27 = vld [vmem:[%s23195_s8 + $0x298] sm:$0xff] }
 0x152   : > { %20298 = vmatprep.mubr.msk.f32.mxu0 %vm328_vm1, %v24442_v38  ;;  %20746 = vmatprep.mubr.msk.f32.mxu1 %vm328_vm1, %v24442_v38  ;;  %v24469_v38 = vld [vmem:[%s27965_s1 + $0x1c] sm:$0xf] }
 0x155   : > { %20299 = vmatmul.mubr.msk.f32.gmra.mrb[34].mxu0 %vm328_vm1, %v24453_v28  ;;  %20747 = vmatmul.mubr.msk.f32.gmra.mrb[52].mxu1 %vm328_vm1, %v24453_v28  ;;  %v24483_v28 = vld [vmem:[%s23195_s8 + $0x2b0] sm:$0xff] }
 0x156   : > { %20303 = vmatprep.mubr.msk.f32.mxu0 %vm328_vm1, %v16760_v20  ;;  %20751 = vmatprep.mubr.msk.f32.mxu1 %vm328_vm1, %v16760_v20  ;;  %v24478_v20 = vld [vmem:[%s23195_s8 + $0x2a8] sm:$0xff]  ;;  %28247 = vst [vmem:[#allocation16_spill] sm:$0xff] %v24483_v28 }
 0x157   : > { %28246 = vst [vmem:[#allocation15_spill] sm:$0xff] %v24478_v20 }
 0x159   : > { %20304 = vmatmul.mubr.msk.f32.vlgmr.msra.gmra.mrb[0].mxu0 %vm328_vm1, %v16761_v27  ;;  %20752 = vmatmul.mubr.msk.f32.vlgmr.msra.gmra.mrb[18].mxu1 %vm328_vm1, %v16761_v27  ;;  %v24501_v27 = vld [vmem:[%s23195_s8 + $0x2c0] sm:$0xff] }
 0x15a   : > { %20358 = vmatpush3.msk.msra.mxu0 %vm437_vm0, %v24207_v45  ;;  %20306 = vmatprep.mubr.msk.f32.mxu0 %vm328_vm1, %v24464_v19  ;;  %v24498_v45 = vld [vmem:[%s23195_s8 + $0x2b8] sm:$0xff]  ;;  %28249 = vst [vmem:[#allocation18_spill] sm:$0xff] %v24501_v27 }
 0x15b   : > { %20754 = vmatprep.mubr.msk.f32.mxu1 %vm328_vm1, %v24464_v19  ;;  %20413 = vmatprep.subr.msk.mxu0 %vm437_vm0, %v24469_v38  ;;  %28248 = vst [vmem:[#allocation17_spill] sm:$0xff] %v24498_v45  ;;  %v16776_v19 = vld [vmem:[%s23195_s8 + $0x310] sm:$0xff] }
 0x15c   : > { %20806 = vmatpush3.msk.msra.mxu1 %vm437_vm0, %v24262_v54  ;;  %v24512_v54 = vld [vmem:[%s23195_s8 + $0x2c8] sm:$0xff] }
 0x15d   : > { %20307 = vmatmul.mubr.msk.f32.gmra.mrb[2].mxu0 %vm328_vm1, %v24478_v20  ;;  %20755 = vmatmul.mubr.msk.f32.gmra.mrb[20].mxu1 %vm328_vm1, %v24478_v20  ;;  %28250 = vst [vmem:[#allocation19_spill] sm:$0xff] %v24512_v54  ;;  %v24534_v20 = vld [vmem:[%s23195_s8 + $0x2e0] sm:$0xff] }
 0x15e   : > { %20309 = vmatprep.mubr.msk.f32.mxu0 %vm328_vm1, %v24483_v28  ;;  %20757 = vmatprep.mubr.msk.f32.mxu1 %vm328_vm1, %v24483_v28  ;;  %v24515_v28 = vld [vmem:[%s23195_s8 + $0x2d0] sm:$0xff]  ;;  %28253 = vst [vmem:[#allocation22_spill] sm:$0xff] %v24534_v20 }
 0x15f   : > { %28251 = vst [vmem:[#allocation20_spill] sm:$0xff] %v24515_v28 }
 0x161   : > { %20310 = vmatmul.mubr.msk.f32.gmra.mrb[4].mxu0 %vm328_vm1, %v24498_v45  ;;  %20758 = vmatmul.mubr.msk.f32.gmra.mrb[22].mxu1 %vm328_vm1, %v24498_v45  ;;  %v24524_v45 = vld [vmem:[%s27965_s1 + $0x18] sm:$0xf] }
 0x162   : > { %20312 = vmatprep.mubr.msk.f32.mxu0 %vm328_vm1, %v24501_v27  ;;  %20760 = vmatprep.mubr.msk.f32.mxu1 %vm328_vm1, %v24501_v27  ;;  %v24531_v27 = vld [vmem:[%s23195_s8 + $0x2d8] sm:$0xff] }
 0x163   : > { %28252 = vst [vmem:[#allocation21_spill] sm:$0xff] %v24531_v27  ;;  %20861 = vmatprep.subr.msk.mxu1 %vm437_vm0, %v24524_v45 }
 0x165   : > { %20313 = vmatmul.mubr.msk.f32.gmra.mrb[6].mxu0 %vm328_vm1, %v24512_v54  ;;  %20761 = vmatmul.mubr.msk.f32.gmra.mrb[24].mxu1 %vm328_vm1, %v24512_v54  ;;  %v24550_v54 = vld [vmem:[%s23195_s8 + $0x2f0] sm:$0xff] }
 0x166   : > { %20315 = vmatprep.mubr.msk.f32.mxu0 %vm328_vm1, %v24515_v28  ;;  %20763 = vmatprep.mubr.msk.f32.mxu1 %vm328_vm1, %v24515_v28  ;;  %v24547_v28 = vld [vmem:[%s23195_s8 + $0x2e8] sm:$0xff]  ;;  %28255 = vst [vmem:[#allocation24_spill] sm:$0xff] %v24550_v54 }
 0x167   : > { %28254 = vst [vmem:[#allocation23_spill] sm:$0xff] %v24547_v28 }
 0x169   : > { %20316 = vmatmul.mubr.msk.f32.gmra.mrb[8].mxu0 %vm328_vm1, %v24531_v27  ;;  %20764 = vmatmul.mubr.msk.f32.gmra.mrb[26].mxu1 %vm328_vm1, %v24531_v27  ;;  %v16773_v27 = vld [vmem:[%s23195_s8 + $0x2f8] sm:$0xff] }
 0x16a   : > { %20318 = vmatprep.mubr.msk.f32.mxu0 %vm328_vm1, %v24534_v20  ;;  %20766 = vmatprep.mubr.msk.f32.mxu1 %vm328_vm1, %v24534_v20  ;;  %v16774_v20 = vld [vmem:[%s23195_s8 + $0x300] sm:$0xff] }
 0x16d   : > { %20319 = vmatmul.mubr.msk.f32.gmra.mrb[10].mxu0 %vm328_vm1, %v24547_v28  ;;  %20767 = vmatmul.mubr.msk.f32.gmra.mrb[28].mxu1 %vm328_vm1, %v24547_v28  ;;  %v16775_v28 = vld [vmem:[%s23195_s8 + $0x308] sm:$0xff] }
 0x16e   : > { %20321 = vmatprep.mubr.msk.f32.mxu0 %vm328_vm1, %v24550_v54  ;;  %20769 = vmatprep.mubr.msk.f32.mxu1 %vm328_vm1, %v24550_v54  ;;  %v16777_v54 = vld [vmem:[%s23195_s8 + $0x318] sm:$0xff] }
 0x171   : > { %20322 = vmatmul.mubr.msk.f32.gmra.mrb[12].mxu0 %vm328_vm1, %v16773_v27  ;;  %20770 = vmatmul.mubr.msk.f32.gmra.mrb[30].mxu1 %vm328_vm1, %v16773_v27  ;;  %v16780_v27 = vld [vmem:[%s23195_s8 + $0x330] sm:$0xff] }
 0x172   : > { %20324 = vmatprep.mubr.msk.f32.mxu0 %vm328_vm1, %v16774_v20  ;;  %20772 = vmatprep.mubr.msk.f32.mxu1 %vm328_vm1, %v16774_v20  ;;  %v16779_v20 = vld [vmem:[%s23195_s8 + $0x328] sm:$0xff] }
 0x175   : > { %20325 = vmatmul.mubr.msk.f32.gmra.mrb[14].mxu0 %vm328_vm1, %v16775_v28  ;;  %20773 = vmatmul.mubr.msk.f32.gmra.mrb[32].mxu1 %vm328_vm1, %v16775_v28  ;;  %v16782_v28 = vld [vmem:[%s23195_s8 + $0x340] sm:$0xff] }
 0x176   : > { %20327 = vmatprep.mubr.msk.f32.mxu0 %vm328_vm1, %v16776_v19  ;;  %20775 = vmatprep.mubr.msk.f32.mxu1 %vm328_vm1, %v16776_v19  ;;  %v16781_v19 = vld [vmem:[%s23195_s8 + $0x338] sm:$0xff] }
 0x179   : > { %20328 = vmatmul.mubr.msk.f32.gmra.mrb[16].mxu0 %vm328_vm1, %v16777_v54  ;;  %20776 = vmatmul.mubr.msk.f32.gmra.mrb[34].mxu1 %vm328_vm1, %v16777_v54  ;;  %v17689_v54 = vld [vmem:[%s27967_s3 + $0x130] sm:$0xff] }
 0x17a   : > { %20330 = vmatprep.mubr.msk.f32.mxu0 %vm328_vm1, %v16778_v16  ;;  %20778 = vmatprep.mubr.msk.f32.mxu1 %vm328_vm1, %v16778_v16  ;;  %v16783_v16 = vld [vmem:[%s23195_s8 + $0x348] sm:$0xff] }
 0x17b   : > { %8411 = vperm.xlu1 %23116, %v17689_v54   ;;  %v16787_v54 = vld [vmem:[%s23195_s8 + $0x368] sm:$0xff] }
 0x17d   : > { %20331 = vmatmul.mubr.msk.f32.gmra.mrb[18].mxu0 %vm328_vm1, %v16779_v20  ;;  %20779 = vmatmul.mubr.msk.f32.gmra.mrb[36].mxu1 %vm328_vm1, %v16779_v20  ;;  %v16784_v20 = vld [vmem:[%s23195_s8 + $0x350] sm:$0xff] }
 0x17e   : > { %20333 = vmatprep.mubr.msk.f32.mxu0 %vm328_vm1, %v16780_v27  ;;  %20781 = vmatprep.mubr.msk.f32.mxu1 %vm328_vm1, %v16780_v27  ;;  %v17687_v27 = vld [vmem:[%s27967_s3 + $0x120] sm:$0xff] }
 0x17f   : > { %8401 = vperm.xlu0 %23115, %v17687_v27   ;;  %8416 = vperm.xlu1 %23116, %v17690_v15   ;;  %v16788_v27 = vld [vmem:[%s23195_s8 + $0x370] sm:$0xff]  ;;  %v16789_v15 = vld [vmem:[%s23195_s8 + $0x378] sm:$0xff] }
 0x181   : > { %20334 = vmatmul.mubr.msk.f32.gmra.mrb[20].mxu0 %vm328_vm1, %v16781_v19  ;;  %20782 = vmatmul.mubr.msk.f32.gmra.mrb[38].mxu1 %vm328_vm1, %v16781_v19  ;;  %v16785_v19 = vld [vmem:[%s23195_s8 + $0x358] sm:$0xff] }
 0x182   : > { %20336 = vmatprep.mubr.msk.f32.mxu0 %vm328_vm1, %v16782_v28  ;;  %20784 = vmatprep.mubr.msk.f32.mxu1 %vm328_vm1, %v16782_v28  ;;  %v16786_v28 = vld [vmem:[%s23195_s8 + $0x360] sm:$0xff] }
 0x185   : > { %20337 = vmatmul.mubr.msk.f32.gmra.mrb[22].mxu0 %vm328_vm1, %v16783_v16  ;;  %20785 = vmatmul.mubr.msk.f32.gmra.mrb[40].mxu1 %vm328_vm1, %v16783_v16  ;;  %v17688_v16 = vld [vmem:[%s27967_s3 + $0x128] sm:$0xff] }
 0x186   : > { %20339 = vmatprep.mubr.msk.f32.mxu0 %vm328_vm1, %v16784_v20  ;;  %20787 = vmatprep.mubr.msk.f32.mxu1 %vm328_vm1, %v16784_v20  ;;  %v17692_v20 = vld [vmem:[%s27967_s3 + $0x148] sm:$0xff] }
 0x187   : > { %8406 = vperm.xlu0 %23115, %v17688_v16   ;;  %8426 = vperm.xlu1 %23116, %v17692_v20   ;;  %v16790_v16 = vld [vmem:[%s23195_s8 + $0x380] sm:$0xff]  ;;  %v16791_v20 = vld [vmem:[%s23195_s8 + $0x388] sm:$0xff] }
 0x189   : > { %20340 = vmatmul.mubr.msk.f32.gmra.mrb[24].mxu0 %vm328_vm1, %v16785_v19  ;;  %20788 = vmatmul.mubr.msk.f32.gmra.mrb[42].mxu1 %vm328_vm1, %v16785_v19  ;;  %v17691_v19 = vld [vmem:[%s27967_s3 + $0x140] sm:$0xff] }
 0x18a   : > { %20342 = vmatprep.mubr.msk.f32.mxu0 %vm328_vm1, %v16786_v28  ;;  %20790 = vmatprep.mubr.msk.f32.mxu1 %vm328_vm1, %v16786_v28  ;;  %v17694_v28 = vld [vmem:[%s27967_s3 + $0x158] sm:$0xff] }
 0x18b   : > { %8421 = vperm.xlu0 %23115, %v17691_v19   ;;  %8436 = vperm.xlu1 %23116, %v17694_v28   ;;  %v16792_v19 = vld [vmem:[%s23195_s8 + $0x390] sm:$0xff]  ;;  %v16793_v28 = vld [vmem:[%s23195_s8 + $0x398] sm:$0xff] }
 0x18d   : > { %20343 = vmatmul.mubr.msk.f32.gmra.mrb[26].mxu0 %vm328_vm1, %v16787_v54  ;;  %20791 = vmatmul.mubr.msk.f32.gmra.mrb[44].mxu1 %vm328_vm1, %v16787_v54  ;;  %v17693_v54 = vld [vmem:[%s27967_s3 + $0x150] sm:$0xff] }
 0x18e   : > { %20345 = vmatprep.mubr.msk.f32.mxu0 %vm328_vm1, %v16788_v27  ;;  %20793 = vmatprep.mubr.msk.f32.mxu1 %vm328_vm1, %v16788_v27  ;;  %v17696_v27 = vld [vmem:[%s27967_s3 + $0x168] sm:$0xff] }
 0x18f   : > { %8431 = vperm.xlu0 %23115, %v17693_v54   ;;  %8446 = vperm.xlu1 %23116, %v17696_v27   ;;  %v16794_v54 = vld [vmem:[%s23195_s8 + $0x3a0] sm:$0xff]  ;;  %v16795_v27 = vld [vmem:[%s23195_s8 + $0x3a8] sm:$0xff] }
 0x191   : > { %20346 = vmatmul.mubr.msk.f32.gmra.mrb[28].mxu0 %vm328_vm1, %v16789_v15  ;;  %20794 = vmatmul.mubr.msk.f32.gmra.mrb[46].mxu1 %vm328_vm1, %v16789_v15  ;;  %v17695_v15 = vld [vmem:[%s27967_s3 + $0x160] sm:$0xff] }
 0x192   : > { %20348 = vmatprep.mubr.msk.f32.mxu0 %vm328_vm1, %v16790_v16  ;;  %20796 = vmatprep.mubr.msk.f32.mxu1 %vm328_vm1, %v16790_v16  ;;  %v17698_v16 = vld [vmem:[%s27967_s3 + $0x178] sm:$0xff] }
 0x193   : > { %8441 = vperm.xlu0 %23115, %v17695_v15   ;;  %8456 = vperm.xlu1 %23116, %v17698_v16   ;;  %v2763_v15 = vld [vmem:[%s23195_s8 + $0x20] sm:$0xff]  ;;  %v2764_v16 = vld [vmem:[%s23195_s8 + $0x28] sm:$0xff] }
 0x195   : > { %20349 = vmatmul.mubr.msk.f32.gmra.mrb[30].mxu0 %vm328_vm1, %v16791_v20  ;;  %20797 = vmatmul.mubr.msk.f32.gmra.mrb[48].mxu1 %vm328_vm1, %v16791_v20  ;;  %v17697_v20 = vld [vmem:[%s27967_s3 + $0x170] sm:$0xff] }
 0x196   : > { %20351 = vmatprep.mubr.msk.f32.mxu0 %vm328_vm1, %v16792_v19  ;;  %20799 = vmatprep.mubr.msk.f32.mxu1 %vm328_vm1, %v16792_v19  ;;  %v17700_v19 = vld [vmem:[%s27967_s3 + $0x188] sm:$0xff] }
 0x197   : > { %8451 = vperm.xlu0 %23115, %v17697_v20   ;;  %8466 = vperm.xlu1 %23116, %v17700_v19   ;;  %v2765_v20 = vld [vmem:[%s23195_s8 + $0x30] sm:$0xff]  ;;  %v2766_v19 = vld [vmem:[%s23195_s8 + $0x38] sm:$0xff] }
 0x199   : > { %20352 = vmatmul.mubr.msk.f32.gmra.mrb[32].mxu0 %vm328_vm1, %v16793_v28  ;;  %20800 = vmatmul.mubr.msk.f32.gmra.mrb[50].mxu1 %vm328_vm1, %v16793_v28  ;;  %v17699_v28 = vld [vmem:[%s27967_s3 + $0x180] sm:$0xff] }
 0x19a   : > { %20354 = vmatprep.mubr.msk.f32.mxu0 %vm328_vm1, %v16794_v54  ;;  %20802 = vmatprep.mubr.msk.f32.mxu1 %vm328_vm1, %v16794_v54  ;;  %v17702_v54 = vld [vmem:[%s27967_s3 + $0x198] sm:$0xff] }
 0x19b   : > { %8461 = vperm.xlu0 %23115, %v17699_v28   ;;  %8476 = vperm.xlu1 %23116, %v17702_v54   ;;  %v17706_v28 = vld [vmem:[%s27967_s3 + $0x1b8] sm:$0xff]  ;;  %v17708_v54 = vld [vmem:[%s27967_s3 + $0x1c8] sm:$0xff] }
 0x19d   : > { %20355 = vmatmul.mubr.msk.f32.gmra.mrb[34].mxu0 %vm328_vm1, %v16795_v27  ;;  %20803 = vmatmul.mubr.msk.f32.gmra.mrb[52].mxu1 %vm328_vm1, %v16795_v27  ;;  %v24683_v27 = vld [vmem:[%s27965_s1 + $0x20] sm:$0xf] }
 0x19e   : > { %20359 = vmatprep.mubr.msk.f32.mxu0 %vm328_vm1, %v2763_v15  ;;  %20807 = vmatprep.mubr.msk.f32.mxu1 %vm328_vm1, %v23933_v22  ;;  %v17701_v22 = vld [vmem:[%s27967_s3 + $0x190] sm:$0xff]  ;;  %v2767_v15 = vld [vmem:[%s23195_s8 + $0x40] sm:$0xff] }
 0x19f   : > { %8471 = vperm.xlu0 %23115, %v17701_v22   ;;  %v2773_v22 = vld [vmem:[%s23195_s8 + $0x70] sm:$0xff] }
 0x1a1   : > { %20360 = vmatmul.mubr.msk.f32.vlgmr.msra.gmra.mrb[0].mxu0 %vm328_vm1, %v2764_v16  ;;  %20808 = vmatmul.mubr.msk.f32.vlgmr.msra.gmra.mrb[18].mxu1 %vm328_vm1, %v23948_v29  ;;  %v17704_v29 = vld [vmem:[%s27967_s3 + $0x1a8] sm:$0xff]  ;;  %v2771_v16 = vld [vmem:[%s23195_s8 + $0x60] sm:$0xff] }
 0x1a2   : > { %20414 = vmatpush3.msk.msra.mxu0 %vm437_vm0, %v24469_v38  ;;  %20362 = vmatprep.mubr.msk.f32.mxu0 %vm328_vm1, %v2765_v20  ;;  %v2768_v38 = vld [vmem:[%s23195_s8 + $0x48] sm:$0xff] }
 0x1a3   : > { %20810 = vmatprep.mubr.msk.f32.mxu1 %vm328_vm1, %v23953_v30  ;;  %20469 = vmatprep.subr.msk.mxu0 %vm437_vm0, %v24683_v27  ;;  %v17703_v30 = vld [vmem:[%s27967_s3 + $0x1a0] sm:$0xff]  ;;  %v2772_v20 = vld [vmem:[%s23195_s8 + $0x68] sm:$0xff] }
 0x1a4   : > { %20862 = vmatpush3.msk.msra.mxu1 %vm437_vm0, %v24524_v45  ;;  %v2769_v45 = vld [vmem:[%s23195_s8 + $0x50] sm:$0xff]  ;;  %8486 = vperm.xlu1 %23116, %v17704_v29   ;;  %v17712_v29 = vld [vmem:[%s27967_s3 + $0x1e8] sm:$0xff] }
 0x1a5   : > { %20363 = vmatmul.mubr.msk.f32.gmra.mrb[2].mxu0 %vm328_vm1, %v2766_v19  ;;  %20811 = vmatmul.mubr.msk.f32.gmra.mrb[20].mxu1 %vm328_vm1, %v23968_v32  ;;  %v17705_v32 = vld [vmem:[%s27967_s3 + $0x1b0] sm:$0xff]  ;;  %v2774_v19 = vld [vmem:[%s23195_s8 + $0x78] sm:$0xff] }
 0x1a6   : > { %20365 = vmatprep.mubr.msk.f32.mxu0 %vm328_vm1, %v2767_v15  ;;  %20813 = vmatprep.mubr.msk.f32.mxu1 %vm328_vm1, %v23971_v33  ;;  %v2770_v33 = vld [vmem:[%s23195_s8 + $0x58] sm:$0xff]  ;;  %v2775_v15 = vld [vmem:[%s23195_s8 + $0x80] sm:$0xff] }
 0x1a7   : > { %8481 = vperm.xlu0 %23115, %v17703_v30   ;;  %v2777_v30 = vld [vmem:[%s23195_s8 + $0x90] sm:$0xff] }
 0x1a8   : > { %8496 = vperm.xlu1 %23116, %v17706_v28   ;;  %v17716_v28 = vld [vmem:[%s27967_s3 + $0x208] sm:$0xff] }
 0x1a9   : > { %20366 = vmatmul.mubr.msk.f32.gmra.mrb[4].mxu0 %vm328_vm1, %v2768_v38  ;;  %20814 = vmatmul.mubr.msk.f32.gmra.mrb[22].mxu1 %vm328_vm1, %v23982_v36  ;;  %v17707_v36 = vld [vmem:[%s27967_s3 + $0x1c0] sm:$0xff]  ;;  %v17714_v38 = vld [vmem:[%s27967_s3 + $0x1f8] sm:$0xff] }
 0x1aa   : > { %20368 = vmatprep.mubr.msk.f32.mxu0 %vm328_vm1, %v2769_v45  ;;  %20816 = vmatprep.mubr.msk.f32.mxu1 %vm328_vm1, %v23985_v37  ;;  %v24742_v37 = vld [vmem:[%s27965_s1 + $0x1c] sm:$0xf]  ;;  %v2779_v45 = vld [vmem:[%s23195_s8 + $0xa0] sm:$0xff] }
 0x1ab   : > { %8491 = vperm.xlu0 %23115, %v17705_v32   ;;  %20917 = vmatprep.subr.msk.mxu1 %vm437_vm0, %v24742_v37  ;;  %v2781_v32 = vld [vmem:[%s23195_s8 + $0xb0] sm:$0xff] }
 0x1ac   : > { %8506 = vperm.xlu1 %23116, %v17708_v54   ;;  %v4169_v54 = vld [vmem:[%s27967_s3 + $0x8] sm:$0xff] }
 0x1ad   : > { %20369 = vmatmul.mubr.msk.f32.gmra.mrb[6].mxu0 %vm328_vm1, %v2770_v33  ;;  %20817 = vmatmul.mubr.msk.f32.gmra.mrb[24].mxu1 %vm328_vm1, %v24001_v42  ;;  %v17710_v42 = vld [vmem:[%s27967_s3 + $0x1d8] sm:$0xff] }
 0x1ae   : > { %20371 = vmatprep.mubr.msk.f32.mxu0 %vm328_vm1, %v2771_v16  ;;  %20819 = vmatprep.mubr.msk.f32.mxu1 %vm328_vm1, %v24004_v44  ;;  %v17709_v44 = vld [vmem:[%s27967_s3 + $0x1d0] sm:$0xff]  ;;  %v17718_v33 = vld [vmem:[%s27967_s3 + $0x218] sm:$0xff]  ;;  %v2783_v16 = vld [vmem:[%s23195_s8 + $0xc0] sm:$0xff] }
 0x1af   : > { %8501 = vperm.xlu0 %23115, %v17707_v36   ;;  %v2785_v36 = vld [vmem:[%s23195_s8 + $0xd0] sm:$0xff] }
 0x1b0   : > { %8516 = vperm.xlu1 %23116, %v17710_v42   ;;  %v4173_v42 = vld [vmem:[%s27967_s3 + $0x28] sm:$0xff] }
 0x1b1   : > { %20372 = vmatmul.mubr.msk.f32.gmra.mrb[8].mxu0 %vm328_vm1, %v2772_v20  ;;  %20820 = vmatmul.mubr.msk.f32.gmra.mrb[26].mxu1 %vm328_vm1, %v24017_v47  ;;  %v17711_v47 = vld [vmem:[%s27967_s3 + $0x1e0] sm:$0xff]  ;;  %v4171_v20 = vld [vmem:[%s27967_s3 + $0x18] sm:$0xff] }
 0x1b2   : > { %20374 = vmatprep.mubr.msk.f32.mxu0 %vm328_vm1, %v2773_v22  ;;  %20822 = vmatprep.mubr.msk.f32.mxu1 %vm328_vm1, %v24020_v48  ;;  %v2776_v48 = vld [vmem:[%s23195_s8 + $0x88] sm:$0xff]  ;;  %v2787_v22 = vld [vmem:[%s23195_s8 + $0xe0] sm:$0xff] }
 0x1b3   : > { %8511 = vperm.xlu0 %23115, %v17709_v44   ;;  %v2789_v44 = vld [vmem:[%s23195_s8 + $0xf0] sm:$0xff] }
 0x1b4   : > { %8526 = vperm.xlu1 %23116, %v17712_v29   ;;  %v4177_v29 = vld [vmem:[%s27967_s3 + $0x48] sm:$0xff] }
 0x1b5   : > { %20375 = vmatmul.mubr.msk.f32.gmra.mrb[10].mxu0 %vm328_vm1, %v2774_v19  ;;  %20823 = vmatmul.mubr.msk.f32.gmra.mrb[28].mxu1 %vm328_vm1, %v24031_v51  ;;  %v17713_v51 = vld [vmem:[%s27967_s3 + $0x1f0] sm:$0xff]  ;;  %v4175_v19 = vld [vmem:[%s27967_s3 + $0x38] sm:$0xff] }
 0x1b6   : > { %20377 = vmatprep.mubr.msk.f32.mxu0 %vm328_vm1, %v2775_v15  ;;  %20825 = vmatprep.mubr.msk.f32.mxu1 %vm328_vm1, %v24034_v52  ;;  %v2778_v52 = vld [vmem:[%s23195_s8 + $0x98] sm:$0xff]  ;;  %v2791_v15 = vld [vmem:[%s23195_s8 + $0x100] sm:$0xff] }
 0x1b7   : > { %8521 = vperm.xlu0 %23115, %v17711_v47   ;;  %v2793_v47 = vld [vmem:[%s23195_s8 + $0x110] sm:$0xff] }
 0x1b8   : > { %8536 = vperm.xlu1 %23116, %v17714_v38   ;;  %v17424_v38 = vld [vmem:[%s23195_s8 + $0x4e0] sm:$0xff] }
 0x1b9   : > { %20378 = vmatmul.mubr.msk.f32.gmra.mrb[12].mxu0 %vm328_vm1, %v2776_v48  ;;  %20826 = vmatmul.mubr.msk.f32.gmra.mrb[30].mxu1 %vm328_vm1, %v24045_v55  ;;  %v17715_v55 = vld [vmem:[%s27967_s3 + $0x200] sm:$0xff]  ;;  %v4179_v48 = vld [vmem:[%s27967_s3 + $0x58] sm:$0xff] }
 0x1ba   : > { %20380 = vmatprep.mubr.msk.f32.mxu0 %vm328_vm1, %v2777_v30  ;;  %20828 = vmatprep.mubr.msk.f32.mxu1 %vm328_vm1, %v24048_v56  ;;  %v2780_v56 = vld [vmem:[%s23195_s8 + $0xa8] sm:$0xff] }
 0x1bb   : > { %8531 = vperm.xlu0 %23115, %v17713_v51   ;;  %v4181_v30 = vld [vmem:[%s27967_s3 + $0x68] sm:$0xff]  ;;  %v4183_v51 = vld [vmem:[%s27967_s3 + $0x78] sm:$0xff] }
 0x1bc   : > { %8546 = vperm.xlu1 %23116, %v17716_v28   ;;  %v28257_v28 = vld [vmem:[#allocation3_spill] sm:$0xff] }
 0x1bd   : > { %20381 = vmatmul.mubr.msk.f32.gmra.mrb[14].mxu0 %vm328_vm1, %v2778_v52  ;;  %20829 = vmatmul.mubr.msk.f32.gmra.mrb[32].mxu1 %vm328_vm1, %v24059_v59  ;;  %v17717_v59 = vld [vmem:[%s27967_s3 + $0x210] sm:$0xff]  ;;  %v4185_v52 = vld [vmem:[%s27967_s3 + $0x88] sm:$0xff] }
 0x1be   : > { %20383 = vmatprep.mubr.msk.f32.mxu0 %vm328_vm1, %v2779_v45  ;;  %20831 = vmatprep.mubr.msk.f32.mxu1 %vm328_vm1, %v24062_v60  ;;  %v2782_v60 = vld [vmem:[%s23195_s8 + $0xb8] sm:$0xff] }
 0x1bf   : > { %8541 = vperm.xlu0 %23115, %v17715_v55   ;;  %v4187_v45 = vld [vmem:[%s27967_s3 + $0x98] sm:$0xff]  ;;  %v28258_v55 = vld [vmem:[#allocation40_spill] sm:$0xff] }
 0x1c0   : > { %8556 = vperm.xlu1 %23116, %v17718_v33   ;;  %v18395_v33 = vld [vmem:[%s27967_s3 + $0x270] sm:$0xff] }
 0x1c1   : > { %20384 = vmatmul.mubr.msk.f32.gmra.mrb[16].mxu0 %vm328_vm1, %v2780_v56  ;;  %20832 = vmatmul.mubr.msk.f32.gmra.mrb[34].mxu1 %vm328_vm1, %v24073_v63  ;;  %v4168_v63 = vld [vmem:[%s27967_s3] sm:$0xff]  ;;  %v18396_v56 = vld [vmem:[%s27967_s3 + $0x278] sm:$0xff] }
 0x1c2   : > { %20386 = vmatprep.mubr.msk.f32.mxu0 %vm328_vm1, %v2781_v32  ;;  %20834 = vmatprep.mubr.msk.f32.mxu1 %vm328_vm1, %v24076_v0  ;;  %v2784_v0 = vld [vmem:[%s23195_s8 + $0xc8] sm:$0xff] }
 0x1c3   : > { %8551 = vperm.xlu0 %23115, %v17717_v59   ;;  %v28259_v32 = vld [vmem:[#allocation4_spill] sm:$0xff]  ;;  %v28260_v59 = vld [vmem:[#allocation42_spill] sm:$0xff] }
 0x1c4   : > { %4211 = vperm.xlu1 %23116, %v4169_v54   ;;  %v18397_v54 = vld [vmem:[%s27967_s3 + $0x280] sm:$0xff] }
 0x1c5   : > { %20387 = vmatmul.mubr.msk.f32.gmra.mrb[18].mxu0 %vm328_vm1, %v2782_v60  ;;  %20835 = vmatmul.mubr.msk.f32.gmra.mrb[36].mxu1 %vm328_vm1, %v24087_v3  ;;  %v4170_v3 = vld [vmem:[%s27967_s3 + $0x10] sm:$0xff]  ;;  %v18398_v60 = vld [vmem:[%s27967_s3 + $0x288] sm:$0xff] }
 0x1c6   : > { %20389 = vmatprep.mubr.msk.f32.mxu0 %vm328_vm1, %v2783_v16  ;;  %20837 = vmatprep.mubr.msk.f32.mxu1 %vm328_vm1, %v24090_v14  ;;  %v2786_v14 = vld [vmem:[%s23195_s8 + $0xd8] sm:$0xff]  ;;  %v28261_v16 = vld [vmem:[#allocation5_spill] sm:$0xff] }
 0x1c7   : > { %4206 = vperm.xlu0 %23115, %v4168_v63   ;;  %v28262_v63 = vld [vmem:[#allocation44_spill] sm:$0xff] }
 0x1c8   : > { %4221 = vperm.xlu1 %23116, %v4171_v20  }
 0x1c9   : > { %20390 = vmatmul.mubr.msk.f32.gmra.mrb[20].mxu0 %vm328_vm1, %v2784_v0  ;;  %20838 = vmatmul.mubr.msk.f32.gmra.mrb[38].mxu1 %vm328_vm1, %v24101_v4  ;;  %v4172_v4 = vld [vmem:[%s27967_s3 + $0x20] sm:$0xff]  ;;  %v18400_v0 = vld [vmem:[%s27967_s3 + $0x298] sm:$0xff] }
 0x1ca   : > { %20392 = vmatprep.mubr.msk.f32.mxu0 %vm328_vm1, %v2785_v36  ;;  %20840 = vmatprep.mubr.msk.f32.mxu1 %vm328_vm1, %v24104_v5  ;;  %v2788_v5 = vld [vmem:[%s23195_s8 + $0xe8] sm:$0xff]  ;;  %v28263_v36 = vld [vmem:[#allocation6_spill] sm:$0xff] }
 0x1cb   : > { %4216 = vperm.xlu0 %23115, %v4170_v3   ;;  %v18399_v3 = vld [vmem:[%s27967_s3 + $0x290] sm:$0xff] }
 0x1cc   : > { %4231 = vperm.xlu1 %23116, %v4173_v42   ;;  %v18402_v42 = vld [vmem:[%s27967_s3 + $0x2a8] sm:$0xff] }
 0x1cd   : > { %20393 = vmatmul.mubr.msk.f32.gmra.mrb[22].mxu0 %vm328_vm1, %v2786_v14  ;;  %20841 = vmatmul.mubr.msk.f32.gmra.mrb[40].mxu1 %vm328_vm1, %v24115_v8  ;;  %v4174_v8 = vld [vmem:[%s27967_s3 + $0x30] sm:$0xff]  ;;  %v28265_v14 = vld [vmem:[#allocation7_spill] sm:$0xff] }
 0x1ce   : > { %20395 = vmatprep.mubr.msk.f32.mxu0 %vm328_vm1, %v2787_v22  ;;  %20843 = vmatprep.mubr.msk.f32.mxu1 %vm328_vm1, %v24118_v9  ;;  %v2790_v9 = vld [vmem:[%s23195_s8 + $0xf8] sm:$0xff] }
 0x1cf   : > { %4226 = vperm.xlu0 %23115, %v4172_v4   ;;  %v28267_v4 = vld [vmem:[#allocation8_spill] sm:$0xff] }
 0x1d0   : > { %4241 = vperm.xlu1 %23116, %v4175_v19   ;;  %v18404_v19 = vld [vmem:[%s27967_s3 + $0x2b8] sm:$0xff] }
 0x1d1   : > { %20396 = vmatmul.mubr.msk.f32.gmra.mrb[24].mxu0 %vm328_vm1, %v2788_v5  ;;  %20844 = vmatmul.mubr.msk.f32.gmra.mrb[42].mxu1 %vm328_vm1, %v24129_v12  ;;  %v4176_v12 = vld [vmem:[%s27967_s3 + $0x40] sm:$0xff] }
 0x1d2   : > { %20398 = vmatprep.mubr.msk.f32.mxu0 %vm328_vm1, %v2789_v44  ;;  %20846 = vmatprep.mubr.msk.f32.mxu1 %vm328_vm1, %v24132_v13  ;;  %v2792_v13 = vld [vmem:[%s23195_s8 + $0x108] sm:$0xff]  ;;  %v18401_v5 = vld [vmem:[%s27967_s3 + $0x2a0] sm:$0xff]  ;;  %v28268_v44 = vld [vmem:[#allocation9_spill] sm:$0xff] }
 0x1d3   : > { %4236 = vperm.xlu0 %23115, %v4174_v8   ;;  %v28269_v8 = vld [vmem:[#allocation10_spill] sm:$0xff] }
 0x1d4   : > { %4251 = vperm.xlu1 %23116, %v4177_v29   ;;  %v18403_v29 = vld [vmem:[%s27967_s3 + $0x2b0] sm:$0xff] }
 0x1d5   : > { %20399 = vmatmul.mubr.msk.f32.gmra.mrb[26].mxu0 %vm328_vm1, %v2790_v9  ;;  %20847 = vmatmul.mubr.msk.f32.gmra.mrb[44].mxu1 %vm328_vm1, %v24143_v17  ;;  %v4178_v17 = vld [vmem:[%s27967_s3 + $0x50] sm:$0xff] }
 0x1d6   : > { %20401 = vmatprep.mubr.msk.f32.mxu0 %vm328_vm1, %v2791_v15  ;;  %20849 = vmatprep.mubr.msk.f32.mxu1 %vm328_vm1, %v24146_v18  ;;  %v2794_v18 = vld [vmem:[%s23195_s8 + $0x118] sm:$0xff] }
 0x1d7   : > { %4246 = vperm.xlu0 %23115, %v4176_v12   ;;  %v28272_v12 = vld [vmem:[#allocation11_spill] sm:$0xff] }
 0x1d8   : > { %4261 = vperm.xlu1 %23116, %v4179_v48   ;;  %v28273_v48 = vld [vmem:[#allocation12_spill] sm:$0xff] }
 0x1d9   : > { %20402 = vmatmul.mubr.msk.f32.gmra.mrb[28].mxu0 %vm328_vm1, %v2792_v13  ;;  %20850 = vmatmul.mubr.msk.f32.gmra.mrb[46].mxu1 %vm328_vm1, %v24157_v21  ;;  %v4180_v21 = vld [vmem:[%s27967_s3 + $0x60] sm:$0xff]  ;;  %v18406_v13 = vld [vmem:[%s27967_s3 + $0x2c8] sm:$0xff] }
 0x1da   : > { %20404 = vmatprep.mubr.msk.f32.mxu0 %vm328_vm1, %v2793_v47  ;;  %20852 = vmatprep.mubr.msk.f32.mxu1 %vm328_vm1, %v24160_v25  ;;  %v2797_v25 = vld [vmem:[%s23195_s8 + $0x130] sm:$0xff]  ;;  %v25188_v47 = vpop.f32.mrb[0].mxu1 }
 0x1db   : > { %4256 = vperm.xlu0 %23115, %v4178_v17   ;;  %v25194_v17 = vpop.f32.mrb[1].mxu1 }
 0x1dc   : > { %4271 = vperm.xlu1 %23116, %v4181_v30  }
 0x1dd   : > { %20405 = vmatmul.mubr.msk.f32.gmra.mrb[30].mxu0 %vm328_vm1, %v2794_v18  ;;  %20853 = vmatmul.mubr.msk.f32.gmra.mrb[48].mxu1 %vm328_vm1, %v24171_v31  ;;  %v4182_v31 = vld [vmem:[%s27967_s3 + $0x70] sm:$0xff] }
 0x1de   : > { %20407 = vmatprep.mubr.msk.f32.mxu0 %vm328_vm1, %v24174_v24  ;;  %20855 = vmatprep.mubr.msk.f32.mxu1 %vm328_vm1, %v24177_v34  ;;  %v2798_v24 = vld [vmem:[%s23195_s8 + $0x138] sm:$0xff]  ;;  %v17425_v34 = vld [vmem:[%s23195_s8 + $0x4e8] sm:$0xff]  ;;  %v16906_v18 = vld [vmem:[%s23195_s8 + $0x270] sm:$0xff] }
 0x1df   : > { %4266 = vperm.xlu0 %23115, %v4180_v21   ;;  %v18405_v21 = vld [vmem:[%s27967_s3 + $0x2c0] sm:$0xff] }
 0x1e0   : > { %4281 = vperm.xlu1 %23116, %v4183_v51   ;;  %v18408_v51 = vld [vmem:[%s27967_s3 + $0x2d8] sm:$0xff] }
 0x1e1   : > { %20408 = vmatmul.mubr.msk.f32.gmra.mrb[32].mxu0 %vm328_vm1, %v24188_v26  ;;  %20856 = vmatmul.mubr.msk.f32.gmra.mrb[50].mxu1 %vm328_vm1, %v24191_v35  ;;  %v4184_v26 = vld [vmem:[%s27967_s3 + $0x80] sm:$0xff] }
 0x1e2   : > { %20410 = vmatprep.mubr.msk.f32.mxu0 %vm328_vm1, %v2797_v25  ;;  %20858 = vmatprep.mubr.msk.f32.mxu1 %vm328_vm1, %v17424_v38  ;;  %v24952_v35 = vld [vmem:[%s27965_s1 + $0x4] sm:$0xf]  ;;  %v28275_v25 = vld [vmem:[#allocation13_spill] sm:$0xff] }
 0x1e3   : > { %4276 = vperm.xlu0 %23115, %v4182_v31   ;;  %v25211_v31 = vpop.f32.mrb[2].mxu1 }
 0x1e4   : > { %4291 = vperm.xlu1 %23116, %v4185_v52   ;;  %v18407_v52 = vld [vmem:[%s27967_s3 + $0x2d0] sm:$0xff] }
 0x1e5   : > { %20411 = vmatmul.mubr.msk.f32.gmra.mrb[34].mxu0 %vm328_vm1, %v2798_v24  ;;  %20859 = vmatmul.mubr.msk.f32.gmra.mrb[52].mxu1 %vm328_vm1, %v17425_v34  ;;  %v16907_v24 = vld [vmem:[%s23195_s8 + $0x278] sm:$0xff]  ;;  %v25216_v34 = vpop.f32.mrb[3].mxu1 }
 0x1e6   : > { %20415 = vmatprep.mubr.msk.f32.mxu0 %vm328_vm1, %v24202_v40  ;;  %20863 = vmatprep.mubr.msk.f32.mxu1 %vm328_vm1, %v24202_v40  ;;  %v4186_v40 = vld [vmem:[%s27967_s3 + $0x90] sm:$0xff] }
 0x1e7   : > { %4286 = vperm.xlu0 %23115, %v4184_v26   ;;  %v18410_v26 = vld [vmem:[%s27967_s3 + $0x2e8] sm:$0xff] }
 0x1e8   : > { %4301 = vperm.xlu1 %23116, %v4187_v45   ;;  %v25226_v45 = vpop.f32.mrb[4].mxu1 }
 0x1e9   : > { %20416 = vmatmul.mubr.msk.f32.vlgmr.msra.gmra.mrb[0].mxu0 %vm328_vm1, %v24216_v46  ;;  %20864 = vmatmul.mubr.msk.f32.vlgmr.msra.gmra.mrb[18].mxu1 %vm328_vm1, %v24216_v46  ;;  %v4189_v46 = vld [vmem:[%s27967_s3 + $0xa8] sm:$0xff] }
 0x1ea   : > { %20470 = vmatpush3.msk.msra.mxu0 %vm437_vm0, %v24683_v27  ;;  %20418 = vmatprep.mubr.msk.f32.mxu0 %vm328_vm1, %v24221_v49  ;;  %v4195_v27 = vld [vmem:[%s27967_s3 + $0xd8] sm:$0xff] }
 0x1eb   : > { %20866 = vmatprep.mubr.msk.f32.mxu1 %vm328_vm1, %v24221_v49  ;;  %20918 = vmatpush3.msk.msra.mxu1 %vm437_vm0, %v24742_v37  ;;  %v4188_v49 = vld [vmem:[%s27967_s3 + $0xa0] sm:$0xff]  ;;  %v28256_v37 = vld [vmem:[#allocation38_spill] sm:$0xff] }
 0x1ec   : > { %21029 = vmatprep.subr.msk.mxu0 %vm437_vm0, %v24952_v35  ;;  %4296 = vperm.xlu0 %23115, %v4186_v40   ;;  %v28277_v40 = vld [vmem:[#allocation14_spill] sm:$0xff] }
 0x1ed   : > { %20419 = vmatmul.mubr.msk.f32.gmra.mrb[2].mxu0 %vm328_vm1, %v24236_v23  ;;  %20867 = vmatmul.mubr.msk.f32.gmra.mrb[20].mxu1 %vm328_vm1, %v24236_v23  ;;  %v4191_v23 = vld [vmem:[%s27967_s3 + $0xb8] sm:$0xff] }
 0x1ee   : > { %20421 = vmatprep.mubr.msk.f32.mxu0 %vm328_vm1, %v24239_v50  ;;  %20869 = vmatprep.mubr.msk.f32.mxu1 %vm328_vm1, %v24239_v50  ;;  %v4190_v50 = vld [vmem:[%s27967_s3 + $0xb0] sm:$0xff] }
 0x1ef   : > { %4311 = vperm.xlu1 %23116, %v4189_v46  }
 0x1f0   : > { %4306 = vperm.xlu0 %23115, %v4188_v49   ;;  %v25234_v49 = vpop.f32.mrb[5].mxu1 }
 0x1f1   : > { %20422 = vmatmul.mubr.msk.f32.gmra.mrb[4].mxu0 %vm328_vm1, %v24250_v39  ;;  %20870 = vmatmul.mubr.msk.f32.gmra.mrb[22].mxu1 %vm328_vm1, %v24250_v39  ;;  %v4193_v39 = vld [vmem:[%s27967_s3 + $0xc8] sm:$0xff] }
 0x1f2   : > { %20424 = vmatprep.mubr.msk.f32.mxu0 %vm328_vm1, %v24253_v53  ;;  %20872 = vmatprep.mubr.msk.f32.mxu1 %vm328_vm1, %v24253_v53  ;;  %v25008_v53 = vld [vmem:[%s27965_s1 + $0x20] sm:$0xf] }
 0x1f3   : > { %4321 = vperm.xlu1 %23116, %v4191_v23   ;;  %20973 = vmatprep.subr.msk.mxu1 %vm437_vm0, %v25008_v53 }
 0x1f4   : > { %4316 = vperm.xlu0 %23115, %v4190_v50   ;;  %v28280_v50 = vld [vmem:[#allocation15_spill] sm:$0xff] }
 0x1f5   : > { %20425 = vmatmul.mubr.msk.f32.gmra.mrb[6].mxu0 %vm328_vm1, %v24269_v57  ;;  %20873 = vmatmul.mubr.msk.f32.gmra.mrb[24].mxu1 %vm328_vm1, %v24269_v57  ;;  %v4192_v57 = vld [vmem:[%s27967_s3 + $0xc0] sm:$0xff] }
 0x1f6   : > { %20427 = vmatprep.mubr.msk.f32.mxu0 %vm328_vm1, %v24272_v58  ;;  %20875 = vmatprep.mubr.msk.f32.mxu1 %vm328_vm1, %v24272_v58  ;;  %v4194_v58 = vld [vmem:[%s27967_s3 + $0xd0] sm:$0xff] }
 0x1f7   : > { %4331 = vperm.xlu1 %23116, %v4193_v39   ;;  %v25245_v39 = vld [vmem:[%s27965_s1] sm:$0xf] }
 0x1f8   : > { %4326 = vperm.xlu0 %23115, %v4192_v57   ;;  %v18409_v57 = vld [vmem:[%s27967_s3 + $0x2e0] sm:$0xff] }
 0x1f9   : > { %20428 = vmatmul.mubr.msk.f32.gmra.mrb[8].mxu0 %vm328_vm1, %v24285_v61  ;;  %20876 = vmatmul.mubr.msk.f32.gmra.mrb[26].mxu1 %vm328_vm1, %v24285_v61  ;;  %v4197_v61 = vld [vmem:[%s27967_s3 + $0xe8] sm:$0xff] }
 0x1fa   : > { %20430 = vmatprep.mubr.msk.f32.mxu0 %vm328_vm1, %v24288_v62  ;;  %20878 = vmatprep.mubr.msk.f32.mxu1 %vm328_vm1, %v24288_v62  ;;  %v4196_v62 = vld [vmem:[%s27967_s3 + $0xe0] sm:$0xff]  ;;  %v25142_v20 = vpop.permute.xlu1 %8411 }
 0x1fb   : > { %4341 = vperm.xlu1 %23116, %v4195_v27   ;;  %28264 = vst [vmem:[#allocation25_spill] sm:$0xff] %v25142_v20  ;;  %v25250_v27 = vpop.f32.mrb[6].mxu1 }
 0x1fc   : > { %4336 = vperm.xlu0 %23115, %v4194_v58   ;;  %v28281_v58 = vld [vmem:[#allocation16_spill] sm:$0xff] }
 0x1fd   : > { %20431 = vmatmul.mubr.msk.f32.gmra.mrb[10].mxu0 %vm328_vm1, %v24299_v1  ;;  %20879 = vmatmul.mubr.msk.f32.gmra.mrb[28].mxu1 %vm328_vm1, %v24299_v1  ;;  %v4199_v1 = vld [vmem:[%s27967_s3 + $0xf8] sm:$0xff] }
 0x1fe   : > { %20433 = vmatprep.mubr.msk.f32.mxu0 %vm328_vm1, %v24302_v2  ;;  %20881 = vmatprep.mubr.msk.f32.mxu1 %vm328_vm1, %v24302_v2  ;;  %v4198_v2 = vld [vmem:[%s27967_s3 + $0xf0] sm:$0xff]  ;;  %v25151_v22 = vpop.permute.xlu0 %8401  ;;  %v25174_v9 = vpop.permute.xlu1 %8416 }
 0x1ff   : > { %4351 = vperm.xlu1 %23116, %v4197_v61   ;;  %28266 = vst [vmem:[#allocation26_spill] sm:$0xff] %v25151_v22  ;;  %28270 = vst [vmem:[#allocation27_spill] sm:$0xff] %v25174_v9  ;;  %v25256_v61 = vpop.f32.mrb[7].mxu1  ;;  %v17636_v22 = vld [vmem:[%s23195_s8 + $0x4a0] sm:$0xff] }
 0x200   : > { %4346 = vperm.xlu0 %23115, %v4196_v62  }
 0x201   : > { %20434 = vmatmul.mubr.msk.f32.gmra.mrb[12].mxu0 %vm328_vm1, %v24313_v41  ;;  %20882 = vmatmul.mubr.msk.f32.gmra.mrb[30].mxu1 %vm328_vm1, %v24313_v41  ;;  %v18390_v41 = vld [vmem:[%s27967_s3 + $0x248] sm:$0xff] }
 0x202   : > { %20436 = vmatprep.mubr.msk.f32.mxu0 %vm328_vm1, %v24316_v43  ;;  %20884 = vmatprep.mubr.msk.f32.mxu1 %vm328_vm1, %v24316_v43  ;;  %v18389_v43 = vld [vmem:[%s27967_s3 + $0x240] sm:$0xff] }
 0x203   : > { %4361 = vperm.xlu1 %23116, %v4199_v1   ;;  %v28283_v1 = vld [vmem:[#allocation17_spill] sm:$0xff] }
 0x204   : > { %4356 = vperm.xlu0 %23115, %v4198_v2  }
 0x205   : > { %20437 = vmatmul.mubr.msk.f32.gmra.mrb[14].mxu0 %vm328_vm1, %v24327_v6  ;;  %20885 = vmatmul.mubr.msk.f32.gmra.mrb[32].mxu1 %vm328_vm1, %v24327_v6  ;;  %v18392_v6 = vld [vmem:[%s27967_s3 + $0x258] sm:$0xff] }
 0x206   : > { %20439 = vmatprep.mubr.msk.f32.mxu0 %vm328_vm1, %v24330_v7  ;;  %20887 = vmatprep.mubr.msk.f32.mxu1 %vm328_vm1, %v24330_v7  ;;  %v18391_v7 = vld [vmem:[%s27967_s3 + $0x250] sm:$0xff]  ;;  %v25176_v15 = vpop.permute.xlu0 %8406  ;;  %v25197_v30 = vpop.permute.xlu1 %8426 }
 0x207   : > { %12601 = vperm.xlu1 %23116, %v18390_v41   ;;  %28271 = vst [vmem:[#allocation28_spill] sm:$0xff] %v25176_v15  ;;  %28274 = vst [vmem:[#allocation29_spill] sm:$0xff] %v25197_v30  ;;  %v25278_v41 = vpop.f32.mrb[8].mxu1  ;;  %v17638_v15 = vld [vmem:[%s23195_s8 + $0x4b0] sm:$0xff] }
 0x208   : > { %12596 = vperm.xlu0 %23115, %v18389_v43   ;;  %v28285_v43 = vld [vmem:[#allocation18_spill] sm:$0xff] }
 0x209   : > { %20440 = vmatmul.mubr.msk.f32.gmra.mrb[16].mxu0 %vm328_vm1, %v24341_v10  ;;  %20888 = vmatmul.mubr.msk.f32.gmra.mrb[34].mxu1 %vm328_vm1, %v24341_v10  ;;  %v18394_v10 = vld [vmem:[%s27967_s3 + $0x268] sm:$0xff] }
 0x20a   : > { %20442 = vmatprep.mubr.msk.f32.mxu0 %vm328_vm1, %v24344_v11  ;;  %20890 = vmatprep.mubr.msk.f32.mxu1 %vm328_vm1, %v24344_v11  ;;  %v18393_v11 = vld [vmem:[%s27967_s3 + $0x260] sm:$0xff]  ;;  %v25206_v38 = vpop.permute.xlu0 %8421  ;;  %v25232_v46 = vpop.permute.xlu1 %8436 }
 0x20b   : > { %12611 = vperm.xlu1 %23116, %v18392_v6   ;;  %28276 = vst [vmem:[#allocation30_spill] sm:$0xff] %v25206_v38  ;;  %28278 = vst [vmem:[#allocation31_spill] sm:$0xff] %v25232_v46  ;;  %v25284_v6 = vpop.f32.mrb[9].mxu1  ;;  %v17630_v38 = vld [vmem:[%s23195_s8 + $0x470] sm:$0xff] }
 0x20c   : > { %12606 = vperm.xlu0 %23115, %v18391_v7   ;;  %28286 = vst [vmem:[#allocation35_spill] sm:$0xff] %v25284_v6  ;;  %v18414_v7 = vld [vmem:[%s27967_s3 + $0x308] sm:$0xff]  ;;  %v17735_v6 = vld [vmem:[%s23195_s8 + $0x2e0] sm:$0xff] }
 0x20d   : > { %20443 = vmatmul.mubr.msk.f32.gmra.mrb[18].mxu0 %vm328_vm1, %v28256_v37  ;;  %20891 = vmatmul.mubr.msk.f32.gmra.mrb[36].mxu1 %vm328_vm1, %v28256_v37  ;;  %v28287_v37 = vld [vmem:[#allocation19_spill] sm:$0xff] }
 0x20e   : > { %20445 = vmatprep.mubr.msk.f32.mxu0 %vm328_vm1, %v28257_v28  ;;  %20893 = vmatprep.mubr.msk.f32.mxu1 %vm328_vm1, %v28257_v28  ;;  %v25236_v23 = vpop.permute.xlu0 %8431  ;;  %v25264_v62 = vpop.permute.xlu1 %8446 }
 0x20f   : > { %12621 = vperm.xlu1 %23116, %v18394_v10   ;;  %28279 = vst [vmem:[#allocation32_spill] sm:$0xff] %v25236_v23  ;;  %28282 = vst [vmem:[#allocation33_spill] sm:$0xff] %v25264_v62  ;;  %v18413_v10 = vld [vmem:[%s27967_s3 + $0x300] sm:$0xff]  ;;  %v25296_v28 = vpop.f32.mrb[10].mxu1  ;;  %v17626_v62 = vld [vmem:[%s23195_s8 + $0x450] sm:$0xff] }
 0x210   : > { %12616 = vperm.xlu0 %23115, %v18393_v11   ;;  %28288 = vst [vmem:[#allocation36_spill] sm:$0xff] %v25296_v28  ;;  %v28289_v11 = vld [vmem:[#allocation20_spill] sm:$0xff]  ;;  %v17733_v28 = vld [vmem:[%s23195_s8 + $0x2d0] sm:$0xff] }
 0x211   : > { %20446 = vmatmul.mubr.msk.f32.gmra.mrb[20].mxu0 %vm328_vm1, %v28258_v55  ;;  %20894 = vmatmul.mubr.msk.f32.gmra.mrb[38].mxu1 %vm328_vm1, %v28258_v55 }
 0x212   : > { %20448 = vmatprep.mubr.msk.f32.mxu0 %vm328_vm1, %v28259_v32  ;;  %20896 = vmatprep.mubr.msk.f32.mxu1 %vm328_vm1, %v28259_v32  ;;  %v25273_v2 = vpop.permute.xlu0 %8441  ;;  %v25302_v55 = vpop.permute.xlu1 %8456 }
 0x213   : > { %12631 = vperm.xlu1 %23116, %v18396_v56   ;;  %28284 = vst [vmem:[#allocation34_spill] sm:$0xff] %v25273_v2  ;;  %28290 = vst [vmem:[#allocation37_spill] sm:$0xff] %v25302_v55  ;;  %v25304_v56 = vpop.f32.mrb[11].mxu1  ;;  %v17624_v2 = vld [vmem:[%s23195_s8 + $0x440] sm:$0xff] }
 0x214   : > { %12626 = vperm.xlu0 %23115, %v18395_v33   ;;  %28291 = vst [vmem:[#allocation39_spill] sm:$0xff] %v25304_v56  ;;  %v18416_v33 = vld [vmem:[%s27967_s3 + $0x318] sm:$0xff] }
 0x215   : > { %20449 = vmatmul.mubr.msk.f32.gmra.mrb[22].mxu0 %vm328_vm1, %v28260_v59  ;;  %20897 = vmatmul.mubr.msk.f32.gmra.mrb[40].mxu1 %vm328_vm1, %v28260_v59  ;;  %v28293_v59 = vld [vmem:[#allocation21_spill] sm:$0xff] }
 0x216   : > { %20451 = vmatprep.mubr.msk.f32.mxu0 %vm328_vm1, %v28261_v16  ;;  %20899 = vmatprep.mubr.msk.f32.mxu1 %vm328_vm1, %v28261_v16  ;;  %v25306_v32 = vpop.permute.xlu0 %8451  ;;  %v25318_v16 = vpop.f32.mrb[12].mxu1 }
 0x217   : > { %12641 = vperm.xlu1 %23116, %v18398_v60   ;;  %28292 = vst [vmem:[#allocation41_spill] sm:$0xff] %v25306_v32  ;;  %v18415_v60 = vld [vmem:[%s27967_s3 + $0x310] sm:$0xff]  ;;  %28294 = vst [vmem:[#allocation43_spill] sm:$0xff] %v25318_v16 }
 0x218   : > { %12636 = vperm.xlu0 %23115, %v18397_v54   ;;  %v28295_v54 = vld [vmem:[#allocation22_spill] sm:$0xff] }
 0x219   : > { %20452 = vmatmul.mubr.msk.f32.gmra.mrb[24].mxu0 %vm328_vm1, %v28262_v63  ;;  %20900 = vmatmul.mubr.msk.f32.gmra.mrb[42].mxu1 %vm328_vm1, %v28262_v63  ;;  %v25324_v63 = vpop.f32.mrb[13].mxu1 }
 0x21a   : > { %20454 = vmatprep.mubr.msk.f32.mxu0 %vm328_vm1, %v28263_v36  ;;  %20902 = vmatprep.mubr.msk.f32.mxu1 %vm328_vm1, %v28263_v36  ;;  %28296 = vst [vmem:[#allocation45_spill] sm:$0xff] %v25324_v63  ;;  %v18418_v36 = vld [vmem:[%s27967_s3 + $0x328] sm:$0xff] }
 0x21b   : > { %12651 = vperm.xlu1 %23116, %v18400_v0   ;;  %v25326_v0 = vpop.permute.xlu1 %8466 }
 0x21c   : > { %12646 = vperm.xlu0 %23115, %v18399_v3   ;;  %28297 = vst [vmem:[#allocation46_spill] sm:$0xff] %v25326_v0  ;;  %v28298_v3 = vld [vmem:[#allocation23_spill] sm:$0xff] }
 0x21d   : > { %20455 = vmatmul.mubr.msk.f32.gmra.mrb[26].mxu0 %vm328_vm1, %v28265_v14  ;;  %20903 = vmatmul.mubr.msk.f32.gmra.mrb[44].mxu1 %vm328_vm1, %v28265_v14  ;;  %v25335_v14 = vpop.permute.xlu0 %8461  ;;  %v17620_v0 = vld [vmem:[%s23195_s8 + $0x420] sm:$0xff] }
 0x21e   : > { %20457 = vmatprep.mubr.msk.f32.mxu0 %vm328_vm1, %v28267_v4  ;;  %20905 = vmatprep.mubr.msk.f32.mxu1 %vm328_vm1, %v28267_v4  ;;  %28299 = vst [vmem:[#allocation47_spill] sm:$0xff] %v25335_v14  ;;  %v28300_v4 = vld [vmem:[#allocation24_spill] sm:$0xff]  ;;  %v17619_v14 = vld [vmem:[%s23195_s8 + $0x418] sm:$0xff] }
 0x21f   : > { %12661 = vperm.xlu1 %23116, %v18402_v42   ;;  %v18417_v42 = vld [vmem:[%s27967_s3 + $0x320] sm:$0xff] }
 0x220   : > { %12656 = vperm.xlu0 %23115, %v18401_v5   ;;  %v25345_v5 = vld [vmem:[%s23195_s8 + $0x2f8] sm:$0xff] }
 0x221   : > { %20458 = vmatmul.mubr.msk.f32.gmra.mrb[28].mxu0 %vm328_vm1, %v28268_v44  ;;  %20906 = vmatmul.mubr.msk.f32.gmra.mrb[46].mxu1 %vm328_vm1, %v28268_v44  ;;  %v25347_v44 = vpop.f32.mrb[14].mxu1 }
 0x222   : > { %20460 = vmatprep.mubr.msk.f32.mxu0 %vm328_vm1, %v28269_v8  ;;  %20908 = vmatprep.mubr.msk.f32.mxu1 %vm328_vm1, %v28269_v8  ;;  %28301 = vst [vmem:[#allocation38_spill] sm:$0xff] %v25347_v44  ;;  %v25352_v8 = vpop.f32.mrb[15].mxu1  ;;  %v17644_v44 = vld [vmem:[%s23195_s8 + $0x4e0] sm:$0xff] }
 0x223   : > { %12671 = vperm.xlu1 %23116, %v18404_v19   ;;  %v25350_v19 = vld [vmem:[%s23195_s8 + $0x300] sm:$0xff]  ;;  %28302 = vst [vmem:[#allocation3_spill] sm:$0xff] %v25352_v8  ;;  %v17642_v8 = vld [vmem:[%s23195_s8 + $0x4d0] sm:$0xff] }
 0x224   : > { %12666 = vperm.xlu0 %23115, %v18403_v29   ;;  %v18420_v29 = vld [vmem:[%s27967_s3 + $0x338] sm:$0xff] }
 0x225   : > { %20461 = vmatmul.mubr.msk.f32.gmra.mrb[30].mxu0 %vm328_vm1, %v28272_v12  ;;  %20909 = vmatmul.mubr.msk.f32.gmra.mrb[48].mxu1 %vm328_vm1, %v28272_v12  ;;  %v23117_v12 = vld [vmem:[%s23195_s8 + $0x2f8] sm:$0xff] }
 0x226   : > { %20463 = vmatprep.mubr.msk.f32.mxu0 %vm328_vm1, %v28273_v48  ;;  %20911 = vmatprep.mubr.msk.f32.mxu1 %vm328_vm1, %v28273_v48  ;;  %v25364_v48 = vpop.f32.mrb[16].mxu1 }
 0x227   : > { %12681 = vperm.xlu1 %23116, %v18406_v13   ;;  %v18419_v13 = vld [vmem:[%s27967_s3 + $0x330] sm:$0xff]  ;;  %28303 = vst [vmem:[#allocation40_spill] sm:$0xff] %v25364_v48 }
 0x228   : > { %12676 = vperm.xlu0 %23115, %v18405_v21   ;;  %v25373_v21 = vpop.permute.xlu1 %8476 }
 0x229   : > { %20464 = vmatmul.mubr.msk.f32.gmra.mrb[32].mxu0 %vm328_vm1, %v28275_v25  ;;  %20912 = vmatmul.mubr.msk.f32.gmra.mrb[50].mxu1 %vm328_vm1, %v28275_v25  ;;  %28304 = vst [vmem:[#allocation4_spill] sm:$0xff] %v25373_v21  ;;  %v25375_v25 = vpop.f32.mrb[17].mxu1  ;;  %v25588_v21 = vld [vmem:[%s27965_s1 + $0x8] sm:$0xf] }
 0x22a   : > { %20466 = vmatprep.mubr.msk.f32.mxu0 %vm328_vm1, %v16906_v18  ;;  %20914 = vmatprep.mubr.msk.f32.mxu1 %vm328_vm1, %v16906_v18  ;;  %v25371_v18 = vld [vmem:[%s23195_s8 + $0x308] sm:$0xff]  ;;  %28305 = vst [vmem:[#allocation42_spill] sm:$0xff] %v25375_v25 }
 0x22b   : > { %12691 = vperm.xlu1 %23116, %v18408_v51   ;;  %v25378_v51 = vld [vmem:[%s23195_s8 + $0x310] sm:$0xff] }
 0x22c   : > { %12686 = vperm.xlu0 %23115, %v18407_v52   ;;  %v4201_v52 = vld [vmem:[%s27967_s3 + $0x108] sm:$0xff] }
 0x22d   : > { %20467 = vmatmul.mubr.msk.f32.gmra.mrb[34].mxu0 %vm328_vm1, %v16907_v24  ;;  %20915 = vmatmul.mubr.msk.f32.gmra.mrb[52].mxu1 %vm328_vm1, %v16907_v24  ;;  %v25380_v24 = vpop.permute.xlu0 %8471 }
 0x22e   : > { %20471 = vmatprep.mubr.msk.f32.mxu0 %vm328_vm1, %v28277_v40  ;;  %20919 = vmatprep.mubr.msk.f32.mxu1 %vm328_vm1, %v28277_v40  ;;  %28306 = vst [vmem:[#allocation5_spill] sm:$0xff] %v25380_v24  ;;  %v25397_v40 = vld [vmem:[%s23195_s8 + $0x318] sm:$0xff]  ;;  %v17761_v24 = vld [vmem:[%s23195_s8 + $0x3d0] sm:$0xff] }
 0x22f   : > { %12701 = vperm.xlu1 %23116, %v18410_v26   ;;  %v4200_v26 = vld [vmem:[%s27967_s3 + $0x100] sm:$0xff] }
 0x230   : > { %12696 = vperm.xlu0 %23115, %v18409_v57   ;;  %v25402_v57 = vpop.permute.xlu1 %8486 }
 0x231   : > { %20472 = vmatmul.mubr.msk.f32.vlgmr.msra.gmra.mrb[0].mxu0 %vm328_vm1, %v28280_v50  ;;  %20920 = vmatmul.mubr.msk.f32.vlgmr.msra.gmra.mrb[18].mxu1 %vm328_vm1, %v28280_v50  ;;  %v25400_v50 = vld [vmem:[%s23195_s8 + $0x320] sm:$0xff]  ;;  %28307 = vst [vmem:[#allocation44_spill] sm:$0xff] %v25402_v57  ;;  %v17614_v57 = vld [vmem:[%s23195_s8 + $0x3f0] sm:$0xff] }
 0x232   : > { %21030 = vmatpush3.msk.msra.mxu0 %vm437_vm0, %v24952_v35  ;;  %20474 = vmatprep.mubr.msk.f32.mxu0 %vm328_vm1, %v28281_v58  ;;  %v18412_v35 = vld [vmem:[%s27967_s3 + $0x2f8] sm:$0xff] }
 0x233   : > { %20922 = vmatprep.mubr.msk.f32.mxu1 %vm328_vm1, %v28281_v58  ;;  %20974 = vmatpush3.msk.msra.mxu1 %vm437_vm0, %v25008_v53  ;;  %v18411_v53 = vld [vmem:[%s27967_s3 + $0x2f0] sm:$0xff]  ;;  %v17720_v58 = vld [vmem:[%s27967_s3 + $0x228] sm:$0xff] }
 0x234   : > { %21085 = vmatprep.subr.msk.mxu0 %vm437_vm0, %v25245_v39  ;;  %12711 = vperm.xlu1 %23116, %v18412_v35   ;;  %v25411_v35 = vpop.permute.xlu0 %8481 }
 0x235   : > { %20475 = vmatmul.mubr.msk.f32.gmra.mrb[2].mxu0 %vm328_vm1, %v28283_v1  ;;  %20923 = vmatmul.mubr.msk.f32.gmra.mrb[20].mxu1 %vm328_vm1, %v28283_v1  ;;  %28308 = vst [vmem:[#allocation6_spill] sm:$0xff] %v25411_v35  ;;  %v17719_v1 = vld [vmem:[%s27967_s3 + $0x220] sm:$0xff] }
 0x236   : > { %20477 = vmatprep.mubr.msk.f32.mxu0 %vm328_vm1, %v28285_v43  ;;  %20925 = vmatprep.mubr.msk.f32.mxu1 %vm328_vm1, %v28285_v43  ;;  %v25424_v43 = vld [vmem:[%s23195_s8 + $0x330] sm:$0xff]  ;;  %v17759_v35 = vld [vmem:[%s23195_s8 + $0x3c0] sm:$0xff] }
 0x237   : > { %12706 = vperm.xlu0 %23115, %v18411_v53   ;;  %v25421_v53 = vld [vmem:[%s23195_s8 + $0x328] sm:$0xff] }
 0x238   : > { %12721 = vperm.xlu1 %23116, %v18414_v7   ;;  %v18422_v7 = vld [vmem:[%s27967_s3 + $0x348] sm:$0xff] }
 0x239   : > { %20478 = vmatmul.mubr.msk.f32.gmra.mrb[4].mxu0 %vm328_vm1, %v28287_v37  ;;  %20926 = vmatmul.mubr.msk.f32.gmra.mrb[22].mxu1 %vm328_vm1, %v28287_v37  ;;  %v18421_v37 = vld [vmem:[%s27967_s3 + $0x340] sm:$0xff] }
 0x23a   : > { %20480 = vmatprep.mubr.msk.f32.mxu0 %vm328_vm1, %v28289_v11  ;;  %20928 = vmatprep.mubr.msk.f32.mxu1 %vm328_vm1, %v28289_v11  ;;  %v25443_v11 = vpop.permute.xlu1 %8496 }
 0x23b   : > { %12716 = vperm.xlu0 %23115, %v18413_v10   ;;  %v25441_v10 = vld [vmem:[%s23195_s8 + $0x338] sm:$0xff]  ;;  %28309 = vst [vmem:[#allocation7_spill] sm:$0xff] %v25443_v11 }
 0x23c   : > { %12731 = vperm.xlu1 %23116, %v18416_v33   ;;  %v25446_v33 = vld [vmem:[%s23195_s8 + $0x340] sm:$0xff]  ;;  %v16981_v11 = vld [vmem:[%s23195_s8 + $0x3b8] sm:$0xff] }
 0x23d   : > { %20481 = vmatmul.mubr.msk.f32.gmra.mrb[6].mxu0 %vm328_vm1, %v28293_v59  ;;  %20929 = vmatmul.mubr.msk.f32.gmra.mrb[24].mxu1 %vm328_vm1, %v28293_v59  ;;  %v25448_v59 = vpop.permute.xlu0 %8491 }
 0x23e   : > { %20483 = vmatprep.mubr.msk.f32.mxu0 %vm328_vm1, %v28295_v54  ;;  %20931 = vmatprep.mubr.msk.f32.mxu1 %vm328_vm1, %v28295_v54  ;;  %28310 = vst [vmem:[#allocation8_spill] sm:$0xff] %v25448_v59  ;;  %v4202_v54 = vld [vmem:[%s27967_s3 + $0x110] sm:$0xff] }
 0x23f   : > { %12726 = vperm.xlu0 %23115, %v18415_v60   ;;  %v4203_v60 = vld [vmem:[%s27967_s3 + $0x118] sm:$0xff]  ;;  %v16980_v59 = vld [vmem:[%s23195_s8 + $0x3b0] sm:$0xff] }
 0x240   : > { %12741 = vperm.xlu1 %23116, %v18418_v36   ;;  %v25465_v36 = vld [vmem:[%s23195_s8 + $0x348] sm:$0xff] }
 0x241   : > { %20484 = vmatmul.mubr.msk.f32.gmra.mrb[8].mxu0 %vm328_vm1, %v28298_v3  ;;  %20932 = vmatmul.mubr.msk.f32.gmra.mrb[26].mxu1 %vm328_vm1, %v28298_v3  ;;  %v25468_v3 = vld [vmem:[%s23195_s8 + $0x350] sm:$0xff] }
 0x242   : > { %20486 = vmatprep.mubr.msk.f32.mxu0 %vm328_vm1, %v28300_v4  ;;  %20934 = vmatprep.mubr.msk.f32.mxu1 %vm328_vm1, %v28300_v4  ;;  %v25476_v4 = vpop.permute.xlu0 %8501 }
 0x243   : > { %12736 = vperm.xlu0 %23115, %v18417_v42   ;;  %v25470_v42 = vpop.permute.xlu1 %8506  ;;  %28312 = vst [vmem:[#allocation10_spill] sm:$0xff] %v25476_v4 }
 0x244   : > { %12751 = vperm.xlu1 %23116, %v18420_v29   ;;  %28311 = vst [vmem:[#allocation9_spill] sm:$0xff] %v25470_v42  ;;  %v25483_v29 = vld [vmem:[%s23195_s8 + $0x358] sm:$0xff]  ;;  %v16979_v42 = vld [vmem:[%s23195_s8 + $0x3a8] sm:$0xff] }
 0x245   : > { %20487 = vmatmul.mubr.msk.f32.gmra.mrb[10].mxu0 %vm328_vm1, %v23117_v12  ;;  %20935 = vmatmul.mubr.msk.f32.gmra.mrb[28].mxu1 %vm328_vm1, %v25345_v5  ;;  %v25486_v12 = vld [vmem:[%s23195_s8 + $0x360] sm:$0xff] }
 0x246   : > { %20489 = vmatprep.mubr.msk.f32.mxu0 %vm328_vm1, %v25350_v19  ;;  %20937 = vmatprep.mubr.msk.f32.mxu1 %vm328_vm1, %v25350_v19 }
 0x247   : > { %12746 = vperm.xlu0 %23115, %v18419_v13   ;;  %v25497_v13 = vld [vmem:[%s23195_s8 + $0x368] sm:$0xff] }
 0x248   : > { %4371 = vperm.xlu1 %23116, %v4201_v52   ;;  %v25499_v52 = vpop.permute.xlu1 %8516 }
 0x249   : > { %20490 = vmatmul.mubr.msk.f32.gmra.mrb[12].mxu0 %vm328_vm1, %v25371_v18  ;;  %20938 = vmatmul.mubr.msk.f32.gmra.mrb[30].mxu1 %vm328_vm1, %v25371_v18  ;;  %28313 = vst [vmem:[#allocation11_spill] sm:$0xff] %v25499_v52  ;;  %v16978_v52 = vld [vmem:[%s23195_s8 + $0x3a0] sm:$0xff] }
 0x24a   : > { %20492 = vmatprep.mubr.msk.f32.mxu0 %vm328_vm1, %v25378_v51  ;;  %20940 = vmatprep.mubr.msk.f32.mxu1 %vm328_vm1, %v25378_v51 }
 0x24b   : > { %4366 = vperm.xlu0 %23115, %v4200_v26   ;;  %v25502_v26 = vld [vmem:[%s23195_s8 + $0x370] sm:$0xff] }
 0x24c   : > { %8566 = vperm.xlu1 %23116, %v17720_v58   ;;  %v25504_v58 = vpop.permute.xlu0 %8511 }
 0x24d   : > { %20493 = vmatmul.mubr.msk.f32.gmra.mrb[14].mxu0 %vm328_vm1, %v25397_v40  ;;  %20941 = vmatmul.mubr.msk.f32.gmra.mrb[32].mxu1 %vm328_vm1, %v25397_v40  ;;  %28314 = vst [vmem:[#allocation12_spill] sm:$0xff] %v25504_v58  ;;  %v25536_v58 = vld [vmem:[%s23195_s8 + $0x390] sm:$0xff] }
 0x24e   : > { %20495 = vmatprep.mubr.msk.f32.mxu0 %vm328_vm1, %v25400_v50  ;;  %20943 = vmatprep.mubr.msk.f32.mxu1 %vm328_vm1, %v25400_v50 }
 0x24f   : > { %8561 = vperm.xlu0 %23115, %v17719_v1   ;;  %v25515_v1 = vld [vmem:[%s23195_s8 + $0x378] sm:$0xff] }
 0x250   : > { %12761 = vperm.xlu1 %23116, %v18422_v7   ;;  %v25518_v7 = vld [vmem:[%s23195_s8 + $0x380] sm:$0xff] }
 0x251   : > { %20496 = vmatmul.mubr.msk.f32.gmra.mrb[16].mxu0 %vm328_vm1, %v25421_v53  ;;  %20944 = vmatmul.mubr.msk.f32.gmra.mrb[34].mxu1 %vm328_vm1, %v25421_v53 }
 0x252   : > { %20498 = vmatprep.mubr.msk.f32.mxu0 %vm328_vm1, %v25424_v43  ;;  %20946 = vmatprep.mubr.msk.f32.mxu1 %vm328_vm1, %v25424_v43 }
 0x253   : > { %12756 = vperm.xlu0 %23115, %v18421_v37   ;;  %v25520_v37 = vpop.permute.xlu1 %8526 }
 0x254   : > { %4381 = vperm.xlu1 %23116, %v4203_v60   ;;  %28315 = vst [vmem:[#allocation13_spill] sm:$0xff] %v25520_v37  ;;  %v25526_v60 = vpop.permute.xlu0 %8521 }
 0x255   : > { %20499 = vmatmul.mubr.msk.f32.gmra.mrb[18].mxu0 %vm328_vm1, %v25441_v10  ;;  %20947 = vmatmul.mubr.msk.f32.gmra.mrb[36].mxu1 %vm328_vm1, %v25441_v10  ;;  %28316 = vst [vmem:[#allocation14_spill] sm:$0xff] %v25526_v60  ;;  %v25547_v60 = vld [vmem:[%s23195_s8 + $0x398] sm:$0xff] }
 0x256   : > { %20501 = vmatprep.mubr.msk.f32.mxu0 %vm328_vm1, %v25446_v33  ;;  %20949 = vmatprep.mubr.msk.f32.mxu1 %vm328_vm1, %v25446_v33 }
 0x257   : > { %4376 = vperm.xlu0 %23115, %v4202_v54   ;;  %v25533_v54 = vld [vmem:[%s23195_s8 + $0x388] sm:$0xff]  ;;  %v25549_v37 = vpop.permute.xlu1 %8536 }
 0x258   : > { %28317 = vst [vmem:[#allocation15_spill] sm:$0xff] %v25549_v37  ;;  %v25552_v4 = vpop.permute.xlu0 %8531 }
 0x259   : > { %20502 = vmatmul.mubr.msk.f32.gmra.mrb[20].mxu0 %vm328_vm1, %v25465_v36  ;;  %20950 = vmatmul.mubr.msk.f32.gmra.mrb[38].mxu1 %vm328_vm1, %v25465_v36  ;;  %28318 = vst [vmem:[#allocation16_spill] sm:$0xff] %v25552_v4 }
 0x25a   : > { %20504 = vmatprep.mubr.msk.f32.mxu0 %vm328_vm1, %v25468_v3  ;;  %20952 = vmatprep.mubr.msk.f32.mxu1 %vm328_vm1, %v25468_v3 }
 0x25b   : > { %v25562_v37 = vpop.permute.xlu1 %8546 }
 0x25c   : > { %28319 = vst [vmem:[#allocation17_spill] sm:$0xff] %v25562_v37  ;;  %v25566_v4 = vpop.permute.xlu0 %8541 }
 0x25d   : > { %20505 = vmatmul.mubr.msk.f32.gmra.mrb[22].mxu0 %vm328_vm1, %v25483_v29  ;;  %20953 = vmatmul.mubr.msk.f32.gmra.mrb[40].mxu1 %vm328_vm1, %v25483_v29  ;;  %28320 = vst [vmem:[#allocation18_spill] sm:$0xff] %v25566_v4  ;;  %v17760_v4 = vld [vmem:[%s23195_s8 + $0x3c8] sm:$0xff] }
 0x25e   : > { %20507 = vmatprep.mubr.msk.f32.mxu0 %vm328_vm1, %v25486_v12  ;;  %20955 = vmatprep.mubr.msk.f32.mxu1 %vm328_vm1, %v25486_v12 }
 0x25f   : > { %v25579_v37 = vpop.permute.xlu1 %8556 }
 0x260   : > { %28321 = vst [vmem:[#allocation19_spill] sm:$0xff] %v25579_v37 }
 0x261   : > { %20508 = vmatmul.mubr.msk.f32.gmra.mrb[24].mxu0 %vm328_vm1, %v25497_v13  ;;  %20956 = vmatmul.mubr.msk.f32.gmra.mrb[42].mxu1 %vm328_vm1, %v25497_v13 }
 0x262   : > { %20510 = vmatprep.mubr.msk.f32.mxu0 %vm328_vm1, %v25502_v26  ;;  %20958 = vmatprep.mubr.msk.f32.mxu1 %vm328_vm1, %v25502_v26 }
 0x263   : > { %v25601_v37 = vpop.permute.xlu1 %4211 }
 0x265   : > { %20511 = vmatmul.mubr.msk.f32.gmra.mrb[26].mxu0 %vm328_vm1, %v25515_v1  ;;  %20959 = vmatmul.mubr.msk.f32.gmra.mrb[44].mxu1 %vm328_vm1, %v25515_v1 }
 0x266   : > { %20513 = vmatprep.mubr.msk.f32.mxu0 %vm328_vm1, %v25518_v7  ;;  %20961 = vmatprep.mubr.msk.f32.mxu1 %vm328_vm1, %v25518_v7 }
 0x269   : > { %20514 = vmatmul.mubr.msk.f32.gmra.mrb[28].mxu0 %vm328_vm1, %v25533_v54  ;;  %20962 = vmatmul.mubr.msk.f32.gmra.mrb[46].mxu1 %vm328_vm1, %v25533_v54 }
 0x26a   : > { %20516 = vmatprep.mubr.msk.f32.mxu0 %vm328_vm1, %v25536_v58  ;;  %20964 = vmatprep.mubr.msk.f32.mxu1 %vm328_vm1, %v25536_v58 }
 0x26d   : > { %20517 = vmatmul.mubr.msk.f32.gmra.mrb[30].mxu0 %vm328_vm1, %v25547_v60  ;;  %20965 = vmatmul.mubr.msk.f32.gmra.mrb[48].mxu1 %vm328_vm1, %v25547_v60 }
 0x26e   : > { %20519 = vmatprep.mubr.msk.f32.mxu0 %vm328_vm1, %v16978_v52  ;;  %20967 = vmatprep.mubr.msk.f32.mxu1 %vm328_vm1, %v16978_v52  ;;  %v17612_v52 = vld [vmem:[%s23195_s8 + $0x3e0] sm:$0xff] }
 0x271   : > { %20520 = vmatmul.mubr.msk.f32.gmra.mrb[32].mxu0 %vm328_vm1, %v16979_v42  ;;  %20968 = vmatmul.mubr.msk.f32.gmra.mrb[50].mxu1 %vm328_vm1, %v16979_v42  ;;  %v17613_v42 = vld [vmem:[%s23195_s8 + $0x3e8] sm:$0xff] }
 0x272   : > { %20522 = vmatprep.mubr.msk.f32.mxu0 %vm328_vm1, %v16980_v59  ;;  %20970 = vmatprep.mubr.msk.f32.mxu1 %vm328_vm1, %v16980_v59  ;;  %v25582_v59 = vpop.permute.xlu0 %8551 }
 0x273   : > { %28322 = vst [vmem:[#allocation20_spill] sm:$0xff] %v25582_v59  ;;  %v17616_v59 = vld [vmem:[%s23195_s8 + $0x400] sm:$0xff] }
 0x275   : > { %20523 = vmatmul.mubr.msk.f32.gmra.mrb[34].mxu0 %vm328_vm1, %v16981_v11  ;;  %20971 = vmatmul.mubr.msk.f32.gmra.mrb[52].mxu1 %vm328_vm1, %v16981_v11  ;;  %v17762_v11 = vld [vmem:[%s23195_s8 + $0x3d8] sm:$0xff] }
 0x276   : > { %20975 = vmatprep.mubr.msk.f32.mxu1 %vm328_vm1, %v17612_v52  ;;  %21031 = vmatprep.mubr.msk.f32.mxu0 %vm328_vm1, %v17759_v35  ;;  %v17615_v35 = vld [vmem:[%s23195_s8 + $0x3f8] sm:$0xff] }
 0x279   : > { %20976 = vmatmul.mubr.msk.f32.vlgmr.msra.gmra.mrb[18].mxu1 %vm328_vm1, %v17613_v42  ;;  %21032 = vmatmul.mubr.msk.f32.vlgmr.msra.gmra.mrb[36].mxu0 %vm328_vm1, %v17760_v4  ;;  %v25605_v4 = vpop.permute.xlu0 %4206 }
 0x27a   : > { %21086 = vmatpush3.msk.msra.mxu0 %vm437_vm0, %v25245_v39  ;;  %20978 = vmatprep.mubr.msk.f32.mxu1 %vm328_vm1, %v17614_v57  ;;  %v17617_v39 = vld [vmem:[%s23195_s8 + $0x408] sm:$0xff] }
 0x27b   : > { %21034 = vmatprep.mubr.msk.f32.mxu0 %vm328_vm1, %v17761_v24  ;;  %21141 = vmatprep.subr.msk.mxu0 %vm437_vm0, %v25588_v21  ;;  %v17618_v24 = vld [vmem:[%s23195_s8 + $0x410] sm:$0xff] }
 0x27d   : > { %20979 = vmatmul.mubr.msk.f32.gmra.mrb[20].mxu1 %vm328_vm1, %v17615_v35  ;;  %21035 = vmatmul.mubr.msk.f32.gmra.mrb[38].mxu0 %vm328_vm1, %v17762_v11  ;;  %v25616_v11 = vpop.permute.xlu1 %4221  ;;  %v25619_v32 = vpop.permute.xlu0 %4216 }
 0x27e   : > { %20981 = vmatprep.mubr.msk.f32.mxu1 %vm328_vm1, %v17616_v59  ;;  %21037 = vmatprep.mubr.msk.f32.mxu0 %vm328_vm1, %v17612_v52  ;;  %v17621_v52 = vld [vmem:[%s23195_s8 + $0x428] sm:$0xff] }
 0x281   : > { %20982 = vmatmul.mubr.msk.f32.gmra.mrb[22].mxu1 %vm328_vm1, %v17617_v39  ;;  %21038 = vmatmul.mubr.msk.f32.gmra.mrb[40].mxu0 %vm328_vm1, %v17613_v42  ;;  %v25627_v42 = vpop.permute.xlu1 %4231  ;;  %v25631_v55 = vpop.permute.xlu0 %4226 }
 0x282   : > { %20984 = vmatprep.mubr.msk.f32.mxu1 %vm328_vm1, %v17618_v24  ;;  %21040 = vmatprep.mubr.msk.f32.mxu0 %vm328_vm1, %v17614_v57  ;;  %v17622_v57 = vld [vmem:[%s23195_s8 + $0x430] sm:$0xff] }
 0x285   : > { %20985 = vmatmul.mubr.msk.f32.gmra.mrb[24].mxu1 %vm328_vm1, %v17619_v14  ;;  %21041 = vmatmul.mubr.msk.f32.gmra.mrb[42].mxu0 %vm328_vm1, %v17615_v35  ;;  %v17623_v35 = vld [vmem:[%s23195_s8 + $0x438] sm:$0xff]  ;;  %v25645_v23 = vpop.permute.xlu0 %4236 }
 0x286   : > { %20987 = vmatprep.mubr.msk.f32.mxu1 %vm328_vm1, %v17620_v0  ;;  %21043 = vmatprep.mubr.msk.f32.mxu0 %vm328_vm1, %v17616_v59  ;;  %v17625_v59 = vld [vmem:[%s23195_s8 + $0x448] sm:$0xff] }
 0x289   : > { %20988 = vmatmul.mubr.msk.f32.gmra.mrb[26].mxu1 %vm328_vm1, %v17621_v52  ;;  %21044 = vmatmul.mubr.msk.f32.gmra.mrb[44].mxu0 %vm328_vm1, %v17617_v39  ;;  %v25642_v39 = vpop.permute.xlu1 %4241 }
 0x28a   : > { %20990 = vmatprep.mubr.msk.f32.mxu1 %vm328_vm1, %v17622_v57  ;;  %21046 = vmatprep.mubr.msk.f32.mxu0 %vm328_vm1, %v17618_v24  ;;  %v17628_v24 = vld [vmem:[%s23195_s8 + $0x460] sm:$0xff] }
 0x28d   : > { %20991 = vmatmul.mubr.msk.f32.gmra.mrb[28].mxu1 %vm328_vm1, %v17623_v35  ;;  %21047 = vmatmul.mubr.msk.f32.gmra.mrb[46].mxu0 %vm328_vm1, %v17619_v14  ;;  %v17627_v14 = vld [vmem:[%s23195_s8 + $0x458] sm:$0xff]  ;;  %v25653_v46 = vpop.permute.xlu1 %4251 }
 0x28e   : > { %20993 = vmatprep.mubr.msk.f32.mxu1 %vm328_vm1, %v17624_v2  ;;  %21049 = vmatprep.mubr.msk.f32.mxu0 %vm328_vm1, %v17620_v0  ;;  %v25657_v0 = vpop.permute.xlu0 %4246 }
 0x291   : > { %20994 = vmatmul.mubr.msk.f32.gmra.mrb[30].mxu1 %vm328_vm1, %v17625_v59  ;;  %21050 = vmatmul.mubr.msk.f32.gmra.mrb[48].mxu0 %vm328_vm1, %v17621_v52  ;;  %v17629_v52 = vld [vmem:[%s23195_s8 + $0x468] sm:$0xff]  ;;  %v25674_v30 = vpop.permute.xlu1 %4261 }
 0x292   : > { %20996 = vmatprep.mubr.msk.f32.mxu1 %vm328_vm1, %v17626_v62  ;;  %21052 = vmatprep.mubr.msk.f32.mxu0 %vm328_vm1, %v17622_v57  ;;  %v17722_v57 = vld [vmem:[%s27967_s3 + $0x238] sm:$0xff]  ;;  %v25677_v20 = vpop.permute.xlu0 %4256 }
 0x293   : > { %8576 = vperm.xlu1 %23116, %v17722_v57   ;;  %v17632_v57 = vld [vmem:[%s23195_s8 + $0x480] sm:$0xff] }
 0x295   : > { %20997 = vmatmul.mubr.msk.f32.gmra.mrb[32].mxu1 %vm328_vm1, %v17627_v14  ;;  %21053 = vmatmul.mubr.msk.f32.gmra.mrb[50].mxu0 %vm328_vm1, %v17623_v35  ;;  %v17721_v35 = vld [vmem:[%s27967_s3 + $0x230] sm:$0xff] }
 0x296   : > { %20999 = vmatprep.mubr.msk.f32.mxu1 %vm328_vm1, %v17628_v24  ;;  %21055 = vmatprep.mubr.msk.f32.mxu0 %vm328_vm1, %v17624_v2  ;;  %v17631_v2 = vld [vmem:[%s23195_s8 + $0x478] sm:$0xff]  ;;  %v25689_v9 = vpop.permute.xlu0 %4266 }
 0x297   : > { %8571 = vperm.xlu0 %23115, %v17721_v35   ;;  %v25685_v35 = vpop.permute.xlu1 %4271 }
 0x299   : > { %21000 = vmatmul.mubr.msk.f32.gmra.mrb[34].mxu1 %vm328_vm1, %v17629_v52  ;;  %21056 = vmatmul.mubr.msk.f32.gmra.mrb[52].mxu0 %vm328_vm1, %v17625_v59  ;;  %v17633_v59 = vld [vmem:[%s23195_s8 + $0x488] sm:$0xff] }
 0x29a   : > { %21002 = vmatprep.mubr.msk.f32.mxu1 %vm328_vm1, %v17630_v38  ;;  %21058 = vmatprep.mubr.msk.f32.mxu0 %vm328_vm1, %v17626_v62  ;;  %v17634_v62 = vld [vmem:[%s23195_s8 + $0x490] sm:$0xff]  ;;  %v25703_v25 = vpop.permute.xlu0 %4276 }
 0x29d   : > { %21003 = vmatmul.mubr.msk.f32.gmra.mrb[36].mxu1 %vm328_vm1, %v17631_v2  ;;  %21059 = vmatmul.mubr.msk.f32.gmra.mrb[54].mxu0 %vm328_vm1, %v17627_v14  ;;  %v17635_v14 = vld [vmem:[%s23195_s8 + $0x498] sm:$0xff] }
 0x29e   : > { %21005 = vmatprep.mubr.msk.f32.mxu1 %vm328_vm1, %v17632_v57  ;;  %21061 = vmatprep.mubr.msk.f32.mxu0 %vm328_vm1, %v17628_v24  ;;  %v17637_v24 = vld [vmem:[%s23195_s8 + $0x4a8] sm:$0xff]  ;;  %v25715_v48 = vpop.permute.xlu0 %4286 }
 0x2a1   : > { %21006 = vmatmul.mubr.msk.f32.gmra.mrb[38].mxu1 %vm328_vm1, %v17633_v59  ;;  %21062 = vmatmul.mubr.msk.f32.gmra.mrb[56].mxu0 %vm328_vm1, %v17629_v52  ;;  %v25700_v52 = vpop.permute.xlu1 %4281 }
 0x2a2   : > { %21008 = vmatprep.mubr.msk.f32.mxu1 %vm328_vm1, %v17634_v62  ;;  %21064 = vmatprep.mubr.msk.f32.mxu0 %vm328_vm1, %v17630_v38  ;;  %v17639_v38 = vld [vmem:[%s23195_s8 + $0x4b8] sm:$0xff]  ;;  %v25729_v63 = vpop.permute.xlu0 %4296 }
 0x2a5   : > { %21009 = vmatmul.mubr.msk.f32.gmra.mrb[40].mxu1 %vm328_vm1, %v17635_v14  ;;  %21065 = vmatmul.mubr.msk.f32.gmra.mrb[58].mxu0 %vm328_vm1, %v17631_v2  ;;  %v17640_v2 = vld [vmem:[%s23195_s8 + $0x4c0] sm:$0xff] }
 0x2a6   : > { %21011 = vmatprep.mubr.msk.f32.mxu1 %vm328_vm1, %v17636_v22  ;;  %21067 = vmatprep.mubr.msk.f32.mxu0 %vm328_vm1, %v17632_v57  ;;  %v25711_v57 = vpop.permute.xlu1 %4291  ;;  %v25741_v16 = vpop.permute.xlu0 %4306 }
 0x2a9   : > { %21012 = vmatmul.mubr.msk.f32.gmra.mrb[42].mxu1 %vm328_vm1, %v17637_v24  ;;  %21068 = vmatmul.mubr.msk.f32.gmra.mrb[60].mxu0 %vm328_vm1, %v17633_v59  ;;  %v17641_v59 = vld [vmem:[%s23195_s8 + $0x4c8] sm:$0xff] }
 0x2aa   : > { %21014 = vmatprep.mubr.msk.f32.mxu1 %vm328_vm1, %v17638_v15  ;;  %21070 = vmatprep.mubr.msk.f32.mxu0 %vm328_vm1, %v17634_v62  ;;  %v17643_v62 = vld [vmem:[%s23195_s8 + $0x4d8] sm:$0xff]  ;;  %v25756_v56 = vpop.permute.xlu0 %4316 }
 0x2ab   : > { %28324 = vst [vmem:[#allocation22_spill] sm:$0xff] %v25756_v56 }
 0x2ad   : > { %21015 = vmatmul.mubr.msk.f32.gmra.mrb[44].mxu1 %vm328_vm1, %v17639_v38  ;;  %21071 = vmatmul.mubr.msk.f32.gmra.mrb[62].mxu0 %vm328_vm1, %v17635_v14  ;;  %v25726_v14 = vpop.permute.xlu1 %4301 }
 0x2ae   : > { %21017 = vmatprep.mubr.msk.f32.mxu1 %vm328_vm1, %v17640_v2  ;;  %21073 = vmatprep.mubr.msk.f32.mxu0 %vm328_vm1, %v17636_v22  ;;  %v17645_v22 = vld [vmem:[%s23195_s8 + $0x4e8] sm:$0xff] }
 0x2b1   : > { %21018 = vmatmul.mubr.msk.f32.gmra.mrb[46].mxu1 %vm328_vm1, %v17641_v59  ;;  %21074 = vmatmul.mubr.msk.f32.gmra.mrb[64].mxu0 %vm328_vm1, %v17637_v24  ;;  %v25737_v24 = vpop.permute.xlu1 %4311 }
 0x2b2   : > { %21020 = vmatprep.mubr.msk.f32.mxu1 %vm328_vm1, %v17642_v8  ;;  %21076 = vmatprep.mubr.msk.f32.mxu0 %vm328_vm1, %v17638_v15  ;;  %v17646_v15 = vld [vmem:[%s23195_s8 + $0x4f0] sm:$0xff] }
 0x2b5   : > { %21021 = vmatmul.mubr.msk.f32.gmra.mrb[48].mxu1 %vm328_vm1, %v17643_v62  ;;  %21077 = vmatmul.mubr.msk.f32.gmra.mrb[66].mxu0 %vm328_vm1, %v17639_v38  ;;  %v17723_v38 = vld [vmem:[%s23195_s8 + $0x280] sm:$0xff] }
 0x2b6   : > { %21023 = vmatprep.mubr.msk.f32.mxu1 %vm328_vm1, %v17644_v44  ;;  %21079 = vmatprep.mubr.msk.f32.mxu0 %vm328_vm1, %v17640_v2  ;;  %v17647_v44 = vld [vmem:[%s23195_s8 + $0x4f8] sm:$0xff]  ;;  %v17724_v2 = vld [vmem:[%s23195_s8 + $0x288] sm:$0xff] }
 0x2b9   : > { %21024 = vmatmul.mubr.msk.f32.gmra.mrb[50].mxu1 %vm328_vm1, %v17645_v22  ;;  %21080 = vmatmul.mubr.msk.f32.gmra.mrb[68].mxu0 %vm328_vm1, %v17641_v59  ;;  %v25751_v59 = vpop.permute.xlu1 %4321  ;;  %v25754_v22 = vld [vmem:[%s23195_s8 + $0x290] sm:$0xff] }
 0x2ba   : > { %21026 = vmatprep.mubr.msk.f32.mxu1 %vm328_vm1, %v17646_v15  ;;  %21082 = vmatprep.mubr.msk.f32.mxu0 %vm328_vm1, %v17642_v8  ;;  %28323 = vst [vmem:[#allocation21_spill] sm:$0xff] %v25754_v22  ;;  %v25761_v8 = vld [vmem:[%s27965_s1 + $0xc] sm:$0xf]  ;;  %v25772_v15 = vld [vmem:[%s23195_s8 + $0x2a0] sm:$0xff] }
 0x2bb   : > { %28326 = vst [vmem:[#allocation24_spill] sm:$0xff] %v25772_v15 }
 0x2bd   : > { %21027 = vmatmul.mubr.msk.f32.gmra.mrb[52].mxu1 %vm328_vm1, %v17647_v44  ;;  %21083 = vmatmul.mubr.msk.f32.gmra.mrb[70].mxu0 %vm328_vm1, %v17643_v62  ;;  %v25769_v62 = vld [vmem:[%s23195_s8 + $0x298] sm:$0xff]  ;;  %v25776_v44 = vpop.permute.xlu1 %4331 }
 0x2be   : > { %21087 = vmatprep.mubr.msk.f32.mxu0 %vm328_vm1, %v17723_v38  ;;  %28325 = vst [vmem:[#allocation23_spill] sm:$0xff] %v25769_v62  ;;  %28327 = vst [vmem:[#allocation48_spill] sm:$0xff] %v25776_v44  ;;  %v25780_v38 = vpop.permute.xlu0 %4326 }
 0x2bf   : > { %28328 = vst [vmem:[#allocation49_spill] sm:$0xff] %v25780_v38  ;;  %v25800_v38 = vld [vmem:[%s23195_s8 + $0x2c0] sm:$0xff] }
 0x2c0   : > { %28333 = vst [vmem:[#allocation54_spill] sm:$0xff] %v25800_v38 }
 0x2c1   : > { %21088 = vmatmul.mubr.msk.f32.vlgmr.msra.gmra.mrb[36].mxu0 %vm328_vm1, %v17724_v2  ;;  %v25788_v2 = vld [vmem:[%s23195_s8 + $0x2b0] sm:$0xff] }
 0x2c2   : > { %21142 = vmatpush3.msk.msra.mxu0 %vm437_vm0, %v25588_v21  ;;  %21090 = vmatprep.mubr.msk.f32.mxu0 %vm328_vm1, %v25754_v22  ;;  %v25785_v21 = vld [vmem:[%s23195_s8 + $0x2a8] sm:$0xff]  ;;  %28330 = vst [vmem:[#allocation51_spill] sm:$0xff] %v25788_v2  ;;  %v25795_v22 = vld [vmem:[%s23195_s8 + $0x2b8] sm:$0xff] }
 0x2c3   : > { %21197 = vmatprep.subr.msk.mxu0 %vm437_vm0, %v25761_v8  ;;  %28329 = vst [vmem:[#allocation50_spill] sm:$0xff] %v25785_v21  ;;  %28331 = vst [vmem:[#allocation52_spill] sm:$0xff] %v25795_v22 }
 0x2c5   : > { %21091 = vmatmul.mubr.msk.f32.gmra.mrb[38].mxu0 %vm328_vm1, %v25769_v62  ;;  %v25797_v62 = vpop.permute.xlu1 %4341 }
 0x2c6   : > { %21093 = vmatprep.mubr.msk.f32.mxu0 %vm328_vm1, %v25772_v15  ;;  %28332 = vst [vmem:[#allocation53_spill] sm:$0xff] %v25797_v62  ;;  %v25802_v15 = vpop.permute.xlu0 %4336  ;;  %v17734_v62 = vld [vmem:[%s23195_s8 + $0x2d8] sm:$0xff] }
 0x2c7   : > { %28334 = vst [vmem:[#allocation55_spill] sm:$0xff] %v25802_v15 }
 0x2c9   : > { %21094 = vmatmul.mubr.msk.f32.gmra.mrb[40].mxu0 %vm328_vm1, %v25785_v21  ;;  %v17732_v21 = vld [vmem:[%s23195_s8 + $0x2c8] sm:$0xff]  ;;  %v25810_v44 = vpop.permute.xlu1 %4351 }
 0x2ca   : > { %21096 = vmatprep.mubr.msk.f32.mxu0 %vm328_vm1, %v25788_v2  ;;  %v25813_v2 = vpop.permute.xlu0 %4346 }
 0x2cd   : > { %21097 = vmatmul.mubr.msk.f32.gmra.mrb[42].mxu0 %vm328_vm1, %v25795_v22  ;;  %v17736_v22 = vld [vmem:[%s23195_s8 + $0x2e8] sm:$0xff]  ;;  %v25821_v15 = vpop.permute.xlu1 %4361 }
 0x2ce   : > { %21099 = vmatprep.mubr.msk.f32.mxu0 %vm328_vm1, %v25800_v38  ;;  %v17737_v38 = vld [vmem:[%s23195_s8 + $0x2f0] sm:$0xff]  ;;  %v25824_v56 = vpop.permute.xlu0 %4356 }
 0x2d1   : > { %21100 = vmatmul.mubr.msk.f32.gmra.mrb[44].mxu0 %vm328_vm1, %v17732_v21  ;;  %v25828_v21 = vpop.permute.xlu1 %12601 }
 0x2d2   : > { %21102 = vmatprep.mubr.msk.f32.mxu0 %vm328_vm1, %v17733_v28  ;;  %28335 = vst [vmem:[#allocation56_spill] sm:$0xff] %v25828_v21  ;;  %v18425_v28 = vld [vmem:[%s27968_s4 + $0x8] sm:$0xff]  ;;  %v26684_v21 = vld [vmem:[%s23195_s8 + $0x520] sm:$0xff] }
 0x2d3   : > { %21533 = vmatprep.subr.mxu1 %v18425_v28 }
 0x2d4   : > { %21534 = vmatpush3.msra.mxu1 %v18425_v28 }
 0x2d5   : > { %21103 = vmatmul.mubr.msk.f32.gmra.mrb[46].mxu0 %vm328_vm1, %v17734_v62 }
 0x2d6   : > { %21105 = vmatprep.mubr.msk.f32.mxu0 %vm328_vm1, %v17735_v6  ;;  %v25835_v6 = vpop.permute.xlu0 %12596 }
 0x2d7   : > { %28336 = vst [vmem:[#allocation57_spill] sm:$0xff] %v25835_v6  ;;  %v26675_v6 = vld [vmem:[%s23195_s8 + $0x4e8] sm:$0xff] }
 0x2d9   : > { %21106 = vmatmul.mubr.msk.f32.gmra.mrb[48].mxu0 %vm328_vm1, %v17736_v22  ;;  %v25843_v22 = vpop.permute.xlu1 %12611 }
 0x2da   : > { %21108 = vmatprep.mubr.msk.f32.mxu0 %vm328_vm1, %v17737_v38  ;;  %28337 = vst [vmem:[#allocation58_spill] sm:$0xff] %v25843_v22  ;;  %v25845_v62 = vpop.permute.xlu0 %12606  ;;  %v17872_v38 = vld [vmem:[%s23195_s8 + $0x510] sm:$0xff]  ;;  %v26667_v22 = vld [vmem:[%s23195_s8 + $0x4e0] sm:$0xff] }
 0x2db   : > { %28338 = vst [vmem:[#allocation59_spill] sm:$0xff] %v25845_v62  ;;  %v26663_v62 = vld [vmem:[%s23195_s8 + $0x4d8] sm:$0xff] }
 0x2dd   : > { %21109 = vmatmul.mubr.msk.f32.gmra.mrb[50].mxu0 %vm328_vm1, %v25345_v5  ;;  %v25851_v5 = vpop.permute.xlu1 %12621 }
 0x2de   : > { %21111 = vmatprep.mubr.msk.f32.mxu0 %vm328_vm1, %v25350_v19  ;;  %28339 = vst [vmem:[#allocation60_spill] sm:$0xff] %v25851_v5  ;;  %v25855_v19 = vpop.permute.xlu0 %12616 }
 0x2df   : > { %28340 = vst [vmem:[#allocation61_spill] sm:$0xff] %v25855_v19  ;;  %v26651_v19 = vld [vmem:[%s23195_s8 + $0x4c8] sm:$0xff] }
 0x2e1   : > { %21112 = vmatmul.mubr.msk.f32.gmra.mrb[52].mxu0 %vm328_vm1, %v25371_v18  ;;  %v25863_v18 = vpop.permute.xlu1 %12631 }
 0x2e2   : > { %21114 = vmatprep.mubr.msk.f32.mxu0 %vm328_vm1, %v25378_v51  ;;  %28341 = vst [vmem:[#allocation62_spill] sm:$0xff] %v25863_v18  ;;  %v25865_v51 = vpop.permute.xlu0 %12626 }
 0x2e3   : > { %28342 = vst [vmem:[#allocation63_spill] sm:$0xff] %v25865_v51  ;;  %v26639_v51 = vld [vmem:[%s23195_s8 + $0x4b8] sm:$0xff] }
 0x2e5   : > { %21115 = vmatmul.mubr.msk.f32.gmra.mrb[54].mxu0 %vm328_vm1, %v25397_v40  ;;  %v25871_v40 = vpop.permute.xlu1 %12641 }
 0x2e6   : > { %21117 = vmatprep.mubr.msk.f32.mxu0 %vm328_vm1, %v25400_v50  ;;  %28343 = vst [vmem:[#allocation64_spill] sm:$0xff] %v25871_v40  ;;  %v25875_v50 = vpop.permute.xlu0 %12636 }
 0x2e7   : > { %28344 = vst [vmem:[#allocation65_spill] sm:$0xff] %v25875_v50  ;;  %v17874_v50 = vld [vmem:[%s23195_s8 + $0x520] sm:$0xff] }
 0x2e9   : > { %21118 = vmatmul.mubr.msk.f32.gmra.mrb[56].mxu0 %vm328_vm1, %v25421_v53  ;;  %v25883_v53 = vpop.permute.xlu1 %12651 }
 0x2ea   : > { %21120 = vmatprep.mubr.msk.f32.mxu0 %vm328_vm1, %v25424_v43  ;;  %28345 = vst [vmem:[#allocation66_spill] sm:$0xff] %v25883_v53  ;;  %v25885_v43 = vpop.permute.xlu0 %12646 }
 0x2eb   : > { %28346 = vst [vmem:[#allocation67_spill] sm:$0xff] %v25885_v43 }
 0x2ed   : > { %21121 = vmatmul.mubr.msk.f32.gmra.mrb[58].mxu0 %vm328_vm1, %v25441_v10  ;;  %v25891_v10 = vpop.permute.xlu1 %12661 }
 0x2ee   : > { %21123 = vmatprep.mubr.msk.f32.mxu0 %vm328_vm1, %v25446_v33  ;;  %28347 = vst [vmem:[#allocation68_spill] sm:$0xff] %v25891_v10  ;;  %v25895_v33 = vpop.permute.xlu0 %12656 }
 0x2ef   : > { %28348 = vst [vmem:[#allocation69_spill] sm:$0xff] %v25895_v33 }
 0x2f1   : > { %21124 = vmatmul.mubr.msk.f32.gmra.mrb[60].mxu0 %vm328_vm1, %v25465_v36  ;;  %v25900_v36 = vld [vmem:[%s27966_s2] ss:$0 sm:$0xff] }
 0x2f2   : > { %21126 = vmatprep.mubr.msk.f32.mxu0 %vm328_vm1, %v25468_v3  ;;  %v17870_v3 = vld [vmem:[%s23195_s8 + $0x500] sm:$0xff]  ;;  %v25914_v28 = vpop.permute.xlu0 %12666 }
 0x2f3   : > { %28350 = vst [vmem:[#allocation71_spill] sm:$0xff] %v25914_v28  ;;  %v17873_v28 = vld [vmem:[%s23195_s8 + $0x518] sm:$0xff] }
 0x2f5   : > { %21127 = vmatmul.mubr.msk.f32.gmra.mrb[62].mxu0 %vm328_vm1, %v25483_v29 }
 0x2f6   : > { %21129 = vmatprep.mubr.msk.f32.mxu0 %vm328_vm1, %v25486_v12 }
 0x2f9   : > { %21130 = vmatmul.mubr.msk.f32.gmra.mrb[64].mxu0 %vm328_vm1, %v25497_v13 }
 0x2fa   : > { %21132 = vmatprep.mubr.msk.f32.mxu0 %vm328_vm1, %v25502_v26 }
 0x2fd   : > { %21133 = vmatmul.mubr.msk.f32.gmra.mrb[66].mxu0 %vm328_vm1, %v25515_v1  ;;  %v17871_v1 = vld [vmem:[%s23195_s8 + $0x508] sm:$0xff] }
 0x2fe   : > { %21135 = vmatprep.mubr.msk.f32.mxu0 %vm328_vm1, %v25518_v7  ;;  %v25911_v7 = vpop.permute.xlu1 %12671 }
 0x2ff   : > { %28349 = vst [vmem:[#allocation70_spill] sm:$0xff] %v25911_v7 }
 0x301   : > { %21136 = vmatmul.mubr.msk.f32.gmra.mrb[68].mxu0 %vm328_vm1, %v25533_v54 }
 0x302   : > { %21138 = vmatprep.mubr.msk.f32.mxu0 %vm328_vm1, %v25536_v58 }
 0x304   : > { %v20473_v29 = vpop.f32.mrb[0].mxu0 }
 0x305   : > { %v4061_v12 = vadd.f32 %v20473_v29, %v25900_v36  ;;  %v3838_v13 = vpop.f32.mrb[1].mxu0  ;;  %21139 = vmatmul.mubr.msk.f32.gmra.mrb[70].mxu0 %vm328_vm1, %v25547_v60  ;;  %v25919_v29 = vld [vmem:[%s27965_s1 + $0x10] sm:$0xf] }
 0x306   : > { %v4060_v26 = vadd.f32 %v25900_v36, %v3838_v13  ;;  %21143 = vmatprep.mubr.msk.f32.mxu0 %vm328_vm1, %v17870_v3 }
 0x307   : > { %v4097_v54 = vmul.f32 0.02, %v4061_v12 }
 0x308   : > { %v4096_v58 = vmul.f32 0.02, %v4060_v26  ;;  %v20476_v33 = vpop.f32.mrb[2].mxu0 }
 0x309   : > { %v4133_v60 = vmax.f32 %v4061_v12, %v4097_v54  ;;  %v4063_v13 = vadd.f32 %v20476_v33, %v25900_v36  ;;  %v3848_v3 = vpop.f32.mrb[3].mxu0  ;;  %21144 = vmatmul.mubr.msk.f32.vlgmr.msra.gmra.mrb[36].mxu0 %vm328_vm1, %v17871_v1  ;;  %v25933_v1 = vpop.permute.xlu1 %12681 }
 0x30a   : > { %v4132_v7 = vmax.f32 %v4060_v26, %v4096_v58  ;;  %v4062_v10 = vadd.f32 %v25900_v36, %v3848_v3  ;;  %21198 = vmatpush3.msk.msra.mxu0 %vm437_vm0, %v25761_v8  ;;  %21146 = vmatprep.mubr.msk.f32.mxu0 %vm328_vm1, %v17872_v38  ;;  %28351 = vst [vmem:[#allocation72_spill] sm:$0xff] %v25933_v1  ;;  %v26627_v1 = vld [vmem:[%s23195_s8 + $0x4a8] sm:$0xff] }
 0x30b   : > { %v4385_v43 = vmul.f32 %v25601_v37, %v4133_v60  ;;  %v4099_v53 = vmul.f32 0.02, %v4063_v13  ;;  %21253 = vmatprep.subr.msk.mxu0 %vm437_vm0, %v25919_v29  ;;  %v25938_v37 = vpop.permute.xlu0 %12676 }
 0x30c   : > { %v4384_v33 = vmul.f32 %v25605_v4, %v4132_v7  ;;  %v4098_v12 = vmul.f32 0.02, %v4062_v10  ;;  %v20479_v26 = vpop.f32.mrb[4].mxu0  ;;  %28352 = vst [vmem:[#allocation73_spill] sm:$0xff] %v25938_v37  ;;  %v17875_v7 = vld [vmem:[%s23195_s8 + $0x528] sm:$0xff] }
 0x30d   : > { %4422 = vst.msk [vmem:[#allocation2 + $0x8] sm:$0xff] %vm4420_vm2, %v4385_v43  ;;  %v4135_v8 = vmax.f32 %v4063_v13, %v4099_v53  ;;  %v4065_v54 = vadd.f32 %v20479_v26, %v25900_v36  ;;  %v3858_v38 = vpop.f32.mrb[5].mxu0  ;;  %21147 = vmatmul.mubr.msk.f32.gmra.mrb[38].mxu0 %vm328_vm1, %v17873_v28  ;;  %v17876_v53 = vld [vmem:[%s23195_s8 + $0x530] sm:$0xff] }
 0x30e   : > { %4421 = vst.msk [vmem:[#allocation2] sm:$0xff] %vm4420_vm2, %v4384_v33  ;;  %v4134_v58 = vmax.f32 %v4062_v10, %v4098_v12  ;;  %v4064_v4 = vadd.f32 %v25900_v36, %v3858_v38  ;;  %21149 = vmatprep.mubr.msk.f32.mxu0 %vm328_vm1, %v17874_v50  ;;  %v17877_v12 = vld [vmem:[%s23195_s8 + $0x538] sm:$0xff] }
 0x30f   : > { %v4387_v60 = vmul.f32 %v25616_v11, %v4135_v8  ;;  %v4101_v43 = vmul.f32 0.02, %v4065_v54 }
 0x310   : > { %v4386_v13 = vmul.f32 %v25619_v32, %v4134_v58  ;;  %v4100_v3 = vmul.f32 0.02, %v4064_v4  ;;  %v20482_v28 = vpop.f32.mrb[6].mxu0  ;;  %v25954_v32 = vpop.permute.xlu1 %12691 }
 0x311   : > { %4424 = vst.msk [vmem:[#allocation2 + $0x18] sm:$0xff] %vm4420_vm2, %v4387_v60  ;;  %v4137_v26 = vmax.f32 %v4065_v54, %v4101_v43  ;;  %v4067_v10 = vadd.f32 %v20482_v28, %v25900_v36  ;;  %v3868_v33 = vpop.f32.mrb[7].mxu0  ;;  %21150 = vmatmul.mubr.msk.f32.gmra.mrb[40].mxu0 %vm328_vm1, %v17875_v7  ;;  %28353 = vst [vmem:[#allocation74_spill] sm:$0xff] %v25954_v32  ;;  %v17878_v54 = vld [vmem:[%s23195_s8 + $0x540] sm:$0xff]  ;;  %v25958_v58 = vpop.permute.xlu0 %12686  ;;  %v17879_v28 = vld [vmem:[%s23195_s8 + $0x548] sm:$0xff] }
 0x312   : > { %4423 = vst.msk [vmem:[#allocation2 + $0x10] sm:$0xff] %vm4420_vm2, %v4386_v13  ;;  %v4136_v50 = vmax.f32 %v4064_v4, %v4100_v3  ;;  %v4066_v11 = vadd.f32 %v25900_v36, %v3868_v33  ;;  %21152 = vmatprep.mubr.msk.f32.mxu0 %vm328_vm1, %v17876_v53  ;;  %28354 = vst [vmem:[#allocation75_spill] sm:$0xff] %v25958_v58  ;;  %v17880_v33 = vld [vmem:[%s23195_s8 + $0x550] sm:$0xff]  ;;  %v26615_v32 = vld [vmem:[%s23195_s8 + $0x498] sm:$0xff] }
 0x313   : > { %v4389_v8 = vmul.f32 %v25627_v42, %v4137_v26  ;;  %v4103_v38 = vmul.f32 0.02, %v4067_v10 }
 0x314   : > { %v4388_v7 = vmul.f32 %v25631_v55, %v4136_v50  ;;  %v4102_v60 = vmul.f32 0.02, %v4066_v11  ;;  %v20485_v43 = vpop.f32.mrb[8].mxu0 }
 0x315   : > { %4426 = vst.msk [vmem:[#allocation2 + $0x28] sm:$0xff] %vm4420_vm2, %v4389_v8  ;;  %v4139_v4 = vmax.f32 %v4067_v10, %v4103_v38  ;;  %v4069_v53 = vadd.f32 %v20485_v43, %v25900_v36  ;;  %v3878_v13 = vpop.f32.mrb[9].mxu0  ;;  %21153 = vmatmul.mubr.msk.f32.gmra.mrb[42].mxu0 %vm328_vm1, %v17877_v12  ;;  %v25971_v38 = vpop.permute.xlu1 %12701 }
 0x316   : > { %4425 = vst.msk [vmem:[#allocation2 + $0x20] sm:$0xff] %vm4420_vm2, %v4388_v7  ;;  %v4138_v42 = vmax.f32 %v4066_v11, %v4102_v60  ;;  %v4068_v3 = vadd.f32 %v25900_v36, %v3878_v13  ;;  %21155 = vmatprep.mubr.msk.f32.mxu0 %vm328_vm1, %v17878_v54  ;;  %28355 = vst [vmem:[#allocation76_spill] sm:$0xff] %v25971_v38  ;;  %v25976_v54 = vpop.permute.xlu0 %12696  ;;  %v17881_v60 = vld [vmem:[%s23195_s8 + $0x558] sm:$0xff]  ;;  %v26603_v38 = vld [vmem:[%s23195_s8 + $0x488] sm:$0xff] }
 0x317   : > { %v4391_v55 = vmul.f32 %v25642_v39, %v4139_v4  ;;  %v4105_v26 = vmul.f32 0.02, %v4069_v53  ;;  %28356 = vst [vmem:[#allocation77_spill] sm:$0xff] %v25976_v54 }
 0x318   : > { %v4390_v10 = vmul.f32 %v25645_v23, %v4138_v42  ;;  %v4104_v50 = vmul.f32 0.02, %v4068_v3  ;;  %v20488_v8 = vpop.f32.mrb[10].mxu0 }
 0x319   : > { %4428 = vst.msk [vmem:[#allocation2 + $0x38] sm:$0xff] %vm4420_vm2, %v4391_v55  ;;  %v4141_v11 = vmax.f32 %v4069_v53, %v4105_v26  ;;  %v4071_v12 = vadd.f32 %v20488_v8, %v25900_v36  ;;  %v3888_v7 = vpop.f32.mrb[11].mxu0  ;;  %21156 = vmatmul.mubr.msk.f32.gmra.mrb[44].mxu0 %vm328_vm1, %v17879_v28  ;;  %v17882_v53 = vld [vmem:[%s23195_s8 + $0x560] sm:$0xff] }
 0x31a   : > { %4427 = vst.msk [vmem:[#allocation2 + $0x30] sm:$0xff] %vm4420_vm2, %v4390_v10  ;;  %v4140_v39 = vmax.f32 %v4068_v3, %v4104_v50  ;;  %v4070_v23 = vadd.f32 %v25900_v36, %v3888_v7  ;;  %21158 = vmatprep.mubr.msk.f32.mxu0 %vm328_vm1, %v17880_v33  ;;  %v25988_v28 = vld [vmem:[%s27968_s4] sm:$0xff]  ;;  %v17883_v10 = vld [vmem:[%s23195_s8 + $0x568] sm:$0xff]  ;;  %v25998_v50 = vpop.permute.xlu1 %12711  ;;  %v26002_v7 = vpop.permute.xlu0 %12706 }
 0x31b   : > { %v4393_v43 = vmul.f32 %v25653_v46, %v4141_v11  ;;  %v4107_v4 = vmul.f32 0.02, %v4071_v12  ;;  %21583 = vmatprep.subr.mxu1 %v25988_v28  ;;  %28357 = vst [vmem:[#allocation78_spill] sm:$0xff] %v25998_v50  ;;  %28358 = vst [vmem:[#allocation79_spill] sm:$0xff] %v26002_v7  ;;  %v26591_v50 = vld [vmem:[%s23195_s8 + $0x478] sm:$0xff] }
 0x31c   : > { %v4392_v13 = vmul.f32 %v25657_v0, %v4140_v39  ;;  %v4106_v42 = vmul.f32 0.02, %v4070_v23  ;;  %v20491_v55 = vpop.f32.mrb[12].mxu0 }
 0x31d   : > { %4430 = vst.msk [vmem:[#allocation2 + $0x48] sm:$0xff] %vm4420_vm2, %v4393_v43  ;;  %v4143_v3 = vmax.f32 %v4071_v12, %v4107_v4  ;;  %v4073_v26 = vadd.f32 %v20491_v55, %v25900_v36  ;;  %v3898_v33 = vpop.f32.mrb[13].mxu0  ;;  %21159 = vmatmul.mubr.msk.f32.gmra.mrb[46].mxu0 %vm328_vm1, %v17881_v60  ;;  %v17884_v12 = vld [vmem:[%s23195_s8 + $0x570] sm:$0xff] }
 0x31e   : > { %4429 = vst.msk [vmem:[#allocation2 + $0x40] sm:$0xff] %vm4420_vm2, %v4392_v13  ;;  %v4142_v46 = vmax.f32 %v4070_v23, %v4106_v42  ;;  %v4072_v0 = vadd.f32 %v25900_v36, %v3898_v33  ;;  %21161 = vmatprep.mubr.msk.f32.mxu0 %vm328_vm1, %v17882_v53  ;;  %v17885_v42 = vld [vmem:[%s23195_s8 + $0x578] sm:$0xff] }
 0x31f   : > { %v4395_v8 = vmul.f32 %v25674_v30, %v4143_v3  ;;  %v4109_v11 = vmul.f32 0.02, %v4073_v26  ;;  %v17886_v3 = vld [vmem:[%s23195_s8 + $0x580] sm:$0xff] }
 0x320   : > { %v4394_v39 = vmul.f32 %v25677_v20, %v4142_v46  ;;  %v4108_v60 = vmul.f32 0.02, %v4072_v0  ;;  %v20494_v43 = vpop.f32.mrb[14].mxu0 }
 0x321   : > { %4432 = vst.msk [vmem:[#allocation2 + $0x58] sm:$0xff] %vm4420_vm2, %v4395_v8  ;;  %v4145_v23 = vmax.f32 %v4073_v26, %v4109_v11  ;;  %v4075_v4 = vadd.f32 %v20494_v43, %v25900_v36  ;;  %v3908_v53 = vpop.f32.mrb[15].mxu0  ;;  %21162 = vmatmul.mubr.msk.f32.gmra.mrb[48].mxu0 %vm328_vm1, %v17883_v10  ;;  %v26015_v8 = vpop.permute.xlu1 %12721 }
 0x322   : > { %4431 = vst.msk [vmem:[#allocation2 + $0x50] sm:$0xff] %vm4420_vm2, %v4394_v39  ;;  %v4144_v30 = vmax.f32 %v4072_v0, %v4108_v60  ;;  %v4074_v13 = vadd.f32 %v25900_v36, %v3908_v53  ;;  %21164 = vmatprep.mubr.msk.f32.mxu0 %vm328_vm1, %v17884_v12  ;;  %28359 = vst [vmem:[#allocation80_spill] sm:$0xff] %v26015_v8  ;;  %v26020_v12 = vpop.permute.xlu0 %12716  ;;  %v17887_v39 = vld [vmem:[%s23195_s8 + $0x588] sm:$0xff] }
 0x323   : > { %v4397_v20 = vmul.f32 %v25685_v35, %v4145_v23  ;;  %v4111_v55 = vmul.f32 0.02, %v4075_v4  ;;  %28360 = vst [vmem:[#allocation81_spill] sm:$0xff] %v26020_v12  ;;  %v17888_v23 = vld [vmem:[%s23195_s8 + $0x590] sm:$0xff]  ;;  %v26579_v8 = vld [vmem:[%s23195_s8 + $0x468] sm:$0xff] }
 0x324   : > { %v4396_v26 = vmul.f32 %v25689_v9, %v4144_v30  ;;  %v4110_v33 = vmul.f32 0.02, %v4074_v13  ;;  %v20497_v46 = vpop.f32.mrb[16].mxu0 }
 0x325   : > { %4434 = vst.msk [vmem:[#allocation2 + $0x68] sm:$0xff] %vm4420_vm2, %v4397_v20  ;;  %v4147_v0 = vmax.f32 %v4075_v4, %v4111_v55  ;;  %v4077_v10 = vadd.f32 %v20497_v46, %v25900_v36  ;;  %v3918_v11 = vpop.f32.mrb[17].mxu0  ;;  %21165 = vmatmul.mubr.msk.f32.gmra.mrb[50].mxu0 %vm328_vm1, %v17885_v42  ;;  %v17890_v46 = vld [vmem:[%s23195_s8 + $0x5a0] sm:$0xff] }
 0x326   : > { %4433 = vst.msk [vmem:[#allocation2 + $0x60] sm:$0xff] %vm4420_vm2, %v4396_v26  ;;  %v4146_v35 = vmax.f32 %v4074_v13, %v4110_v33  ;;  %v4076_v9 = vadd.f32 %v25900_v36, %v3918_v11  ;;  %21167 = vmatprep.mubr.msk.f32.mxu0 %vm328_vm1, %v17886_v3  ;;  %v17889_v3 = vld [vmem:[%s23195_s8 + $0x598] sm:$0xff] }
 0x327   : > { %v4399_v60 = vmul.f32 %v25700_v52, %v4147_v0  ;;  %v4113_v43 = vmul.f32 0.02, %v4077_v10 }
 0x328   : > { %v4398_v4 = vmul.f32 %v25703_v25, %v4146_v35  ;;  %v4112_v53 = vmul.f32 0.02, %v4076_v9  ;;  %v20500_v30 = vpop.f32.mrb[18].mxu0  ;;  %v26036_v25 = vpop.permute.xlu1 %12731 }
 0x329   : > { %4436 = vst.msk [vmem:[#allocation2 + $0x78] sm:$0xff] %vm4420_vm2, %v4399_v60  ;;  %v4149_v42 = vmax.f32 %v4077_v10, %v4113_v43  ;;  %v21985_v13 = vadd.f32 %v20500_v30, %v25188_v47  ;;  %v3928_v20 = vpop.f32.mrb[19].mxu0  ;;  %21168 = vmatmul.mubr.msk.f32.gmra.mrb[52].mxu0 %vm328_vm1, %v17887_v39  ;;  %28361 = vst [vmem:[#allocation82_spill] sm:$0xff] %v26036_v25  ;;  %v26041_v47 = vpop.permute.xlu0 %12726  ;;  %v17891_v60 = vld [vmem:[%s23195_s8 + $0x5a8] sm:$0xff]  ;;  %v26567_v25 = vld [vmem:[%s23195_s8 + $0x458] sm:$0xff] }
 0x32a   : > { %4435 = vst.msk [vmem:[#allocation2 + $0x70] sm:$0xff] %vm4420_vm2, %v4398_v4  ;;  %v4148_v55 = vmax.f32 %v4076_v9, %v4112_v53  ;;  %v21986_v52 = vadd.f32 %v3928_v20, %v25194_v17  ;;  %21170 = vmatprep.mubr.msk.f32.mxu0 %vm328_vm1, %v17888_v23  ;;  %28362 = vst [vmem:[#allocation83_spill] sm:$0xff] %v26041_v47  ;;  %v17892_v23 = vld [vmem:[%s23195_s8 + $0x5b0] sm:$0xff] }
 0x32b   : > { %v4401_v26 = vmul.f32 %v25711_v57, %v4149_v42  ;;  %v4079_v33 = vadd.f32 %v21985_v13, %v25900_v36 }
 0x32c   : > { %v4400_v0 = vmul.f32 %v25715_v48, %v4148_v55  ;;  %v4078_v10 = vadd.f32 %v21986_v52, %v25900_v36  ;;  %v20503_v11 = vpop.f32.mrb[20].mxu0  ;;  %v26055_v30 = vpop.permute.xlu1 %12741 }
 0x32d   : > { %4438 = vst.msk [vmem:[#allocation2 + $0x88] sm:$0xff] %vm4420_vm2, %v4401_v26  ;;  %v4115_v17 = vmul.f32 0.02, %v4079_v33  ;;  %v21987_v35 = vadd.f32 %v20503_v11, %v25211_v31  ;;  %v3938_v9 = vpop.f32.mrb[21].mxu0  ;;  %21171 = vmatmul.mubr.msk.f32.gmra.mrb[54].mxu0 %vm328_vm1, %v17889_v3  ;;  %28363 = vst [vmem:[#allocation84_spill] sm:$0xff] %v26055_v30  ;;  %v26060_v55 = vpop.permute.xlu0 %12736  ;;  %v12859_v47 = vld [vmem:[#allocation2 + $0x60] sm:$0xff] }
 0x32e   : > { %4437 = vst.msk [vmem:[#allocation2 + $0x80] sm:$0xff] %vm4420_vm2, %v4400_v0  ;;  %v4114_v57 = vmul.f32 0.02, %v4078_v10  ;;  %v21988_v39 = vadd.f32 %v3938_v9, %v25216_v34  ;;  %21173 = vmatprep.mubr.msk.f32.mxu0 %vm328_vm1, %v17890_v46  ;;  %28364 = vst [vmem:[#allocation85_spill] sm:$0xff] %v26060_v55  ;;  %v28421_v55 = vld [vmem:[#allocation20_spill] sm:$0xff] }
 0x32f   : > { %v4151_v48 = vmax.f32 %v4079_v33, %v4115_v17  ;;  %v4081_v43 = vadd.f32 %v21987_v35, %v25900_v36  ;;  %v17893_v33 = vld [vmem:[%s23195_s8 + $0x5b8] sm:$0xff] }
 0x330   : > { %v4150_v4 = vmax.f32 %v4078_v10, %v4114_v57  ;;  %v4080_v53 = vadd.f32 %v21988_v39, %v25900_v36  ;;  %v20506_v31 = vpop.f32.mrb[22].mxu0 }
 0x331   : > { %v4403_v42 = vmul.f32 %v25726_v14, %v4151_v48  ;;  %v4117_v13 = vmul.f32 0.02, %v4081_v43  ;;  %v21989_v34 = vadd.f32 %v20506_v31, %v25226_v45  ;;  %v3948_v20 = vpop.f32.mrb[23].mxu0  ;;  %21174 = vmatmul.mubr.msk.f32.gmra.mrb[56].mxu0 %vm328_vm1, %v17891_v60  ;;  %v17894_v45 = vld [vmem:[%s23195_s8 + $0x5c0] sm:$0xff]  ;;  %v17895_v60 = vld [vmem:[%s23195_s8 + $0x5c8] sm:$0xff]  ;;  %v26078_v48 = vpop.permute.xlu1 %12751  ;;  %v12861_v12 = vld [vmem:[#allocation2 + $0x70] sm:$0xff] }
 0x332   : > { %v4402_v52 = vmul.f32 %v25729_v63, %v4150_v4  ;;  %v4116_v3 = vmul.f32 0.02, %v4080_v53  ;;  %v21990_v26 = vadd.f32 %v3948_v20, %v25234_v49  ;;  %21176 = vmatprep.mubr.msk.f32.mxu0 %vm328_vm1, %v17892_v23  ;;  %28365 = vst [vmem:[#allocation86_spill] sm:$0xff] %v26078_v48  ;;  %v26083_v23 = vpop.permute.xlu0 %12746 }
 0x333   : > { %4440 = vst.msk [vmem:[#allocation2 + $0x98] sm:$0xff] %vm4420_vm2, %v4403_v42  ;;  %v4153_v46 = vmax.f32 %v4081_v43, %v4117_v13  ;;  %v4083_v14 = vadd.f32 %v21989_v34, %v25900_v36  ;;  %28366 = vst [vmem:[#allocation87_spill] sm:$0xff] %v26083_v23  ;;  %v28367_v34 = vld [vmem:[#allocation22_spill] sm:$0xff] }
 0x334   : > { %4439 = vst.msk [vmem:[#allocation2 + $0x90] sm:$0xff] %vm4420_vm2, %v4402_v52  ;;  %v4152_v0 = vmax.f32 %v4080_v53, %v4116_v3  ;;  %v4082_v10 = vadd.f32 %v21990_v26, %v25900_v36  ;;  %v20509_v63 = vpop.f32.mrb[24].mxu0  ;;  %v28368_v3 = vld [vmem:[#allocation35_spill] sm:$0xff]  ;;  %v28419_v23 = vld [vmem:[#allocation18_spill] sm:$0xff] }
 0x335   : > { %v4405_v11 = vmul.f32 %v25737_v24, %v4153_v46  ;;  %v4119_v49 = vmul.f32 0.02, %v4083_v14  ;;  %v21991_v17 = vadd.f32 %v20509_v63, %v25250_v27  ;;  %v3958_v35 = vpop.f32.mrb[25].mxu0  ;;  %21177 = vmatmul.mubr.msk.f32.gmra.mrb[58].mxu0 %vm328_vm1, %v17893_v33  ;;  %v17896_v27 = vld [vmem:[%s23195_s8 + $0x5d0] sm:$0xff]  ;;  %v17897_v33 = vld [vmem:[%s23195_s8 + $0x5d8] sm:$0xff]  ;;  %v28369_v63 = vld [vmem:[#allocation48_spill] sm:$0xff] }
 0x336   : > { %v4404_v9 = vmul.f32 %v25741_v16, %v4152_v0  ;;  %v4118_v57 = vmul.f32 0.02, %v4082_v10  ;;  %v21992_v39 = vadd.f32 %v3958_v35, %v25256_v61  ;;  %21179 = vmatprep.mubr.msk.f32.mxu0 %vm328_vm1, %v17894_v45  ;;  %v12863_v7 = vld [vmem:[#allocation2 + $0x80] sm:$0xff]  ;;  %28422 = vst [vmem:[#allocation48_spill] sm:$0xff] %v26663_v62 }
 0x337   : > { %4442 = vst.msk [vmem:[#allocation2 + $0xa8] sm:$0xff] %vm4420_vm2, %v4405_v11  ;;  %v4155_v43 = vmax.f32 %v4083_v14, %v4119_v49  ;;  %v4085_v24 = vadd.f32 %v21991_v17, %v25900_v36  ;;  %v28370_v17 = vld [vmem:[#allocation36_spill] sm:$0xff] }
 0x338   : > { %4441 = vst.msk [vmem:[#allocation2 + $0xa0] sm:$0xff] %vm4420_vm2, %v4404_v9  ;;  %v4154_v16 = vmax.f32 %v4082_v10, %v4118_v57  ;;  %v4084_v61 = vadd.f32 %v21992_v39, %v25900_v36  ;;  %v20512_v4 = vpop.f32.mrb[26].mxu0  ;;  %v26099_v10 = vpop.permute.xlu1 %4371  ;;  %v28371_v39 = vld [vmem:[#allocation49_spill] sm:$0xff]  ;;  %28423 = vst [vmem:[#allocation36_spill] sm:$0xff] %v26667_v22 }
 0x339   : > { %v4407_v53 = vmul.f32 %v25751_v59, %v4155_v43  ;;  %v4121_v31 = vmul.f32 0.02, %v4085_v24  ;;  %v21993_v42 = vadd.f32 %v20512_v4, %v25278_v41  ;;  %v3968_v13 = vpop.f32.mrb[27].mxu0  ;;  %21180 = vmatmul.mubr.msk.f32.gmra.mrb[60].mxu0 %vm328_vm1, %v17895_v60  ;;  %v17898_v59 = vld [vmem:[%s23195_s8 + $0x5e0] sm:$0xff]  ;;  %v26104_v57 = vpop.permute.xlu0 %4366  ;;  %28424 = vst [vmem:[#allocation49_spill] sm:$0xff] %v26675_v6 }
 0x33a   : > { %v4406_v20 = vmul.f32 %v28367_v34, %v4154_v16  ;;  %v4120_v52 = vmul.f32 0.02, %v4084_v61  ;;  %v21994_v26 = vadd.f32 %v3968_v13, %v28368_v3  ;;  %21182 = vmatprep.mubr.msk.f32.mxu0 %vm328_vm1, %v17896_v27  ;;  %v17899_v16 = vld [vmem:[%s23195_s8 + $0x5e8] sm:$0xff]  ;;  %v28373_v34 = vld [vmem:[#allocation53_spill] sm:$0xff]  ;;  %v28374_v3 = vld [vmem:[#allocation43_spill] sm:$0xff] }
 0x33b   : > { %4444 = vst.msk [vmem:[#allocation2 + $0xb8] sm:$0xff] %vm4420_vm2, %v4407_v53  ;;  %v4157_v46 = vmax.f32 %v4085_v24, %v4121_v31  ;;  %v4087_v14 = vadd.f32 %v21993_v42, %v25900_v36  ;;  %v28372_v24 = vld [vmem:[#allocation39_spill] sm:$0xff]  ;;  %v17900_v53 = vld [vmem:[%s23195_s8 + $0x5f0] sm:$0xff] }
 0x33c   : > { %4443 = vst.msk [vmem:[#allocation2 + $0xb0] sm:$0xff] %vm4420_vm2, %v4406_v20  ;;  %v4156_v41 = vmax.f32 %v4084_v61, %v4120_v52  ;;  %v4086_v45 = vadd.f32 %v21994_v26, %v25900_v36  ;;  %v20515_v0 = vpop.f32.mrb[28].mxu0  ;;  %v12865_v54 = vld [vmem:[#allocation2 + $0x90] sm:$0xff]  ;;  %28425 = vst [vmem:[#allocation39_spill] sm:$0xff] %v26684_v21 }
 0x33d   : > { %v4409_v11 = vmul.f32 %v28369_v63, %v4157_v46  ;;  %v4123_v49 = vmul.f32 0.02, %v4087_v14  ;;  %v21995_v35 = vadd.f32 %v20515_v0, %v28370_v17  ;;  %v3978_v9 = vpop.f32.mrb[29].mxu0  ;;  %21183 = vmatmul.mubr.msk.f32.gmra.mrb[62].mxu0 %vm328_vm1, %v17897_v33  ;;  %v28375_v46 = vld [vmem:[#allocation55_spill] sm:$0xff]  ;;  %v26122_v63 = vpop.permute.xlu1 %8566 }
 0x33e   : > { %v4408_v60 = vmul.f32 %v28371_v39, %v4156_v41  ;;  %v4122_v43 = vmul.f32 0.02, %v4086_v45  ;;  %v21996_v27 = vadd.f32 %v3978_v9, %v28372_v24  ;;  %21185 = vmatprep.mubr.msk.f32.mxu0 %vm328_vm1, %v17898_v59  ;;  %v28376_v41 = vld [vmem:[#allocation45_spill] sm:$0xff]  ;;  %v17902_v17 = vld [vmem:[%s23195_s8 + $0x600] sm:$0xff] }
 0x33f   : > { %4446 = vst.msk [vmem:[#allocation2 + $0xc8] sm:$0xff] %vm4420_vm2, %v4409_v11  ;;  %v4159_v61 = vmax.f32 %v4087_v14, %v4123_v49  ;;  %v4089_v4 = vadd.f32 %v21995_v35, %v25900_v36  ;;  %v26127_v35 = vpop.permute.xlu0 %8561  ;;  %v12867_v58 = vld [vmem:[#allocation2 + $0xa0] sm:$0xff] }
 0x340   : > { %4445 = vst.msk [vmem:[#allocation2 + $0xc0] sm:$0xff] %vm4420_vm2, %v4408_v60  ;;  %v4158_v31 = vmax.f32 %v4086_v45, %v4122_v43  ;;  %v4088_v42 = vadd.f32 %v21996_v27, %v25900_v36  ;;  %v20518_v13 = vpop.f32.mrb[30].mxu0  ;;  %v17901_v45 = vld [vmem:[%s23195_s8 + $0x5f8] sm:$0xff] }
 0x341   : > { %v4411_v20 = vmul.f32 %v28373_v34, %v4159_v61  ;;  %v4125_v52 = vmul.f32 0.02, %v4089_v4  ;;  %v21997_v26 = vadd.f32 %v20518_v13, %v28374_v3  ;;  %v3988_v33 = vpop.f32.mrb[31].mxu0  ;;  %21186 = vmatmul.mubr.msk.f32.gmra.mrb[64].mxu0 %vm328_vm1, %v17899_v16  ;;  %v28377_v27 = vld [vmem:[#allocation38_spill] sm:$0xff] }
 0x342   : > { %v4410_v14 = vmul.f32 %v28375_v46, %v4158_v31  ;;  %v4124_v59 = vmul.f32 0.02, %v4088_v42  ;;  %v21998_v0 = vadd.f32 %v3988_v33, %v28376_v41  ;;  %21188 = vmatprep.mubr.msk.f32.mxu0 %vm328_vm1, %v17900_v53  ;;  %v28378_v31 = vld [vmem:[#allocation3_spill] sm:$0xff] }
 0x343   : > { %4448 = vst.msk [vmem:[#allocation2 + $0xd8] sm:$0xff] %vm4420_vm2, %v4411_v20  ;;  %v4161_v11 = vmax.f32 %v4089_v4, %v4125_v52  ;;  %v4091_v49 = vadd.f32 %v21997_v26, %v25900_v36  ;;  %v12869_v37 = vld [vmem:[#allocation2 + $0xb0] sm:$0xff] }
 0x344   : > { %4447 = vst.msk [vmem:[#allocation2 + $0xd0] sm:$0xff] %vm4420_vm2, %v4410_v14  ;;  %v4160_v9 = vmax.f32 %v4088_v42, %v4124_v59  ;;  %v4090_v39 = vadd.f32 %v21998_v0, %v25900_v36  ;;  %v20521_v60 = vpop.f32.mrb[32].mxu0  ;;  %v17903_v42 = vld [vmem:[%s23195_s8 + $0x608] sm:$0xff]  ;;  %v26148_v0 = vpop.permute.xlu0 %12756 }
 0x345   : > { %v4413_v43 = vmul.f32 %v25810_v44, %v4161_v11  ;;  %v4127_v24 = vmul.f32 0.02, %v4091_v49  ;;  %v21999_v16 = vadd.f32 %v20521_v60, %v28377_v27  ;;  %v3998_v61 = vpop.f32.mrb[33].mxu0  ;;  %21189 = vmatmul.mubr.msk.f32.gmra.mrb[66].mxu0 %vm328_vm1, %v17901_v45  ;;  %v17904_v44 = vld [vmem:[%s23195_s8 + $0x610] sm:$0xff]  ;;  %v28380_v14 = vld [vmem:[#allocation40_spill] sm:$0xff]  ;;  %28381 = vst [vmem:[#allocation35_spill] sm:$0xff] %v26148_v0 }
 0x346   : > { %v4412_v4 = vmul.f32 %v25813_v2, %v4160_v9  ;;  %v4126_v53 = vmul.f32 0.02, %v4090_v39  ;;  %v22000_v13 = vadd.f32 %v3998_v61, %v28378_v31  ;;  %21191 = vmatprep.mubr.msk.f32.mxu0 %vm328_vm1, %v17902_v17  ;;  %v26143_v2 = vpop.permute.xlu1 %12761  ;;  %v17905_v9 = vld [vmem:[%s23195_s8 + $0x618] sm:$0xff]  ;;  %v28417_v0 = vld [vmem:[#allocation16_spill] sm:$0xff] }
 0x347   : > { %4450 = vst.msk [vmem:[#allocation2 + $0xe8] sm:$0xff] %vm4420_vm2, %v4413_v43  ;;  %v4163_v34 = vmax.f32 %v4091_v49, %v4127_v24  ;;  %v4093_v20 = vadd.f32 %v21999_v16, %v25900_v36  ;;  %28379 = vst [vmem:[#allocation22_spill] sm:$0xff] %v26143_v2  ;;  %v28382_v49 = vld [vmem:[#allocation42_spill] sm:$0xff]  ;;  %v12871_v40 = vld [vmem:[#allocation2 + $0xc0] sm:$0xff] }
 0x348   : > { %4449 = vst.msk [vmem:[#allocation2 + $0xe0] sm:$0xff] %vm4420_vm2, %v4412_v4  ;;  %v4162_v52 = vmax.f32 %v4090_v39, %v4126_v53  ;;  %v4092_v3 = vadd.f32 %v22000_v13, %v25900_v36  ;;  %v20524_v26 = vpop.f32.mrb[34].mxu0  ;;  %v28383_v13 = vld [vmem:[#allocation21_spill] sm:$0xff] }
 0x349   : > { %v4415_v33 = vmul.f32 %v25821_v15, %v4163_v34  ;;  %v4129_v46 = vmul.f32 0.02, %v4093_v20  ;;  %v22001_v59 = vadd.f32 %v20524_v26, %v28380_v14  ;;  %v4008_v41 = vpop.f32.mrb[35].mxu0  ;;  %21192 = vmatmul.mubr.msk.f32.gmra.mrb[68].mxu0 %vm328_vm1, %v17903_v42 }
 0x34a   : > { %v4414_v45 = vmul.f32 %v25824_v56, %v4162_v52  ;;  %v4128_v11 = vmul.f32 0.02, %v4092_v3  ;;  %v22002_v17 = vadd.f32 %v4008_v41, %v28382_v49  ;;  %21194 = vmatprep.mubr.msk.f32.mxu0 %vm328_vm1, %v17904_v44  ;;  %v4382_v31 = vpop.permute.xlu1 %4381  ;;  %v28385_v49 = vld [vmem:[#allocation24_spill] sm:$0xff] }
 0x34b   : > { %4452 = vst.msk [vmem:[#allocation2 + $0xf8] sm:$0xff] %vm4420_vm2, %v4415_v33  ;;  %v4165_v39 = vmax.f32 %v4093_v20, %v4129_v46  ;;  %v4095_v15 = vadd.f32 %v22001_v59, %v25900_v36  ;;  %v28384_v59 = vld [vmem:[#allocation23_spill] sm:$0xff]  ;;  %v12873_v18 = vld [vmem:[#allocation2 + $0xd0] sm:$0xff] }
 0x34c   : > { %4451 = vst.msk [vmem:[#allocation2 + $0xf0] sm:$0xff] %vm4420_vm2, %v4414_v45  ;;  %v4164_v60 = vmax.f32 %v4092_v3, %v4128_v11  ;;  %v4094_v43 = vadd.f32 %v22002_v17, %v25900_v36  ;;  %v20977_v24 = vpop.f32.mrb[18].mxu1  ;;  %v28386_v17 = vld [vmem:[#allocation28_spill] sm:$0xff] }
 0x34d   : > { %v4417_v27 = vmul.f32 %v26099_v10, %v4165_v39  ;;  %v8255_v56 = vadd.f32 %v20977_v24, %v25900_v36  ;;  %v8032_v16 = vpop.f32.mrb[19].mxu1  ;;  %21195 = vmatmul.mubr.msk.f32.gmra.mrb[70].mxu0 %vm328_vm1, %v17905_v9  ;;  %v4131_v61 = vmul.f32 0.02, %v4095_v15  ;;  %v4377_v10 = vpop.permute.xlu0 %4376 }
 0x34e   : > { %v4416_v4 = vmul.f32 %v26104_v57, %v4164_v60  ;;  %v8254_v53 = vadd.f32 %v25900_v36, %v8032_v16  ;;  %21199 = vmatprep.mubr.msk.f32.mxu0 %vm328_vm1, %v28383_v13  ;;  %v4130_v42 = vmul.f32 0.02, %v4094_v43  ;;  %v26170_v57 = vld [vmem:[%s27965_s1 + $0x14] sm:$0xf]  ;;  %v28388_v16 = vld [vmem:[#allocation50_spill] sm:$0xff] }
 0x34f   : > { %4454 = vst.msk [vmem:[#allocation2 + $0x108] sm:$0xff] %vm4420_vm2, %v4417_v27  ;;  %v8291_v34 = vmul.f32 0.02, %v8255_v56  ;;  %v4167_v20 = vmax.f32 %v4095_v15, %v4131_v61  ;;  %v28387_v15 = vld [vmem:[#allocation26_spill] sm:$0xff]  ;;  %v12875_v5 = vld [vmem:[#allocation2 + $0xe0] sm:$0xff] }
 0x350   : > { %4453 = vst.msk [vmem:[#allocation2 + $0x100] sm:$0xff] %vm4420_vm2, %v4416_v4  ;;  %v8290_v44 = vmul.f32 0.02, %v8254_v53  ;;  %v20980_v52 = vpop.f32.mrb[20].mxu1  ;;  %v4166_v3 = vmax.f32 %v4094_v43, %v4130_v42 }
 0x351   : > { %v8327_v26 = vmax.f32 %v8255_v56, %v8291_v34  ;;  %v4419_v33 = vmul.f32 %v4382_v31, %v4167_v20  ;;  %v8257_v46 = vadd.f32 %v20980_v52, %v25900_v36  ;;  %v8042_v14 = vpop.f32.mrb[21].mxu1  ;;  %21200 = vmatmul.mubr.msk.f32.vlgmr.msra.gmra.mrb[36].mxu0 %vm328_vm1, %v28384_v59  ;;  %v28390_v31 = vld [vmem:[#allocation27_spill] sm:$0xff]  ;;  %v28391_v34 = vld [vmem:[#allocation25_spill] sm:$0xff]  ;;  %v28393_v59 = vld [vmem:[#allocation54_spill] sm:$0xff] }
 0x352   : > { %v8326_v41 = vmax.f32 %v8254_v53, %v8290_v44  ;;  %v4418_v45 = vmul.f32 %v4377_v10, %v4166_v3  ;;  %v8256_v11 = vadd.f32 %v25900_v36, %v8042_v14  ;;  %21254 = vmatpush3.msk.msra.mxu0 %vm437_vm0, %v25919_v29  ;;  %21202 = vmatprep.mubr.msk.f32.mxu0 %vm328_vm1, %v28385_v49  ;;  %v28389_v53 = vld [vmem:[#allocation51_spill] sm:$0xff] }
 0x353   : > { %v8580_v9 = vmul.f32 %v28386_v17, %v8327_v26  ;;  %4456 = vst.msk [vmem:[#allocation2 + $0x118] sm:$0xff] %vm4420_vm2, %v4419_v33  ;;  %v8293_v39 = vmul.f32 0.02, %v8257_v46  ;;  %21309 = vmatprep.subr.msk.mxu0 %vm437_vm0, %v26170_v57  ;;  %v28392_v33 = vld [vmem:[#allocation52_spill] sm:$0xff]  ;;  %v17952_v17 = vld [vmem:[%s23195_s8 + $0x2d0] sm:$0xff] }
 0x354   : > { %v8579_v60 = vmul.f32 %v28387_v15, %v8326_v41  ;;  %4455 = vst.msk [vmem:[#allocation2 + $0x110] sm:$0xff] %vm4420_vm2, %v4418_v45  ;;  %v8292_v43 = vmul.f32 0.02, %v8256_v11  ;;  %v20983_v24 = vpop.f32.mrb[22].mxu1  ;;  %v17951_v41 = vld [vmem:[%s23195_s8 + $0x2c8] sm:$0xff]  ;;  %v28394_v45 = vld [vmem:[#allocation29_spill] sm:$0xff] }
 0x355   : > { %8617 = vst.msk [vmem:[#allocation2 + $0x128] sm:$0xff] %vm4420_vm2, %v8580_v9  ;;  %v8329_v29 = vmax.f32 %v8257_v46, %v8293_v39  ;;  %v8259_v27 = vadd.f32 %v20983_v24, %v25900_v36  ;;  %v8052_v56 = vpop.f32.mrb[23].mxu1  ;;  %21203 = vmatmul.mubr.msk.f32.gmra.mrb[38].mxu0 %vm328_vm1, %v28388_v16  ;;  %v28395_v9 = vld [vmem:[#allocation30_spill] sm:$0xff] }
 0x356   : > { %8616 = vst.msk [vmem:[#allocation2 + $0x120] sm:$0xff] %vm4420_vm2, %v8579_v60  ;;  %v8328_v61 = vmax.f32 %v8256_v11, %v8292_v43  ;;  %v8258_v4 = vadd.f32 %v25900_v36, %v8052_v56  ;;  %21205 = vmatprep.mubr.msk.f32.mxu0 %vm328_vm1, %v28389_v53  ;;  %v28396_v53 = vld [vmem:[#allocation31_spill] sm:$0xff] }
 0x357   : > { %v8582_v13 = vmul.f32 %v28390_v31, %v8329_v29  ;;  %v8295_v42 = vmul.f32 0.02, %v8259_v27 }
 0x358   : > { %v8581_v20 = vmul.f32 %v28391_v34, %v8328_v61  ;;  %v8294_v10 = vmul.f32 0.02, %v8258_v4  ;;  %v20986_v44 = vpop.f32.mrb[24].mxu1  ;;  %v28397_v34 = vld [vmem:[#allocation32_spill] sm:$0xff] }
 0x359   : > { %8619 = vst.msk [vmem:[#allocation2 + $0x138] sm:$0xff] %vm4420_vm2, %v8582_v13  ;;  %v8331_v52 = vmax.f32 %v8259_v27, %v8295_v42  ;;  %v8261_v3 = vadd.f32 %v20986_v44, %v25900_v36  ;;  %v8062_v26 = vpop.f32.mrb[25].mxu1  ;;  %21206 = vmatmul.mubr.msk.f32.gmra.mrb[40].mxu0 %vm328_vm1, %v28392_v33  ;;  %v17954_v42 = vld [vmem:[%s23195_s8 + $0x2e0] sm:$0xff] }
 0x35a   : > { %8618 = vst.msk [vmem:[#allocation2 + $0x130] sm:$0xff] %vm4420_vm2, %v8581_v20  ;;  %v8330_v46 = vmax.f32 %v8258_v4, %v8294_v10  ;;  %v8260_v14 = vadd.f32 %v25900_v36, %v8062_v26  ;;  %21208 = vmatprep.mubr.msk.f32.mxu0 %vm328_vm1, %v28393_v59  ;;  %v17953_v4 = vld [vmem:[%s23195_s8 + $0x2d8] sm:$0xff] }
 0x35b   : > { %v8584_v11 = vmul.f32 %v28394_v45, %v8331_v52  ;;  %v8297_v49 = vmul.f32 0.02, %v8261_v3 }
 0x35c   : > { %v8583_v39 = vmul.f32 %v28395_v9, %v8330_v46  ;;  %v8296_v15 = vmul.f32 0.02, %v8260_v14  ;;  %v20989_v60 = vpop.f32.mrb[26].mxu1  ;;  %v12881_v61 = vld [vmem:[#allocation2 + $0x128] sm:$0xff] }
 0x35d   : > { %8621 = vst.msk [vmem:[#allocation2 + $0x148] sm:$0xff] %vm4420_vm2, %v8584_v11  ;;  %v8333_v43 = vmax.f32 %v8261_v3, %v8297_v49  ;;  %v8263_v24 = vadd.f32 %v20989_v60, %v25900_v36  ;;  %v8072_v29 = vpop.f32.mrb[27].mxu1  ;;  %21209 = vmatmul.mubr.msk.f32.gmra.mrb[42].mxu0 %vm328_vm1, %v17951_v41  ;;  %v12880_v27 = vld [vmem:[#allocation2 + $0x120] sm:$0xff]  ;;  %v28398_v41 = vld [vmem:[#allocation33_spill] sm:$0xff] }
 0x35e   : > { %8620 = vst.msk [vmem:[#allocation2 + $0x140] sm:$0xff] %vm4420_vm2, %v8583_v39  ;;  %v8332_v56 = vmax.f32 %v8260_v14, %v8296_v15  ;;  %v8262_v16 = vadd.f32 %v25900_v36, %v8072_v29  ;;  %21535 = vmatprep.mubr.msk.f32.mxu1 %vm4420_vm2, %v12880_v27  ;;  %21211 = vmatprep.mubr.msk.f32.mxu0 %vm328_vm1, %v17952_v17  ;;  %v26234_v49 = vld [vmem:[%s23195_s8 + $0x2f0] sm:$0xff]  ;;  %v28399_v17 = vld [vmem:[#allocation34_spill] sm:$0xff] }
 0x35f   : > { %v8586_v31 = vmul.f32 %v28396_v53, %v8333_v43  ;;  %v8299_v13 = vmul.f32 0.02, %v8263_v24  ;;  %21536 = vmatmul.mubr.msk.f32.vlgmr.msra.gmra.mrb[54].mxu1 %vm4420_vm2, %v12881_v61  ;;  %v26247_v61 = vld [vmem:[%s23195_s8 + $0x2f8] sm:$0xff] }
 0x360   : > { %v8585_v20 = vmul.f32 %v28397_v34, %v8332_v56  ;;  %v8298_v10 = vmul.f32 0.02, %v8262_v16  ;;  %v20992_v44 = vpop.f32.mrb[28].mxu1  ;;  %21584 = vmatpush3.msra.mxu1 %v25988_v28  ;;  %v12883_v59 = vld [vmem:[#allocation2 + $0x138] sm:$0xff]  ;;  %v26229_v28 = vld [vmem:[%s23195_s8 + $0x2e8] sm:$0xff] }
 0x361   : > { %8623 = vst.msk [vmem:[#allocation2 + $0x158] sm:$0xff] %vm4420_vm2, %v8586_v31  ;;  %v8335_v52 = vmax.f32 %v8263_v24, %v8299_v13  ;;  %v8265_v3 = vadd.f32 %v20992_v44, %v25900_v36  ;;  %v8082_v26 = vpop.f32.mrb[29].mxu1  ;;  %21212 = vmatmul.mubr.msk.f32.gmra.mrb[44].mxu0 %vm328_vm1, %v17953_v4  ;;  %v12882_v33 = vld [vmem:[#allocation2 + $0x130] sm:$0xff]  ;;  %v26252_v13 = vld [vmem:[%s23195_s8 + $0x300] sm:$0xff] }
 0x362   : > { %8622 = vst.msk [vmem:[#allocation2 + $0x150] sm:$0xff] %vm4420_vm2, %v8585_v20  ;;  %v8334_v46 = vmax.f32 %v8262_v16, %v8298_v10  ;;  %v8264_v14 = vadd.f32 %v25900_v36, %v8082_v26  ;;  %21538 = vmatprep.mubr.msk.f32.mxu1 %vm4420_vm2, %v12882_v33  ;;  %21214 = vmatprep.mubr.msk.f32.mxu0 %vm328_vm1, %v17954_v42  ;;  %v28400_v4 = vld [vmem:[#allocation37_spill] sm:$0xff] }
 0x363   : > { %v8588_v45 = vmul.f32 %v28398_v41, %v8335_v52  ;;  %v8301_v11 = vmul.f32 0.02, %v8265_v3  ;;  %21539 = vmatmul.mubr.msk.f32.gmra.mrb[56].mxu1 %vm4420_vm2, %v12883_v59  ;;  %v28401_v42 = vld [vmem:[#allocation41_spill] sm:$0xff]  ;;  %v26265_v59 = vld [vmem:[%s23195_s8 + $0x308] sm:$0xff]  ;;  %v28402_v41 = vld [vmem:[#allocation46_spill] sm:$0xff] }
 0x364   : > { %v8587_v9 = vmul.f32 %v28399_v17, %v8334_v46  ;;  %v8300_v39 = vmul.f32 0.02, %v8264_v14  ;;  %v20995_v15 = vpop.f32.mrb[30].mxu1  ;;  %v12885_v16 = vld [vmem:[#allocation2 + $0x148] sm:$0xff]  ;;  %v26270_v17 = vld [vmem:[%s23195_s8 + $0x310] sm:$0xff] }
 0x365   : > { %8625 = vst.msk [vmem:[#allocation2 + $0x168] sm:$0xff] %vm4420_vm2, %v8588_v45  ;;  %v8337_v60 = vmax.f32 %v8265_v3, %v8301_v11  ;;  %v8267_v43 = vadd.f32 %v20995_v15, %v25900_v36  ;;  %v8092_v24 = vpop.f32.mrb[31].mxu1  ;;  %21215 = vmatmul.mubr.msk.f32.gmra.mrb[46].mxu0 %vm328_vm1, %v26229_v28  ;;  %v12884_v29 = vld [vmem:[#allocation2 + $0x140] sm:$0xff] }
 0x366   : > { %8624 = vst.msk [vmem:[#allocation2 + $0x160] sm:$0xff] %vm4420_vm2, %v8587_v9  ;;  %v8336_v27 = vmax.f32 %v8264_v14, %v8300_v39  ;;  %v8266_v56 = vadd.f32 %v25900_v36, %v8092_v24  ;;  %21541 = vmatprep.mubr.msk.f32.mxu1 %vm4420_vm2, %v12884_v29  ;;  %21217 = vmatprep.mubr.msk.f32.mxu0 %vm328_vm1, %v26234_v49  ;;  %v28403_v9 = vld [vmem:[#allocation47_spill] sm:$0xff] }
 0x367   : > { %v8590_v53 = vmul.f32 %v28400_v4, %v8337_v60  ;;  %v8303_v31 = vmul.f32 0.02, %v8267_v43  ;;  %21542 = vmatmul.mubr.msk.f32.gmra.mrb[58].mxu1 %vm4420_vm2, %v12885_v16 }
 0x368   : > { %v8589_v34 = vmul.f32 %v28401_v42, %v8336_v27  ;;  %v8302_v20 = vmul.f32 0.02, %v8266_v56  ;;  %v20998_v10 = vpop.f32.mrb[32].mxu1  ;;  %v12887_v14 = vld [vmem:[#allocation2 + $0x158] sm:$0xff] }
 0x369   : > { %8627 = vst.msk [vmem:[#allocation2 + $0x178] sm:$0xff] %vm4420_vm2, %v8590_v53  ;;  %v8339_v44 = vmax.f32 %v8267_v43, %v8303_v31  ;;  %v8269_v52 = vadd.f32 %v20998_v10, %v25900_v36  ;;  %v8102_v3 = vpop.f32.mrb[33].mxu1  ;;  %21218 = vmatmul.mubr.msk.f32.gmra.mrb[48].mxu0 %vm328_vm1, %v26247_v61  ;;  %v12886_v26 = vld [vmem:[#allocation2 + $0x150] sm:$0xff]  ;;  %v26283_v53 = vld [vmem:[%s23195_s8 + $0x318] sm:$0xff]  ;;  %v28404_v31 = vld [vmem:[#allocation4_spill] sm:$0xff] }
 0x36a   : > { %8626 = vst.msk [vmem:[#allocation2 + $0x170] sm:$0xff] %vm4420_vm2, %v8589_v34  ;;  %v8338_v33 = vmax.f32 %v8266_v56, %v8302_v20  ;;  %v8268_v46 = vadd.f32 %v25900_v36, %v8102_v3  ;;  %21544 = vmatprep.mubr.msk.f32.mxu1 %vm4420_vm2, %v12886_v26  ;;  %21220 = vmatprep.mubr.msk.f32.mxu0 %vm328_vm1, %v26252_v13  ;;  %v26288_v20 = vld [vmem:[%s23195_s8 + $0x320] sm:$0xff]  ;;  %v28405_v10 = vld [vmem:[#allocation5_spill] sm:$0xff] }
 0x36b   : > { %v8592_v45 = vmul.f32 %v28402_v41, %v8339_v44  ;;  %v8305_v11 = vmul.f32 0.02, %v8269_v52  ;;  %21545 = vmatmul.mubr.msk.f32.gmra.mrb[60].mxu1 %vm4420_vm2, %v12887_v14 }
 0x36c   : > { %v8591_v39 = vmul.f32 %v28403_v9, %v8338_v33  ;;  %v8304_v15 = vmul.f32 0.02, %v8268_v46  ;;  %v21001_v60 = vpop.f32.mrb[34].mxu1  ;;  %v12889_v4 = vld [vmem:[#allocation2 + $0x168] sm:$0xff] }
 0x36d   : > { %8629 = vst.msk [vmem:[#allocation2 + $0x188] sm:$0xff] %vm4420_vm2, %v8592_v45  ;;  %v8341_v43 = vmax.f32 %v8269_v52, %v8305_v11  ;;  %v8271_v24 = vadd.f32 %v21001_v60, %v25900_v36  ;;  %v8112_v29 = vpop.f32.mrb[35].mxu1  ;;  %21221 = vmatmul.mubr.msk.f32.gmra.mrb[50].mxu0 %vm328_vm1, %v26265_v59  ;;  %v12888_v27 = vld [vmem:[#allocation2 + $0x160] sm:$0xff]  ;;  %v26301_v9 = vld [vmem:[%s23195_s8 + $0x328] sm:$0xff] }
 0x36e   : > { %8628 = vst.msk [vmem:[#allocation2 + $0x180] sm:$0xff] %vm4420_vm2, %v8591_v39  ;;  %v8340_v56 = vmax.f32 %v8268_v46, %v8304_v15  ;;  %v8270_v16 = vadd.f32 %v25900_v36, %v8112_v29  ;;  %21547 = vmatprep.mubr.msk.f32.mxu1 %vm4420_vm2, %v12888_v27  ;;  %21223 = vmatprep.mubr.msk.f32.mxu0 %vm328_vm1, %v26270_v17  ;;  %v28406_v39 = vld [vmem:[#allocation44_spill] sm:$0xff] }
 0x36f   : > { %v8594_v42 = vmul.f32 %v28404_v31, %v8341_v43  ;;  %v8307_v34 = vmul.f32 0.02, %v8271_v24  ;;  %21548 = vmatmul.mubr.msk.f32.gmra.mrb[62].mxu1 %vm4420_vm2, %v12889_v4  ;;  %v26306_v43 = vld [vmem:[%s23195_s8 + $0x330] sm:$0xff] }
 0x370   : > { %v8593_v44 = vmul.f32 %v28405_v10, %v8340_v56  ;;  %v8306_v52 = vmul.f32 0.02, %v8270_v16  ;;  %v21004_v3 = vpop.f32.mrb[36].mxu1  ;;  %v12891_v11 = vld [vmem:[#allocation2 + $0x178] sm:$0xff] }
 0x371   : > { %8631 = vst.msk [vmem:[#allocation2 + $0x198] sm:$0xff] %vm4420_vm2, %v8594_v42  ;;  %v8343_v26 = vmax.f32 %v8271_v24, %v8307_v34  ;;  %v8273_v33 = vadd.f32 %v21004_v3, %v25900_v36  ;;  %v8122_v46 = vpop.f32.mrb[37].mxu1  ;;  %21224 = vmatmul.mubr.msk.f32.gmra.mrb[52].mxu0 %vm328_vm1, %v26283_v53  ;;  %v12890_v14 = vld [vmem:[#allocation2 + $0x170] sm:$0xff]  ;;  %v28407_v24 = vld [vmem:[#allocation6_spill] sm:$0xff]  ;;  %v28408_v3 = vld [vmem:[#allocation7_spill] sm:$0xff] }
 0x372   : > { %8630 = vst.msk [vmem:[#allocation2 + $0x190] sm:$0xff] %vm4420_vm2, %v8593_v44  ;;  %v8342_v41 = vmax.f32 %v8270_v16, %v8306_v52  ;;  %v8272_v45 = vadd.f32 %v25900_v36, %v8122_v46  ;;  %21550 = vmatprep.mubr.msk.f32.mxu1 %vm4420_vm2, %v12890_v14  ;;  %21226 = vmatprep.mubr.msk.f32.mxu0 %vm328_vm1, %v26288_v20  ;;  %v26313_v16 = vld [vmem:[%s27966_s2] ss:$0 sm:$0xff]  ;;  %v26324_v52 = vld [vmem:[%s23195_s8 + $0x338] sm:$0xff]  ;;  %v28409_v14 = vld [vmem:[#allocation8_spill] sm:$0xff] }
 0x373   : > { %v8596_v15 = vmul.f32 %v28406_v39, %v8343_v26  ;;  %v8309_v60 = vmul.f32 0.02, %v8273_v33  ;;  %21551 = vmatmul.mubr.msk.f32.gmra.mrb[64].mxu1 %vm4420_vm2, %v12891_v11  ;;  %v26329_v46 = vld [vmem:[%s23195_s8 + $0x340] sm:$0xff] }
 0x374   : > { %v8595_v29 = vmul.f32 %v28407_v24, %v8342_v41  ;;  %v8308_v27 = vmul.f32 0.02, %v8272_v45  ;;  %v21007_v36 = vpop.f32.mrb[38].mxu1  ;;  %v12893_v44 = vld [vmem:[#allocation2 + $0x188] sm:$0xff] }
 0x375   : > { %8633 = vst.msk [vmem:[#allocation2 + $0x1a8] sm:$0xff] %vm4420_vm2, %v8596_v15  ;;  %v8345_v56 = vmax.f32 %v8273_v33, %v8309_v60  ;;  %v8275_v4 = vadd.f32 %v26313_v16, %v21007_v36  ;;  %v8132_v31 = vpop.f32.mrb[39].mxu1  ;;  %21227 = vmatmul.mubr.msk.f32.gmra.mrb[54].mxu0 %vm328_vm1, %v26301_v9  ;;  %v12892_v42 = vld [vmem:[#allocation2 + $0x180] sm:$0xff] }
 0x376   : > { %8632 = vst.msk [vmem:[#allocation2 + $0x1a0] sm:$0xff] %vm4420_vm2, %v8595_v29  ;;  %v8344_v34 = vmax.f32 %v8272_v45, %v8308_v27  ;;  %v8274_v10 = vadd.f32 %v26313_v16, %v8132_v31  ;;  %21553 = vmatprep.mubr.msk.f32.mxu1 %vm4420_vm2, %v12892_v42  ;;  %21229 = vmatprep.mubr.msk.f32.mxu0 %vm328_vm1, %v26306_v43 }
 0x377   : > { %v8598_v26 = vmul.f32 %v28408_v3, %v8345_v56  ;;  %v8311_v33 = vmul.f32 0.02, %v8275_v4  ;;  %21554 = vmatmul.mubr.msk.f32.gmra.mrb[66].mxu1 %vm4420_vm2, %v12893_v44  ;;  %v26342_v56 = vld [vmem:[%s23195_s8 + $0x348] sm:$0xff]  ;;  %v28411_v44 = vld [vmem:[#allocation10_spill] sm:$0xff] }
 0x378   : > { %v8597_v41 = vmul.f32 %v28409_v14, %v8344_v34  ;;  %v8310_v45 = vmul.f32 0.02, %v8274_v10  ;;  %v21010_v11 = vpop.f32.mrb[40].mxu1  ;;  %v12895_v36 = vld [vmem:[#allocation2 + $0x198] sm:$0xff]  ;;  %v26347_v34 = vld [vmem:[%s23195_s8 + $0x350] sm:$0xff] }
 0x379   : > { %8635 = vst.msk [vmem:[#allocation2 + $0x1b8] sm:$0xff] %vm4420_vm2, %v8598_v26  ;;  %v8347_v39 = vmax.f32 %v8275_v4, %v8311_v33  ;;  %v8277_v15 = vadd.f32 %v26313_v16, %v21010_v11  ;;  %v8142_v60 = vpop.f32.mrb[41].mxu1  ;;  %21230 = vmatmul.mubr.msk.f32.gmra.mrb[56].mxu0 %vm328_vm1, %v26324_v52  ;;  %v12894_v24 = vld [vmem:[#allocation2 + $0x190] sm:$0xff] }
 0x37a   : > { %8634 = vst.msk [vmem:[#allocation2 + $0x1b0] sm:$0xff] %vm4420_vm2, %v8597_v41  ;;  %v8346_v29 = vmax.f32 %v8274_v10, %v8310_v45  ;;  %v8276_v27 = vadd.f32 %v26313_v16, %v8142_v60  ;;  %21556 = vmatprep.mubr.msk.f32.mxu1 %vm4420_vm2, %v12894_v24  ;;  %21232 = vmatprep.mubr.msk.f32.mxu0 %vm328_vm1, %v26329_v46  ;;  %v28410_v4 = vld [vmem:[#allocation9_spill] sm:$0xff]  ;;  %v26360_v24 = vld [vmem:[%s23195_s8 + $0x358] sm:$0xff] }
 0x37b   : > { %v8600_v31 = vmul.f32 %v28410_v4, %v8347_v39  ;;  %v8313_v42 = vmul.f32 0.02, %v8277_v15  ;;  %21557 = vmatmul.mubr.msk.f32.gmra.mrb[68].mxu1 %vm4420_vm2, %v12895_v36  ;;  %v26365_v4 = vld [vmem:[%s23195_s8 + $0x360] sm:$0xff] }
 0x37c   : > { %v8599_v10 = vmul.f32 %v28411_v44, %v8346_v29  ;;  %v8312_v3 = vmul.f32 0.02, %v8276_v27  ;;  %v21013_v26 = vpop.f32.mrb[42].mxu1  ;;  %v12897_v60 = vld [vmem:[#allocation2 + $0x1a8] sm:$0xff] }
 0x37d   : > { %8637 = vst.msk [vmem:[#allocation2 + $0x1c8] sm:$0xff] %vm4420_vm2, %v8600_v31  ;;  %v8349_v33 = vmax.f32 %v8277_v15, %v8313_v42  ;;  %v8279_v14 = vadd.f32 %v26313_v16, %v21013_v26  ;;  %v8152_v41 = vpop.f32.mrb[43].mxu1  ;;  %21233 = vmatmul.mubr.msk.f32.gmra.mrb[58].mxu0 %vm328_vm1, %v26342_v56  ;;  %v12896_v45 = vld [vmem:[#allocation2 + $0x1a0] sm:$0xff]  ;;  %v28413_v31 = vld [vmem:[#allocation12_spill] sm:$0xff] }
 0x37e   : > { %8636 = vst.msk [vmem:[#allocation2 + $0x1c0] sm:$0xff] %vm4420_vm2, %v8599_v10  ;;  %v8348_v11 = vmax.f32 %v8276_v27, %v8312_v3  ;;  %v8278_v39 = vadd.f32 %v26313_v16, %v8152_v41  ;;  %21559 = vmatprep.mubr.msk.f32.mxu1 %vm4420_vm2, %v12896_v45  ;;  %21235 = vmatprep.mubr.msk.f32.mxu0 %vm328_vm1, %v26347_v34  ;;  %v28412_v15 = vld [vmem:[#allocation11_spill] sm:$0xff] }
 0x37f   : > { %v8602_v29 = vmul.f32 %v28412_v15, %v8349_v33  ;;  %v8315_v36 = vmul.f32 0.02, %v8279_v14  ;;  %21560 = vmatmul.mubr.msk.f32.gmra.mrb[70].mxu1 %vm4420_vm2, %v12897_v60  ;;  %v26378_v60 = vld [vmem:[%s23195_s8 + $0x368] sm:$0xff] }
 0x380   : > { %v8601_v27 = vmul.f32 %v28413_v31, %v8348_v11  ;;  %v8314_v42 = vmul.f32 0.02, %v8278_v39  ;;  %v21016_v44 = vpop.f32.mrb[44].mxu1  ;;  %v12899_v11 = vld [vmem:[#allocation2 + $0x1b8] sm:$0xff] }
 0x381   : > { %8639 = vst.msk [vmem:[#allocation2 + $0x1d8] sm:$0xff] %vm4420_vm2, %v8602_v29  ;;  %v8351_v10 = vmax.f32 %v8279_v14, %v8315_v36  ;;  %v8281_v3 = vadd.f32 %v26313_v16, %v21016_v44  ;;  %v8162_v26 = vpop.f32.mrb[45].mxu1  ;;  %21236 = vmatmul.mubr.msk.f32.gmra.mrb[60].mxu0 %vm328_vm1, %v26360_v24  ;;  %v12898_v33 = vld [vmem:[#allocation2 + $0x1b0] sm:$0xff]  ;;  %v28415_v31 = vld [vmem:[#allocation14_spill] sm:$0xff] }
 0x382   : > { %8638 = vst.msk [vmem:[#allocation2 + $0x1d0] sm:$0xff] %vm4420_vm2, %v8601_v27  ;;  %v8350_v41 = vmax.f32 %v8278_v39, %v8314_v42  ;;  %v8280_v45 = vadd.f32 %v26313_v16, %v8162_v26  ;;  %21562 = vmatprep.mubr.msk.f32.mxu1 %vm4420_vm2, %v12898_v33  ;;  %21238 = vmatprep.mubr.msk.f32.mxu0 %vm328_vm1, %v26365_v4  ;;  %v28414_v14 = vld [vmem:[#allocation13_spill] sm:$0xff] }
 0x383   : > { %v8604_v15 = vmul.f32 %v28414_v14, %v8351_v10  ;;  %v8317_v29 = vmul.f32 0.02, %v8281_v3  ;;  %21563 = vmatmul.mubr.msk.f32.gmra.mrb[72].mxu1 %vm4420_vm2, %v12899_v11  ;;  %v26383_v36 = vld [vmem:[%s23195_s8 + $0x370] sm:$0xff] }
 0x384   : > { %v8603_v39 = vmul.f32 %v28415_v31, %v8350_v41  ;;  %v8316_v27 = vmul.f32 0.02, %v8280_v45  ;;  %v21019_v42 = vpop.f32.mrb[46].mxu1  ;;  %v12901_v41 = vld [vmem:[#allocation2 + $0x1c8] sm:$0xff] }
 0x385   : > { %8641 = vst.msk [vmem:[#allocation2 + $0x1e8] sm:$0xff] %vm4420_vm2, %v8604_v15  ;;  %v8353_v44 = vmax.f32 %v8281_v3, %v8317_v29  ;;  %v8283_v26 = vadd.f32 %v26313_v16, %v21019_v42  ;;  %v8172_v33 = vpop.f32.mrb[47].mxu1  ;;  %21239 = vmatmul.mubr.msk.f32.gmra.mrb[62].mxu0 %vm328_vm1, %v26378_v60  ;;  %v12900_v10 = vld [vmem:[#allocation2 + $0x1c0] sm:$0xff]  ;;  %v26396_v15 = vld [vmem:[%s23195_s8 + $0x378] sm:$0xff] }
 0x386   : > { %8640 = vst.msk [vmem:[#allocation2 + $0x1e0] sm:$0xff] %vm4420_vm2, %v8603_v39  ;;  %v8352_v11 = vmax.f32 %v8280_v45, %v8316_v27  ;;  %v8282_v14 = vadd.f32 %v26313_v16, %v8172_v33  ;;  %21565 = vmatprep.mubr.msk.f32.mxu1 %vm4420_vm2, %v12900_v10  ;;  %21241 = vmatprep.mubr.msk.f32.mxu0 %vm328_vm1, %v26383_v36  ;;  %v28416_v3 = vld [vmem:[#allocation15_spill] sm:$0xff] }
 0x387   : > { %v8606_v29 = vmul.f32 %v28416_v3, %v8353_v44  ;;  %v8319_v31 = vmul.f32 0.02, %v8283_v26  ;;  %21566 = vmatmul.mubr.msk.f32.gmra.mrb[74].mxu1 %vm4420_vm2, %v12901_v41  ;;  %v26401_v42 = vld [vmem:[%s23195_s8 + $0x380] sm:$0xff] }
 0x388   : > { %v8605_v45 = vmul.f32 %v28417_v0, %v8352_v11  ;;  %v8318_v39 = vmul.f32 0.02, %v8282_v14  ;;  %v21022_v27 = vpop.f32.mrb[48].mxu1  ;;  %v12903_v0 = vld [vmem:[#allocation2 + $0x1d8] sm:$0xff]  ;;  %v26414_v11 = vld [vmem:[%s23195_s8 + $0x388] sm:$0xff] }
 0x389   : > { %8643 = vst.msk [vmem:[#allocation2 + $0x1f8] sm:$0xff] %vm4420_vm2, %v8606_v29  ;;  %v8355_v33 = vmax.f32 %v8283_v26, %v8319_v31  ;;  %v8285_v10 = vadd.f32 %v26313_v16, %v21022_v27  ;;  %v8182_v2 = vpop.f32.mrb[49].mxu1  ;;  %21242 = vmatmul.mubr.msk.f32.gmra.mrb[64].mxu0 %vm328_vm1, %v26396_v15  ;;  %v12902_v44 = vld [vmem:[#allocation2 + $0x1d0] sm:$0xff] }
 0x38a   : > { %8642 = vst.msk [vmem:[#allocation2 + $0x1f0] sm:$0xff] %vm4420_vm2, %v8605_v45  ;;  %v8354_v41 = vmax.f32 %v8282_v14, %v8318_v39  ;;  %v8284_v3 = vadd.f32 %v26313_v16, %v8182_v2  ;;  %21568 = vmatprep.mubr.msk.f32.mxu1 %vm4420_vm2, %v12902_v44  ;;  %21244 = vmatprep.mubr.msk.f32.mxu0 %vm328_vm1, %v26401_v42  ;;  %v28418_v26 = vld [vmem:[#allocation17_spill] sm:$0xff] }
 0x38b   : > { %v8608_v29 = vmul.f32 %v28418_v26, %v8355_v33  ;;  %v8321_v31 = vmul.f32 0.02, %v8285_v10  ;;  %21569 = vmatmul.mubr.msk.f32.gmra.mrb[76].mxu1 %vm4420_vm2, %v12903_v0  ;;  %v26419_v27 = vld [vmem:[%s23195_s8 + $0x390] sm:$0xff] }
 0x38c   : > { %v8607_v14 = vmul.f32 %v28419_v23, %v8354_v41  ;;  %v8320_v45 = vmul.f32 0.02, %v8284_v3  ;;  %v21025_v2 = vpop.f32.mrb[50].mxu1  ;;  %v12905_v23 = vld [vmem:[#allocation2 + $0x1e8] sm:$0xff]  ;;  %v26432_v41 = vld [vmem:[%s23195_s8 + $0x398] sm:$0xff] }
 0x38d   : > { %8645 = vst.msk [vmem:[#allocation2 + $0x208] sm:$0xff] %vm4420_vm2, %v8608_v29  ;;  %v8357_v39 = vmax.f32 %v8285_v10, %v8321_v31  ;;  %v8287_v44 = vadd.f32 %v26313_v16, %v21025_v2  ;;  %v8192_v48 = vpop.f32.mrb[51].mxu1  ;;  %21245 = vmatmul.mubr.msk.f32.gmra.mrb[66].mxu0 %vm328_vm1, %v26414_v11  ;;  %v12904_v33 = vld [vmem:[#allocation2 + $0x1e0] sm:$0xff] }
 0x38e   : > { %8644 = vst.msk [vmem:[#allocation2 + $0x200] sm:$0xff] %vm4420_vm2, %v8607_v14  ;;  %v8356_v0 = vmax.f32 %v8284_v3, %v8320_v45  ;;  %v8286_v26 = vadd.f32 %v26313_v16, %v8192_v48  ;;  %21571 = vmatprep.mubr.msk.f32.mxu1 %vm4420_vm2, %v12904_v33  ;;  %21247 = vmatprep.mubr.msk.f32.mxu0 %vm328_vm1, %v26419_v27  ;;  %v28420_v10 = vld [vmem:[#allocation19_spill] sm:$0xff] }
 0x38f   : > { %v8610_v29 = vmul.f32 %v28420_v10, %v8357_v39  ;;  %v8323_v31 = vmul.f32 0.02, %v8287_v44  ;;  %21572 = vmatmul.mubr.msk.f32.gmra.mrb[78].mxu1 %vm4420_vm2, %v12905_v23  ;;  %v26437_v2 = vld [vmem:[%s23195_s8 + $0x3a0] sm:$0xff] }
 0x390   : > { %v8609_v3 = vmul.f32 %v28421_v55, %v8356_v0  ;;  %v8322_v14 = vmul.f32 0.02, %v8286_v26  ;;  %v21028_v48 = vpop.f32.mrb[52].mxu1  ;;  %v12907_v55 = vld [vmem:[#allocation2 + $0x1f8] sm:$0xff]  ;;  %v26450_v0 = vld [vmem:[%s23195_s8 + $0x3a8] sm:$0xff] }
 0x391   : > { %8647 = vst.msk [vmem:[#allocation2 + $0x218] sm:$0xff] %vm4420_vm2, %v8610_v29  ;;  %v8359_v45 = vmax.f32 %v8287_v44, %v8323_v31  ;;  %v8289_v33 = vadd.f32 %v26313_v16, %v21028_v48  ;;  %v8202_v30 = vpop.f32.mrb[53].mxu1  ;;  %21248 = vmatmul.mubr.msk.f32.gmra.mrb[68].mxu0 %vm328_vm1, %v26432_v41  ;;  %v12906_v39 = vld [vmem:[#allocation2 + $0x1f0] sm:$0xff]  ;;  %v8572_v48 = vpop.permute.xlu0 %8571 }
 0x392   : > { %8646 = vst.msk [vmem:[#allocation2 + $0x210] sm:$0xff] %vm4420_vm2, %v8609_v3  ;;  %v8358_v23 = vmax.f32 %v8286_v26, %v8322_v14  ;;  %v8288_v10 = vadd.f32 %v26313_v16, %v8202_v30  ;;  %21574 = vmatprep.mubr.msk.f32.mxu1 %vm4420_vm2, %v12906_v39  ;;  %21250 = vmatprep.mubr.msk.f32.mxu0 %vm328_vm1, %v26437_v2  ;;  %v18018_v31 = vld [vmem:[%s23195_s8 + $0x3d0] sm:$0xff]  ;;  %v8577_v30 = vpop.permute.xlu1 %8576 }
 0x393   : > { %v8612_v44 = vmul.f32 %v26122_v63, %v8359_v45  ;;  %v8325_v29 = vmul.f32 0.02, %v8289_v33  ;;  %21575 = vmatmul.mubr.msk.f32.gmra.mrb[80].mxu1 %vm4420_vm2, %v12907_v55  ;;  %v26465_v55 = vld [vmem:[%s23195_s8 + $0x3e0] sm:$0xff] }
 0x394   : > { %v8611_v3 = vmul.f32 %v26127_v35, %v8358_v23  ;;  %v8324_v26 = vmul.f32 0.02, %v8288_v10  ;;  %v12909_v45 = vld [vmem:[#allocation2 + $0x208] sm:$0xff]  ;;  %v18019_v35 = vld [vmem:[%s23195_s8 + $0x3d8] sm:$0xff] }
 0x395   : > { %8649 = vst.msk [vmem:[#allocation2 + $0x228] sm:$0xff] %vm4420_vm2, %v8612_v44  ;;  %21251 = vmatmul.mubr.msk.f32.gmra.mrb[70].mxu0 %vm328_vm1, %v26450_v0  ;;  %v8361_v16 = vmax.f32 %v8289_v33, %v8325_v29  ;;  %v12908_v14 = vld [vmem:[#allocation2 + $0x200] sm:$0xff]  ;;  %v26479_v29 = vld [vmem:[%s23195_s8 + $0x3e8] sm:$0xff] }
 0x396   : > { %8648 = vst.msk [vmem:[#allocation2 + $0x220] sm:$0xff] %vm4420_vm2, %v8611_v3  ;;  %21577 = vmatprep.mubr.msk.f32.mxu1 %vm4420_vm2, %v12908_v14  ;;  %v8360_v63 = vmax.f32 %v8288_v10, %v8324_v26  ;;  %21255 = vmatprep.mubr.msk.f32.mxu0 %vm328_vm1, %v18018_v31  ;;  %v26472_v10 = vld [vmem:[%s27965_s1 + $0x18] sm:$0xf]  ;;  %v12847_v31 = vld [vmem:[#allocation2] sm:$0xff]  ;;  %v26485_v3 = vld [vmem:[%s23195_s8 + $0x3f0] sm:$0xff] }
 0x397   : > { %v8614_v39 = vmul.f32 %v8577_v30, %v8361_v16  ;;  %21578 = vmatmul.mubr.msk.f32.gmra.mrb[82].mxu1 %vm4420_vm2, %v12909_v45  ;;  %v26495_v26 = vld [vmem:[%s23195_s8 + $0x3f8] sm:$0xff]  ;;  %v12849_v30 = vld [vmem:[#allocation2 + $0x10] sm:$0xff]  ;;  %v26499_v16 = vld [vmem:[%s23195_s8 + $0x400] sm:$0xff] }
 0x398   : > { %v8613_v23 = vmul.f32 %v8572_v48, %v8360_v63  ;;  %v12911_v44 = vld [vmem:[#allocation2 + $0x218] sm:$0xff]  ;;  %v26507_v48 = vld [vmem:[%s23195_s8 + $0x408] sm:$0xff]  ;;  %v12851_v63 = vld [vmem:[#allocation2 + $0x20] sm:$0xff] }
 0x399   : > { %8651 = vst.msk [vmem:[#allocation2 + $0x238] sm:$0xff] %vm4420_vm2, %v8614_v39  ;;  %21256 = vmatmul.mubr.msk.f32.vlgmr.msra.gmra.mrb[36].mxu0 %vm328_vm1, %v18019_v35  ;;  %v12910_v33 = vld [vmem:[#allocation2 + $0x210] sm:$0xff]  ;;  %v12850_v14 = vld [vmem:[#allocation2 + $0x18] sm:$0xff]  ;;  %v12852_v35 = vld [vmem:[#allocation2 + $0x28] sm:$0xff] }
 0x39a   : > { %8650 = vst.msk [vmem:[#allocation2 + $0x230] sm:$0xff] %vm4420_vm2, %v8613_v23  ;;  %21310 = vmatpush3.msk.msra.mxu0 %vm437_vm0, %v26170_v57  ;;  %21580 = vmatprep.mubr.msk.f32.mxu1 %vm4420_vm2, %v12910_v33  ;;  %v12848_v57 = vld [vmem:[#allocation2 + $0x8] sm:$0xff]  ;;  %v26511_v45 = vld [vmem:[%s23195_s8 + $0x410] sm:$0xff]  ;;  %v26519_v39 = vld [vmem:[%s23195_s8 + $0x418] sm:$0xff] }
 0x39b   : > { %21581 = vmatmul.mubr.msk.f32.gmra.mrb[84].mxu1 %vm4420_vm2, %v12911_v44  ;;  %21258 = vmatprep.mubr.msk.f32.mxu0 %vm328_vm1, %v26465_v55  ;;  %v12853_v23 = vld [vmem:[#allocation2 + $0x30] sm:$0xff]  ;;  %v26523_v33 = vld [vmem:[%s23195_s8 + $0x420] sm:$0xff]  ;;  %v12854_v44 = vld [vmem:[#allocation2 + $0x38] sm:$0xff] }
 0x39c   : > { %21585 = vmatprep.mubr.msk.f32.mxu1 %vm4420_vm2, %v12847_v31  ;;  %21365 = vmatprep.subr.msk.mxu0 %vm437_vm0, %v26472_v10  ;;  %v26531_v31 = vld [vmem:[%s23195_s8 + $0x428] sm:$0xff] }
 0x39d   : > { %21259 = vmatmul.mubr.msk.f32.gmra.mrb[38].mxu0 %vm328_vm1, %v26479_v29 }
 0x39e   : > { %21261 = vmatprep.mubr.msk.f32.mxu0 %vm328_vm1, %v26485_v3 }
 0x39f   : > { %21586 = vmatmul.mubr.msk.f32.vlgmr.msra.gmra.mrb[54].mxu1 %vm4420_vm2, %v12848_v57  ;;  %v12855_v57 = vld [vmem:[#allocation2 + $0x40] sm:$0xff] }
 0x3a0   : > { %21588 = vmatprep.mubr.msk.f32.mxu1 %vm4420_vm2, %v12849_v30  ;;  %v26535_v30 = vld [vmem:[%s23195_s8 + $0x430] sm:$0xff] }
 0x3a1   : > { %21262 = vmatmul.mubr.msk.f32.gmra.mrb[40].mxu0 %vm328_vm1, %v26495_v26 }
 0x3a2   : > { %21264 = vmatprep.mubr.msk.f32.mxu0 %vm328_vm1, %v26499_v16 }
 0x3a3   : > { %21589 = vmatmul.mubr.msk.f32.gmra.mrb[56].mxu1 %vm4420_vm2, %v12850_v14  ;;  %v12856_v14 = vld [vmem:[#allocation2 + $0x48] sm:$0xff] }
 0x3a4   : > { %21591 = vmatprep.mubr.msk.f32.mxu1 %vm4420_vm2, %v12851_v63  ;;  %v26543_v63 = vld [vmem:[%s23195_s8 + $0x438] sm:$0xff] }
 0x3a5   : > { %21265 = vmatmul.mubr.msk.f32.gmra.mrb[42].mxu0 %vm328_vm1, %v26507_v48 }
 0x3a6   : > { %21267 = vmatprep.mubr.msk.f32.mxu0 %vm328_vm1, %v26511_v45 }
 0x3a7   : > { %21592 = vmatmul.mubr.msk.f32.gmra.mrb[58].mxu1 %vm4420_vm2, %v12852_v35  ;;  %v12857_v35 = vld [vmem:[#allocation2 + $0x50] sm:$0xff] }
 0x3a8   : > { %21594 = vmatprep.mubr.msk.f32.mxu1 %vm4420_vm2, %v12853_v23  ;;  %v26547_v23 = vld [vmem:[%s23195_s8 + $0x440] sm:$0xff] }
 0x3a9   : > { %21268 = vmatmul.mubr.msk.f32.gmra.mrb[44].mxu0 %vm328_vm1, %v26519_v39 }
 0x3aa   : > { %21270 = vmatprep.mubr.msk.f32.mxu0 %vm328_vm1, %v26523_v33 }
 0x3ab   : > { %21595 = vmatmul.mubr.msk.f32.gmra.mrb[60].mxu1 %vm4420_vm2, %v12854_v44  ;;  %v12858_v44 = vld [vmem:[#allocation2 + $0x58] sm:$0xff] }
 0x3ac   : > { %21597 = vmatprep.mubr.msk.f32.mxu1 %vm4420_vm2, %v12855_v57  ;;  %v26555_v57 = vld [vmem:[%s23195_s8 + $0x448] sm:$0xff] }
 0x3ad   : > { %21271 = vmatmul.mubr.msk.f32.gmra.mrb[46].mxu0 %vm328_vm1, %v26531_v31 }
 0x3ae   : > { %21273 = vmatprep.mubr.msk.f32.mxu0 %vm328_vm1, %v26535_v30 }
 0x3af   : > { %21598 = vmatmul.mubr.msk.f32.gmra.mrb[62].mxu1 %vm4420_vm2, %v12856_v14  ;;  %v26559_v14 = vld [vmem:[%s23195_s8 + $0x450] sm:$0xff] }
 0x3b0   : > { %21600 = vmatprep.mubr.msk.f32.mxu1 %vm4420_vm2, %v12857_v35  ;;  %v12860_v35 = vld [vmem:[#allocation2 + $0x68] sm:$0xff] }
 0x3b1   : > { %21274 = vmatmul.mubr.msk.f32.gmra.mrb[48].mxu0 %vm328_vm1, %v26543_v63 }
 0x3b2   : > { %21276 = vmatprep.mubr.msk.f32.mxu0 %vm328_vm1, %v26547_v23 }
 0x3b3   : > { %21601 = vmatmul.mubr.msk.f32.gmra.mrb[64].mxu1 %vm4420_vm2, %v12858_v44  ;;  %v26571_v44 = vld [vmem:[%s23195_s8 + $0x460] sm:$0xff] }
 0x3b4   : > { %21603 = vmatprep.mubr.msk.f32.mxu1 %vm4420_vm2, %v12859_v47  ;;  %v12862_v47 = vld [vmem:[#allocation2 + $0x78] sm:$0xff] }
 0x3b5   : > { %21277 = vmatmul.mubr.msk.f32.gmra.mrb[50].mxu0 %vm328_vm1, %v26555_v57 }
 0x3b6   : > { %21279 = vmatprep.mubr.msk.f32.mxu0 %vm328_vm1, %v26559_v14 }
 0x3b7   : > { %21604 = vmatmul.mubr.msk.f32.gmra.mrb[66].mxu1 %vm4420_vm2, %v12860_v35  ;;  %v26583_v35 = vld [vmem:[%s23195_s8 + $0x470] sm:$0xff] }
 0x3b8   : > { %21606 = vmatprep.mubr.msk.f32.mxu1 %vm4420_vm2, %v12861_v12  ;;  %v12864_v12 = vld [vmem:[#allocation2 + $0x88] sm:$0xff] }
 0x3b9   : > { %21280 = vmatmul.mubr.msk.f32.gmra.mrb[52].mxu0 %vm328_vm1, %v26567_v25 }
 0x3ba   : > { %21282 = vmatprep.mubr.msk.f32.mxu0 %vm328_vm1, %v26571_v44 }
 0x3bb   : > { %21607 = vmatmul.mubr.msk.f32.gmra.mrb[68].mxu1 %vm4420_vm2, %v12862_v47  ;;  %v26595_v47 = vld [vmem:[%s23195_s8 + $0x480] sm:$0xff] }
 0x3bc   : > { %21609 = vmatprep.mubr.msk.f32.mxu1 %vm4420_vm2, %v12863_v7  ;;  %v12866_v7 = vld [vmem:[#allocation2 + $0x98] sm:$0xff] }
 0x3bd   : > { %21283 = vmatmul.mubr.msk.f32.gmra.mrb[54].mxu0 %vm328_vm1, %v26579_v8 }
 0x3be   : > { %21285 = vmatprep.mubr.msk.f32.mxu0 %vm328_vm1, %v26583_v35 }
 0x3bf   : > { %21610 = vmatmul.mubr.msk.f32.gmra.mrb[70].mxu1 %vm4420_vm2, %v12864_v12  ;;  %v26607_v12 = vld [vmem:[%s23195_s8 + $0x490] sm:$0xff] }
 0x3c0   : > { %21612 = vmatprep.mubr.msk.f32.mxu1 %vm4420_vm2, %v12865_v54  ;;  %v12868_v54 = vld [vmem:[#allocation2 + $0xa8] sm:$0xff] }
 0x3c1   : > { %21286 = vmatmul.mubr.msk.f32.gmra.mrb[56].mxu0 %vm328_vm1, %v26591_v50 }
 0x3c2   : > { %21288 = vmatprep.mubr.msk.f32.mxu0 %vm328_vm1, %v26595_v47 }
 0x3c3   : > { %21613 = vmatmul.mubr.msk.f32.gmra.mrb[72].mxu1 %vm4420_vm2, %v12866_v7  ;;  %v26619_v7 = vld [vmem:[%s23195_s8 + $0x4a0] sm:$0xff] }
 0x3c4   : > { %21615 = vmatprep.mubr.msk.f32.mxu1 %vm4420_vm2, %v12867_v58  ;;  %v12870_v58 = vld [vmem:[#allocation2 + $0xb8] sm:$0xff] }
 0x3c5   : > { %21289 = vmatmul.mubr.msk.f32.gmra.mrb[58].mxu0 %vm328_vm1, %v26603_v38 }
 0x3c6   : > { %21291 = vmatprep.mubr.msk.f32.mxu0 %vm328_vm1, %v26607_v12 }
 0x3c7   : > { %21616 = vmatmul.mubr.msk.f32.gmra.mrb[74].mxu1 %vm4420_vm2, %v12868_v54  ;;  %v26631_v54 = vld [vmem:[%s23195_s8 + $0x4b0] sm:$0xff] }
 0x3c8   : > { %21618 = vmatprep.mubr.msk.f32.mxu1 %vm4420_vm2, %v12869_v37  ;;  %v12872_v37 = vld [vmem:[#allocation2 + $0xc8] sm:$0xff] }
 0x3c9   : > { %21292 = vmatmul.mubr.msk.f32.gmra.mrb[60].mxu0 %vm328_vm1, %v26615_v32 }
 0x3ca   : > { %21294 = vmatprep.mubr.msk.f32.mxu0 %vm328_vm1, %v26619_v7 }
 0x3cb   : > { %21619 = vmatmul.mubr.msk.f32.gmra.mrb[76].mxu1 %vm4420_vm2, %v12870_v58  ;;  %v26643_v58 = vld [vmem:[%s23195_s8 + $0x4c0] sm:$0xff] }
 0x3cc   : > { %21621 = vmatprep.mubr.msk.f32.mxu1 %vm4420_vm2, %v12871_v40  ;;  %v12874_v40 = vld [vmem:[#allocation2 + $0xd8] sm:$0xff] }
 0x3cd   : > { %21295 = vmatmul.mubr.msk.f32.gmra.mrb[62].mxu0 %vm328_vm1, %v26627_v1 }
 0x3ce   : > { %21297 = vmatprep.mubr.msk.f32.mxu0 %vm328_vm1, %v26631_v54 }
 0x3cf   : > { %21622 = vmatmul.mubr.msk.f32.gmra.mrb[78].mxu1 %vm4420_vm2, %v12872_v37  ;;  %v26655_v37 = vld [vmem:[%s23195_s8 + $0x4d0] sm:$0xff] }
 0x3d0   : > { %21624 = vmatprep.mubr.msk.f32.mxu1 %vm4420_vm2, %v12873_v18  ;;  %v12876_v18 = vld [vmem:[#allocation2 + $0xe8] sm:$0xff] }
 0x3d1   : > { %21298 = vmatmul.mubr.msk.f32.gmra.mrb[64].mxu0 %vm328_vm1, %v26639_v51 }
 0x3d2   : > { %21300 = vmatprep.mubr.msk.f32.mxu0 %vm328_vm1, %v26643_v58 }
 0x3d3   : > { %21625 = vmatmul.mubr.msk.f32.gmra.mrb[80].mxu1 %vm4420_vm2, %v12874_v40  ;;  %v12877_v40 = vld [vmem:[#allocation2 + $0xf0] sm:$0xff] }
 0x3d4   : > { %21627 = vmatprep.mubr.msk.f32.mxu1 %vm4420_vm2, %v12875_v5  ;;  %v12878_v5 = vld [vmem:[#allocation2 + $0xf8] sm:$0xff] }
 0x3d5   : > { %21301 = vmatmul.mubr.msk.f32.gmra.mrb[66].mxu0 %vm328_vm1, %v26651_v19 }
 0x3d6   : > { %21303 = vmatprep.mubr.msk.f32.mxu0 %vm328_vm1, %v26655_v37 }
 0x3d7   : > { %21628 = vmatmul.mubr.msk.f32.gmra.mrb[82].mxu1 %vm4420_vm2, %v12876_v18  ;;  %v18092_v18 = vld [vmem:[%s23195_s8 + $0x510] sm:$0xff] }
 0x3d8   : > { %21630 = vmatprep.mubr.msk.f32.mxu1 %vm4420_vm2, %v12877_v40  ;;  %v18093_v40 = vld [vmem:[%s23195_s8 + $0x518] sm:$0xff] }
 0x3d9   : > { %21304 = vmatmul.mubr.msk.f32.gmra.mrb[68].mxu0 %vm328_vm1, %v26663_v62  ;;  %v18170_v62 = vld [vmem:[%s23195_s8 + $0x2c0] sm:$0xff] }
 0x3da   : > { %21306 = vmatprep.mubr.msk.f32.mxu0 %vm328_vm1, %v26667_v22  ;;  %v26689_v22 = vld [vmem:[%s27965_s1 + $0x1c] sm:$0xf] }
 0x3db   : > { %21631 = vmatmul.mubr.msk.f32.gmra.mrb[84].mxu1 %vm4420_vm2, %v12878_v5  ;;  %v26697_v5 = vld [vmem:[%s23195_s8 + $0x528] sm:$0xff] }
 0x3dc   : > { %28426 = vst [vmem:[#allocation53_spill] sm:$0xff] %v26697_v5 }
 0x3dd   : > { %21307 = vmatmul.mubr.msk.f32.gmra.mrb[70].mxu0 %vm328_vm1, %v26675_v6  ;;  %v26722_v6 = vld [vmem:[%s23195_s8 + $0x550] sm:$0xff] }
 0x3de   : > { %21311 = vmatprep.mubr.msk.f32.mxu0 %vm328_vm1, %v18092_v18  ;;  %v26700_v18 = vld [vmem:[%s23195_s8 + $0x530] sm:$0xff]  ;;  %28431 = vst [vmem:[#allocation3_spill] sm:$0xff] %v26722_v6 }
 0x3df   : > { %28427 = vst [vmem:[#allocation43_spill] sm:$0xff] %v26700_v18 }
 0x3e1   : > { %21312 = vmatmul.mubr.msk.f32.vlgmr.msra.gmra.mrb[36].mxu0 %vm328_vm1, %v18093_v40  ;;  %v26712_v40 = vld [vmem:[%s23195_s8 + $0x540] sm:$0xff] }
 0x3e2   : > { %21366 = vmatpush3.msk.msra.mxu0 %vm437_vm0, %v26472_v10  ;;  %21314 = vmatprep.mubr.msk.f32.mxu0 %vm328_vm1, %v26684_v21  ;;  %v26709_v10 = vld [vmem:[%s23195_s8 + $0x538] sm:$0xff]  ;;  %28429 = vst [vmem:[#allocation45_spill] sm:$0xff] %v26712_v40  ;;  %v26719_v21 = vld [vmem:[%s23195_s8 + $0x548] sm:$0xff] }
 0x3e3   : > { %21421 = vmatprep.subr.msk.mxu0 %vm437_vm0, %v26689_v22  ;;  %28428 = vst [vmem:[#allocation55_spill] sm:$0xff] %v26709_v10  ;;  %28430 = vst [vmem:[#allocation38_spill] sm:$0xff] %v26719_v21 }
 0x3e5   : > { %21315 = vmatmul.mubr.msk.f32.gmra.mrb[38].mxu0 %vm328_vm1, %v26697_v5  ;;  %v26732_v5 = vld [vmem:[%s23195_s8 + $0x560] sm:$0xff] }
 0x3e6   : > { %21317 = vmatprep.mubr.msk.f32.mxu0 %vm328_vm1, %v26700_v18  ;;  %v26729_v18 = vld [vmem:[%s23195_s8 + $0x558] sm:$0xff]  ;;  %28433 = vst [vmem:[#allocation42_spill] sm:$0xff] %v26732_v5 }
 0x3e7   : > { %28432 = vst [vmem:[#allocation40_spill] sm:$0xff] %v26729_v18 }
 0x3e9   : > { %21318 = vmatmul.mubr.msk.f32.gmra.mrb[40].mxu0 %vm328_vm1, %v26709_v10  ;;  %v26742_v10 = vld [vmem:[%s23195_s8 + $0x570] sm:$0xff] }
 0x3ea   : > { %21320 = vmatprep.mubr.msk.f32.mxu0 %vm328_vm1, %v26712_v40  ;;  %v26739_v40 = vld [vmem:[%s23195_s8 + $0x568] sm:$0xff]  ;;  %28435 = vst [vmem:[#allocation23_spill] sm:$0xff] %v26742_v10 }
 0x3eb   : > { %28434 = vst [vmem:[#allocation21_spill] sm:$0xff] %v26739_v40 }
 0x3ed   : > { %21321 = vmatmul.mubr.msk.f32.gmra.mrb[42].mxu0 %vm328_vm1, %v26719_v21  ;;  %v26752_v21 = vld [vmem:[%s23195_s8 + $0x580] sm:$0xff] }
 0x3ee   : > { %21323 = vmatprep.mubr.msk.f32.mxu0 %vm328_vm1, %v26722_v6  ;;  %v26749_v6 = vld [vmem:[%s23195_s8 + $0x578] sm:$0xff]  ;;  %28437 = vst [vmem:[#allocation28_spill] sm:$0xff] %v26752_v21 }
 0x3ef   : > { %28436 = vst [vmem:[#allocation24_spill] sm:$0xff] %v26749_v6 }
 0x3f1   : > { %21324 = vmatmul.mubr.msk.f32.gmra.mrb[44].mxu0 %vm328_vm1, %v26729_v18  ;;  %v26762_v18 = vld [vmem:[%s23195_s8 + $0x590] sm:$0xff] }
 0x3f2   : > { %21326 = vmatprep.mubr.msk.f32.mxu0 %vm328_vm1, %v26732_v5  ;;  %v26759_v5 = vld [vmem:[%s23195_s8 + $0x588] sm:$0xff]  ;;  %28439 = vst [vmem:[#allocation50_spill] sm:$0xff] %v26762_v18 }
 0x3f3   : > { %28438 = vst [vmem:[#allocation26_spill] sm:$0xff] %v26759_v5 }
 0x3f5   : > { %21327 = vmatmul.mubr.msk.f32.gmra.mrb[46].mxu0 %vm328_vm1, %v26739_v40  ;;  %v26772_v40 = vld [vmem:[%s23195_s8 + $0x5a0] sm:$0xff] }
 0x3f6   : > { %21329 = vmatprep.mubr.msk.f32.mxu0 %vm328_vm1, %v26742_v10  ;;  %v26769_v10 = vld [vmem:[%s23195_s8 + $0x598] sm:$0xff]  ;;  %28441 = vst [vmem:[#allocation27_spill] sm:$0xff] %v26772_v40 }
 0x3f7   : > { %28440 = vst [vmem:[#allocation51_spill] sm:$0xff] %v26769_v10 }
 0x3f9   : > { %21330 = vmatmul.mubr.msk.f32.gmra.mrb[48].mxu0 %vm328_vm1, %v26749_v6  ;;  %v26782_v6 = vld [vmem:[%s23195_s8 + $0x5b0] sm:$0xff] }
 0x3fa   : > { %21332 = vmatprep.mubr.msk.f32.mxu0 %vm328_vm1, %v26752_v21  ;;  %v26779_v21 = vld [vmem:[%s23195_s8 + $0x5a8] sm:$0xff]  ;;  %28443 = vst [vmem:[#allocation52_spill] sm:$0xff] %v26782_v6 }
 0x3fb   : > { %28442 = vst [vmem:[#allocation25_spill] sm:$0xff] %v26779_v21 }
 0x3fd   : > { %21333 = vmatmul.mubr.msk.f32.gmra.mrb[50].mxu0 %vm328_vm1, %v26759_v5  ;;  %v26792_v5 = vld [vmem:[%s23195_s8 + $0x5c0] sm:$0xff] }
 0x3fe   : > { %21335 = vmatprep.mubr.msk.f32.mxu0 %vm328_vm1, %v26762_v18  ;;  %v26789_v18 = vld [vmem:[%s23195_s8 + $0x5b8] sm:$0xff]  ;;  %28445 = vst [vmem:[#allocation29_spill] sm:$0xff] %v26792_v5 }
 0x3ff   : > { %28444 = vst [vmem:[#allocation54_spill] sm:$0xff] %v26789_v18 }
 0x401   : > { %21336 = vmatmul.mubr.msk.f32.gmra.mrb[52].mxu0 %vm328_vm1, %v26769_v10  ;;  %v26802_v10 = vld [vmem:[%s23195_s8 + $0x5d0] sm:$0xff] }
 0x402   : > { %21338 = vmatprep.mubr.msk.f32.mxu0 %vm328_vm1, %v26772_v40  ;;  %v26799_v40 = vld [vmem:[%s23195_s8 + $0x5c8] sm:$0xff]  ;;  %28447 = vst [vmem:[#allocation31_spill] sm:$0xff] %v26802_v10 }
 0x403   : > { %28446 = vst [vmem:[#allocation30_spill] sm:$0xff] %v26799_v40 }
 0x405   : > { %21339 = vmatmul.mubr.msk.f32.gmra.mrb[54].mxu0 %vm328_vm1, %v26779_v21  ;;  %v26828_v21 = vld [vmem:[%s23195_s8 + $0x5f0] sm:$0xff] }
 0x406   : > { %21341 = vmatprep.mubr.msk.f32.mxu0 %vm328_vm1, %v26782_v6  ;;  %v26809_v6 = vld [vmem:[%s23195_s8 + $0x5d8] sm:$0xff]  ;;  %28451 = vst [vmem:[#allocation37_spill] sm:$0xff] %v26828_v21 }
 0x407   : > { %28448 = vst [vmem:[#allocation32_spill] sm:$0xff] %v26809_v6 }
 0x409   : > { %21342 = vmatmul.mubr.msk.f32.gmra.mrb[56].mxu0 %vm328_vm1, %v26789_v18  ;;  %v18423_v18 = vld [vmem:[%s27967_s3 + $0x350] sm:$0xff] }
 0x40a   : > { %21344 = vmatprep.mubr.msk.f32.mxu0 %vm328_vm1, %v26792_v5  ;;  %v26815_v5 = vld [vmem:[%s23195_s8 + $0x5e0] sm:$0xff]  ;;  %12766 = vperm.xlu0 %23115, %v18423_v18   ;;  %v26835_v18 = vld [vmem:[%s23195_s8 + $0x5f8] sm:$0xff] }
 0x40b   : > { %28449 = vst [vmem:[#allocation33_spill] sm:$0xff] %v26815_v5  ;;  %28452 = vst [vmem:[#allocation41_spill] sm:$0xff] %v26835_v18 }
 0x40d   : > { %21345 = vmatmul.mubr.msk.f32.gmra.mrb[58].mxu0 %vm328_vm1, %v26799_v40  ;;  %v18424_v40 = vld [vmem:[%s27967_s3 + $0x358] sm:$0xff] }
 0x40e   : > { %21347 = vmatprep.mubr.msk.f32.mxu0 %vm328_vm1, %v26802_v10  ;;  %v26822_v10 = vld [vmem:[%s23195_s8 + $0x5e8] sm:$0xff]  ;;  %12771 = vperm.xlu1 %23116, %v18424_v40  }
 0x40f   : > { %28450 = vst [vmem:[#allocation34_spill] sm:$0xff] %v26822_v10  ;;  %v26845_v40 = vld [vmem:[%s23195_s8 + $0x608] sm:$0xff] }
 0x410   : > { %28454 = vst [vmem:[#allocation47_spill] sm:$0xff] %v26845_v40 }
 0x411   : > { %21348 = vmatmul.mubr.msk.f32.gmra.mrb[60].mxu0 %vm328_vm1, %v26809_v6  ;;  %v26848_v6 = vld [vmem:[%s23195_s8 + $0x610] sm:$0xff] }
 0x412   : > { %21350 = vmatprep.mubr.msk.f32.mxu0 %vm328_vm1, %v26815_v5  ;;  %v26838_v5 = vld [vmem:[%s23195_s8 + $0x600] sm:$0xff]  ;;  %28455 = vst [vmem:[#allocation4_spill] sm:$0xff] %v26848_v6 }
 0x413   : > { %28453 = vst [vmem:[#allocation46_spill] sm:$0xff] %v26838_v5 }
 0x415   : > { %21351 = vmatmul.mubr.msk.f32.gmra.mrb[62].mxu0 %vm328_vm1, %v26822_v10  ;;  %v26858_v10 = vld [vmem:[%s23195_s8 + $0x620] sm:$0xff] }
 0x416   : > { %21353 = vmatprep.mubr.msk.f32.mxu0 %vm328_vm1, %v26828_v21  ;;  %v26855_v21 = vld [vmem:[%s23195_s8 + $0x618] sm:$0xff]  ;;  %28457 = vst [vmem:[#allocation44_spill] sm:$0xff] %v26858_v10 }
 0x417   : > { %28456 = vst [vmem:[#allocation5_spill] sm:$0xff] %v26855_v21 }
 0x419   : > { %21354 = vmatmul.mubr.msk.f32.gmra.mrb[64].mxu0 %vm328_vm1, %v26835_v18  ;;  %v18166_v18 = vld [vmem:[%s23195_s8 + $0x2a0] sm:$0xff] }
 0x41a   : > { %21356 = vmatprep.mubr.msk.f32.mxu0 %vm328_vm1, %v26838_v5  ;;  %v26865_v5 = vld [vmem:[%s23195_s8 + $0x628] sm:$0xff] }
 0x41b   : > { %28458 = vst [vmem:[#allocation6_spill] sm:$0xff] %v26865_v5 }
 0x41d   : > { %21357 = vmatmul.mubr.msk.f32.gmra.mrb[66].mxu0 %vm328_vm1, %v26845_v40  ;;  %v18168_v40 = vld [vmem:[%s23195_s8 + $0x2b0] sm:$0xff] }
 0x41e   : > { %21359 = vmatprep.mubr.msk.f32.mxu0 %vm328_vm1, %v26848_v6  ;;  %v18167_v6 = vld [vmem:[%s23195_s8 + $0x2a8] sm:$0xff] }
 0x421   : > { %21360 = vmatmul.mubr.msk.f32.gmra.mrb[68].mxu0 %vm328_vm1, %v26855_v21  ;;  %v18350_v21 = vld [vmem:[%s27965_s1 + $0x20] sm:$0xf] }
 0x422   : > { %21362 = vmatprep.mubr.msk.f32.mxu0 %vm328_vm1, %v26858_v10  ;;  %v18169_v10 = vld [vmem:[%s23195_s8 + $0x2b8] sm:$0xff] }
 0x425   : > { %21363 = vmatmul.mubr.msk.f32.gmra.mrb[70].mxu0 %vm328_vm1, %v26865_v5  ;;  %v23119_v5 = vld [vmem:[%s23195_s8 + $0x2d0] sm:$0xff] }
 0x426   : > { %21367 = vmatprep.mubr.msk.f32.mxu0 %vm328_vm1, %v18166_v18  ;;  %v18171_v18 = vld [vmem:[%s23195_s8 + $0x2c8] sm:$0xff] }
 0x429   : > { %21368 = vmatmul.mubr.msk.f32.vlgmr.msra.gmra.mrb[36].mxu0 %vm328_vm1, %v18167_v6  ;;  %v23120_v6 = vld [vmem:[%s23195_s8 + $0x2d8] sm:$0xff] }
 0x42a   : > { %21422 = vmatpush3.msk.msra.mxu0 %vm437_vm0, %v26689_v22  ;;  %21370 = vmatprep.mubr.msk.f32.mxu0 %vm328_vm1, %v18168_v40  ;;  %v23121_v22 = vld [vmem:[%s23195_s8 + $0x2e0] sm:$0xff] }
 0x42b   : > { %21477 = vmatprep.subr.msk.mxu0 %vm437_vm0, %v18350_v21 }
 0x42d   : > { %21371 = vmatmul.mubr.msk.f32.gmra.mrb[38].mxu0 %vm328_vm1, %v18169_v10 }
 0x42e   : > { %21373 = vmatprep.mubr.msk.f32.mxu0 %vm328_vm1, %v18170_v62  ;;  %v18200_v62 = vld [vmem:[%s23195_s8 + $0x3b0] sm:$0xff] }
 0x431   : > { %21374 = vmatmul.mubr.msk.f32.gmra.mrb[40].mxu0 %vm328_vm1, %v18171_v18  ;;  %v28497_v18 = vld [vmem:[#allocation57_spill] sm:$0xff] }
 0x432   : > { %21376 = vmatprep.mubr.msk.f32.mxu0 %vm328_vm1, %v23119_v5  ;;  %v28496_v5 = vld [vmem:[#allocation56_spill] sm:$0xff] }
 0x435   : > { %21377 = vmatmul.mubr.msk.f32.gmra.mrb[42].mxu0 %vm328_vm1, %v23120_v6 }
 0x436   : > { %21379 = vmatprep.mubr.msk.f32.mxu0 %vm328_vm1, %v23121_v22 }
 0x439   : > { %21380 = vmatmul.mubr.msk.f32.gmra.mrb[44].mxu0 %vm328_vm1, %v26229_v28  ;;  %v18201_v28 = vld [vmem:[%s23195_s8 + $0x3b8] sm:$0xff] }
 0x43a   : > { %21382 = vmatprep.mubr.msk.f32.mxu0 %vm328_vm1, %v26234_v49  ;;  %v28465_v49 = vld [vmem:[#allocation55_spill] sm:$0xff] }
 0x43d   : > { %21383 = vmatmul.mubr.msk.f32.gmra.mrb[46].mxu0 %vm328_vm1, %v26247_v61  ;;  %v28466_v61 = vld [vmem:[#allocation45_spill] sm:$0xff] }
 0x43e   : > { %21385 = vmatprep.mubr.msk.f32.mxu0 %vm328_vm1, %v26252_v13  ;;  %v28467_v13 = vld [vmem:[#allocation38_spill] sm:$0xff] }
 0x441   : > { %21386 = vmatmul.mubr.msk.f32.gmra.mrb[48].mxu0 %vm328_vm1, %v26265_v59  ;;  %v28468_v59 = vld [vmem:[#allocation3_spill] sm:$0xff] }
 0x442   : > { %21388 = vmatprep.mubr.msk.f32.mxu0 %vm328_vm1, %v26270_v17  ;;  %v28469_v17 = vld [vmem:[#allocation40_spill] sm:$0xff] }
 0x445   : > { %21389 = vmatmul.mubr.msk.f32.gmra.mrb[50].mxu0 %vm328_vm1, %v26283_v53  ;;  %v28470_v53 = vld [vmem:[#allocation42_spill] sm:$0xff] }
 0x446   : > { %21391 = vmatprep.mubr.msk.f32.mxu0 %vm328_vm1, %v26288_v20  ;;  %v28471_v20 = vld [vmem:[#allocation21_spill] sm:$0xff] }
 0x449   : > { %21392 = vmatmul.mubr.msk.f32.gmra.mrb[52].mxu0 %vm328_vm1, %v26301_v9  ;;  %v28472_v9 = vld [vmem:[#allocation23_spill] sm:$0xff] }
 0x44a   : > { %21394 = vmatprep.mubr.msk.f32.mxu0 %vm328_vm1, %v26306_v43  ;;  %v28473_v43 = vld [vmem:[#allocation24_spill] sm:$0xff] }
 0x44d   : > { %21395 = vmatmul.mubr.msk.f32.gmra.mrb[54].mxu0 %vm328_vm1, %v26324_v52  ;;  %v28474_v52 = vld [vmem:[#allocation28_spill] sm:$0xff] }
 0x44e   : > { %21397 = vmatprep.mubr.msk.f32.mxu0 %vm328_vm1, %v26329_v46  ;;  %v28475_v46 = vld [vmem:[#allocation26_spill] sm:$0xff] }
 0x451   : > { %21398 = vmatmul.mubr.msk.f32.gmra.mrb[56].mxu0 %vm328_vm1, %v26342_v56  ;;  %v28476_v56 = vld [vmem:[#allocation50_spill] sm:$0xff] }
 0x452   : > { %21400 = vmatprep.mubr.msk.f32.mxu0 %vm328_vm1, %v26347_v34  ;;  %v28477_v34 = vld [vmem:[#allocation51_spill] sm:$0xff] }
 0x455   : > { %21401 = vmatmul.mubr.msk.f32.gmra.mrb[58].mxu0 %vm328_vm1, %v26360_v24  ;;  %v28478_v24 = vld [vmem:[#allocation27_spill] sm:$0xff] }
 0x456   : > { %21403 = vmatprep.mubr.msk.f32.mxu0 %vm328_vm1, %v26365_v4  ;;  %v28479_v4 = vld [vmem:[#allocation25_spill] sm:$0xff] }
 0x459   : > { %21404 = vmatmul.mubr.msk.f32.gmra.mrb[60].mxu0 %vm328_vm1, %v26378_v60  ;;  %v28480_v60 = vld [vmem:[#allocation52_spill] sm:$0xff] }
 0x45a   : > { %21406 = vmatprep.mubr.msk.f32.mxu0 %vm328_vm1, %v26383_v36  ;;  %v28481_v36 = vld [vmem:[#allocation54_spill] sm:$0xff] }
 0x45d   : > { %21407 = vmatmul.mubr.msk.f32.gmra.mrb[62].mxu0 %vm328_vm1, %v26396_v15  ;;  %v28482_v15 = vld [vmem:[#allocation29_spill] sm:$0xff] }
 0x45e   : > { %21409 = vmatprep.mubr.msk.f32.mxu0 %vm328_vm1, %v26401_v42  ;;  %v28483_v42 = vld [vmem:[#allocation30_spill] sm:$0xff] }
 0x461   : > { %21410 = vmatmul.mubr.msk.f32.gmra.mrb[64].mxu0 %vm328_vm1, %v26414_v11  ;;  %v28484_v11 = vld [vmem:[#allocation31_spill] sm:$0xff] }
 0x462   : > { %21412 = vmatprep.mubr.msk.f32.mxu0 %vm328_vm1, %v26419_v27  ;;  %v28485_v27 = vld [vmem:[#allocation32_spill] sm:$0xff] }
 0x465   : > { %21413 = vmatmul.mubr.msk.f32.gmra.mrb[66].mxu0 %vm328_vm1, %v26432_v41  ;;  %v28486_v41 = vld [vmem:[#allocation33_spill] sm:$0xff] }
 0x466   : > { %21415 = vmatprep.mubr.msk.f32.mxu0 %vm328_vm1, %v26437_v2  ;;  %v28487_v2 = vld [vmem:[#allocation34_spill] sm:$0xff] }
 0x469   : > { %21416 = vmatmul.mubr.msk.f32.gmra.mrb[68].mxu0 %vm328_vm1, %v26450_v0  ;;  %v28488_v0 = vld [vmem:[#allocation37_spill] sm:$0xff] }
 0x46a   : > { %21418 = vmatprep.mubr.msk.f32.mxu0 %vm328_vm1, %v18200_v62 }
 0x46d   : > { %21419 = vmatmul.mubr.msk.f32.gmra.mrb[70].mxu0 %vm328_vm1, %v18201_v28 }
 0x46e   : > { %21423 = vmatprep.mubr.msk.f32.mxu0 %vm328_vm1, %v26465_v55  ;;  %v28489_v55 = vld [vmem:[#allocation41_spill] sm:$0xff] }
 0x471   : > { %21424 = vmatmul.mubr.msk.f32.vlgmr.msra.gmra.mrb[36].mxu0 %vm328_vm1, %v26479_v29  ;;  %v28490_v29 = vld [vmem:[#allocation46_spill] sm:$0xff] }
 0x472   : > { %21478 = vmatpush3.msk.msra.mxu0 %vm437_vm0, %v18350_v21  ;;  %21426 = vmatprep.mubr.msk.f32.mxu0 %vm328_vm1, %v26485_v3  ;;  %v18490_v21 = vld [vmem:[%s27968_s4 + $0x10] sm:$0xff]  ;;  %v28491_v3 = vld [vmem:[#allocation47_spill] sm:$0xff] }
 0x473   : > { %21633 = vmatprep.subr.mxu1 %v18490_v21 }
 0x474   : > { %21634 = vmatpush3.msra.mxu1 %v18490_v21 }
 0x475   : > { %21427 = vmatmul.mubr.msk.f32.gmra.mrb[38].mxu0 %vm328_vm1, %v26495_v26  ;;  %v28492_v26 = vld [vmem:[#allocation4_spill] sm:$0xff] }
 0x476   : > { %21429 = vmatprep.mubr.msk.f32.mxu0 %vm328_vm1, %v26499_v16  ;;  %v28493_v16 = vld [vmem:[#allocation5_spill] sm:$0xff] }
 0x479   : > { %21430 = vmatmul.mubr.msk.f32.gmra.mrb[40].mxu0 %vm328_vm1, %v26507_v48  ;;  %v28494_v48 = vld [vmem:[#allocation44_spill] sm:$0xff] }
 0x47a   : > { %21432 = vmatprep.mubr.msk.f32.mxu0 %vm328_vm1, %v26511_v45  ;;  %v18348_v45 = vld [vmem:[%s23195_s8 + $0x630] sm:$0xff] }
 0x47d   : > { %21433 = vmatmul.mubr.msk.f32.gmra.mrb[42].mxu0 %vm328_vm1, %v26519_v39  ;;  %v28495_v39 = vld [vmem:[#allocation6_spill] sm:$0xff] }
 0x47e   : > { %21435 = vmatprep.mubr.msk.f32.mxu0 %vm328_vm1, %v26523_v33  ;;  %v18349_v33 = vld [vmem:[%s23195_s8 + $0x638] sm:$0xff] }
 0x481   : > { %21436 = vmatmul.mubr.msk.f32.gmra.mrb[44].mxu0 %vm328_vm1, %v26531_v31  ;;  %v18523_v31 = vld [vmem:[%s27968_s4 + $0x18] sm:$0xff] }
 0x482   : > { %21438 = vmatprep.mubr.msk.f32.mxu0 %vm328_vm1, %v26535_v30  ;;  %21683 = vmatprep.subr.mxu1 %v18523_v31  ;;  %v27101_v30 = vld [vmem:[%s27966_s2] ss:$0 sm:$0xff] }
 0x485   : > { %21439 = vmatmul.mubr.msk.f32.gmra.mrb[46].mxu0 %vm328_vm1, %v26543_v63 }
 0x486   : > { %21441 = vmatprep.mubr.msk.f32.mxu0 %vm328_vm1, %v26547_v23 }
 0x489   : > { %21442 = vmatmul.mubr.msk.f32.gmra.mrb[48].mxu0 %vm328_vm1, %v26555_v57 }
 0x48a   : > { %21444 = vmatprep.mubr.msk.f32.mxu0 %vm328_vm1, %v26559_v14 }
 0x48d   : > { %21445 = vmatmul.mubr.msk.f32.gmra.mrb[50].mxu0 %vm328_vm1, %v26567_v25  ;;  %v28464_v25 = vld [vmem:[#allocation43_spill] sm:$0xff] }
 0x48e   : > { %21447 = vmatprep.mubr.msk.f32.mxu0 %vm328_vm1, %v26571_v44 }
 0x491   : > { %21448 = vmatmul.mubr.msk.f32.gmra.mrb[52].mxu0 %vm328_vm1, %v26579_v8  ;;  %v28462_v8 = vld [vmem:[#allocation39_spill] sm:$0xff] }
 0x492   : > { %21450 = vmatprep.mubr.msk.f32.mxu0 %vm328_vm1, %v26583_v35 }
 0x495   : > { %21451 = vmatmul.mubr.msk.f32.gmra.mrb[54].mxu0 %vm328_vm1, %v26591_v50  ;;  %v28461_v50 = vld [vmem:[#allocation49_spill] sm:$0xff] }
 0x496   : > { %21453 = vmatprep.mubr.msk.f32.mxu0 %vm328_vm1, %v26595_v47 }
 0x499   : > { %21454 = vmatmul.mubr.msk.f32.gmra.mrb[56].mxu0 %vm328_vm1, %v26603_v38  ;;  %v28460_v38 = vld [vmem:[#allocation36_spill] sm:$0xff] }
 0x49a   : > { %21456 = vmatprep.mubr.msk.f32.mxu0 %vm328_vm1, %v26607_v12 }
 0x49d   : > { %21457 = vmatmul.mubr.msk.f32.gmra.mrb[58].mxu0 %vm328_vm1, %v26615_v32  ;;  %v28459_v32 = vld [vmem:[#allocation48_spill] sm:$0xff] }
 0x49e   : > { %21459 = vmatprep.mubr.msk.f32.mxu0 %vm328_vm1, %v26619_v7 }
 0x4a1   : > { %21460 = vmatmul.mubr.msk.f32.gmra.mrb[60].mxu0 %vm328_vm1, %v26627_v1  ;;  %v18274_v1 = vld [vmem:[%s23195_s8 + $0x4f0] sm:$0xff] }
 0x4a2   : > { %21462 = vmatprep.mubr.msk.f32.mxu0 %vm328_vm1, %v26631_v54 }
 0x4a5   : > { %21463 = vmatmul.mubr.msk.f32.gmra.mrb[62].mxu0 %vm328_vm1, %v26639_v51  ;;  %v18275_v51 = vld [vmem:[%s23195_s8 + $0x4f8] sm:$0xff] }
 0x4a6   : > { %21465 = vmatprep.mubr.msk.f32.mxu0 %vm328_vm1, %v26643_v58 }
 0x4a9   : > { %21466 = vmatmul.mubr.msk.f32.gmra.mrb[64].mxu0 %vm328_vm1, %v26651_v19  ;;  %v28463_v19 = vld [vmem:[#allocation53_spill] sm:$0xff] }
 0x4aa   : > { %21468 = vmatprep.mubr.msk.f32.mxu0 %vm328_vm1, %v26655_v37 }
 0x4ad   : > { %21469 = vmatmul.mubr.msk.f32.gmra.mrb[66].mxu0 %vm328_vm1, %v28459_v32 }
 0x4ae   : > { %21471 = vmatprep.mubr.msk.f32.mxu0 %vm328_vm1, %v28460_v38 }
 0x4b1   : > { %21472 = vmatmul.mubr.msk.f32.gmra.mrb[68].mxu0 %vm328_vm1, %v28461_v50  ;;  %v28498_v50 = vld [vmem:[#allocation58_spill] sm:$0xff] }
 0x4b2   : > { %21474 = vmatprep.mubr.msk.f32.mxu0 %vm328_vm1, %v18274_v1 }
 0x4b5   : > { %21475 = vmatmul.mubr.msk.f32.gmra.mrb[70].mxu0 %vm328_vm1, %v18275_v51 }
 0x4b6   : > { %21479 = vmatprep.mubr.msk.f32.mxu0 %vm328_vm1, %v28462_v8 }
 0x4b9   : > { %21480 = vmatmul.mubr.msk.f32.vlgmr.msra.gmra.mrb[36].mxu0 %vm328_vm1, %v28463_v19  ;;  %v28499_v19 = vld [vmem:[#allocation59_spill] sm:$0xff] }
 0x4ba   : > { %21482 = vmatprep.mubr.msk.f32.mxu0 %vm328_vm1, %v28464_v25 }
 0x4bd   : > { %21483 = vmatmul.mubr.msk.f32.gmra.mrb[38].mxu0 %vm328_vm1, %v28465_v49 }
 0x4be   : > { %21485 = vmatprep.mubr.msk.f32.mxu0 %vm328_vm1, %v28466_v61 }
 0x4c1   : > { %21486 = vmatmul.mubr.msk.f32.gmra.mrb[40].mxu0 %vm328_vm1, %v28467_v13 }
 0x4c2   : > { %21488 = vmatprep.mubr.msk.f32.mxu0 %vm328_vm1, %v28468_v59 }
 0x4c5   : > { %21489 = vmatmul.mubr.msk.f32.gmra.mrb[42].mxu0 %vm328_vm1, %v28469_v17 }
 0x4c6   : > { %21491 = vmatprep.mubr.msk.f32.mxu0 %vm328_vm1, %v28470_v53 }
 0x4c9   : > { %21492 = vmatmul.mubr.msk.f32.gmra.mrb[44].mxu0 %vm328_vm1, %v28471_v20 }
 0x4ca   : > { %21494 = vmatprep.mubr.msk.f32.mxu0 %vm328_vm1, %v28472_v9  ;;  %v28500_v9 = vld [vmem:[#allocation60_spill] sm:$0xff] }
 0x4cd   : > { %21495 = vmatmul.mubr.msk.f32.gmra.mrb[46].mxu0 %vm328_vm1, %v28473_v43 }
 0x4ce   : > { %21497 = vmatprep.mubr.msk.f32.mxu0 %vm328_vm1, %v28474_v52 }
 0x4d1   : > { %21498 = vmatmul.mubr.msk.f32.gmra.mrb[48].mxu0 %vm328_vm1, %v28475_v46  ;;  %v28501_v46 = vld [vmem:[#allocation61_spill] sm:$0xff] }
 0x4d2   : > { %21500 = vmatprep.mubr.msk.f32.mxu0 %vm328_vm1, %v28476_v56 }
 0x4d5   : > { %21501 = vmatmul.mubr.msk.f32.gmra.mrb[50].mxu0 %vm328_vm1, %v28477_v34 }
 0x4d6   : > { %21503 = vmatprep.mubr.msk.f32.mxu0 %vm328_vm1, %v28478_v24 }
 0x4d9   : > { %21504 = vmatmul.mubr.msk.f32.gmra.mrb[52].mxu0 %vm328_vm1, %v28479_v4 }
 0x4da   : > { %21506 = vmatprep.mubr.msk.f32.mxu0 %vm328_vm1, %v28480_v60 }
 0x4dd   : > { %21507 = vmatmul.mubr.msk.f32.gmra.mrb[54].mxu0 %vm328_vm1, %v28481_v36 }
 0x4de   : > { %21509 = vmatprep.mubr.msk.f32.mxu0 %vm328_vm1, %v28482_v15 }
 0x4e1   : > { %21510 = vmatmul.mubr.msk.f32.gmra.mrb[56].mxu0 %vm328_vm1, %v28483_v42 }
 0x4e2   : > { %21512 = vmatprep.mubr.msk.f32.mxu0 %vm328_vm1, %v28484_v11 }
 0x4e5   : > { %21513 = vmatmul.mubr.msk.f32.gmra.mrb[58].mxu0 %vm328_vm1, %v28485_v27 }
 0x4e6   : > { %21515 = vmatprep.mubr.msk.f32.mxu0 %vm328_vm1, %v28486_v41  ;;  %v27129_v41 = vld [vmem:[%s27968_s4 + $0x20] sm:$0xff] }
 0x4e9   : > { %21516 = vmatmul.mubr.msk.f32.gmra.mrb[60].mxu0 %vm328_vm1, %v28487_v2  ;;  %v28502_v2 = vld [vmem:[#allocation62_spill] sm:$0xff] }
 0x4ea   : > { %21518 = vmatprep.mubr.msk.f32.mxu0 %vm328_vm1, %v28488_v0 }
 0x4ed   : > { %21519 = vmatmul.mubr.msk.f32.gmra.mrb[62].mxu0 %vm328_vm1, %v28489_v55 }
 0x4ee   : > { %21521 = vmatprep.mubr.msk.f32.mxu0 %vm328_vm1, %v28490_v29  ;;  %v28503_v29 = vld [vmem:[#allocation63_spill] sm:$0xff] }
 0x4f1   : > { %21522 = vmatmul.mubr.msk.f32.gmra.mrb[64].mxu0 %vm328_vm1, %v28491_v3 }
 0x4f2   : > { %21524 = vmatprep.mubr.msk.f32.mxu0 %vm328_vm1, %v28492_v26 }
 0x4f5   : > { %21525 = vmatmul.mubr.msk.f32.gmra.mrb[66].mxu0 %vm328_vm1, %v28493_v16 }
 0x4f6   : > { %21527 = vmatprep.mubr.msk.f32.mxu0 %vm328_vm1, %v28494_v48 }
 0x4f9   : > { %21528 = vmatmul.mubr.msk.f32.gmra.mrb[68].mxu0 %vm328_vm1, %v28495_v39 }
 0x4fa   : > { %21530 = vmatprep.mubr.msk.f32.mxu0 %vm328_vm1, %v18348_v45 }
 0x4fd   : > { %21531 = vmatmul.mubr.msk.f32.gmra.mrb[70].mxu0 %vm328_vm1, %v18349_v33 }
 0x58c   : > { %v21481_v63 = vpop.f32.mrb[36].mxu0 }
 0x58d   : > { %v12450_v23 = vadd.f32 %v21481_v63, %v27101_v30  ;;  %v12227_v57 = vpop.f32.mrb[37].mxu0 }
 0x58e   : > { %v12449_v14 = vadd.f32 %v27101_v30, %v12227_v57  ;;  %v28504_v57 = vld [vmem:[#allocation64_spill] sm:$0xff] }
 0x58f   : > { %v12486_v44 = vmul.f32 0.02, %v12450_v23 }
 0x590   : > { %v12485_v35 = vmul.f32 0.02, %v12449_v14  ;;  %v21484_v47 = vpop.f32.mrb[38].mxu0 }
 0x591   : > { %v12522_v12 = vmax.f32 %v12450_v23, %v12486_v44  ;;  %v12452_v7 = vadd.f32 %v21484_v47, %v27101_v30  ;;  %v12237_v54 = vpop.f32.mrb[39].mxu0 }
 0x592   : > { %v12521_v58 = vmax.f32 %v12449_v14, %v12485_v35  ;;  %v12451_v37 = vadd.f32 %v27101_v30, %v12237_v54  ;;  %v28505_v35 = vld [vmem:[#allocation65_spill] sm:$0xff] }
 0x593   : > { %v12775_v10 = vmul.f32 %v28496_v5, %v12522_v12  ;;  %v12488_v40 = vmul.f32 0.02, %v12452_v7 }
 0x594   : > { %v12774_v6 = vmul.f32 %v28497_v18, %v12521_v58  ;;  %v12487_v22 = vmul.f32 0.02, %v12451_v37  ;;  %v21487_v62 = vpop.f32.mrb[40].mxu0 }
 0x595   : > { %12812 = vst.msk [vmem:[#allocation2 + $0x248] sm:$0xff] %vm4420_vm2, %v12775_v10  ;;  %v12524_v28 = vmax.f32 %v12452_v7, %v12488_v40  ;;  %v12454_v21 = vadd.f32 %v21487_v62, %v27101_v30  ;;  %v12247_v32 = vpop.f32.mrb[41].mxu0 }
 0x596   : > { %12811 = vst.msk [vmem:[#allocation2 + $0x240] sm:$0xff] %vm4420_vm2, %v12774_v6  ;;  %v12523_v38 = vmax.f32 %v12451_v37, %v12487_v22  ;;  %v12453_v1 = vadd.f32 %v27101_v30, %v12247_v32  ;;  %v28506_v6 = vld [vmem:[#allocation66_spill] sm:$0xff] }
 0x597   : > { %v12777_v51 = vmul.f32 %v28498_v50, %v12524_v28  ;;  %v12490_v8 = vmul.f32 0.02, %v12454_v21  ;;  %v28507_v28 = vld [vmem:[#allocation67_spill] sm:$0xff] }
 0x598   : > { %v12776_v25 = vmul.f32 %v28499_v19, %v12523_v38  ;;  %v12489_v49 = vmul.f32 0.02, %v12453_v1  ;;  %v21490_v61 = vpop.f32.mrb[42].mxu0 }
 0x599   : > { %12814 = vst.msk [vmem:[#allocation2 + $0x258] sm:$0xff] %vm4420_vm2, %v12777_v51  ;;  %v12526_v13 = vmax.f32 %v12454_v21, %v12490_v8  ;;  %v12456_v59 = vadd.f32 %v21490_v61, %v27101_v30  ;;  %v12257_v17 = vpop.f32.mrb[43].mxu0  ;;  %v28508_v61 = vld [vmem:[#allocation68_spill] sm:$0xff] }
 0x59a   : > { %12813 = vst.msk [vmem:[#allocation2 + $0x250] sm:$0xff] %vm4420_vm2, %v12776_v25  ;;  %v12525_v53 = vmax.f32 %v12453_v1, %v12489_v49  ;;  %v12455_v20 = vadd.f32 %v27101_v30, %v12257_v17  ;;  %v28509_v17 = vld [vmem:[#allocation69_spill] sm:$0xff] }
 0x59b   : > { %v12779_v43 = vmul.f32 %v28500_v9, %v12526_v13  ;;  %v12492_v52 = vmul.f32 0.02, %v12456_v59 }
 0x59c   : > { %v12778_v56 = vmul.f32 %v28501_v46, %v12525_v53  ;;  %v12491_v34 = vmul.f32 0.02, %v12455_v20  ;;  %v21493_v24 = vpop.f32.mrb[44].mxu0  ;;  %v13557_v27 = vld [vmem:[#allocation2 + $0x248] sm:$0xff] }
 0x59d   : > { %12816 = vst.msk [vmem:[#allocation2 + $0x268] sm:$0xff] %vm4420_vm2, %v12779_v43  ;;  %v12528_v4 = vmax.f32 %v12456_v59, %v12492_v52  ;;  %v12458_v60 = vadd.f32 %v21493_v24, %v27101_v30  ;;  %v12267_v36 = vpop.f32.mrb[45].mxu0  ;;  %v13556_v15 = vld [vmem:[#allocation2 + $0x240] sm:$0xff] }
 0x59e   : > { %12815 = vst.msk [vmem:[#allocation2 + $0x260] sm:$0xff] %vm4420_vm2, %v12778_v56  ;;  %v12527_v42 = vmax.f32 %v12455_v20, %v12491_v34  ;;  %v12457_v11 = vadd.f32 %v27101_v30, %v12267_v36  ;;  %21635 = vmatprep.mubr.msk.f32.mxu1 %vm4420_vm2, %v13556_v15 }
 0x59f   : > { %v12781_v0 = vmul.f32 %v28502_v2, %v12528_v4  ;;  %v12494_v55 = vmul.f32 0.02, %v12458_v60  ;;  %21636 = vmatmul.mubr.msk.f32.vlgmr.msra.gmra.mrb[54].mxu1 %vm4420_vm2, %v13557_v27 }
 0x5a0   : > { %v12780_v3 = vmul.f32 %v28503_v29, %v12527_v42  ;;  %v12493_v26 = vmul.f32 0.02, %v12457_v11  ;;  %21684 = vmatpush3.msra.mxu1 %v18523_v31  ;;  %v21496_v16 = vpop.f32.mrb[46].mxu0  ;;  %v27143_v31 = vld [vmem:[#allocation2 + $0x258] sm:$0xff]  ;;  %v28511_v42 = vld [vmem:[#allocation71_spill] sm:$0xff] }
 0x5a1   : > { %12818 = vst.msk [vmem:[#allocation2 + $0x278] sm:$0xff] %vm4420_vm2, %v12781_v0  ;;  %v12530_v48 = vmax.f32 %v12458_v60, %v12494_v55  ;;  %v12460_v45 = vadd.f32 %v21496_v16, %v27101_v30  ;;  %v12277_v39 = vpop.f32.mrb[47].mxu0  ;;  %v27136_v33 = vld [vmem:[#allocation2 + $0x250] sm:$0xff]  ;;  %21733 = vmatprep.subr.mxu1 %v27129_v41  ;;  %v28510_v60 = vld [vmem:[#allocation70_spill] sm:$0xff] }
 0x5a2   : > { %12817 = vst.msk [vmem:[#allocation2 + $0x270] sm:$0xff] %vm4420_vm2, %v12780_v3  ;;  %v12529_v63 = vmax.f32 %v12457_v11, %v12493_v26  ;;  %v12459_v23 = vadd.f32 %v27101_v30, %v12277_v39  ;;  %21638 = vmatprep.mubr.msk.f32.mxu1 %vm4420_vm2, %v27136_v33 }
 0x5a3   : > { %v12783_v14 = vmul.f32 %v28504_v57, %v12530_v48  ;;  %v12496_v44 = vmul.f32 0.02, %v12460_v45  ;;  %21639 = vmatmul.mubr.msk.f32.gmra.mrb[56].mxu1 %vm4420_vm2, %v27143_v31 }
 0x5a4   : > { %v12782_v47 = vmul.f32 %v28505_v35, %v12529_v63  ;;  %v12495_v12 = vmul.f32 0.02, %v12459_v23  ;;  %v21499_v7 = vpop.f32.mrb[48].mxu0  ;;  %v27157_v18 = vld [vmem:[#allocation2 + $0x268] sm:$0xff] }
 0x5a5   : > { %12820 = vst.msk [vmem:[#allocation2 + $0x288] sm:$0xff] %vm4420_vm2, %v12783_v14  ;;  %v12532_v54 = vmax.f32 %v12460_v45, %v12496_v44  ;;  %v12462_v58 = vadd.f32 %v21499_v7, %v27101_v30  ;;  %v12287_v37 = vpop.f32.mrb[49].mxu0  ;;  %v27151_v5 = vld [vmem:[#allocation2 + $0x260] sm:$0xff]  ;;  %v28512_v45 = vld [vmem:[#allocation72_spill] sm:$0xff] }
 0x5a6   : > { %12819 = vst.msk [vmem:[#allocation2 + $0x280] sm:$0xff] %vm4420_vm2, %v12782_v47  ;;  %v12531_v10 = vmax.f32 %v12459_v23, %v12495_v12  ;;  %v12461_v40 = vadd.f32 %v27101_v30, %v12287_v37  ;;  %21641 = vmatprep.mubr.msk.f32.mxu1 %vm4420_vm2, %v27151_v5  ;;  %v28513_v23 = vld [vmem:[#allocation73_spill] sm:$0xff] }
 0x5a7   : > { %v12785_v22 = vmul.f32 %v28506_v6, %v12532_v54  ;;  %v12498_v62 = vmul.f32 0.02, %v12462_v58  ;;  %21642 = vmatmul.mubr.msk.f32.gmra.mrb[58].mxu1 %vm4420_vm2, %v27157_v18 }
 0x5a8   : > { %v12784_v21 = vmul.f32 %v28507_v28, %v12531_v10  ;;  %v12497_v32 = vmul.f32 0.02, %v12461_v40  ;;  %v21502_v38 = vpop.f32.mrb[50].mxu0  ;;  %v27171_v49 = vld [vmem:[#allocation2 + $0x278] sm:$0xff] }
 0x5a9   : > { %12822 = vst.msk [vmem:[#allocation2 + $0x298] sm:$0xff] %vm4420_vm2, %v12785_v22  ;;  %v12534_v1 = vmax.f32 %v12462_v58, %v12498_v62  ;;  %v12464_v50 = vadd.f32 %v21502_v38, %v27101_v30  ;;  %v12297_v51 = vpop.f32.mrb[51].mxu0  ;;  %v27165_v8 = vld [vmem:[#allocation2 + $0x270] sm:$0xff]  ;;  %v28514_v10 = vld [vmem:[#allocation74_spill] sm:$0xff]  ;;  %v28515_v22 = vld [vmem:[#allocation75_spill] sm:$0xff] }
 0x5aa   : > { %12821 = vst.msk [vmem:[#allocation2 + $0x290] sm:$0xff] %vm4420_vm2, %v12784_v21  ;;  %v12533_v19 = vmax.f32 %v12461_v40, %v12497_v32  ;;  %v12463_v25 = vadd.f32 %v27101_v30, %v12297_v51  ;;  %21644 = vmatprep.mubr.msk.f32.mxu1 %vm4420_vm2, %v27165_v8 }
 0x5ab   : > { %v12787_v13 = vmul.f32 %v28508_v61, %v12534_v1  ;;  %v12500_v59 = vmul.f32 0.02, %v12464_v50  ;;  %21645 = vmatmul.mubr.msk.f32.gmra.mrb[60].mxu1 %vm4420_vm2, %v27171_v49  ;;  %v28516_v61 = vld [vmem:[#allocation76_spill] sm:$0xff] }
 0x5ac   : > { %v12786_v53 = vmul.f32 %v28509_v17, %v12533_v19  ;;  %v12499_v20 = vmul.f32 0.02, %v12463_v25  ;;  %v21505_v9 = vpop.f32.mrb[52].mxu0  ;;  %v27185_v4 = vld [vmem:[#allocation2 + $0x288] sm:$0xff]  ;;  %v28517_v17 = vld [vmem:[#allocation77_spill] sm:$0xff] }
 0x5ad   : > { %12824 = vst.msk [vmem:[#allocation2 + $0x2a8] sm:$0xff] %vm4420_vm2, %v12787_v13  ;;  %v12536_v43 = vmax.f32 %v12464_v50, %v12500_v59  ;;  %v12466_v52 = vadd.f32 %v21505_v9, %v27101_v30  ;;  %v12307_v46 = vpop.f32.mrb[53].mxu0  ;;  %v27179_v56 = vld [vmem:[#allocation2 + $0x280] sm:$0xff] }
 0x5ae   : > { %12823 = vst.msk [vmem:[#allocation2 + $0x2a0] sm:$0xff] %vm4420_vm2, %v12786_v53  ;;  %v12535_v34 = vmax.f32 %v12463_v25, %v12499_v20  ;;  %v12465_v24 = vadd.f32 %v27101_v30, %v12307_v46  ;;  %21647 = vmatprep.mubr.msk.f32.mxu1 %vm4420_vm2, %v27179_v56 }
 0x5af   : > { %v12789_v36 = vmul.f32 %v28510_v60, %v12536_v43  ;;  %v12502_v15 = vmul.f32 0.02, %v12466_v52  ;;  %21648 = vmatmul.mubr.msk.f32.gmra.mrb[62].mxu1 %vm4420_vm2, %v27185_v4 }
 0x5b0   : > { %v12788_v11 = vmul.f32 %v28511_v42, %v12535_v34  ;;  %v12501_v27 = vmul.f32 0.02, %v12465_v24  ;;  %v21508_v2 = vpop.f32.mrb[54].mxu0  ;;  %v27199_v48 = vld [vmem:[#allocation2 + $0x298] sm:$0xff] }
 0x5b1   : > { %12826 = vst.msk [vmem:[#allocation2 + $0x2b8] sm:$0xff] %vm4420_vm2, %v12789_v36  ;;  %v12538_v0 = vmax.f32 %v12466_v52, %v12502_v15  ;;  %v12468_v55 = vadd.f32 %v21508_v2, %v27101_v30  ;;  %v12317_v29 = vpop.f32.mrb[55].mxu0  ;;  %v27193_v3 = vld [vmem:[#allocation2 + $0x290] sm:$0xff]  ;;  %v28518_v15 = vld [vmem:[#allocation78_spill] sm:$0xff] }
 0x5b2   : > { %12825 = vst.msk [vmem:[#allocation2 + $0x2b0] sm:$0xff] %vm4420_vm2, %v12788_v11  ;;  %v12537_v26 = vmax.f32 %v12465_v24, %v12501_v27  ;;  %v12467_v16 = vadd.f32 %v27101_v30, %v12317_v29  ;;  %21650 = vmatprep.mubr.msk.f32.mxu1 %vm4420_vm2, %v27193_v3  ;;  %v28519_v27 = vld [vmem:[#allocation79_spill] sm:$0xff] }
 0x5b3   : > { %v12791_v39 = vmul.f32 %v28512_v45, %v12538_v0  ;;  %v12504_v63 = vmul.f32 0.02, %v12468_v55  ;;  %21651 = vmatmul.mubr.msk.f32.gmra.mrb[64].mxu1 %vm4420_vm2, %v27199_v48 }
 0x5b4   : > { %v12790_v57 = vmul.f32 %v28513_v23, %v12537_v26  ;;  %v12503_v14 = vmul.f32 0.02, %v12467_v16  ;;  %v21511_v44 = vpop.f32.mrb[56].mxu0  ;;  %v27213_v37 = vld [vmem:[#allocation2 + $0x2a8] sm:$0xff] }
 0x5b5   : > { %12828 = vst.msk [vmem:[#allocation2 + $0x2c8] sm:$0xff] %vm4420_vm2, %v12791_v39  ;;  %v12540_v35 = vmax.f32 %v12468_v55, %v12504_v63  ;;  %v12470_v47 = vadd.f32 %v21511_v44, %v27101_v30  ;;  %v12327_v12 = vpop.f32.mrb[57].mxu0  ;;  %v27207_v7 = vld [vmem:[#allocation2 + $0x2a0] sm:$0xff] }
 0x5b6   : > { %12827 = vst.msk [vmem:[#allocation2 + $0x2c0] sm:$0xff] %vm4420_vm2, %v12790_v57  ;;  %v12539_v54 = vmax.f32 %v12467_v16, %v12503_v14  ;;  %v12469_v58 = vadd.f32 %v27101_v30, %v12327_v12  ;;  %21653 = vmatprep.mubr.msk.f32.mxu1 %vm4420_vm2, %v27207_v7  ;;  %v28520_v57 = vld [vmem:[#allocation80_spill] sm:$0xff] }
 0x5b7   : > { %v12793_v40 = vmul.f32 %v28514_v10, %v12540_v35  ;;  %v12506_v6 = vmul.f32 0.02, %v12470_v47  ;;  %21654 = vmatmul.mubr.msk.f32.gmra.mrb[66].mxu1 %vm4420_vm2, %v27213_v37  ;;  %v28521_v35 = vld [vmem:[#allocation81_spill] sm:$0xff] }
 0x5b8   : > { %v12792_v62 = vmul.f32 %v28515_v22, %v12539_v54  ;;  %v12505_v28 = vmul.f32 0.02, %v12469_v58  ;;  %v21514_v21 = vpop.f32.mrb[58].mxu0  ;;  %v27227_v25 = vld [vmem:[#allocation2 + $0x2b8] sm:$0xff] }
 0x5b9   : > { %12830 = vst.msk [vmem:[#allocation2 + $0x2d8] sm:$0xff] %vm4420_vm2, %v12793_v40  ;;  %v12542_v32 = vmax.f32 %v12470_v47, %v12506_v6  ;;  %v12472_v38 = vadd.f32 %v21514_v21, %v27101_v30  ;;  %v12337_v1 = vpop.f32.mrb[59].mxu0  ;;  %v27221_v50 = vld [vmem:[#allocation2 + $0x2b0] sm:$0xff]  ;;  %v28522_v21 = vld [vmem:[#allocation82_spill] sm:$0xff] }
 0x5ba   : > { %12829 = vst.msk [vmem:[#allocation2 + $0x2d0] sm:$0xff] %vm4420_vm2, %v12792_v62  ;;  %v12541_v51 = vmax.f32 %v12469_v58, %v12505_v28  ;;  %v12471_v19 = vadd.f32 %v27101_v30, %v12337_v1  ;;  %21656 = vmatprep.mubr.msk.f32.mxu1 %vm4420_vm2, %v27221_v50  ;;  %v28523_v1 = vld [vmem:[#allocation83_spill] sm:$0xff] }
 0x5bb   : > { %v12795_v13 = vmul.f32 %v28516_v61, %v12542_v32  ;;  %v12508_v59 = vmul.f32 0.02, %v12472_v38  ;;  %21657 = vmatmul.mubr.msk.f32.gmra.mrb[68].mxu1 %vm4420_vm2, %v27227_v25 }
 0x5bc   : > { %v12794_v53 = vmul.f32 %v28517_v17, %v12541_v51  ;;  %v12507_v20 = vmul.f32 0.02, %v12471_v19  ;;  %v21517_v9 = vpop.f32.mrb[60].mxu0  ;;  %v27241_v36 = vld [vmem:[#allocation2 + $0x2c8] sm:$0xff] }
 0x5bd   : > { %12832 = vst.msk [vmem:[#allocation2 + $0x2e8] sm:$0xff] %vm4420_vm2, %v12795_v13  ;;  %v12544_v43 = vmax.f32 %v12472_v38, %v12508_v59  ;;  %v12474_v52 = vadd.f32 %v21517_v9, %v27101_v30  ;;  %v12347_v46 = vpop.f32.mrb[61].mxu0  ;;  %v27235_v34 = vld [vmem:[#allocation2 + $0x2c0] sm:$0xff] }
 0x5be   : > { %12831 = vst.msk [vmem:[#allocation2 + $0x2e0] sm:$0xff] %vm4420_vm2, %v12794_v53  ;;  %v12543_v24 = vmax.f32 %v12471_v19, %v12507_v20  ;;  %v12473_v60 = vadd.f32 %v27101_v30, %v12347_v46  ;;  %21659 = vmatprep.mubr.msk.f32.mxu1 %vm4420_vm2, %v27235_v34 }
 0x5bf   : > { %v12797_v42 = vmul.f32 %v28518_v15, %v12544_v43  ;;  %v12510_v11 = vmul.f32 0.02, %v12474_v52  ;;  %21660 = vmatmul.mubr.msk.f32.gmra.mrb[70].mxu1 %vm4420_vm2, %v27241_v36 }
 0x5c0   : > { %v12796_v2 = vmul.f32 %v28519_v27, %v12543_v24  ;;  %v12509_v0 = vmul.f32 0.02, %v12473_v60  ;;  %v21520_v55 = vpop.f32.mrb[62].mxu0  ;;  %v27255_v23 = vld [vmem:[#allocation2 + $0x2d8] sm:$0xff] }
 0x5c1   : > { %12834 = vst.msk [vmem:[#allocation2 + $0x2f8] sm:$0xff] %vm4420_vm2, %v12797_v42  ;;  %v12546_v29 = vmax.f32 %v12474_v52, %v12510_v11  ;;  %v12476_v26 = vadd.f32 %v21520_v55, %v27101_v30  ;;  %v12357_v16 = vpop.f32.mrb[63].mxu0  ;;  %v27249_v45 = vld [vmem:[#allocation2 + $0x2d0] sm:$0xff]  ;;  %v28524_v52 = vld [vmem:[#allocation84_spill] sm:$0xff] }
 0x5c2   : > { %12833 = vst.msk [vmem:[#allocation2 + $0x2f0] sm:$0xff] %vm4420_vm2, %v12796_v2  ;;  %v12545_v39 = vmax.f32 %v12473_v60, %v12509_v0  ;;  %v12475_v63 = vadd.f32 %v27101_v30, %v12357_v16  ;;  %21662 = vmatprep.mubr.msk.f32.mxu1 %vm4420_vm2, %v27249_v45  ;;  %v28525_v60 = vld [vmem:[#allocation85_spill] sm:$0xff] }
 0x5c3   : > { %v12799_v14 = vmul.f32 %v28520_v57, %v12546_v29  ;;  %v12512_v44 = vmul.f32 0.02, %v12476_v26  ;;  %21663 = vmatmul.mubr.msk.f32.gmra.mrb[72].mxu1 %vm4420_vm2, %v27255_v23 }
 0x5c4   : > { %v12798_v47 = vmul.f32 %v28521_v35, %v12545_v39  ;;  %v12511_v12 = vmul.f32 0.02, %v12475_v63  ;;  %v21523_v54 = vpop.f32.mrb[64].mxu0  ;;  %v27269_v28 = vld [vmem:[#allocation2 + $0x2e8] sm:$0xff]  ;;  %v28526_v39 = vld [vmem:[#allocation86_spill] sm:$0xff] }
 0x5c5   : > { %12836 = vst.msk [vmem:[#allocation2 + $0x308] sm:$0xff] %vm4420_vm2, %v12799_v14  ;;  %v12548_v58 = vmax.f32 %v12476_v26, %v12512_v44  ;;  %v12478_v10 = vadd.f32 %v21523_v54, %v27101_v30  ;;  %v12367_v40 = vpop.f32.mrb[65].mxu0  ;;  %v27263_v6 = vld [vmem:[#allocation2 + $0x2e0] sm:$0xff] }
 0x5c6   : > { %12835 = vst.msk [vmem:[#allocation2 + $0x300] sm:$0xff] %vm4420_vm2, %v12798_v47  ;;  %v12547_v22 = vmax.f32 %v12475_v63, %v12511_v12  ;;  %v12477_v62 = vadd.f32 %v27101_v30, %v12367_v40  ;;  %21665 = vmatprep.mubr.msk.f32.mxu1 %vm4420_vm2, %v27263_v6  ;;  %v28527_v14 = vld [vmem:[#allocation87_spill] sm:$0xff] }
 0x5c7   : > { %v12801_v32 = vmul.f32 %v28522_v21, %v12548_v58  ;;  %v12514_v38 = vmul.f32 0.02, %v12478_v10  ;;  %21666 = vmatmul.mubr.msk.f32.gmra.mrb[74].mxu1 %vm4420_vm2, %v27269_v28  ;;  %v28528_v21 = vld [vmem:[#allocation22_spill] sm:$0xff] }
 0x5c8   : > { %v12800_v51 = vmul.f32 %v28523_v1, %v12547_v22  ;;  %v12513_v19 = vmul.f32 0.02, %v12477_v62  ;;  %v21526_v61 = vpop.f32.mrb[66].mxu0  ;;  %v27283_v43 = vld [vmem:[#allocation2 + $0x2f8] sm:$0xff]  ;;  %v28529_v1 = vld [vmem:[#allocation35_spill] sm:$0xff] }
 0x5c9   : > { %12838 = vst.msk [vmem:[#allocation2 + $0x318] sm:$0xff] %vm4420_vm2, %v12801_v32  ;;  %v12550_v13 = vmax.f32 %v12478_v10, %v12514_v38  ;;  %v12480_v59 = vadd.f32 %v21526_v61, %v27101_v30  ;;  %v12377_v17 = vpop.f32.mrb[67].mxu0  ;;  %v27277_v53 = vld [vmem:[#allocation2 + $0x2f0] sm:$0xff] }
 0x5ca   : > { %12837 = vst.msk [vmem:[#allocation2 + $0x310] sm:$0xff] %vm4420_vm2, %v12800_v51  ;;  %v12549_v20 = vmax.f32 %v12477_v62, %v12513_v19  ;;  %v12479_v9 = vadd.f32 %v27101_v30, %v12377_v17  ;;  %21668 = vmatprep.mubr.msk.f32.mxu1 %vm4420_vm2, %v27277_v53 }
 0x5cb   : > { %v12803_v46 = vmul.f32 %v28524_v52, %v12550_v13  ;;  %v12516_v24 = vmul.f32 0.02, %v12480_v59  ;;  %21669 = vmatmul.mubr.msk.f32.gmra.mrb[76].mxu1 %vm4420_vm2, %v27283_v43 }
 0x5cc   : > { %v12802_v15 = vmul.f32 %v28525_v60, %v12549_v20  ;;  %v12515_v42 = vmul.f32 0.02, %v12479_v9  ;;  %v21529_v11 = vpop.f32.mrb[68].mxu0  ;;  %v27297_v16 = vld [vmem:[#allocation2 + $0x308] sm:$0xff]  ;;  %v12767_v20 = vpop.permute.xlu0 %12766  ;;  %v13943_v60 = vld [vmem:[#allocation2 + $0x10] sm:$0xff] }
 0x5cd   : > { %12840 = vst.msk [vmem:[#allocation2 + $0x328] sm:$0xff] %vm4420_vm2, %v12803_v46  ;;  %v12552_v27 = vmax.f32 %v12480_v59, %v12516_v24  ;;  %v12482_v2 = vadd.f32 %v21529_v11, %v27101_v30  ;;  %v12387_v0 = vpop.f32.mrb[69].mxu0  ;;  %v27291_v55 = vld [vmem:[#allocation2 + $0x300] sm:$0xff] }
 0x5ce   : > { %12839 = vst.msk [vmem:[#allocation2 + $0x320] sm:$0xff] %vm4420_vm2, %v12802_v15  ;;  %v12551_v29 = vmax.f32 %v12479_v9, %v12515_v42  ;;  %v12481_v26 = vadd.f32 %v27101_v30, %v12387_v0  ;;  %21671 = vmatprep.mubr.msk.f32.mxu1 %vm4420_vm2, %v27291_v55  ;;  %v13944_v15 = vld [vmem:[#allocation2 + $0x18] sm:$0xff]  ;;  %v27341_v42 = vld [vmem:[%s27968_s4 + $0x28] sm:$0xff]  ;;  %v27344_v11 = vld [vmem:[#allocation2 + $0x20] sm:$0xff] }
 0x5cf   : > { %v12805_v63 = vmul.f32 %v28526_v39, %v12552_v27  ;;  %v12518_v57 = vmul.f32 0.02, %v12482_v2  ;;  %21672 = vmatmul.mubr.msk.f32.gmra.mrb[78].mxu1 %vm4420_vm2, %v27297_v16  ;;  %v27350_v27 = vld [vmem:[#allocation2 + $0x28] sm:$0xff]  ;;  %v27358_v0 = vld [vmem:[#allocation2 + $0x38] sm:$0xff] }
 0x5d0   : > { %v12804_v44 = vmul.f32 %v28527_v14, %v12551_v29  ;;  %v12517_v35 = vmul.f32 0.02, %v12481_v26  ;;  %v21532_v47 = vpop.f32.mrb[70].mxu0  ;;  %v27311_v62 = vld [vmem:[#allocation2 + $0x318] sm:$0xff]  ;;  %v27366_v29 = vld [vmem:[#allocation2 + $0x48] sm:$0xff]  ;;  %v27386_v14 = vld [vmem:[#allocation2 + $0x70] sm:$0xff] }
 0x5d1   : > { %12842 = vst.msk [vmem:[#allocation2 + $0x338] sm:$0xff] %vm4420_vm2, %v12805_v63  ;;  %v12554_v12 = vmax.f32 %v12482_v2, %v12518_v57  ;;  %v12484_v54 = vadd.f32 %v21532_v47, %v27101_v30  ;;  %v12397_v58 = vpop.f32.mrb[71].mxu0  ;;  %v27305_v10 = vld [vmem:[#allocation2 + $0x310] sm:$0xff]  ;;  %v27374_v39 = vld [vmem:[#allocation2 + $0x58] sm:$0xff]  ;;  %v27378_v63 = vld [vmem:[#allocation2 + $0x60] sm:$0xff] }
 0x5d2   : > { %12841 = vst.msk [vmem:[#allocation2 + $0x330] sm:$0xff] %vm4420_vm2, %v12804_v44  ;;  %v12553_v40 = vmax.f32 %v12481_v26, %v12517_v35  ;;  %v12483_v22 = vadd.f32 %v27101_v30, %v12397_v58  ;;  %21674 = vmatprep.mubr.msk.f32.mxu1 %vm4420_vm2, %v27305_v10  ;;  %v12772_v30 = vpop.permute.xlu1 %12771  ;;  %v27354_v2 = vld [vmem:[#allocation2 + $0x30] sm:$0xff]  ;;  %v27382_v57 = vld [vmem:[#allocation2 + $0x68] sm:$0xff]  ;;  %v27390_v44 = vld [vmem:[#allocation2 + $0x78] sm:$0xff] }
 0x5d3   : > { %v12807_v32 = vmul.f32 %v28528_v21, %v12554_v12  ;;  %v12520_v38 = vmul.f32 0.02, %v12484_v54  ;;  %21675 = vmatmul.mubr.msk.f32.gmra.mrb[80].mxu1 %vm4420_vm2, %v27311_v62  ;;  %v27370_v26 = vld [vmem:[#allocation2 + $0x50] sm:$0xff]  ;;  %v27394_v35 = vld [vmem:[#allocation2 + $0x80] sm:$0xff]  ;;  %v27398_v47 = vld [vmem:[#allocation2 + $0x88] sm:$0xff] }
 0x5d4   : > { %v12806_v51 = vmul.f32 %v28529_v1, %v12553_v40  ;;  %v12519_v19 = vmul.f32 0.02, %v12483_v22  ;;  %v27323_v17 = vld [vmem:[#allocation2 + $0x328] sm:$0xff]  ;;  %v27402_v12 = vld [vmem:[#allocation2 + $0x90] sm:$0xff]  ;;  %v27410_v58 = vld [vmem:[#allocation2 + $0xa0] sm:$0xff] }
 0x5d5   : > { %12844 = vst.msk [vmem:[#allocation2 + $0x348] sm:$0xff] %vm4420_vm2, %v12807_v32  ;;  %v12556_v61 = vmax.f32 %v12484_v54, %v12520_v38  ;;  %v27318_v13 = vld [vmem:[#allocation2 + $0x320] sm:$0xff]  ;;  %v27406_v54 = vld [vmem:[#allocation2 + $0x98] sm:$0xff]  ;;  %v27414_v40 = vld [vmem:[#allocation2 + $0xa8] sm:$0xff] }
 0x5d6   : > { %12843 = vst.msk [vmem:[#allocation2 + $0x340] sm:$0xff] %vm4420_vm2, %v12806_v51  ;;  %v12555_v59 = vmax.f32 %v12483_v22, %v12519_v19  ;;  %21677 = vmatprep.mubr.msk.f32.mxu1 %vm4420_vm2, %v27318_v13  ;;  %v27418_v22 = vld [vmem:[#allocation2 + $0xb0] sm:$0xff]  ;;  %v27422_v21 = vld [vmem:[#allocation2 + $0xb8] sm:$0xff]  ;;  %v27426_v32 = vld [vmem:[#allocation2 + $0xc0] sm:$0xff] }
 0x5d7   : > { %v12809_v9 = vmul.f32 %v12772_v30, %v12556_v61  ;;  %21678 = vmatmul.mubr.msk.f32.gmra.mrb[82].mxu1 %vm4420_vm2, %v27323_v17  ;;  %v27430_v38 = vld [vmem:[#allocation2 + $0xc8] sm:$0xff]  ;;  %v27434_v1 = vld [vmem:[#allocation2 + $0xd0] sm:$0xff]  ;;  %v27438_v51 = vld [vmem:[#allocation2 + $0xd8] sm:$0xff] }
 0x5d8   : > { %v12808_v52 = vmul.f32 %v12767_v20, %v12555_v59  ;;  %v27333_v24 = vld [vmem:[#allocation2 + $0x338] sm:$0xff]  ;;  %v27442_v19 = vld [vmem:[#allocation2 + $0xe0] sm:$0xff]  ;;  %v27446_v61 = vld [vmem:[#allocation2 + $0xe8] sm:$0xff] }
 0x5d9   : > { %12846 = vst.msk [vmem:[#allocation2 + $0x358] sm:$0xff] %vm4420_vm2, %v12809_v9  ;;  %v27328_v46 = vld [vmem:[#allocation2 + $0x330] sm:$0xff]  ;;  %v27454_v59 = vld [vmem:[#allocation2 + $0xf8] sm:$0xff]  ;;  %v27458_v20 = vld [vmem:[#allocation2 + $0x100] sm:$0xff] }
 0x5da   : > { %12845 = vst.msk [vmem:[#allocation2 + $0x350] sm:$0xff] %vm4420_vm2, %v12808_v52  ;;  %21680 = vmatprep.mubr.msk.f32.mxu1 %vm4420_vm2, %v27328_v46  ;;  %v27450_v30 = vld [vmem:[#allocation2 + $0xf0] sm:$0xff]  ;;  %28530 = vst [vmem:[#allocation7_spill] sm:$0xff] %v27454_v59  ;;  %v27462_v9 = vld [vmem:[#allocation2 + $0x108] sm:$0xff] }
 0x5db   : > { %21681 = vmatmul.mubr.msk.f32.gmra.mrb[84].mxu1 %vm4420_vm2, %v27333_v24  ;;  %28531 = vst [vmem:[#allocation8_spill] sm:$0xff] %v27462_v9  ;;  %v14330_v52 = vld [vmem:[#allocation2 + $0x130] sm:$0xff] }
 0x5dc   : > { %21685 = vmatprep.mubr.msk.f32.mxu1 %vm4420_vm2, %v13943_v60  ;;  %v14331_v60 = vld [vmem:[#allocation2 + $0x138] sm:$0xff] }
 0x5df   : > { %21686 = vmatmul.mubr.msk.f32.vlgmr.msra.gmra.mrb[54].mxu1 %vm4420_vm2, %v13944_v15  ;;  %v27470_v15 = vld [vmem:[%s27968_s4 + $0x30] sm:$0xff] }
 0x5e0   : > { %21734 = vmatpush3.msra.mxu1 %v27129_v41  ;;  %21688 = vmatprep.mubr.msk.f32.mxu1 %vm4420_vm2, %v27344_v11  ;;  %v27362_v41 = vld [vmem:[#allocation2 + $0x40] sm:$0xff] }
 0x5e1   : > { %21783 = vmatprep.subr.mxu1 %v27341_v42 }
 0x5e3   : > { %21689 = vmatmul.mubr.msk.f32.gmra.mrb[56].mxu1 %vm4420_vm2, %v27350_v27 }
 0x5e4   : > { %21691 = vmatprep.mubr.msk.f32.mxu1 %vm4420_vm2, %v27354_v2 }
 0x5e7   : > { %21692 = vmatmul.mubr.msk.f32.gmra.mrb[58].mxu1 %vm4420_vm2, %v27358_v0 }
 0x5e8   : > { %21694 = vmatprep.mubr.msk.f32.mxu1 %vm4420_vm2, %v27362_v41 }
 0x5eb   : > { %21695 = vmatmul.mubr.msk.f32.gmra.mrb[60].mxu1 %vm4420_vm2, %v27366_v29 }
 0x5ec   : > { %21697 = vmatprep.mubr.msk.f32.mxu1 %vm4420_vm2, %v27370_v26 }
 0x5ef   : > { %21698 = vmatmul.mubr.msk.f32.gmra.mrb[62].mxu1 %vm4420_vm2, %v27374_v39 }
 0x5f0   : > { %21700 = vmatprep.mubr.msk.f32.mxu1 %vm4420_vm2, %v27378_v63 }
 0x5f3   : > { %21701 = vmatmul.mubr.msk.f32.gmra.mrb[64].mxu1 %vm4420_vm2, %v27382_v57 }
 0x5f4   : > { %21703 = vmatprep.mubr.msk.f32.mxu1 %vm4420_vm2, %v27386_v14 }
 0x5f7   : > { %21704 = vmatmul.mubr.msk.f32.gmra.mrb[66].mxu1 %vm4420_vm2, %v27390_v44 }
 0x5f8   : > { %21706 = vmatprep.mubr.msk.f32.mxu1 %vm4420_vm2, %v27394_v35 }
 0x5fb   : > { %21707 = vmatmul.mubr.msk.f32.gmra.mrb[68].mxu1 %vm4420_vm2, %v27398_v47 }
 0x5fc   : > { %21709 = vmatprep.mubr.msk.f32.mxu1 %vm4420_vm2, %v27402_v12 }
 0x5ff   : > { %21710 = vmatmul.mubr.msk.f32.gmra.mrb[70].mxu1 %vm4420_vm2, %v27406_v54 }
 0x600   : > { %21712 = vmatprep.mubr.msk.f32.mxu1 %vm4420_vm2, %v27410_v58 }
 0x603   : > { %21713 = vmatmul.mubr.msk.f32.gmra.mrb[72].mxu1 %vm4420_vm2, %v27414_v40 }
 0x604   : > { %21715 = vmatprep.mubr.msk.f32.mxu1 %vm4420_vm2, %v27418_v22 }
 0x607   : > { %21716 = vmatmul.mubr.msk.f32.gmra.mrb[74].mxu1 %vm4420_vm2, %v27422_v21 }
 0x608   : > { %21718 = vmatprep.mubr.msk.f32.mxu1 %vm4420_vm2, %v27426_v32 }
 0x60b   : > { %21719 = vmatmul.mubr.msk.f32.gmra.mrb[76].mxu1 %vm4420_vm2, %v27430_v38 }
 0x60c   : > { %21721 = vmatprep.mubr.msk.f32.mxu1 %vm4420_vm2, %v27434_v1 }
 0x60f   : > { %21722 = vmatmul.mubr.msk.f32.gmra.mrb[78].mxu1 %vm4420_vm2, %v27438_v51 }
 0x610   : > { %21724 = vmatprep.mubr.msk.f32.mxu1 %vm4420_vm2, %v27442_v19 }
 0x613   : > { %21725 = vmatmul.mubr.msk.f32.gmra.mrb[80].mxu1 %vm4420_vm2, %v27446_v61 }
 0x614   : > { %21727 = vmatprep.mubr.msk.f32.mxu1 %vm4420_vm2, %v27450_v30 }
 0x617   : > { %21728 = vmatmul.mubr.msk.f32.gmra.mrb[82].mxu1 %vm4420_vm2, %v27454_v59  ;;  %v27473_v59 = vld [vmem:[#allocation2 + $0x140] sm:$0xff] }
 0x618   : > { %21730 = vmatprep.mubr.msk.f32.mxu1 %vm4420_vm2, %v27458_v20  ;;  %28532 = vst [vmem:[#allocation9_spill] sm:$0xff] %v27473_v59 }
 0x61b   : > { %21731 = vmatmul.mubr.msk.f32.gmra.mrb[84].mxu1 %vm4420_vm2, %v27462_v9  ;;  %v27479_v9 = vld [vmem:[#allocation2 + $0x148] sm:$0xff] }
 0x61c   : > { %21735 = vmatprep.mubr.msk.f32.mxu1 %vm4420_vm2, %v14330_v52  ;;  %28533 = vst [vmem:[#allocation10_spill] sm:$0xff] %v27479_v9  ;;  %v27483_v52 = vld [vmem:[#allocation2 + $0x150] sm:$0xff] }
 0x61d   : > { %28534 = vst [vmem:[#allocation11_spill] sm:$0xff] %v27483_v52 }
 0x61f   : > { %21736 = vmatmul.mubr.msk.f32.vlgmr.msra.gmra.mrb[54].mxu1 %vm4420_vm2, %v14331_v60  ;;  %v27487_v60 = vld [vmem:[#allocation2 + $0x158] sm:$0xff] }
 0x620   : > { %21784 = vmatpush3.msra.mxu1 %v27341_v42  ;;  %21738 = vmatprep.mubr.msk.f32.mxu1 %vm4420_vm2, %v27473_v59  ;;  %28535 = vst [vmem:[#allocation12_spill] sm:$0xff] %v27487_v60  ;;  %v27491_v42 = vld [vmem:[#allocation2 + $0x160] sm:$0xff]  ;;  %v27495_v59 = vld [vmem:[#allocation2 + $0x168] sm:$0xff] }
 0x621   : > { %21833 = vmatprep.subr.mxu1 %v27470_v15  ;;  %28536 = vst [vmem:[#allocation13_spill] sm:$0xff] %v27491_v42  ;;  %28537 = vst [vmem:[#allocation14_spill] sm:$0xff] %v27495_v59 }
 0x623   : > { %21739 = vmatmul.mubr.msk.f32.gmra.mrb[56].mxu1 %vm4420_vm2, %v27479_v9  ;;  %v27499_v9 = vld [vmem:[#allocation2 + $0x170] sm:$0xff] }
 0x624   : > { %21741 = vmatprep.mubr.msk.f32.mxu1 %vm4420_vm2, %v27483_v52  ;;  %28538 = vst [vmem:[#allocation15_spill] sm:$0xff] %v27499_v9  ;;  %v27503_v52 = vld [vmem:[#allocation2 + $0x178] sm:$0xff] }
 0x625   : > { %28539 = vst [vmem:[#allocation16_spill] sm:$0xff] %v27503_v52 }
 0x627   : > { %21742 = vmatmul.mubr.msk.f32.gmra.mrb[58].mxu1 %vm4420_vm2, %v27487_v60  ;;  %v27507_v60 = vld [vmem:[#allocation2 + $0x180] sm:$0xff] }
 0x628   : > { %21744 = vmatprep.mubr.msk.f32.mxu1 %vm4420_vm2, %v27491_v42  ;;  %28540 = vst [vmem:[#allocation17_spill] sm:$0xff] %v27507_v60  ;;  %v27511_v42 = vld [vmem:[#allocation2 + $0x188] sm:$0xff] }
 0x629   : > { %28541 = vst [vmem:[#allocation18_spill] sm:$0xff] %v27511_v42 }
 0x62b   : > { %21745 = vmatmul.mubr.msk.f32.gmra.mrb[60].mxu1 %vm4420_vm2, %v27495_v59  ;;  %v27515_v59 = vld [vmem:[#allocation2 + $0x190] sm:$0xff] }
 0x62c   : > { %21747 = vmatprep.mubr.msk.f32.mxu1 %vm4420_vm2, %v27499_v9  ;;  %28542 = vst [vmem:[#allocation19_spill] sm:$0xff] %v27515_v59  ;;  %v27519_v9 = vld [vmem:[#allocation2 + $0x198] sm:$0xff] }
 0x62d   : > { %28543 = vst [vmem:[#allocation20_spill] sm:$0xff] %v27519_v9 }
 0x62f   : > { %21748 = vmatmul.mubr.msk.f32.gmra.mrb[62].mxu1 %vm4420_vm2, %v27503_v52  ;;  %v27523_v52 = vld [vmem:[#allocation2 + $0x1a0] sm:$0xff] }
 0x630   : > { %21750 = vmatprep.mubr.msk.f32.mxu1 %vm4420_vm2, %v27507_v60  ;;  %28544 = vst [vmem:[#allocation48_spill] sm:$0xff] %v27523_v52  ;;  %v27527_v60 = vld [vmem:[#allocation2 + $0x1a8] sm:$0xff] }
 0x631   : > { %28545 = vst [vmem:[#allocation36_spill] sm:$0xff] %v27527_v60 }
 0x633   : > { %21751 = vmatmul.mubr.msk.f32.gmra.mrb[64].mxu1 %vm4420_vm2, %v27511_v42  ;;  %v27531_v42 = vld [vmem:[#allocation2 + $0x1b0] sm:$0xff] }
 0x634   : > { %21753 = vmatprep.mubr.msk.f32.mxu1 %vm4420_vm2, %v27515_v59  ;;  %28546 = vst [vmem:[#allocation49_spill] sm:$0xff] %v27531_v42  ;;  %v27535_v59 = vld [vmem:[#allocation2 + $0x1b8] sm:$0xff] }
 0x635   : > { %28547 = vst [vmem:[#allocation39_spill] sm:$0xff] %v27535_v59 }
 0x637   : > { %21754 = vmatmul.mubr.msk.f32.gmra.mrb[66].mxu1 %vm4420_vm2, %v27519_v9  ;;  %v27539_v9 = vld [vmem:[#allocation2 + $0x1c0] sm:$0xff] }
 0x638   : > { %21756 = vmatprep.mubr.msk.f32.mxu1 %vm4420_vm2, %v27523_v52  ;;  %28548 = vst [vmem:[#allocation53_spill] sm:$0xff] %v27539_v9  ;;  %v27543_v52 = vld [vmem:[#allocation2 + $0x1c8] sm:$0xff] }
 0x639   : > { %28549 = vst [vmem:[#allocation43_spill] sm:$0xff] %v27543_v52 }
 0x63b   : > { %21757 = vmatmul.mubr.msk.f32.gmra.mrb[68].mxu1 %vm4420_vm2, %v27527_v60  ;;  %v27547_v60 = vld [vmem:[#allocation2 + $0x1d0] sm:$0xff] }
 0x63c   : > { %21759 = vmatprep.mubr.msk.f32.mxu1 %vm4420_vm2, %v27531_v42  ;;  %28550 = vst [vmem:[#allocation55_spill] sm:$0xff] %v27547_v60  ;;  %v27551_v42 = vld [vmem:[#allocation2 + $0x1d8] sm:$0xff] }
 0x63d   : > { %28551 = vst [vmem:[#allocation45_spill] sm:$0xff] %v27551_v42 }
 0x63f   : > { %21760 = vmatmul.mubr.msk.f32.gmra.mrb[70].mxu1 %vm4420_vm2, %v27535_v59  ;;  %v27555_v59 = vld [vmem:[#allocation2 + $0x1e0] sm:$0xff] }
 0x640   : > { %21762 = vmatprep.mubr.msk.f32.mxu1 %vm4420_vm2, %v27539_v9  ;;  %28552 = vst [vmem:[#allocation38_spill] sm:$0xff] %v27555_v59  ;;  %v27559_v9 = vld [vmem:[#allocation2 + $0x1e8] sm:$0xff] }
 0x641   : > { %28553 = vst [vmem:[#allocation3_spill] sm:$0xff] %v27559_v9 }
 0x643   : > { %21763 = vmatmul.mubr.msk.f32.gmra.mrb[72].mxu1 %vm4420_vm2, %v27543_v52  ;;  %v27563_v52 = vld [vmem:[#allocation2 + $0x1f0] sm:$0xff] }
 0x644   : > { %21765 = vmatprep.mubr.msk.f32.mxu1 %vm4420_vm2, %v27547_v60  ;;  %28554 = vst [vmem:[#allocation40_spill] sm:$0xff] %v27563_v52  ;;  %v27567_v60 = vld [vmem:[#allocation2 + $0x1f8] sm:$0xff] }
 0x645   : > { %28555 = vst [vmem:[#allocation42_spill] sm:$0xff] %v27567_v60 }
 0x647   : > { %21766 = vmatmul.mubr.msk.f32.gmra.mrb[74].mxu1 %vm4420_vm2, %v27551_v42  ;;  %v27571_v42 = vld [vmem:[#allocation2 + $0x200] sm:$0xff] }
 0x648   : > { %21768 = vmatprep.mubr.msk.f32.mxu1 %vm4420_vm2, %v27555_v59  ;;  %28556 = vst [vmem:[#allocation21_spill] sm:$0xff] %v27571_v42  ;;  %v27575_v59 = vld [vmem:[#allocation2 + $0x208] sm:$0xff] }
 0x64b   : > { %21769 = vmatmul.mubr.msk.f32.gmra.mrb[76].mxu1 %vm4420_vm2, %v27559_v9  ;;  %v27579_v9 = vld [vmem:[#allocation2 + $0x210] sm:$0xff] }
 0x64c   : > { %21771 = vmatprep.mubr.msk.f32.mxu1 %vm4420_vm2, %v27563_v52  ;;  %28557 = vst [vmem:[#allocation23_spill] sm:$0xff] %v27579_v9  ;;  %v27583_v52 = vld [vmem:[#allocation2 + $0x218] sm:$0xff] }
 0x64f   : > { %21772 = vmatmul.mubr.msk.f32.gmra.mrb[78].mxu1 %vm4420_vm2, %v27567_v60  ;;  %v27587_v60 = vld [vmem:[#allocation2 + $0x220] sm:$0xff] }
 0x650   : > { %21774 = vmatprep.mubr.msk.f32.mxu1 %vm4420_vm2, %v27571_v42  ;;  %v27591_v42 = vld [vmem:[#allocation2 + $0x228] sm:$0xff] }
 0x653   : > { %21775 = vmatmul.mubr.msk.f32.gmra.mrb[80].mxu1 %vm4420_vm2, %v27575_v59 }
 0x654   : > { %21777 = vmatprep.mubr.msk.f32.mxu1 %vm4420_vm2, %v27579_v9  ;;  %v18655_v9 = vld [vmem:[%s27968_s4 + $0x38] sm:$0xff] }
 0x657   : > { %21778 = vmatmul.mubr.msk.f32.gmra.mrb[82].mxu1 %vm4420_vm2, %v27583_v52 }
 0x658   : > { %21780 = vmatprep.mubr.msk.f32.mxu1 %vm4420_vm2, %v27587_v60 }
 0x65b   : > { %21781 = vmatmul.mubr.msk.f32.gmra.mrb[84].mxu1 %vm4420_vm2, %v27591_v42 }
 0x65c   : > { %21785 = vmatprep.mubr.msk.f32.mxu1 %vm4420_vm2, %v27136_v33  ;;  %v27659_v33 = vld [vmem:[#allocation2 + $0x340] sm:$0xff] }
 0x65f   : > { %21786 = vmatmul.mubr.msk.f32.vlgmr.msra.gmra.mrb[54].mxu1 %vm4420_vm2, %v27143_v31  ;;  %v27663_v31 = vld [vmem:[#allocation2 + $0x348] sm:$0xff] }
 0x660   : > { %21834 = vmatpush3.msra.mxu1 %v27470_v15  ;;  %21788 = vmatprep.mubr.msk.f32.mxu1 %vm4420_vm2, %v27151_v5  ;;  %v18688_v5 = vld [vmem:[%s27968_s4 + $0x40] sm:$0xff]  ;;  %v15521_v15 = vld [vmem:[#allocation2 + $0x230] sm:$0xff] }
 0x661   : > { %21883 = vmatprep.subr.mxu1 %v18655_v9 }
 0x663   : > { %21789 = vmatmul.mubr.msk.f32.gmra.mrb[56].mxu1 %vm4420_vm2, %v27157_v18  ;;  %v28558_v18 = vld [vmem:[#allocation7_spill] sm:$0xff] }
 0x664   : > { %21791 = vmatprep.mubr.msk.f32.mxu1 %vm4420_vm2, %v27165_v8 }
 0x667   : > { %21792 = vmatmul.mubr.msk.f32.gmra.mrb[58].mxu1 %vm4420_vm2, %v27171_v49 }
 0x668   : > { %21794 = vmatprep.mubr.msk.f32.mxu1 %vm4420_vm2, %v27179_v56 }
 0x66b   : > { %21795 = vmatmul.mubr.msk.f32.gmra.mrb[60].mxu1 %vm4420_vm2, %v27185_v4 }
 0x66c   : > { %21797 = vmatprep.mubr.msk.f32.mxu1 %vm4420_vm2, %v27193_v3 }
 0x66f   : > { %21798 = vmatmul.mubr.msk.f32.gmra.mrb[62].mxu1 %vm4420_vm2, %v27199_v48 }
 0x670   : > { %21800 = vmatprep.mubr.msk.f32.mxu1 %vm4420_vm2, %v27207_v7 }
 0x673   : > { %21801 = vmatmul.mubr.msk.f32.gmra.mrb[64].mxu1 %vm4420_vm2, %v27213_v37 }
 0x674   : > { %21803 = vmatprep.mubr.msk.f32.mxu1 %vm4420_vm2, %v27221_v50 }
 0x677   : > { %21804 = vmatmul.mubr.msk.f32.gmra.mrb[66].mxu1 %vm4420_vm2, %v27227_v25 }
 0x678   : > { %21806 = vmatprep.mubr.msk.f32.mxu1 %vm4420_vm2, %v27235_v34 }
 0x67b   : > { %21807 = vmatmul.mubr.msk.f32.gmra.mrb[68].mxu1 %vm4420_vm2, %v27241_v36 }
 0x67c   : > { %21809 = vmatprep.mubr.msk.f32.mxu1 %vm4420_vm2, %v27249_v45 }
 0x67f   : > { %21810 = vmatmul.mubr.msk.f32.gmra.mrb[70].mxu1 %vm4420_vm2, %v27255_v23 }
 0x680   : > { %21812 = vmatprep.mubr.msk.f32.mxu1 %vm4420_vm2, %v27263_v6 }
 0x683   : > { %21813 = vmatmul.mubr.msk.f32.gmra.mrb[72].mxu1 %vm4420_vm2, %v27269_v28 }
 0x684   : > { %21815 = vmatprep.mubr.msk.f32.mxu1 %vm4420_vm2, %v27277_v53 }
 0x687   : > { %21816 = vmatmul.mubr.msk.f32.gmra.mrb[74].mxu1 %vm4420_vm2, %v27283_v43 }
 0x688   : > { %21818 = vmatprep.mubr.msk.f32.mxu1 %vm4420_vm2, %v27291_v55 }
 0x68b   : > { %21819 = vmatmul.mubr.msk.f32.gmra.mrb[76].mxu1 %vm4420_vm2, %v27297_v16 }
 0x68c   : > { %21821 = vmatprep.mubr.msk.f32.mxu1 %vm4420_vm2, %v27305_v10 }
 0x68f   : > { %21822 = vmatmul.mubr.msk.f32.gmra.mrb[78].mxu1 %vm4420_vm2, %v27311_v62 }
 0x690   : > { %21824 = vmatprep.mubr.msk.f32.mxu1 %vm4420_vm2, %v27318_v13 }
 0x693   : > { %21825 = vmatmul.mubr.msk.f32.gmra.mrb[80].mxu1 %vm4420_vm2, %v27323_v17 }
 0x694   : > { %21827 = vmatprep.mubr.msk.f32.mxu1 %vm4420_vm2, %v27328_v46 }
 0x697   : > { %21828 = vmatmul.mubr.msk.f32.gmra.mrb[82].mxu1 %vm4420_vm2, %v27333_v24 }
 0x698   : > { %21830 = vmatprep.mubr.msk.f32.mxu1 %vm4420_vm2, %v27659_v33 }
 0x69b   : > { %21831 = vmatmul.mubr.msk.f32.gmra.mrb[84].mxu1 %vm4420_vm2, %v27663_v31 }
 0x69c   : > { %21835 = vmatprep.mubr.msk.f32.mxu1 %vm4420_vm2, %v27344_v11  ;;  %v28559_v11 = vld [vmem:[#allocation8_spill] sm:$0xff] }
 0x69f   : > { %21836 = vmatmul.mubr.msk.f32.vlgmr.msra.gmra.mrb[54].mxu1 %vm4420_vm2, %v27350_v27  ;;  %v15134_v27 = vld [vmem:[#allocation2 + $0x110] sm:$0xff] }
 0x6a0   : > { %21884 = vmatpush3.msra.mxu1 %v18655_v9  ;;  %21838 = vmatprep.mubr.msk.f32.mxu1 %vm4420_vm2, %v27354_v2  ;;  %v15135_v2 = vld [vmem:[#allocation2 + $0x118] sm:$0xff]  ;;  %v28585_v9 = vld [vmem:[#allocation23_spill] sm:$0xff] }
 0x6a1   : > { %21933 = vmatprep.subr.mxu1 %v18688_v5 }
 0x6a3   : > { %21839 = vmatmul.mubr.msk.f32.gmra.mrb[56].mxu1 %vm4420_vm2, %v27358_v0  ;;  %v28560_v0 = vld [vmem:[#allocation9_spill] sm:$0xff] }
 0x6a4   : > { %21841 = vmatprep.mubr.msk.f32.mxu1 %vm4420_vm2, %v27362_v41  ;;  %v28561_v41 = vld [vmem:[#allocation10_spill] sm:$0xff] }
 0x6a7   : > { %21842 = vmatmul.mubr.msk.f32.gmra.mrb[58].mxu1 %vm4420_vm2, %v27366_v29  ;;  %v28562_v29 = vld [vmem:[#allocation11_spill] sm:$0xff] }
 0x6a8   : > { %21844 = vmatprep.mubr.msk.f32.mxu1 %vm4420_vm2, %v27370_v26  ;;  %v28563_v26 = vld [vmem:[#allocation12_spill] sm:$0xff] }
 0x6ab   : > { %21845 = vmatmul.mubr.msk.f32.gmra.mrb[60].mxu1 %vm4420_vm2, %v27374_v39  ;;  %v28564_v39 = vld [vmem:[#allocation13_spill] sm:$0xff] }
 0x6ac   : > { %21847 = vmatprep.mubr.msk.f32.mxu1 %vm4420_vm2, %v27378_v63  ;;  %v28565_v63 = vld [vmem:[#allocation14_spill] sm:$0xff] }
 0x6af   : > { %21848 = vmatmul.mubr.msk.f32.gmra.mrb[62].mxu1 %vm4420_vm2, %v27382_v57  ;;  %v28566_v57 = vld [vmem:[#allocation15_spill] sm:$0xff] }
 0x6b0   : > { %21850 = vmatprep.mubr.msk.f32.mxu1 %vm4420_vm2, %v27386_v14  ;;  %v28567_v14 = vld [vmem:[#allocation16_spill] sm:$0xff] }
 0x6b3   : > { %21851 = vmatmul.mubr.msk.f32.gmra.mrb[64].mxu1 %vm4420_vm2, %v27390_v44  ;;  %v28568_v44 = vld [vmem:[#allocation17_spill] sm:$0xff] }
 0x6b4   : > { %21853 = vmatprep.mubr.msk.f32.mxu1 %vm4420_vm2, %v27394_v35  ;;  %v28569_v35 = vld [vmem:[#allocation18_spill] sm:$0xff] }
 0x6b7   : > { %21854 = vmatmul.mubr.msk.f32.gmra.mrb[66].mxu1 %vm4420_vm2, %v27398_v47  ;;  %v28570_v47 = vld [vmem:[#allocation19_spill] sm:$0xff] }
 0x6b8   : > { %21856 = vmatprep.mubr.msk.f32.mxu1 %vm4420_vm2, %v27402_v12  ;;  %v28571_v12 = vld [vmem:[#allocation20_spill] sm:$0xff] }
 0x6bb   : > { %21857 = vmatmul.mubr.msk.f32.gmra.mrb[68].mxu1 %vm4420_vm2, %v27406_v54  ;;  %v28572_v54 = vld [vmem:[#allocation48_spill] sm:$0xff] }
 0x6bc   : > { %21859 = vmatprep.mubr.msk.f32.mxu1 %vm4420_vm2, %v27410_v58  ;;  %v28573_v58 = vld [vmem:[#allocation36_spill] sm:$0xff] }
 0x6bf   : > { %21860 = vmatmul.mubr.msk.f32.gmra.mrb[70].mxu1 %vm4420_vm2, %v27414_v40  ;;  %v28574_v40 = vld [vmem:[#allocation49_spill] sm:$0xff] }
 0x6c0   : > { %21862 = vmatprep.mubr.msk.f32.mxu1 %vm4420_vm2, %v27418_v22  ;;  %v28575_v22 = vld [vmem:[#allocation39_spill] sm:$0xff] }
 0x6c3   : > { %21863 = vmatmul.mubr.msk.f32.gmra.mrb[72].mxu1 %vm4420_vm2, %v27422_v21  ;;  %v28576_v21 = vld [vmem:[#allocation53_spill] sm:$0xff] }
 0x6c4   : > { %21865 = vmatprep.mubr.msk.f32.mxu1 %vm4420_vm2, %v27426_v32  ;;  %v28577_v32 = vld [vmem:[#allocation43_spill] sm:$0xff] }
 0x6c7   : > { %21866 = vmatmul.mubr.msk.f32.gmra.mrb[74].mxu1 %vm4420_vm2, %v27430_v38  ;;  %v28578_v38 = vld [vmem:[#allocation55_spill] sm:$0xff] }
 0x6c8   : > { %21868 = vmatprep.mubr.msk.f32.mxu1 %vm4420_vm2, %v27434_v1  ;;  %v28579_v1 = vld [vmem:[#allocation45_spill] sm:$0xff] }
 0x6cb   : > { %21869 = vmatmul.mubr.msk.f32.gmra.mrb[76].mxu1 %vm4420_vm2, %v27438_v51  ;;  %v28580_v51 = vld [vmem:[#allocation38_spill] sm:$0xff] }
 0x6cc   : > { %21871 = vmatprep.mubr.msk.f32.mxu1 %vm4420_vm2, %v27442_v19  ;;  %v28581_v19 = vld [vmem:[#allocation3_spill] sm:$0xff] }
 0x6cf   : > { %21872 = vmatmul.mubr.msk.f32.gmra.mrb[78].mxu1 %vm4420_vm2, %v27446_v61  ;;  %v28582_v61 = vld [vmem:[#allocation40_spill] sm:$0xff] }
 0x6d0   : > { %21874 = vmatprep.mubr.msk.f32.mxu1 %vm4420_vm2, %v27450_v30  ;;  %v28583_v30 = vld [vmem:[#allocation42_spill] sm:$0xff] }
 0x6d3   : > { %21875 = vmatmul.mubr.msk.f32.gmra.mrb[80].mxu1 %vm4420_vm2, %v28558_v18  ;;  %v15878_v18 = vld [vmem:[#allocation2 + $0x260] sm:$0xff] }
 0x6d4   : > { %21877 = vmatprep.mubr.msk.f32.mxu1 %vm4420_vm2, %v27458_v20  ;;  %v28584_v20 = vld [vmem:[#allocation21_spill] sm:$0xff] }
 0x6d7   : > { %21878 = vmatmul.mubr.msk.f32.gmra.mrb[82].mxu1 %vm4420_vm2, %v28559_v11 }
 0x6d8   : > { %21880 = vmatprep.mubr.msk.f32.mxu1 %vm4420_vm2, %v15134_v27 }
 0x6db   : > { %21881 = vmatmul.mubr.msk.f32.gmra.mrb[84].mxu1 %vm4420_vm2, %v15135_v2 }
 0x6dc   : > { %21885 = vmatprep.mubr.msk.f32.mxu1 %vm4420_vm2, %v28560_v0 }
 0x6df   : > { %21886 = vmatmul.mubr.msk.f32.vlgmr.msra.gmra.mrb[54].mxu1 %vm4420_vm2, %v28561_v41 }
 0x6e0   : > { %21934 = vmatpush3.msra.mxu1 %v18688_v5  ;;  %21888 = vmatprep.mubr.msk.f32.mxu1 %vm4420_vm2, %v28562_v29  ;;  %v15522_v5 = vld [vmem:[#allocation2 + $0x238] sm:$0xff] }
 0x6e3   : > { %21889 = vmatmul.mubr.msk.f32.gmra.mrb[56].mxu1 %vm4420_vm2, %v28563_v26 }
 0x6e4   : > { %21891 = vmatprep.mubr.msk.f32.mxu1 %vm4420_vm2, %v28564_v39 }
 0x6e7   : > { %21892 = vmatmul.mubr.msk.f32.gmra.mrb[58].mxu1 %vm4420_vm2, %v28565_v63 }
 0x6e8   : > { %21894 = vmatprep.mubr.msk.f32.mxu1 %vm4420_vm2, %v28566_v57 }
 0x6eb   : > { %21895 = vmatmul.mubr.msk.f32.gmra.mrb[60].mxu1 %vm4420_vm2, %v28567_v14 }
 0x6ec   : > { %21897 = vmatprep.mubr.msk.f32.mxu1 %vm4420_vm2, %v28568_v44 }
 0x6ef   : > { %21898 = vmatmul.mubr.msk.f32.gmra.mrb[62].mxu1 %vm4420_vm2, %v28569_v35 }
 0x6f0   : > { %21900 = vmatprep.mubr.msk.f32.mxu1 %vm4420_vm2, %v28570_v47 }
 0x6f3   : > { %21901 = vmatmul.mubr.msk.f32.gmra.mrb[64].mxu1 %vm4420_vm2, %v28571_v12 }
 0x6f4   : > { %21903 = vmatprep.mubr.msk.f32.mxu1 %vm4420_vm2, %v28572_v54 }
 0x6f7   : > { %21904 = vmatmul.mubr.msk.f32.gmra.mrb[66].mxu1 %vm4420_vm2, %v28573_v58 }
 0x6f8   : > { %21906 = vmatprep.mubr.msk.f32.mxu1 %vm4420_vm2, %v28574_v40 }
 0x6fb   : > { %21907 = vmatmul.mubr.msk.f32.gmra.mrb[68].mxu1 %vm4420_vm2, %v28575_v22 }
 0x6fc   : > { %21909 = vmatprep.mubr.msk.f32.mxu1 %vm4420_vm2, %v28576_v21 }
 0x6ff   : > { %21910 = vmatmul.mubr.msk.f32.gmra.mrb[70].mxu1 %vm4420_vm2, %v28577_v32 }
 0x700   : > { %21912 = vmatprep.mubr.msk.f32.mxu1 %vm4420_vm2, %v28578_v38 }
 0x703   : > { %21913 = vmatmul.mubr.msk.f32.gmra.mrb[72].mxu1 %vm4420_vm2, %v28579_v1 }
 0x704   : > { %21915 = vmatprep.mubr.msk.f32.mxu1 %vm4420_vm2, %v28580_v51 }
 0x707   : > { %21916 = vmatmul.mubr.msk.f32.gmra.mrb[74].mxu1 %vm4420_vm2, %v28581_v19 }
 0x708   : > { %21918 = vmatprep.mubr.msk.f32.mxu1 %vm4420_vm2, %v28582_v61 }
 0x70b   : > { %21919 = vmatmul.mubr.msk.f32.gmra.mrb[76].mxu1 %vm4420_vm2, %v28583_v30 }
 0x70c   : > { %21921 = vmatprep.mubr.msk.f32.mxu1 %vm4420_vm2, %v28584_v20 }
 0x70f   : > { %21922 = vmatmul.mubr.msk.f32.gmra.mrb[78].mxu1 %vm4420_vm2, %v27575_v59  ;;  %v15879_v59 = vld [vmem:[#allocation2 + $0x268] sm:$0xff] }
 0x710   : > { %21924 = vmatprep.mubr.msk.f32.mxu1 %vm4420_vm2, %v28585_v9 }
 0x713   : > { %21925 = vmatmul.mubr.msk.f32.gmra.mrb[80].mxu1 %vm4420_vm2, %v27583_v52 }
 0x714   : > { %21927 = vmatprep.mubr.msk.f32.mxu1 %vm4420_vm2, %v27587_v60 }
 0x717   : > { %21928 = vmatmul.mubr.msk.f32.gmra.mrb[82].mxu1 %vm4420_vm2, %v27591_v42 }
 0x718   : > { %21930 = vmatprep.mubr.msk.f32.mxu1 %vm4420_vm2, %v15521_v15 }
 0x71b   : > { %21931 = vmatmul.mubr.msk.f32.gmra.mrb[84].mxu1 %vm4420_vm2, %v15522_v5 }
 0x71c   : > { %21935 = vmatprep.mubr.msk.f32.mxu1 %vm4420_vm2, %v15878_v18 }
 0x71f   : > { %21936 = vmatmul.mubr.msk.f32.vlgmr.msra.gmra.mrb[54].mxu1 %vm4420_vm2, %v15879_v59 }
 0x720   : > { %21938 = vmatprep.mubr.msk.f32.mxu1 %vm4420_vm2, %v27165_v8  ;;  %v15908_v8 = vld [vmem:[#allocation2 + $0x350] sm:$0xff] }
 0x723   : > { %21939 = vmatmul.mubr.msk.f32.gmra.mrb[56].mxu1 %vm4420_vm2, %v27171_v49  ;;  %v15909_v49 = vld [vmem:[#allocation2 + $0x358] sm:$0xff] }
 0x724   : > { %21941 = vmatprep.mubr.msk.f32.mxu1 %vm4420_vm2, %v27179_v56  ;;  %v27857_v56 = vld [vmem:[%s27969_s5] ss:$0 sm:$0xff] }
 0x727   : > { %21942 = vmatmul.mubr.msk.f32.gmra.mrb[58].mxu1 %vm4420_vm2, %v27185_v4 }
 0x728   : > { %21944 = vmatprep.mubr.msk.f32.mxu1 %vm4420_vm2, %v27193_v3 }
 0x72b   : > { %21945 = vmatmul.mubr.msk.f32.gmra.mrb[60].mxu1 %vm4420_vm2, %v27199_v48 }
 0x72c   : > { %21947 = vmatprep.mubr.msk.f32.mxu1 %vm4420_vm2, %v27207_v7 }
 0x72f   : > { %21948 = vmatmul.mubr.msk.f32.gmra.mrb[62].mxu1 %vm4420_vm2, %v27213_v37 }
 0x730   : > { %21950 = vmatprep.mubr.msk.f32.mxu1 %vm4420_vm2, %v27221_v50 }
 0x733   : > { %21951 = vmatmul.mubr.msk.f32.gmra.mrb[64].mxu1 %vm4420_vm2, %v27227_v25 }
 0x734   : > { %21953 = vmatprep.mubr.msk.f32.mxu1 %vm4420_vm2, %v27235_v34 }
 0x737   : > { %21954 = vmatmul.mubr.msk.f32.gmra.mrb[66].mxu1 %vm4420_vm2, %v27241_v36 }
 0x738   : > { %21956 = vmatprep.mubr.msk.f32.mxu1 %vm4420_vm2, %v27249_v45 }
 0x73b   : > { %21957 = vmatmul.mubr.msk.f32.gmra.mrb[68].mxu1 %vm4420_vm2, %v27255_v23 }
 0x73c   : > { %21959 = vmatprep.mubr.msk.f32.mxu1 %vm4420_vm2, %v27263_v6 }
 0x73f   : > { %21960 = vmatmul.mubr.msk.f32.gmra.mrb[70].mxu1 %vm4420_vm2, %v27269_v28 }
 0x740   : > { %21962 = vmatprep.mubr.msk.f32.mxu1 %vm4420_vm2, %v27277_v53 }
 0x743   : > { %21963 = vmatmul.mubr.msk.f32.gmra.mrb[72].mxu1 %vm4420_vm2, %v27283_v43 }
 0x744   : > { %21965 = vmatprep.mubr.msk.f32.mxu1 %vm4420_vm2, %v27291_v55 }
 0x747   : > { %21966 = vmatmul.mubr.msk.f32.gmra.mrb[74].mxu1 %vm4420_vm2, %v27297_v16 }
 0x748   : > { %21968 = vmatprep.mubr.msk.f32.mxu1 %vm4420_vm2, %v27305_v10 }
 0x74b   : > { %21969 = vmatmul.mubr.msk.f32.gmra.mrb[76].mxu1 %vm4420_vm2, %v27311_v62 }
 0x74c   : > { %21971 = vmatprep.mubr.msk.f32.mxu1 %vm4420_vm2, %v27318_v13 }
 0x74f   : > { %21972 = vmatmul.mubr.msk.f32.gmra.mrb[78].mxu1 %vm4420_vm2, %v27323_v17 }
 0x750   : > { %21974 = vmatprep.mubr.msk.f32.mxu1 %vm4420_vm2, %v27328_v46 }
 0x753   : > { %21975 = vmatmul.mubr.msk.f32.gmra.mrb[80].mxu1 %vm4420_vm2, %v27333_v24 }
 0x754   : > { %21977 = vmatprep.mubr.msk.f32.mxu1 %vm4420_vm2, %v27659_v33 }
 0x757   : > { %21978 = vmatmul.mubr.msk.f32.gmra.mrb[82].mxu1 %vm4420_vm2, %v27663_v31 }
 0x758   : > { %21980 = vmatprep.mubr.msk.f32.mxu1 %vm4420_vm2, %v15908_v8 }
 0x75b   : > { %21981 = vmatmul.mubr.msk.f32.gmra.mrb[84].mxu1 %vm4420_vm2, %v15909_v49 }
 0x7f2   : > { %v21937_v4 = vpop.f32.mrb[54].mxu1 }
 0x7f3   : > { %v16273_v3 = vadd.f32 %v21937_v4, %v27857_v56  ;;  %v16074_v48 = vpop.f32.mrb[55].mxu1 }
 0x7f4   : > { %v16272_v7 = vadd.f32 %v27857_v56, %v16074_v48 }
 0x7f5   : > { %v16305_v37 = vmul.f32 0.02, %v16273_v3 }
 0x7f6   : > { %v16304_v50 = vmul.f32 0.02, %v16272_v7  ;;  %v21940_v25 = vpop.f32.mrb[56].mxu1 }
 0x7f7   : > { %v16337_v34 = vmax.f32 %v16273_v3, %v16305_v37  ;;  %v16275_v36 = vadd.f32 %v21940_v25, %v27857_v56  ;;  %v16084_v45 = vpop.f32.mrb[57].mxu1 }
 0x7f8   : > { %v16336_v23 = vmax.f32 %v16272_v7, %v16304_v50  ;;  %v16274_v6 = vadd.f32 %v27857_v56, %v16084_v45 }
 0x7f9   : > { %16369 = vst.msk [vmem:[%s27865_s30 + $0x8] sm:$0xff] %vm4420_vm2, %v16337_v34  ;;  %v16307_v28 = vmul.f32 0.02, %v16275_v36 }
 0x7fa   : > { %16368 = vst.msk [vmem:[%s27865_s30] sm:$0xff] %vm4420_vm2, %v16336_v23  ;;  %v16306_v53 = vmul.f32 0.02, %v16274_v6  ;;  %v21943_v43 = vpop.f32.mrb[58].mxu1 }
 0x7fb   : > { %v16339_v55 = vmax.f32 %v16275_v36, %v16307_v28  ;;  %v16277_v16 = vadd.f32 %v21943_v43, %v27857_v56  ;;  %v16094_v10 = vpop.f32.mrb[59].mxu1 }
 0x7fc   : > { %v16338_v62 = vmax.f32 %v16274_v6, %v16306_v53  ;;  %v16276_v13 = vadd.f32 %v27857_v56, %v16094_v10 }
 0x7fd   : > { %16371 = vst.msk [vmem:[%s27865_s30 + $0x18] sm:$0xff] %vm4420_vm2, %v16339_v55  ;;  %v16309_v17 = vmul.f32 0.02, %v16277_v16 }
 0x7fe   : > { %16370 = vst.msk [vmem:[%s27865_s30 + $0x10] sm:$0xff] %vm4420_vm2, %v16338_v62  ;;  %v16308_v46 = vmul.f32 0.02, %v16276_v13  ;;  %v21946_v24 = vpop.f32.mrb[60].mxu1 }
 0x7ff   : > { %v16341_v52 = vmax.f32 %v16277_v16, %v16309_v17  ;;  %v16279_v60 = vadd.f32 %v21946_v24, %v27857_v56  ;;  %v16104_v42 = vpop.f32.mrb[61].mxu1 }
 0x800   : > { %v16340_v33 = vmax.f32 %v16276_v13, %v16308_v46  ;;  %v16278_v31 = vadd.f32 %v27857_v56, %v16104_v42 }
 0x801   : > { %16373 = vst.msk [vmem:[%s27865_s30 + $0x28] sm:$0xff] %vm4420_vm2, %v16341_v52  ;;  %v16311_v11 = vmul.f32 0.02, %v16279_v60 }
 0x802   : > { %16372 = vst.msk [vmem:[%s27865_s30 + $0x20] sm:$0xff] %vm4420_vm2, %v16340_v33  ;;  %v16310_v27 = vmul.f32 0.02, %v16278_v31  ;;  %v21949_v2 = vpop.f32.mrb[62].mxu1 }
 0x803   : > { %v16343_v0 = vmax.f32 %v16279_v60, %v16311_v11  ;;  %v16281_v41 = vadd.f32 %v21949_v2, %v27857_v56  ;;  %v16114_v29 = vpop.f32.mrb[63].mxu1 }
 0x804   : > { %v16342_v26 = vmax.f32 %v16278_v31, %v16310_v27  ;;  %v16280_v39 = vadd.f32 %v27857_v56, %v16114_v29 }
 0x805   : > { %16375 = vst.msk [vmem:[%s27865_s30 + $0x38] sm:$0xff] %vm4420_vm2, %v16343_v0  ;;  %v16313_v63 = vmul.f32 0.02, %v16281_v41 }
 0x806   : > { %16374 = vst.msk [vmem:[%s27865_s30 + $0x30] sm:$0xff] %vm4420_vm2, %v16342_v26  ;;  %v16312_v57 = vmul.f32 0.02, %v16280_v39  ;;  %v21952_v14 = vpop.f32.mrb[64].mxu1 }
 0x807   : > { %v16345_v44 = vmax.f32 %v16281_v41, %v16313_v63  ;;  %v16283_v35 = vadd.f32 %v21952_v14, %v27857_v56  ;;  %v16124_v47 = vpop.f32.mrb[65].mxu1 }
 0x808   : > { %v16344_v12 = vmax.f32 %v16280_v39, %v16312_v57  ;;  %v16282_v54 = vadd.f32 %v27857_v56, %v16124_v47 }
 0x809   : > { %16377 = vst.msk [vmem:[%s27865_s30 + $0x48] sm:$0xff] %vm4420_vm2, %v16345_v44  ;;  %v16315_v58 = vmul.f32 0.02, %v16283_v35 }
 0x80a   : > { %16376 = vst.msk [vmem:[%s27865_s30 + $0x40] sm:$0xff] %vm4420_vm2, %v16344_v12  ;;  %v16314_v40 = vmul.f32 0.02, %v16282_v54  ;;  %v21955_v22 = vpop.f32.mrb[66].mxu1 }
 0x80b   : > { %v16347_v21 = vmax.f32 %v16283_v35, %v16315_v58  ;;  %v16285_v32 = vadd.f32 %v21955_v22, %v27857_v56  ;;  %v16134_v38 = vpop.f32.mrb[67].mxu1 }
 0x80c   : > { %v16346_v1 = vmax.f32 %v16282_v54, %v16314_v40  ;;  %v16284_v51 = vadd.f32 %v27857_v56, %v16134_v38 }
 0x80d   : > { %16379 = vst.msk [vmem:[%s27865_s30 + $0x58] sm:$0xff] %vm4420_vm2, %v16347_v21  ;;  %v16317_v19 = vmul.f32 0.02, %v16285_v32 }
 0x80e   : > { %16378 = vst.msk [vmem:[%s27865_s30 + $0x50] sm:$0xff] %vm4420_vm2, %v16346_v1  ;;  %v16316_v61 = vmul.f32 0.02, %v16284_v51  ;;  %v21958_v30 = vpop.f32.mrb[68].mxu1 }
 0x80f   : > { %v16349_v20 = vmax.f32 %v16285_v32, %v16317_v19  ;;  %v16287_v9 = vadd.f32 %v21958_v30, %v27857_v56  ;;  %v16144_v15 = vpop.f32.mrb[69].mxu1 }
 0x810   : > { %v16348_v5 = vmax.f32 %v16284_v51, %v16316_v61  ;;  %v16286_v18 = vadd.f32 %v27857_v56, %v16144_v15 }
 0x811   : > { %16381 = vst.msk [vmem:[%s27865_s30 + $0x68] sm:$0xff] %vm4420_vm2, %v16349_v20  ;;  %v16319_v59 = vmul.f32 0.02, %v16287_v9 }
 0x812   : > { %16380 = vst.msk [vmem:[%s27865_s30 + $0x60] sm:$0xff] %vm4420_vm2, %v16348_v5  ;;  %v16318_v8 = vmul.f32 0.02, %v16286_v18  ;;  %v21961_v49 = vpop.f32.mrb[70].mxu1 }
 0x813   : > { %v16351_v4 = vmax.f32 %v16287_v9, %v16319_v59  ;;  %v16289_v3 = vadd.f32 %v21961_v49, %v27857_v56  ;;  %v16154_v48 = vpop.f32.mrb[71].mxu1 }
 0x814   : > { %v16350_v7 = vmax.f32 %v16286_v18, %v16318_v8  ;;  %v16288_v37 = vadd.f32 %v27857_v56, %v16154_v48 }
 0x815   : > { %16383 = vst.msk [vmem:[%s27865_s30 + $0x78] sm:$0xff] %vm4420_vm2, %v16351_v4  ;;  %v16321_v50 = vmul.f32 0.02, %v16289_v3 }
 0x816   : > { %16382 = vst.msk [vmem:[%s27865_s30 + $0x70] sm:$0xff] %vm4420_vm2, %v16350_v7  ;;  %v16320_v25 = vmul.f32 0.02, %v16288_v37  ;;  %v21964_v34 = vpop.f32.mrb[72].mxu1 }
 0x817   : > { %v16353_v36 = vmax.f32 %v16289_v3, %v16321_v50  ;;  %v16291_v45 = vadd.f32 %v21964_v34, %v27857_v56  ;;  %v16164_v23 = vpop.f32.mrb[73].mxu1 }
 0x818   : > { %v16352_v6 = vmax.f32 %v16288_v37, %v16320_v25  ;;  %v16290_v28 = vadd.f32 %v27857_v56, %v16164_v23 }
 0x819   : > { %16385 = vst.msk [vmem:[%s27865_s30 + $0x88] sm:$0xff] %vm4420_vm2, %v16353_v36  ;;  %v16323_v53 = vmul.f32 0.02, %v16291_v45 }
 0x81a   : > { %16384 = vst.msk [vmem:[%s27865_s30 + $0x80] sm:$0xff] %vm4420_vm2, %v16352_v6  ;;  %v16322_v43 = vmul.f32 0.02, %v16290_v28  ;;  %v21967_v55 = vpop.f32.mrb[74].mxu1 }
 0x81b   : > { %v16355_v16 = vmax.f32 %v16291_v45, %v16323_v53  ;;  %v16293_v10 = vadd.f32 %v21967_v55, %v27857_v56  ;;  %v16174_v62 = vpop.f32.mrb[75].mxu1 }
 0x81c   : > { %v16354_v13 = vmax.f32 %v16290_v28, %v16322_v43  ;;  %v16292_v17 = vadd.f32 %v27857_v56, %v16174_v62 }
 0x81d   : > { %16387 = vst.msk [vmem:[%s27865_s30 + $0x98] sm:$0xff] %vm4420_vm2, %v16355_v16  ;;  %v16325_v46 = vmul.f32 0.02, %v16293_v10 }
 0x81e   : > { %16386 = vst.msk [vmem:[%s27865_s30 + $0x90] sm:$0xff] %vm4420_vm2, %v16354_v13  ;;  %v16324_v24 = vmul.f32 0.02, %v16292_v17  ;;  %v21970_v52 = vpop.f32.mrb[76].mxu1 }
 0x81f   : > { %v16357_v60 = vmax.f32 %v16293_v10, %v16325_v46  ;;  %v16295_v42 = vadd.f32 %v21970_v52, %v27857_v56  ;;  %v16184_v33 = vpop.f32.mrb[77].mxu1 }
 0x820   : > { %v16356_v31 = vmax.f32 %v16292_v17, %v16324_v24  ;;  %v16294_v11 = vadd.f32 %v27857_v56, %v16184_v33 }
 0x821   : > { %16389 = vst.msk [vmem:[%s27865_s30 + $0xa8] sm:$0xff] %vm4420_vm2, %v16357_v60  ;;  %v16327_v27 = vmul.f32 0.02, %v16295_v42 }
 0x822   : > { %16388 = vst.msk [vmem:[%s27865_s30 + $0xa0] sm:$0xff] %vm4420_vm2, %v16356_v31  ;;  %v16326_v2 = vmul.f32 0.02, %v16294_v11  ;;  %v21973_v0 = vpop.f32.mrb[78].mxu1 }
 0x823   : > { %v16359_v41 = vmax.f32 %v16295_v42, %v16327_v27  ;;  %v16297_v29 = vadd.f32 %v21973_v0, %v27857_v56  ;;  %v16194_v26 = vpop.f32.mrb[79].mxu1 }
 0x824   : > { %v16358_v39 = vmax.f32 %v16294_v11, %v16326_v2  ;;  %v16296_v63 = vadd.f32 %v27857_v56, %v16194_v26 }
 0x825   : > { %16391 = vst.msk [vmem:[%s27865_s30 + $0xb8] sm:$0xff] %vm4420_vm2, %v16359_v41  ;;  %v16329_v57 = vmul.f32 0.02, %v16297_v29 }
 0x826   : > { %16390 = vst.msk [vmem:[%s27865_s30 + $0xb0] sm:$0xff] %vm4420_vm2, %v16358_v39  ;;  %v16328_v14 = vmul.f32 0.02, %v16296_v63  ;;  %v21976_v44 = vpop.f32.mrb[80].mxu1 }
 0x827   : > { %v16361_v35 = vmax.f32 %v16297_v29, %v16329_v57  ;;  %v16299_v47 = vadd.f32 %v21976_v44, %v27857_v56  ;;  %v16204_v12 = vpop.f32.mrb[81].mxu1 }
 0x828   : > { %v16360_v54 = vmax.f32 %v16296_v63, %v16328_v14  ;;  %v16298_v58 = vadd.f32 %v27857_v56, %v16204_v12 }
 0x829   : > { %16393 = vst.msk [vmem:[%s27865_s30 + $0xc8] sm:$0xff] %vm4420_vm2, %v16361_v35  ;;  %v16331_v40 = vmul.f32 0.02, %v16299_v47 }
 0x82a   : > { %16392 = vst.msk [vmem:[%s27865_s30 + $0xc0] sm:$0xff] %vm4420_vm2, %v16360_v54  ;;  %v16330_v22 = vmul.f32 0.02, %v16298_v58  ;;  %v21979_v21 = vpop.f32.mrb[82].mxu1 }
 0x82b   : > { %v16363_v32 = vmax.f32 %v16299_v47, %v16331_v40  ;;  %v16301_v38 = vadd.f32 %v21979_v21, %v27857_v56  ;;  %v16214_v1 = vpop.f32.mrb[83].mxu1 }
 0x82c   : > { %v16362_v51 = vmax.f32 %v16298_v58, %v16330_v22  ;;  %v16300_v19 = vadd.f32 %v27857_v56, %v16214_v1 }
 0x82d   : > { %16395 = vst.msk [vmem:[%s27865_s30 + $0xd8] sm:$0xff] %vm4420_vm2, %v16363_v32  ;;  %v16333_v61 = vmul.f32 0.02, %v16301_v38 }
 0x82e   : > { %16394 = vst.msk [vmem:[%s27865_s30 + $0xd0] sm:$0xff] %vm4420_vm2, %v16362_v51  ;;  %v16332_v30 = vmul.f32 0.02, %v16300_v19  ;;  %v21982_v20 = vpop.f32.mrb[84].mxu1 }
 0x82f   : > { %v16365_v9 = vmax.f32 %v16301_v38, %v16333_v61  ;;  %v16303_v15 = vadd.f32 %v21982_v20, %v27857_v56  ;;  %v16224_v5 = vpop.f32.mrb[85].mxu1 }
 0x830   : > { %v16364_v18 = vmax.f32 %v16300_v19, %v16332_v30  ;;  %v16302_v59 = vadd.f32 %v27857_v56, %v16224_v5 }
 0x831   : > { %16397 = vst.msk [vmem:[%s27865_s30 + $0xe8] sm:$0xff] %vm4420_vm2, %v16365_v9  ;;  %v16335_v8 = vmul.f32 0.02, %v16303_v15 }
 0x832   : > { %16396 = vst.msk [vmem:[%s27865_s30 + $0xe0] sm:$0xff] %vm4420_vm2, %v16364_v18  ;;  %v16334_v49 = vmul.f32 0.02, %v16302_v59 }
 0x833   : > { %v16367_v4 = vmax.f32 %v16303_v15, %v16335_v8 }
 0x834   : > { %v16366_v3 = vmax.f32 %v16302_v59, %v16334_v49 }
 0x835   : > { %16399 = vst.msk [vmem:[%s27865_s30 + $0xf8] sm:$0xff] %vm4420_vm2, %v16367_v4 }
 0x836   : > { %16398 = vst.msk [vmem:[%s27865_s30 + $0xf0] sm:$0xff] %vm4420_vm2, %v16366_v3 }
 0x837 PF: > { %s16_s21 = sadd.s32 1, %s23128_s21  }
 0x838   : > { %p13_p4 = scmp.ge.s32.totalorder %s16_s21, 4  }
 0x83a   :  { %15 = sbr.rel (!%p13_p4) target bundleno = 1 (0x1), region = 98 }

</bundles_post_ra>
